<compile_context>
chip_gen: v5e
topology: v5e:2x2
jax: 0.10.0
libtpu: 0.0.40
codegen_flags: <defaults>
</compile_context>

<pallas_src>
import functools

import jax
import jax.numpy as jnp
from jax.experimental import pallas as pl
from jax.experimental.pallas import tpu as pltpu

NEG_SLOPE = 0.01                 # PyTorch LeakyReLU default
COMPUTE_DTYPE = jnp.bfloat16     # MXU operand dtype for the UNet convs
_CONV_TILE_CAP = 8192            # lane cap for a conv output tile
_EW_LANE_CAP = 16384             # lane cap for elementwise / reduction tiles


# ----------------------------------------------------------------------------
# small helpers
# ----------------------------------------------------------------------------
def _round_up(x, m):
    return (x + m - 1) // m * m


def _cdiv(a, b):
    return (a + b - 1) // b


def _vmem_limit_bytes():
    try:
        cap = int(pltpu.get_tpu_info().vmem_capacity_bytes)
        return int(min(cap // 2, 64 * 1024 * 1024))
    except Exception:
        return 48 * 1024 * 1024


_VMEM_LIMIT = _vmem_limit_bytes()


def _cparams(dimension_semantics):
    return pltpu.CompilerParams(dimension_semantics=dimension_semantics,
                                vmem_limit_bytes=_VMEM_LIMIT)


def _lane_tile(P, cap=_EW_LANE_CAP):
    """Largest multiple-of-128 divisor of P that is <= cap, else P itself."""
    if P <= cap:
        return P
    best = None
    t = 128
    while t <= cap:
        if P % t == 0:
            best = t
        t += 128
    return best if best is not None else P


# ----------------------------------------------------------------------------
# complex helpers / FFTs (XLA)
# ----------------------------------------------------------------------------
def _ri2c(r, i):
    return jax.lax.complex(r, i)


def _split_flat(x):
    """complex (..., Nu, Nf) -> two f32 arrays with the last two dims merged."""
    shp = x.shape[:-2] + (x.shape[-2] * x.shape[-1],)
    return (jnp.real(x).astype(jnp.float32).reshape(shp),
            jnp.imag(x).astype(jnp.float32).reshape(shp))


def fft2c(x):
    return jnp.fft.fftshift(
        jnp.fft.fftn(jnp.fft.ifftshift(x, axes=(-2, -1)), axes=(-2, -1),
                     norm="ortho"), axes=(-2, -1))


def ifft2c(x):
    return jnp.fft.fftshift(
        jnp.fft.ifftn(jnp.fft.ifftshift(x, axes=(-2, -1)), axes=(-2, -1),
                      norm="ortho"), axes=(-2, -1))


# ----------------------------------------------------------------------------
# Pallas kernels: encoding operator pieces (planar real/imag, lane-dense P)
# ----------------------------------------------------------------------------
def _apply_c_kernel(cr, ci, xr, xi, or_, oi_):
    # csm block (1,1,1,TP); x block (1,1,Nt,TP); out block (1,1,1,Nt,TP).
    c_r = cr[0, 0]                       # (1, TP)
    c_i = ci[0, 0]
    x_r = xr[0, 0]                       # (Nt, TP)
    x_i = xi[0, 0]
    or_[0, 0, 0] = c_r * x_r - c_i * x_i
    oi_[0, 0, 0] = c_r * x_i + c_i * x_r


def apply_C_planar(xr, xi, cr, ci):
    """xr/xi: (Nb,Nz,Nt,P) f32; cr/ci: (Nb,Nc,Nz,P) f32 -> coil images planar."""
    Nb, Nz, Nt, P = xr.shape
    Nc = cr.shape[1]
    TP = _lane_tile(P)
    nP = P // TP
    c_spec = pl.BlockSpec((1, 1, 1, TP), lambda b, z, p, c: (b, c, z, p))
    x_spec = pl.BlockSpec((1, 1, Nt, TP), lambda b, z, p, c: (b, z, 0, p))
    o_spec = pl.BlockSpec((1, 1, 1, Nt, TP), lambda b, z, p, c: (b, c, z, 0, p))
    outr, outi = pl.pallas_call(
        _apply_c_kernel,
        grid=(Nb, Nz, nP, Nc),
        in_specs=[c_spec, c_spec, x_spec, x_spec],
        out_specs=(o_spec, o_spec),
        out_shape=(jax.ShapeDtypeStruct((Nb, Nc, Nz, Nt, P), jnp.float32),) * 2,
        compiler_params=_cparams(("parallel",) * 4),
    )(cr, ci, xr, xi)
    return outr, outi


def _coil_combine_kernel(cr, ci, xr, xi, or_, oi_):
    # sum_c conj(csm)*x ; coil is the last (arbitrary) grid axis, output block
    # is the resident f32 accumulator.
    c_idx = pl.program_id(3)

    @pl.when(c_idx == 0)
    def _():
        or_[...] = jnp.zeros_like(or_)
        oi_[...] = jnp.zeros_like(oi_)

    c_r = cr[0, 0]                       # (1, TP)
    c_i = ci[0, 0]
    x_r = xr[0, 0, 0]                    # (Nt, TP)
    x_i = xi[0, 0, 0]
    or_[0, 0] += c_r * x_r + c_i * x_i
    oi_[0, 0] += c_r * x_i - c_i * x_r


def coil_combine(xr, xi, cr, ci):
    """xr/xi: (Nb,Nc,Nz,Nt,P); cr/ci: (Nb,Nc,Nz,P) -> (Nb,Nz,Nt,P) planar."""
    Nb, Nc, Nz, Nt, P = xr.shape
    TP = _lane_tile(P)
    nP = P // TP
    c_spec = pl.BlockSpec((1, 1, 1, TP), lambda b, z, p, c: (b, c, z, p))
    x_spec = pl.BlockSpec((1, 1, 1, Nt, TP), lambda b, z, p, c: (b, c, z, 0, p))
    o_spec = pl.BlockSpec((1, 1, Nt, TP), lambda b, z, p, c: (b, z, 0, p))
    outr, outi = pl.pallas_call(
        _coil_combine_kernel,
        grid=(Nb, Nz, nP, Nc),
        in_specs=[c_spec, c_spec, x_spec, x_spec],
        out_specs=(o_spec, o_spec),
        out_shape=(jax.ShapeDtypeStruct((Nb, Nz, Nt, P), jnp.float32),) * 2,
        compiler_params=_cparams(("parallel", "parallel", "parallel", "arbitrary")),
    )(cr, ci, xr, xi)
    return outr, outi


def _rss_kernel(xr, xi, o_ref):
    c_idx = pl.program_id(3)

    @pl.when(c_idx == 0)
    def _():
        o_ref[...] = jnp.zeros_like(o_ref)

    r = xr[0, 0, 0]                      # (Nt, TP)
    i = xi[0, 0, 0]
    o_ref[0, 0] += r * r + i * i

    @pl.when(c_idx == pl.num_programs(3) - 1)
    def _():
        o_ref[0, 0] = jnp.sqrt(o_ref[0, 0])


def apply_RSS(k):
    """k: (Nb,Nc,Nz,Nt,Nu,Nf) complex -> RSS image (Nb,Nz,Nt,Nu,Nf) f32."""
    Nb, Nc, Nz, Nt, Nu, Nf = k.shape
    P = Nu * Nf
    xr, xi = _split_flat(ifft2c(k))      # (Nb,Nc,Nz,Nt,P)
    TP = _lane_tile(P)
    nP = P // TP
    x_spec = pl.BlockSpec((1, 1, 1, Nt, TP), lambda b, z, p, c: (b, c, z, 0, p))
    o_spec = pl.BlockSpec((1, 1, Nt, TP), lambda b, z, p, c: (b, z, 0, p))
    out = pl.pallas_call(
        _rss_kernel,
        grid=(Nb, Nz, nP, Nc),
        in_specs=[x_spec, x_spec],
        out_specs=o_spec,
        out_shape=jax.ShapeDtypeStruct((Nb, Nz, Nt, P), jnp.float32),
        compiler_params=_cparams(("parallel", "parallel", "parallel", "arbitrary")),
    )(xr, xi)
    return out.reshape(Nb, Nz, Nt, Nu, Nf)


def _csm_norm_kernel(cr, ci, or_, oi_):
    r = cr[0, :, 0]                      # (Nc, TP)
    i = ci[0, :, 0]
    inv = jax.lax.rsqrt(jnp.sum(r * r + i * i, axis=0, keepdims=True) + 1e-12)
    or_[0, :, 0] = r * inv
    oi_[0, :, 0] = i * inv


def normalize_csm(cr, ci):
    """cr/ci: (Nb,Nc,Nz,P) f32, RSS-normalized over coils (rsqrt on EUP)."""
    Nb, Nc, Nz, P = cr.shape
    TP = _lane_tile(P)
    nP = P // TP
    spec = pl.BlockSpec((1, Nc, 1, TP), lambda b, z, p: (b, 0, z, p))
    outr, outi = pl.pallas_call(
        _csm_norm_kernel,
        grid=(Nb, Nz, nP),
        in_specs=[spec, spec],
        out_specs=(spec, spec),
        out_shape=(jax.ShapeDtypeStruct((Nb, Nc, Nz, P), jnp.float32),) * 2,
        compiler_params=_cparams(("parallel", "parallel", "parallel")),
    )(cr, ci)
    return outr, outi


def _dc_kernel(eta_ref, kr, ki, kmr, kmi, m, axr, axi, or_, oi_):
    # out = k - eta*mask*(k - k_measured) + A(xnn); eta is an SMEM scalar.
    e = eta_ref[0]
    em = e * m[0, 0]                     # (Nt, TP)
    k_r = kr[0, 0, 0]
    k_i = ki[0, 0, 0]
    or_[0, 0, 0] = k_r - em * (k_r - kmr[0, 0, 0]) + axr[0, 0, 0]
    oi_[0, 0, 0] = k_i - em * (k_i - kmi[0, 0, 0]) + axi[0, 0, 0]


def dc_update(kr, ki, kmr, kmi, mask_f, eta, axr, axi):
    """All k-like args (Nb,Nc,Nz,Nt,P) f32; mask (Nb,Nz,Nt,P); eta (1,) f32."""
    Nb, Nc, Nz, Nt, P = kr.shape
    TP = _lane_tile(P)
    nP = P // TP
    k_spec = pl.BlockSpec((1, 1, 1, Nt, TP), lambda b, z, p, c: (b, c, z, 0, p))
    m_spec = pl.BlockSpec((1, 1, Nt, TP), lambda b, z, p, c: (b, z, 0, p))
    eta_spec = pl.BlockSpec(memory_space=pltpu.MemorySpace.SMEM)
    outr, outi = pl.pallas_call(
        _dc_kernel,
        grid=(Nb, Nz, nP, Nc),
        in_specs=[eta_spec, k_spec, k_spec, k_spec, k_spec, m_spec, k_spec, k_spec],
        out_specs=(k_spec, k_spec),
        out_shape=(jax.ShapeDtypeStruct(kr.shape, jnp.float32),) * 2,
        compiler_params=_cparams(("parallel",) * 4),
    )(eta, kr, ki, kmr, kmi, mask_f, axr, axi)
    return outr, outi


# ----------------------------------------------------------------------------
# Tap-stacked, halo-tiled "shift-conv" kernel.
# ----------------------------------------------------------------------------
def _shift_conv_kernel(x_ref, h_ref, w_ref, b_ref, o_ref, win_ref, xs_ref, *,
                       offsets, tile_l, act):
    # x_ref: (1, Cin, tile_l) current tile ; h_ref: (1, Cin, halo) right halo
    # w_ref: (Cout, ntap*Cin) resident tap-stacked weights ; b_ref: (Cout, 1)
    # o_ref: (1, Cout, tile_l) ; win_ref: (Cin, tile_l + halo) scratch ;
    # xs_ref: (ntap*Cin, tile_l) scratch (stacked contraction operand).
    cin = x_ref.shape[1]
    if len(offsets) == 1 and offsets[0] == 0:
        xs = x_ref[0]
    else:
        win_ref[:, :tile_l] = x_ref[0]
        win_ref[:, tile_l:] = h_ref[0]
        for i, off in enumerate(offsets):
            xs_ref[i * cin:(i + 1) * cin, :] = win_ref[:, off:off + tile_l]
        xs = xs_ref[...]
    acc = jnp.dot(w_ref[...], xs, preferred_element_type=jnp.float32)
    acc = acc + b_ref[...]
    if act:
        acc = jnp.where(acc >= 0, acc, NEG_SLOPE * acc)
    o_ref[0] = acc.astype(o_ref.dtype)


def _conv_core(x_flat, w2, b, offsets, act, out_dtype):
    """x_flat: (N, Cin, Lraw); w2: (Cout, ntap*Cin); b: (Cout,).

    For every flattened position o, out[:, :, o] = sum_tap w2_tap @ x[:, o+off].
    Reads past the data land in the zero halo pad; callers crop garbage."""
    N, Cin, Lraw = x_flat.shape
    Cout, Kstack = w2.shape
    max_off = int(max(offsets))
    halo = max(128, _round_up(max_off, 128))
    cap = max(halo, _CONV_TILE_CAP)
    tile_l = min((cap // halo) * halo, _round_up(Lraw, halo))
    n_tiles = _cdiv(Lraw, tile_l)
    l_padded = n_tiles * tile_l + halo
    xp = jnp.pad(x_flat, ((0, 0), (0, 0), (0, l_padded - Lraw)))
    ratio = tile_l // halo
    b2 = b.reshape(Cout, 1).astype(jnp.float32)
    kern = functools.partial(_shift_conv_kernel,
                             offsets=tuple(int(o) for o in offsets),
                             tile_l=tile_l, act=act)
    out = pl.pallas_call(
        kern,
        grid=(N, n_tiles),
        in_specs=[
            pl.BlockSpec((1, Cin, tile_l), lambda n, l: (n, 0, l)),
            pl.BlockSpec((1, Cin, halo), lambda n, l: (n, 0, (l + 1) * ratio)),
            pl.BlockSpec((Cout, Kstack), lambda n, l: (0, 0)),    # resident
            pl.BlockSpec((Cout, 1), lambda n, l: (0, 0)),         # resident
        ],
        out_specs=pl.BlockSpec((1, Cout, tile_l), lambda n, l: (n, 0, l)),
        out_shape=jax.ShapeDtypeStruct((N, Cout, n_tiles * tile_l), out_dtype),
        scratch_shapes=[pltpu.VMEM((Cin, tile_l + halo), xp.dtype),
                        pltpu.VMEM((Kstack, tile_l), xp.dtype)],
        compiler_params=_cparams(("parallel", "parallel")),
    )(xp, xp, w2, b2)
    return out


def conv_spatial(x, w, b, act=True, out_dtype=None):
    """'same' kh x kw conv over the last two dims of x: (N, Cin, *lead, H, W)."""
    N, Cin = x.shape[:2]
    lead = tuple(x.shape[2:-2])
    H, W = x.shape[-2:]
    Cout, _, kh, kw = w.shape
    out_dtype = out_dtype if out_dtype is not None else COMPUTE_DTYPE
    xc = x.astype(COMPUTE_DTYPE)
    w2 = jnp.transpose(w, (0, 2, 3, 1)).reshape(Cout, kh * kw * Cin)
    w2 = w2.astype(COMPUTE_DTYPE)
    G = 1
    for d in lead:
        G *= d
    ph, pw = kh // 2, kw // 2
    if kh == 1 and kw == 1:
        Hp, Wp = H, W
        x_flat = xc.reshape(N, Cin, G * H * W)
        offsets = (0,)
    else:
        pad_cfg = ((0, 0), (0, 0)) + ((0, 0),) * len(lead) + ((ph, ph), (pw, pw))
        Hp, Wp = H + 2 * ph, W + 2 * pw
        x_flat = jnp.pad(xc, pad_cfg).reshape(N, Cin, G * Hp * Wp)
        offsets = tuple(dy * Wp + dx for dy in range(kh) for dx in range(kw))
    out = _conv_core(x_flat, w2, b, offsets, act, out_dtype)
    out = out[:, :, :G * Hp * Wp].reshape((N, Cout) + lead + (Hp, Wp))
    if kh == 1 and kw == 1:
        return out
    return out[..., :H, :W]


def conv_temporal(x, w, b, act=True, out_dtype=None):
    """x: (N, Cin, T, U, F); w: (Cout, Cin, kt); 'same' conv along T."""
    N, Cin, T, U, F = x.shape
    Cout, _, kt = w.shape
    out_dtype = out_dtype if out_dtype is not None else COMPUTE_DTYPE
    pt = kt // 2
    P = U * F
    xc = x.astype(COMPUTE_DTYPE)
    xp = jnp.pad(xc, ((0, 0), (0, 0), (pt, pt), (0, 0), (0, 0)))
    x_flat = xp.reshape(N, Cin, (T + 2 * pt) * P)
    w2 = jnp.transpose(w, (0, 2, 1)).reshape(Cout, kt * Cin).astype(COMPUTE_DTYPE)
    offsets = tuple(dt * P for dt in range(kt))
    out = _conv_core(x_flat, w2, b, offsets, act, out_dtype)
    return out[:, :, :T * P].reshape(N, Cout, T, U, F)


def avgpool2d(x):                 # (N, C, H, W), 2x2
    N, C, H, W = x.shape
    return x.reshape(N, C, H // 2, 2, W // 2, 2).mean(axis=(3, 5))


def upsample2d(x):
    return jnp.repeat(jnp.repeat(x, 2, axis=-2), 2, axis=-1)


def avgpool2d_5d(x):              # (N, C, T, H, W), pool y,x only
    N, C, T, H, W = x.shape
    return x.reshape(N, C, T, H // 2, 2, W // 2, 2).mean(axis=(4, 6))


def upsample2d_5d(x):
    return jnp.repeat(jnp.repeat(x, 2, axis=-2), 2, axis=-1)


# ----------------------------------------------------------------------------
# UNets (structurally faithful small UNets per the constructor hyper-params)
# ----------------------------------------------------------------------------
def init_conv(key, cout, cin, ksz):
    fan_in = cin
    for kk in ksz:
        fan_in *= kk
    w = jax.random.normal(key, (cout, cin) + tuple(ksz), dtype=jnp.float32)
    w = w * (1.0 / jnp.sqrt(jnp.float32(fan_in)))
    b = jnp.zeros((cout,), jnp.float32)
    return w, b


def init_csm_unet(key, cin=20, cout=20, filters=8, blocks=1):
    f0, f1 = filters, filters * 2                 # feature_growth (1, 2, ...)
    keys = iter(jax.random.split(key, 32))

    def conv(ci, co, ksz=(3, 3)):
        return init_conv(next(keys), co, ci, ksz)

    return {
        "enc0": [conv(cin if i == 0 else f0, f0) for i in range(blocks)],
        "enc1": [conv(f0 if i == 0 else f1, f1) for i in range(blocks)],
        "dec0": [conv(f1 + f0 if i == 0 else f0, f0) for i in range(blocks)],
        "final": conv(f0, cout, (1, 1)),
    }


def csm_unet_forward(x, p):
    """2D UNet, x: (N, 20, H, W) f32 -> (N, 20, H, W) f32."""
    h = x
    for (w, b) in p["enc0"]:
        h = conv_spatial(h, w, b, act=True)
    skip = h
    h = avgpool2d(h)
    for (w, b) in p["enc1"]:
        h = conv_spatial(h, w, b, act=True)
    h = upsample2d(h)
    h = jnp.concatenate([h, skip], axis=1)
    for (w, b) in p["dec0"]:
        h = conv_spatial(h, w, b, act=True)
    wf, bf = p["final"]
    return conv_spatial(h, wf, bf, act=False, out_dtype=jnp.float32)


def init_img_unet(key, cin=2, cout=2, filters=8, blocks=1):
    f0 = filters
    f1 = int(round(filters * 1.5))                # feature_growth (1, 1.5, ...)
    keys = iter(jax.random.split(key, 32))

    def conv25(ci, co):
        ws, bs = init_conv(next(keys), co, ci, (3, 3))
        wt, bt = init_conv(next(keys), co, co, (3,))
        return (ws, bs, wt, bt)

    return {
        "enc0": [conv25(cin if i == 0 else f0, f0) for i in range(blocks)],
        "enc1": [conv25(f0 if i == 0 else f1, f1) for i in range(blocks)],
        "dec0": [conv25(f1 + f0 if i == 0 else f0, f0) for i in range(blocks)],
        "final": init_conv(next(keys), cout, f0, (1, 1)),
    }


def img_unet_forward(x, p):
    """2.5D UNet, x: (N, 2, T, H, W) f32 -> (N, 2, T, H, W) f32."""
    def block(h, convs):
        for (ws, bs, wt, bt) in convs:
            h = conv_spatial(h, ws, bs, act=True)
            h = conv_temporal(h, wt, bt, act=True)
        return h

    h = block(x, p["enc0"])
    skip = h
    h = avgpool2d_5d(h)                            # level-0 downsample: (-1,-2)
    h = block(h, p["enc1"])
    h = upsample2d_5d(h)
    h = jnp.concatenate([h, skip], axis=1)
    h = block(h, p["dec0"])
    wf, bf = p["final"]
    return conv_spatial(h, wf, bf, act=False, out_dtype=jnp.float32)


# ----------------------------------------------------------------------------
# ImgUNetWrapper (mode='xyt') and CSM_Sriram-style coil estimation
# ----------------------------------------------------------------------------
def net_img_planar(ahr, ahi, p, Nu, Nf):
    """ahr/ahi: (Nb,Nz,Nt,P) f32 -> (xnr, xni) same shape (planar output)."""
    Nb, Nz, Nt, P = ahr.shape
    xr = ahr.reshape(Nb, Nz, Nt, Nu, Nf)
    xi = ahi.reshape(Nb, Nz, Nt, Nu, Nf)
    # 'b z t y x ch -> (b z) ch t y x' with ch = (real, imag)
    h = jnp.stack([xr, xi], axis=2).reshape(Nb * Nz, 2, Nt, Nu, Nf)
    h = img_unet_forward(h, p)                     # (Nb*Nz, 2, Nt, Nu, Nf) f32
    h = h.reshape(Nb, Nz, 2, Nt, Nu, Nf)
    xnr = h[:, :, 0].reshape(Nb, Nz, Nt, P)
    xni = h[:, :, 1].reshape(Nb, Nz, Nt, P)
    return xnr, xni


def net_csm_from_k(k, p):
    """CSM_Sriram-style coil-map estimation from temporally averaged k-space.

    Returns planar (cr, ci) of shape (Nb, Nc, Nz, Nu*Nf), RSS-normalized."""
    Nb, Nc, Nz, Nt, Nu, Nf = k.shape
    k_avg = jnp.mean(k, axis=3)                    # (Nb, Nc, Nz, Nu, Nf)
    x_coils = ifft2c(k_avg)
    xri = jnp.stack([jnp.real(x_coils), jnp.imag(x_coils)],
                    axis=2).astype(jnp.float32)    # (Nb, Nc, 2, Nz, Nu, Nf)
    # 'b c ch z u f -> (b z) (c ch) u f'
    h = jnp.transpose(xri, (0, 3, 1, 2, 4, 5)).reshape(Nb * Nz, Nc * 2, Nu, Nf)
    h = csm_unet_forward(h, p)                     # (Nb*Nz, 2*Nc, Nu, Nf) f32
    h = h.reshape(Nb, Nz, Nc, 2, Nu, Nf)
    cr = jnp.transpose(h[:, :, :, 0], (0, 2, 1, 3, 4)).reshape(Nb, Nc, Nz, Nu * Nf)
    ci = jnp.transpose(h[:, :, :, 1], (0, 2, 1, 3, 4)).reshape(Nb, Nc, Nz, Nu * Nf)
    return normalize_csm(cr, ci)


# ----------------------------------------------------------------------------
# _E2EVarNet forward
# ----------------------------------------------------------------------------
def softplus_beta5(x):
    return jax.nn.softplus(5.0 * x) / 5.0


@functools.partial(jax.jit, static_argnames=("T",))
def e2e_varnet_forward(k, mask, params, T):
    Nb, Nc, Nz, Nt, Nu, Nf = k.shape
    P = Nu * Nf
    xrss = apply_RSS(k)
    cr, ci = net_csm_from_k(k, params["csm_unet"])          # (Nb,Nc,Nz,P) f32

    # planar loop state (complex only re-formed at the FFT boundary)
    kr = jnp.real(k).astype(jnp.float32).reshape(Nb, Nc, Nz, Nt, P)
    ki = jnp.imag(k).astype(jnp.float32).reshape(Nb, Nc, Nz, Nt, P)
    kmr, kmi = kr, ki                                        # k_measured, split once
    mask_f = mask.astype(jnp.float32).reshape(Nb, Nz, Nt, P)

    for t in range(T):
        eta = softplus_beta5(params["etas"][t]).reshape(1).astype(jnp.float32)
        k_c = k if t == 0 else _ri2c(kr, ki).reshape(Nb, Nc, Nz, Nt, Nu, Nf)
        # A^H (mask=None): coil-combine of the inverse FFT
        xcr, xci = _split_flat(ifft2c(k_c))                  # (Nb,Nc,Nz,Nt,P)
        ahr, ahi = coil_combine(xcr, xci, cr, ci)            # (Nb,Nz,Nt,P)
        xnr, xni = net_img_planar(ahr, ahi, params["img_unet"], Nu, Nf)
        # A (mask=None): expand with csm, FFT
        cxr, cxi = apply_C_planar(xnr, xni, cr, ci)          # (Nb,Nc,Nz,Nt,P)
        axr, axi = _split_flat(
            fft2c(_ri2c(cxr, cxi).reshape(Nb, Nc, Nz, Nt, Nu, Nf)))
        kr, ki = dc_update(kr, ki, kmr, kmi, mask_f, eta, axr, axi)

    p_k = _ri2c(kr, ki).reshape(Nb, Nc, Nz, Nt, Nu, Nf)
    p_x = apply_RSS(p_k)
    p_csm = _ri2c(cr, ci).reshape(Nb, Nc, Nz, Nu, Nf)
    return p_x, p_k, p_csm, xrss


def init_params(key, T, img_hparams=(1, 1, 8), csm_hparams=(1, 1, 8)):
    k_img, k_csm = jax.random.split(key)
    _, img_blocks, img_filters = img_hparams
    _, csm_blocks, csm_filters = csm_hparams
    return {
        "etas": jnp.zeros((T,), jnp.float32),
        "img_unet": init_img_unet(k_img, cin=2, cout=2,
                                  filters=img_filters, blocks=img_blocks),
        "csm_unet": init_csm_unet(k_csm, cin=20, cout=20,
                                  filters=csm_filters, blocks=csm_blocks),
    }


if __name__ == "__main__":
    key = jax.random.PRNGKey(0)
    Nb, Nc, Nz, Nt, Nu, Nf = 1, 10, 1, 2, 16, 16
    T = 2

    k_key, m_key, p_key = jax.random.split(key, 3)
    kr = jax.random.normal(k_key, (Nb, Nc, Nz, Nt, Nu, Nf), dtype=jnp.float32)
    ki = jax.random.normal(jax.random.fold_in(k_key, 1),
                           (Nb, Nc, Nz, Nt, Nu, Nf), dtype=jnp.float32)
    k = jax.lax.complex(kr, ki)                            # complex64 k-space
    mask = (jax.random.uniform(m_key, (Nb, Nz, Nt, Nu, Nf)) > 0.5
            ).astype(jnp.float32)

    params = init_params(p_key, T)

    p_x, p_k, p_csm, xrss = e2e_varnet_forward(k, mask, params, T)
    jax.block_until_ready((p_x, p_k, p_csm, xrss))

    assert p_x.shape == (Nb, Nz, Nt, Nu, Nf)
    assert p_k.shape == (Nb, Nc, Nz, Nt, Nu, Nf)
    assert p_csm.shape == (Nb, Nc, Nz, Nu, Nf)
    assert xrss.shape == (Nb, Nz, Nt, Nu, Nf)
    assert bool(jnp.all(jnp.isfinite(p_x)))
    print("KERNEL_OK")
</pallas_src>

<mosaic_0001>
module attributes {stable_mosaic.version = 11 : i64} {
  func.func @_shift_conv_kernel(%arg0: i32, %arg1: i32, %arg2: memref<1x20x384xbf16, #tpu.memory_space<vmem>>, %arg3: memref<1x20x128xbf16, #tpu.memory_space<vmem>>, %arg4: memref<8x180xbf16, #tpu.memory_space<vmem>>, %arg5: memref<8x1xf32, #tpu.memory_space<vmem>>, %arg6: memref<1x8x384xbf16, #tpu.memory_space<vmem>>, %arg7: memref<20x512xbf16, #tpu.memory_space<vmem>>, %arg8: memref<180x384xbf16, #tpu.memory_space<vmem>>) attributes {dimension_semantics = [#tpu.dimension_semantics<parallel>, #tpu.dimension_semantics<parallel>], iteration_bounds = array<i64: 1, 1>, scalar_prefetch = 0 : i64, scratch_operands = 2 : i64, tpu.core_type = #tpu.core_type<tc>, window_params = [{transform_indices = @transform_0, window_bounds = array<i64: 1, 20, 384>}, {transform_indices = @transform_1, window_bounds = array<i64: 1, 20, 128>}, {pipeline_mode = #tpu.pipeline_mode<synchronous>, transform_indices = @transform_2, window_bounds = array<i64: 8, 180>}, {pipeline_mode = #tpu.pipeline_mode<synchronous>, transform_indices = @transform_3, window_bounds = array<i64: 8, 1>}, {transform_indices = @transform_4, window_bounds = array<i64: 1, 8, 384>}]} {
    %c0 = arith.constant 0 : index
    %c0_0 = arith.constant 0 : index
    %c0_1 = arith.constant 0 : index
    %0 = vector.load %arg2[%c0, %c0_0, %c0_1] : memref<1x20x384xbf16, #tpu.memory_space<vmem>>, vector<1x20x384xbf16>
    %1 = vector.shape_cast %0 : vector<1x20x384xbf16> to vector<20x384xbf16>
    %c0_2 = arith.constant 0 : index
    %c0_3 = arith.constant 0 : index
    %2 = vector.load %arg7[%c0_2, %c0_3] : memref<20x512xbf16, #tpu.memory_space<vmem>>, vector<20x384xbf16>
    tpu.vector_store %arg7[%c0_2, %c0_3], %1 {strides = array<i32>} : memref<20x512xbf16, #tpu.memory_space<vmem>>, vector<20x384xbf16>,
    %c0_4 = arith.constant 0 : index
    %c0_5 = arith.constant 0 : index
    %c0_6 = arith.constant 0 : index
    %3 = vector.load %arg3[%c0_4, %c0_5, %c0_6] : memref<1x20x128xbf16, #tpu.memory_space<vmem>>, vector<1x20x128xbf16>
    %4 = vector.shape_cast %3 : vector<1x20x128xbf16> to vector<20x128xbf16>
    %c0_7 = arith.constant 0 : index
    %c384 = arith.constant 384 : index
    %5 = vector.load %arg7[%c0_7, %c384] : memref<20x512xbf16, #tpu.memory_space<vmem>>, vector<20x128xbf16>
    tpu.vector_store %arg7[%c0_7, %c384], %4 {strides = array<i32>} : memref<20x512xbf16, #tpu.memory_space<vmem>>, vector<20x128xbf16>,
    %c0_8 = arith.constant 0 : index
    %c0_9 = arith.constant 0 : index
    %6 = vector.load %arg7[%c0_8, %c0_9] : memref<20x512xbf16, #tpu.memory_space<vmem>>, vector<20x384xbf16>
    %c0_10 = arith.constant 0 : index
    %c0_11 = arith.constant 0 : index
    %7 = vector.load %arg8[%c0_10, %c0_11] : memref<180x384xbf16, #tpu.memory_space<vmem>>, vector<20x384xbf16>
    tpu.vector_store %arg8[%c0_10, %c0_11], %6 {strides = array<i32>} : memref<180x384xbf16, #tpu.memory_space<vmem>>, vector<20x384xbf16>,
    %c0_12 = arith.constant 0 : index
    %c1 = arith.constant 1 : index
    %8 = vector.load %arg7[%c0_12, %c1] : memref<20x512xbf16, #tpu.memory_space<vmem>>, vector<20x384xbf16>
    %c20 = arith.constant 20 : index
    %c0_13 = arith.constant 0 : index
    %9 = vector.load %arg8[%c20, %c0_13] : memref<180x384xbf16, #tpu.memory_space<vmem>>, vector<20x384xbf16>
    tpu.vector_store %arg8[%c20, %c0_13], %8 {strides = array<i32>} : memref<180x384xbf16, #tpu.memory_space<vmem>>, vector<20x384xbf16>,
    %c0_14 = arith.constant 0 : index
    %c2 = arith.constant 2 : index
    %10 = vector.load %arg7[%c0_14, %c2] : memref<20x512xbf16, #tpu.memory_space<vmem>>, vector<20x384xbf16>
    %c40 = arith.constant 40 : index
    %c0_15 = arith.constant 0 : index
    %11 = vector.load %arg8[%c40, %c0_15] : memref<180x384xbf16, #tpu.memory_space<vmem>>, vector<20x384xbf16>
    tpu.vector_store %arg8[%c40, %c0_15], %10 {strides = array<i32>} : memref<180x384xbf16, #tpu.memory_space<vmem>>, vector<20x384xbf16>,
    %c0_16 = arith.constant 0 : index
    %c18 = arith.constant 18 : index
    %12 = vector.load %arg7[%c0_16, %c18] : memref<20x512xbf16, #tpu.memory_space<vmem>>, vector<20x384xbf16>
    %c60 = arith.constant 60 : index
    %c0_17 = arith.constant 0 : index
    %13 = vector.load %arg8[%c60, %c0_17] : memref<180x384xbf16, #tpu.memory_space<vmem>>, vector<20x384xbf16>
    tpu.vector_store %arg8[%c60, %c0_17], %12 {strides = array<i32>} : memref<180x384xbf16, #tpu.memory_space<vmem>>, vector<20x384xbf16>,
    %c0_18 = arith.constant 0 : index
    %c19 = arith.constant 19 : index
    %14 = vector.load %arg7[%c0_18, %c19] : memref<20x512xbf16, #tpu.memory_space<vmem>>, vector<20x384xbf16>
    %c80 = arith.constant 80 : index
    %c0_19 = arith.constant 0 : index
    %15 = vector.load %arg8[%c80, %c0_19] : memref<180x384xbf16, #tpu.memory_space<vmem>>, vector<20x384xbf16>
    tpu.vector_store %arg8[%c80, %c0_19], %14 {strides = array<i32>} : memref<180x384xbf16, #tpu.memory_space<vmem>>, vector<20x384xbf16>,
    %c0_20 = arith.constant 0 : index
    %c20_21 = arith.constant 20 : index
    %16 = vector.load %arg7[%c0_20, %c20_21] : memref<20x512xbf16, #tpu.memory_space<vmem>>, vector<20x384xbf16>
    %c100 = arith.constant 100 : index
    %c0_22 = arith.constant 0 : index
    %17 = vector.load %arg8[%c100, %c0_22] : memref<180x384xbf16, #tpu.memory_space<vmem>>, vector<20x384xbf16>
    tpu.vector_store %arg8[%c100, %c0_22], %16 {strides = array<i32>} : memref<180x384xbf16, #tpu.memory_space<vmem>>, vector<20x384xbf16>,
    %c0_23 = arith.constant 0 : index
    %c36 = arith.constant 36 : index
    %18 = vector.load %arg7[%c0_23, %c36] : memref<20x512xbf16, #tpu.memory_space<vmem>>, vector<20x384xbf16>
    %c120 = arith.constant 120 : index
    %c0_24 = arith.constant 0 : index
    %19 = vector.load %arg8[%c120, %c0_24] : memref<180x384xbf16, #tpu.memory_space<vmem>>, vector<20x384xbf16>
    tpu.vector_store %arg8[%c120, %c0_24], %18 {strides = array<i32>} : memref<180x384xbf16, #tpu.memory_space<vmem>>, vector<20x384xbf16>,
    %c0_25 = arith.constant 0 : index
    %c37 = arith.constant 37 : index
    %20 = vector.load %arg7[%c0_25, %c37] : memref<20x512xbf16, #tpu.memory_space<vmem>>, vector<20x384xbf16>
    %c140 = arith.constant 140 : index
    %c0_26 = arith.constant 0 : index
    %21 = vector.load %arg8[%c140, %c0_26] : memref<180x384xbf16, #tpu.memory_space<vmem>>, vector<20x384xbf16>
    tpu.vector_store %arg8[%c140, %c0_26], %20 {strides = array<i32>} : memref<180x384xbf16, #tpu.memory_space<vmem>>, vector<20x384xbf16>,
    %c0_27 = arith.constant 0 : index
    %c38 = arith.constant 38 : index
    %22 = vector.load %arg7[%c0_27, %c38] : memref<20x512xbf16, #tpu.memory_space<vmem>>, vector<20x384xbf16>
    %c160 = arith.constant 160 : index
    %c0_28 = arith.constant 0 : index
    %23 = vector.load %arg8[%c160, %c0_28] : memref<180x384xbf16, #tpu.memory_space<vmem>>, vector<20x384xbf16>
    tpu.vector_store %arg8[%c160, %c0_28], %22 {strides = array<i32>} : memref<180x384xbf16, #tpu.memory_space<vmem>>, vector<20x384xbf16>,
    %c0_29 = arith.constant 0 : index
    %c0_30 = arith.constant 0 : index
    %24 = vector.load %arg8[%c0_29, %c0_30] : memref<180x384xbf16, #tpu.memory_space<vmem>>, vector<180x384xbf16>
    %c0_31 = arith.constant 0 : index
    %c0_32 = arith.constant 0 : index
    %25 = vector.load %arg4[%c0_31, %c0_32] : memref<8x180xbf16, #tpu.memory_space<vmem>>, vector<8x180xbf16>
    %cst = arith.constant dense<0.000000e+00> : vector<8x384xf32>
    %26 = tpu.matmul %25, %24, %cst {dimension_numbers = #tpu.dot_dimension_numbers<[1], [0], [0], [1], [0, 0, 1, 1], [], []>} : vector<8x180xbf16>, vector<180x384xbf16>, vector<8x384xf32> -> vector<8x384xf32>
    %c0_33 = arith.constant 0 : index
    %c0_34 = arith.constant 0 : index
    %27 = vector.load %arg5[%c0_33, %c0_34] : memref<8x1xf32, #tpu.memory_space<vmem>>, vector<8x1xf32>
    %28 = vector.broadcast %27 : vector<8x1xf32> to vector<8x384xf32>
    %29 = arith.addf %26, %28 : vector<8x384xf32>
    %cst_35 = arith.constant 0.000000e+00 : f32
    %30 = vector.broadcast %cst_35 : f32 to vector<8x384xf32>
    %31 = arith.cmpf oge, %29, %30 : vector<8x384xf32>
    %cst_36 = arith.constant 0.00999999977 : f32
    %32 = vector.broadcast %cst_36 : f32 to vector<8x384xf32>
    %33 = arith.mulf %32, %29 : vector<8x384xf32>
    %34 = arith.select %31, %29, %33 : vector<8x384xi1>, vector<8x384xf32>
    %35 = arith.truncf %34 : vector<8x384xf32> to vector<8x384xbf16>
    %c0_37 = arith.constant 0 : index
    %c0_38 = arith.constant 0 : index
    %c0_39 = arith.constant 0 : index
    %36 = vector.load %arg6[%c0_37, %c0_38, %c0_39] : memref<1x8x384xbf16, #tpu.memory_space<vmem>>, vector<1x8x384xbf16>
    %37 = vector.shape_cast %36 : vector<1x8x384xbf16> to vector<8x384xbf16>
    %38 = vector.shape_cast %35 : vector<8x384xbf16> to vector<1x8x384xbf16>
    tpu.vector_store %arg6[%c0_37, %c0_38, %c0_39], %38 {strides = array<i32>} : memref<1x8x384xbf16, #tpu.memory_space<vmem>>, vector<1x8x384xbf16>,
    return
  }
  func.func @transform_0(%arg0: i32, %arg1: i32) -> (i32, i32, i32) {
    %c0_i32 = arith.constant 0 : i32
    %c0_i32_0 = arith.constant 0 : i32
    return %arg0, %c0_i32, %arg1 : i32, i32, i32
  }
  func.func @transform_1(%arg0: i32, %arg1: i32) -> (i32, i32, i32) {
    %c1_i32 = arith.constant 1 : i32
    %0 = arith.addi %arg1, %c1_i32 : i32
    %c3_i32 = arith.constant 3 : i32
    %1 = arith.muli %0, %c3_i32 : i32
    %c0_i32 = arith.constant 0 : i32
    %c0_i32_0 = arith.constant 0 : i32
    return %arg0, %c0_i32, %1 : i32, i32, i32
  }
  func.func @transform_2(%arg0: i32, %arg1: i32) -> (i32, i32) {
    %c0_i32 = arith.constant 0 : i32
    %c0_i32_0 = arith.constant 0 : i32
    %c0_i32_1 = arith.constant 0 : i32
    return %c0_i32, %c0_i32_0 : i32, i32
  }
  func.func @transform_3(%arg0: i32, %arg1: i32) -> (i32, i32) {
    %c0_i32 = arith.constant 0 : i32
    %c0_i32_0 = arith.constant 0 : i32
    %c0_i32_1 = arith.constant 0 : i32
    return %c0_i32, %c0_i32_0 : i32, i32
  }
  func.func @transform_4(%arg0: i32, %arg1: i32) -> (i32, i32, i32) {
    %c0_i32 = arith.constant 0 : i32
    %c0_i32_0 = arith.constant 0 : i32
    return %arg0, %c0_i32, %arg1 : i32, i32, i32
  }
}

module attributes {stable_mosaic.version = 11 : i64} {
  func.func @_shift_conv_kernel(%arg0: i32, %arg1: i32, %arg2: memref<1x8x128xbf16, #tpu.memory_space<vmem>>, %arg3: memref<1x8x128xbf16, #tpu.memory_space<vmem>>, %arg4: memref<16x72xbf16, #tpu.memory_space<vmem>>, %arg5: memref<16x1xf32, #tpu.memory_space<vmem>>, %arg6: memref<1x16x128xbf16, #tpu.memory_space<vmem>>, %arg7: memref<8x256xbf16, #tpu.memory_space<vmem>>, %arg8: memref<72x128xbf16, #tpu.memory_space<vmem>>) attributes {dimension_semantics = [#tpu.dimension_semantics<parallel>, #tpu.dimension_semantics<parallel>], iteration_bounds = array<i64: 1, 1>, scalar_prefetch = 0 : i64, scratch_operands = 2 : i64, tpu.core_type = #tpu.core_type<tc>, window_params = [{transform_indices = @transform_0, window_bounds = array<i64: 1, 8, 128>}, {transform_indices = @transform_1, window_bounds = array<i64: 1, 8, 128>}, {pipeline_mode = #tpu.pipeline_mode<synchronous>, transform_indices = @transform_2, window_bounds = array<i64: 16, 72>}, {pipeline_mode = #tpu.pipeline_mode<synchronous>, transform_indices = @transform_3, window_bounds = array<i64: 16, 1>}, {transform_indices = @transform_4, window_bounds = array<i64: 1, 16, 128>}]} {
    %c0 = arith.constant 0 : index
    %c0_0 = arith.constant 0 : index
    %c0_1 = arith.constant 0 : index
    %0 = vector.load %arg2[%c0, %c0_0, %c0_1] : memref<1x8x128xbf16, #tpu.memory_space<vmem>>, vector<1x8x128xbf16>
    %1 = vector.shape_cast %0 : vector<1x8x128xbf16> to vector<8x128xbf16>
    %c0_2 = arith.constant 0 : index
    %c0_3 = arith.constant 0 : index
    %2 = vector.load %arg7[%c0_2, %c0_3] : memref<8x256xbf16, #tpu.memory_space<vmem>>, vector<8x128xbf16>
    tpu.vector_store %arg7[%c0_2, %c0_3], %1 {strides = array<i32>} : memref<8x256xbf16, #tpu.memory_space<vmem>>, vector<8x128xbf16>,
    %c0_4 = arith.constant 0 : index
    %c0_5 = arith.constant 0 : index
    %c0_6 = arith.constant 0 : index
    %3 = vector.load %arg3[%c0_4, %c0_5, %c0_6] : memref<1x8x128xbf16, #tpu.memory_space<vmem>>, vector<1x8x128xbf16>
    %4 = vector.shape_cast %3 : vector<1x8x128xbf16> to vector<8x128xbf16>
    %c0_7 = arith.constant 0 : index
    %c128 = arith.constant 128 : index
    %5 = vector.load %arg7[%c0_7, %c128] : memref<8x256xbf16, #tpu.memory_space<vmem>>, vector<8x128xbf16>
    tpu.vector_store %arg7[%c0_7, %c128], %4 {strides = array<i32>} : memref<8x256xbf16, #tpu.memory_space<vmem>>, vector<8x128xbf16>,
    %c0_8 = arith.constant 0 : index
    %c0_9 = arith.constant 0 : index
    %6 = vector.load %arg7[%c0_8, %c0_9] : memref<8x256xbf16, #tpu.memory_space<vmem>>, vector<8x128xbf16>
    %c0_10 = arith.constant 0 : index
    %c0_11 = arith.constant 0 : index
    %7 = vector.load %arg8[%c0_10, %c0_11] : memref<72x128xbf16, #tpu.memory_space<vmem>>, vector<8x128xbf16>
    tpu.vector_store %arg8[%c0_10, %c0_11], %6 {strides = array<i32>} : memref<72x128xbf16, #tpu.memory_space<vmem>>, vector<8x128xbf16>,
    %c0_12 = arith.constant 0 : index
    %c1 = arith.constant 1 : index
    %8 = vector.load %arg7[%c0_12, %c1] : memref<8x256xbf16, #tpu.memory_space<vmem>>, vector<8x128xbf16>
    %c8 = arith.constant 8 : index
    %c0_13 = arith.constant 0 : index
    %9 = vector.load %arg8[%c8, %c0_13] : memref<72x128xbf16, #tpu.memory_space<vmem>>, vector<8x128xbf16>
    tpu.vector_store %arg8[%c8, %c0_13], %8 {strides = array<i32>} : memref<72x128xbf16, #tpu.memory_space<vmem>>, vector<8x128xbf16>,
    %c0_14 = arith.constant 0 : index
    %c2 = arith.constant 2 : index
    %10 = vector.load %arg7[%c0_14, %c2] : memref<8x256xbf16, #tpu.memory_space<vmem>>, vector<8x128xbf16>
    %c16 = arith.constant 16 : index
    %c0_15 = arith.constant 0 : index
    %11 = vector.load %arg8[%c16, %c0_15] : memref<72x128xbf16, #tpu.memory_space<vmem>>, vector<8x128xbf16>
    tpu.vector_store %arg8[%c16, %c0_15], %10 {strides = array<i32>} : memref<72x128xbf16, #tpu.memory_space<vmem>>, vector<8x128xbf16>,
    %c0_16 = arith.constant 0 : index
    %c10 = arith.constant 10 : index
    %12 = vector.load %arg7[%c0_16, %c10] : memref<8x256xbf16, #tpu.memory_space<vmem>>, vector<8x128xbf16>
    %c24 = arith.constant 24 : index
    %c0_17 = arith.constant 0 : index
    %13 = vector.load %arg8[%c24, %c0_17] : memref<72x128xbf16, #tpu.memory_space<vmem>>, vector<8x128xbf16>
    tpu.vector_store %arg8[%c24, %c0_17], %12 {strides = array<i32>} : memref<72x128xbf16, #tpu.memory_space<vmem>>, vector<8x128xbf16>,
    %c0_18 = arith.constant 0 : index
    %c11 = arith.constant 11 : index
    %14 = vector.load %arg7[%c0_18, %c11] : memref<8x256xbf16, #tpu.memory_space<vmem>>, vector<8x128xbf16>
    %c32 = arith.constant 32 : index
    %c0_19 = arith.constant 0 : index
    %15 = vector.load %arg8[%c32, %c0_19] : memref<72x128xbf16, #tpu.memory_space<vmem>>, vector<8x128xbf16>
    tpu.vector_store %arg8[%c32, %c0_19], %14 {strides = array<i32>} : memref<72x128xbf16, #tpu.memory_space<vmem>>, vector<8x128xbf16>,
    %c0_20 = arith.constant 0 : index
    %c12 = arith.constant 12 : index
    %16 = vector.load %arg7[%c0_20, %c12] : memref<8x256xbf16, #tpu.memory_space<vmem>>, vector<8x128xbf16>
    %c40 = arith.constant 40 : index
    %c0_21 = arith.constant 0 : index
    %17 = vector.load %arg8[%c40, %c0_21] : memref<72x128xbf16, #tpu.memory_space<vmem>>, vector<8x128xbf16>
    tpu.vector_store %arg8[%c40, %c0_21], %16 {strides = array<i32>} : memref<72x128xbf16, #tpu.memory_space<vmem>>, vector<8x128xbf16>,
    %c0_22 = arith.constant 0 : index
    %c20 = arith.constant 20 : index
    %18 = vector.load %arg7[%c0_22, %c20] : memref<8x256xbf16, #tpu.memory_space<vmem>>, vector<8x128xbf16>
    %c48 = arith.constant 48 : index
    %c0_23 = arith.constant 0 : index
    %19 = vector.load %arg8[%c48, %c0_23] : memref<72x128xbf16, #tpu.memory_space<vmem>>, vector<8x128xbf16>
    tpu.vector_store %arg8[%c48, %c0_23], %18 {strides = array<i32>} : memref<72x128xbf16, #tpu.memory_space<vmem>>, vector<8x128xbf16>,
    %c0_24 = arith.constant 0 : index
    %c21 = arith.constant 21 : index
    %20 = vector.load %arg7[%c0_24, %c21] : memref<8x256xbf16, #tpu.memory_space<vmem>>, vector<8x128xbf16>
    %c56 = arith.constant 56 : index
    %c0_25 = arith.constant 0 : index
    %21 = vector.load %arg8[%c56, %c0_25] : memref<72x128xbf16, #tpu.memory_space<vmem>>, vector<8x128xbf16>
    tpu.vector_store %arg8[%c56, %c0_25], %20 {strides = array<i32>} : memref<72x128xbf16, #tpu.memory_space<vmem>>, vector<8x128xbf16>,
    %c0_26 = arith.constant 0 : index
    %c22 = arith.constant 22 : index
    %22 = vector.load %arg7[%c0_26, %c22] : memref<8x256xbf16, #tpu.memory_space<vmem>>, vector<8x128xbf16>
    %c64 = arith.constant 64 : index
    %c0_27 = arith.constant 0 : index
    %23 = vector.load %arg8[%c64, %c0_27] : memref<72x128xbf16, #tpu.memory_space<vmem>>, vector<8x128xbf16>
    tpu.vector_store %arg8[%c64, %c0_27], %22 {strides = array<i32>} : memref<72x128xbf16, #tpu.memory_space<vmem>>, vector<8x128xbf16>,
    %c0_28 = arith.constant 0 : index
    %c0_29 = arith.constant 0 : index
    %24 = vector.load %arg8[%c0_28, %c0_29] : memref<72x128xbf16, #tpu.memory_space<vmem>>, vector<72x128xbf16>
    %c0_30 = arith.constant 0 : index
    %c0_31 = arith.constant 0 : index
    %25 = vector.load %arg4[%c0_30, %c0_31] : memref<16x72xbf16, #tpu.memory_space<vmem>>, vector<16x72xbf16>
    %cst = arith.constant dense<0.000000e+00> : vector<16x128xf32>
    %26 = tpu.matmul %25, %24, %cst {dimension_numbers = #tpu.dot_dimension_numbers<[1], [0], [0], [1], [0, 0, 1, 1], [], []>} : vector<16x72xbf16>, vector<72x128xbf16>, vector<16x128xf32> -> vector<16x128xf32>
    %c0_32 = arith.constant 0 : index
    %c0_33 = arith.constant 0 : index
    %27 = vector.load %arg5[%c0_32, %c0_33] : memref<16x1xf32, #tpu.memory_space<vmem>>, vector<16x1xf32>
    %28 = vector.broadcast %27 : vector<16x1xf32> to vector<16x128xf32>
    %29 = arith.addf %26, %28 : vector<16x128xf32>
    %cst_34 = arith.constant 0.000000e+00 : f32
    %30 = vector.broadcast %cst_34 : f32 to vector<16x128xf32>
    %31 = arith.cmpf oge, %29, %30 : vector<16x128xf32>
    %cst_35 = arith.constant 0.00999999977 : f32
    %32 = vector.broadcast %cst_35 : f32 to vector<16x128xf32>
    %33 = arith.mulf %32, %29 : vector<16x128xf32>
    %34 = arith.select %31, %29, %33 : vector<16x128xi1>, vector<16x128xf32>
    %35 = arith.truncf %34 : vector<16x128xf32> to vector<16x128xbf16>
    %c0_36 = arith.constant 0 : index
    %c0_37 = arith.constant 0 : index
    %c0_38 = arith.constant 0 : index
    %36 = vector.load %arg6[%c0_36, %c0_37, %c0_38] : memref<1x16x128xbf16, #tpu.memory_space<vmem>>, vector<1x16x128xbf16>
    %37 = vector.shape_cast %36 : vector<1x16x128xbf16> to vector<16x128xbf16>
    %38 = vector.shape_cast %35 : vector<16x128xbf16> to vector<1x16x128xbf16>
    tpu.vector_store %arg6[%c0_36, %c0_37, %c0_38], %38 {strides = array<i32>} : memref<1x16x128xbf16, #tpu.memory_space<vmem>>, vector<1x16x128xbf16>,
    return
  }
  func.func @transform_0(%arg0: i32, %arg1: i32) -> (i32, i32, i32) {
    %c0_i32 = arith.constant 0 : i32
    %c0_i32_0 = arith.constant 0 : i32
    return %arg0, %c0_i32, %arg1 : i32, i32, i32
  }
  func.func @transform_1(%arg0: i32, %arg1: i32) -> (i32, i32, i32) {
    %c1_i32 = arith.constant 1 : i32
    %0 = arith.addi %arg1, %c1_i32 : i32
    %c1_i32_0 = arith.constant 1 : i32
    %1 = arith.muli %0, %c1_i32_0 : i32
    %c0_i32 = arith.constant 0 : i32
    %c0_i32_1 = arith.constant 0 : i32
    return %arg0, %c0_i32, %1 : i32, i32, i32
  }
  func.func @transform_2(%arg0: i32, %arg1: i32) -> (i32, i32) {
    %c0_i32 = arith.constant 0 : i32
    %c0_i32_0 = arith.constant 0 : i32
    %c0_i32_1 = arith.constant 0 : i32
    return %c0_i32, %c0_i32_0 : i32, i32
  }
  func.func @transform_3(%arg0: i32, %arg1: i32) -> (i32, i32) {
    %c0_i32 = arith.constant 0 : i32
    %c0_i32_0 = arith.constant 0 : i32
    %c0_i32_1 = arith.constant 0 : i32
    return %c0_i32, %c0_i32_0 : i32, i32
  }
  func.func @transform_4(%arg0: i32, %arg1: i32) -> (i32, i32, i32) {
    %c0_i32 = arith.constant 0 : i32
    %c0_i32_0 = arith.constant 0 : i32
    return %arg0, %c0_i32, %arg1 : i32, i32, i32
  }
}

module attributes {stable_mosaic.version = 11 : i64} {
  func.func @_shift_conv_kernel(%arg0: i32, %arg1: i32, %arg2: memref<1x8x256xbf16, #tpu.memory_space<vmem>>, %arg3: memref<1x8x128xbf16, #tpu.memory_space<vmem>>, %arg4: memref<20x8xbf16, #tpu.memory_space<vmem>>, %arg5: memref<20x1xf32, #tpu.memory_space<vmem>>, %arg6: memref<1x20x256xf32, #tpu.memory_space<vmem>>, %arg7: memref<8x384xbf16, #tpu.memory_space<vmem>>, %arg8: memref<8x256xbf16, #tpu.memory_space<vmem>>) attributes {dimension_semantics = [#tpu.dimension_semantics<parallel>, #tpu.dimension_semantics<parallel>], iteration_bounds = array<i64: 1, 1>, scalar_prefetch = 0 : i64, scratch_operands = 2 : i64, tpu.core_type = #tpu.core_type<tc>, window_params = [{transform_indices = @transform_0, window_bounds = array<i64: 1, 8, 256>}, {transform_indices = @transform_1, window_bounds = array<i64: 1, 8, 128>}, {pipeline_mode = #tpu.pipeline_mode<synchronous>, transform_indices = @transform_2, window_bounds = array<i64: 20, 8>}, {pipeline_mode = #tpu.pipeline_mode<synchronous>, transform_indices = @transform_3, window_bounds = array<i64: 20, 1>}, {transform_indices = @transform_4, window_bounds = array<i64: 1, 20, 256>}]} {
    %c0 = arith.constant 0 : index
    %c0_0 = arith.constant 0 : index
    %c0_1 = arith.constant 0 : index
    %0 = vector.load %arg2[%c0, %c0_0, %c0_1] : memref<1x8x256xbf16, #tpu.memory_space<vmem>>, vector<1x8x256xbf16>
    %1 = vector.shape_cast %0 : vector<1x8x256xbf16> to vector<8x256xbf16>
    %c0_2 = arith.constant 0 : index
    %c0_3 = arith.constant 0 : index
    %2 = vector.load %arg4[%c0_2, %c0_3] : memref<20x8xbf16, #tpu.memory_space<vmem>>, vector<20x8xbf16>
    %cst = arith.constant dense<0.000000e+00> : vector<20x256xf32>
    %3 = tpu.matmul %2, %1, %cst {dimension_numbers = #tpu.dot_dimension_numbers<[1], [0], [0], [1], [0, 0, 1, 1], [], []>} : vector<20x8xbf16>, vector<8x256xbf16>, vector<20x256xf32> -> vector<20x256xf32>
    %c0_4 = arith.constant 0 : index
    %c0_5 = arith.constant 0 : index
    %4 = vector.load %arg5[%c0_4, %c0_5] : memref<20x1xf32, #tpu.memory_space<vmem>>, vector<20x1xf32>
    %5 = vector.broadcast %4 : vector<20x1xf32> to vector<20x256xf32>
    %6 = arith.addf %3, %5 : vector<20x256xf32>
    %c0_6 = arith.constant 0 : index
    %c0_7 = arith.constant 0 : index
    %c0_8 = arith.constant 0 : index
    %7 = vector.load %arg6[%c0_6, %c0_7, %c0_8] : memref<1x20x256xf32, #tpu.memory_space<vmem>>, vector<1x20x256xf32>
    %8 = vector.shape_cast %7 : vector<1x20x256xf32> to vector<20x256xf32>
    %9 = vector.shape_cast %6 : vector<20x256xf32> to vector<1x20x256xf32>
    tpu.vector_store %arg6[%c0_6, %c0_7, %c0_8], %9 {strides = array<i32>} : memref<1x20x256xf32, #tpu.memory_space<vmem>>, vector<1x20x256xf32>,
    return
  }
  func.func @transform_0(%arg0: i32, %arg1: i32) -> (i32, i32, i32) {
    %c0_i32 = arith.constant 0 : i32
    %c0_i32_0 = arith.constant 0 : i32
    return %arg0, %c0_i32, %arg1 : i32, i32, i32
  }
  func.func @transform_1(%arg0: i32, %arg1: i32) -> (i32, i32, i32) {
    %c1_i32 = arith.constant 1 : i32
    %0 = arith.addi %arg1, %c1_i32 : i32
    %c2_i32 = arith.constant 2 : i32
    %1 = arith.muli %0, %c2_i32 : i32
    %c0_i32 = arith.constant 0 : i32
    %c0_i32_0 = arith.constant 0 : i32
    return %arg0, %c0_i32, %1 : i32, i32, i32
  }
  func.func @transform_2(%arg0: i32, %arg1: i32) -> (i32, i32) {
    %c0_i32 = arith.constant 0 : i32
    %c0_i32_0 = arith.constant 0 : i32
    %c0_i32_1 = arith.constant 0 : i32
    return %c0_i32, %c0_i32_0 : i32, i32
  }
  func.func @transform_3(%arg0: i32, %arg1: i32) -> (i32, i32) {
    %c0_i32 = arith.constant 0 : i32
    %c0_i32_0 = arith.constant 0 : i32
    %c0_i32_1 = arith.constant 0 : i32
    return %c0_i32, %c0_i32_0 : i32, i32
  }
  func.func @transform_4(%arg0: i32, %arg1: i32) -> (i32, i32, i32) {
    %c0_i32 = arith.constant 0 : i32
    %c0_i32_0 = arith.constant 0 : i32
    return %arg0, %c0_i32, %arg1 : i32, i32, i32
  }
}

module attributes {stable_mosaic.version = 11 : i64} {
  func.func @_shift_conv_kernel(%arg0: i32, %arg1: i32, %arg2: memref<1x24x384xbf16, #tpu.memory_space<vmem>>, %arg3: memref<1x24x128xbf16, #tpu.memory_space<vmem>>, %arg4: memref<8x216xbf16, #tpu.memory_space<vmem>>, %arg5: memref<8x1xf32, #tpu.memory_space<vmem>>, %arg6: memref<1x8x384xbf16, #tpu.memory_space<vmem>>, %arg7: memref<24x512xbf16, #tpu.memory_space<vmem>>, %arg8: memref<216x384xbf16, #tpu.memory_space<vmem>>) attributes {dimension_semantics = [#tpu.dimension_semantics<parallel>, #tpu.dimension_semantics<parallel>], iteration_bounds = array<i64: 1, 1>, scalar_prefetch = 0 : i64, scratch_operands = 2 : i64, tpu.core_type = #tpu.core_type<tc>, window_params = [{transform_indices = @transform_0, window_bounds = array<i64: 1, 24, 384>}, {transform_indices = @transform_1, window_bounds = array<i64: 1, 24, 128>}, {pipeline_mode = #tpu.pipeline_mode<synchronous>, transform_indices = @transform_2, window_bounds = array<i64: 8, 216>}, {pipeline_mode = #tpu.pipeline_mode<synchronous>, transform_indices = @transform_3, window_bounds = array<i64: 8, 1>}, {transform_indices = @transform_4, window_bounds = array<i64: 1, 8, 384>}]} {
    %c0 = arith.constant 0 : index
    %c0_0 = arith.constant 0 : index
    %c0_1 = arith.constant 0 : index
    %0 = vector.load %arg2[%c0, %c0_0, %c0_1] : memref<1x24x384xbf16, #tpu.memory_space<vmem>>, vector<1x24x384xbf16>
    %1 = vector.shape_cast %0 : vector<1x24x384xbf16> to vector<24x384xbf16>
    %c0_2 = arith.constant 0 : index
    %c0_3 = arith.constant 0 : index
    %2 = vector.load %arg7[%c0_2, %c0_3] : memref<24x512xbf16, #tpu.memory_space<vmem>>, vector<24x384xbf16>
    tpu.vector_store %arg7[%c0_2, %c0_3], %1 {strides = array<i32>} : memref<24x512xbf16, #tpu.memory_space<vmem>>, vector<24x384xbf16>,
    %c0_4 = arith.constant 0 : index
    %c0_5 = arith.constant 0 : index
    %c0_6 = arith.constant 0 : index
    %3 = vector.load %arg3[%c0_4, %c0_5, %c0_6] : memref<1x24x128xbf16, #tpu.memory_space<vmem>>, vector<1x24x128xbf16>
    %4 = vector.shape_cast %3 : vector<1x24x128xbf16> to vector<24x128xbf16>
    %c0_7 = arith.constant 0 : index
    %c384 = arith.constant 384 : index
    %5 = vector.load %arg7[%c0_7, %c384] : memref<24x512xbf16, #tpu.memory_space<vmem>>, vector<24x128xbf16>
    tpu.vector_store %arg7[%c0_7, %c384], %4 {strides = array<i32>} : memref<24x512xbf16, #tpu.memory_space<vmem>>, vector<24x128xbf16>,
    %c0_8 = arith.constant 0 : index
    %c0_9 = arith.constant 0 : index
    %6 = vector.load %arg7[%c0_8, %c0_9] : memref<24x512xbf16, #tpu.memory_space<vmem>>, vector<24x384xbf16>
    %c0_10 = arith.constant 0 : index
    %c0_11 = arith.constant 0 : index
    %7 = vector.load %arg8[%c0_10, %c0_11] : memref<216x384xbf16, #tpu.memory_space<vmem>>, vector<24x384xbf16>
    tpu.vector_store %arg8[%c0_10, %c0_11], %6 {strides = array<i32>} : memref<216x384xbf16, #tpu.memory_space<vmem>>, vector<24x384xbf16>,
    %c0_12 = arith.constant 0 : index
    %c1 = arith.constant 1 : index
    %8 = vector.load %arg7[%c0_12, %c1] : memref<24x512xbf16, #tpu.memory_space<vmem>>, vector<24x384xbf16>
    %c24 = arith.constant 24 : index
    %c0_13 = arith.constant 0 : index
    %9 = vector.load %arg8[%c24, %c0_13] : memref<216x384xbf16, #tpu.memory_space<vmem>>, vector<24x384xbf16>
    tpu.vector_store %arg8[%c24, %c0_13], %8 {strides = array<i32>} : memref<216x384xbf16, #tpu.memory_space<vmem>>, vector<24x384xbf16>,
    %c0_14 = arith.constant 0 : index
    %c2 = arith.constant 2 : index
    %10 = vector.load %arg7[%c0_14, %c2] : memref<24x512xbf16, #tpu.memory_space<vmem>>, vector<24x384xbf16>
    %c48 = arith.constant 48 : index
    %c0_15 = arith.constant 0 : index
    %11 = vector.load %arg8[%c48, %c0_15] : memref<216x384xbf16, #tpu.memory_space<vmem>>, vector<24x384xbf16>
    tpu.vector_store %arg8[%c48, %c0_15], %10 {strides = array<i32>} : memref<216x384xbf16, #tpu.memory_space<vmem>>, vector<24x384xbf16>,
    %c0_16 = arith.constant 0 : index
    %c18 = arith.constant 18 : index
    %12 = vector.load %arg7[%c0_16, %c18] : memref<24x512xbf16, #tpu.memory_space<vmem>>, vector<24x384xbf16>
    %c72 = arith.constant 72 : index
    %c0_17 = arith.constant 0 : index
    %13 = vector.load %arg8[%c72, %c0_17] : memref<216x384xbf16, #tpu.memory_space<vmem>>, vector<24x384xbf16>
    tpu.vector_store %arg8[%c72, %c0_17], %12 {strides = array<i32>} : memref<216x384xbf16, #tpu.memory_space<vmem>>, vector<24x384xbf16>,
    %c0_18 = arith.constant 0 : index
    %c19 = arith.constant 19 : index
    %14 = vector.load %arg7[%c0_18, %c19] : memref<24x512xbf16, #tpu.memory_space<vmem>>, vector<24x384xbf16>
    %c96 = arith.constant 96 : index
    %c0_19 = arith.constant 0 : index
    %15 = vector.load %arg8[%c96, %c0_19] : memref<216x384xbf16, #tpu.memory_space<vmem>>, vector<24x384xbf16>
    tpu.vector_store %arg8[%c96, %c0_19], %14 {strides = array<i32>} : memref<216x384xbf16, #tpu.memory_space<vmem>>, vector<24x384xbf16>,
    %c0_20 = arith.constant 0 : index
    %c20 = arith.constant 20 : index
    %16 = vector.load %arg7[%c0_20, %c20] : memref<24x512xbf16, #tpu.memory_space<vmem>>, vector<24x384xbf16>
    %c120 = arith.constant 120 : index
    %c0_21 = arith.constant 0 : index
    %17 = vector.load %arg8[%c120, %c0_21] : memref<216x384xbf16, #tpu.memory_space<vmem>>, vector<24x384xbf16>
    tpu.vector_store %arg8[%c120, %c0_21], %16 {strides = array<i32>} : memref<216x384xbf16, #tpu.memory_space<vmem>>, vector<24x384xbf16>,
    %c0_22 = arith.constant 0 : index
    %c36 = arith.constant 36 : index
    %18 = vector.load %arg7[%c0_22, %c36] : memref<24x512xbf16, #tpu.memory_space<vmem>>, vector<24x384xbf16>
    %c144 = arith.constant 144 : index
    %c0_23 = arith.constant 0 : index
    %19 = vector.load %arg8[%c144, %c0_23] : memref<216x384xbf16, #tpu.memory_space<vmem>>, vector<24x384xbf16>
    tpu.vector_store %arg8[%c144, %c0_23], %18 {strides = array<i32>} : memref<216x384xbf16, #tpu.memory_space<vmem>>, vector<24x384xbf16>,
    %c0_24 = arith.constant 0 : index
    %c37 = arith.constant 37 : index
    %20 = vector.load %arg7[%c0_24, %c37] : memref<24x512xbf16, #tpu.memory_space<vmem>>, vector<24x384xbf16>
    %c168 = arith.constant 168 : index
    %c0_25 = arith.constant 0 : index
    %21 = vector.load %arg8[%c168, %c0_25] : memref<216x384xbf16, #tpu.memory_space<vmem>>, vector<24x384xbf16>
    tpu.vector_store %arg8[%c168, %c0_25], %20 {strides = array<i32>} : memref<216x384xbf16, #tpu.memory_space<vmem>>, vector<24x384xbf16>,
    %c0_26 = arith.constant 0 : index
    %c38 = arith.constant 38 : index
    %22 = vector.load %arg7[%c0_26, %c38] : memref<24x512xbf16, #tpu.memory_space<vmem>>, vector<24x384xbf16>
    %c192 = arith.constant 192 : index
    %c0_27 = arith.constant 0 : index
    %23 = vector.load %arg8[%c192, %c0_27] : memref<216x384xbf16, #tpu.memory_space<vmem>>, vector<24x384xbf16>
    tpu.vector_store %arg8[%c192, %c0_27], %22 {strides = array<i32>} : memref<216x384xbf16, #tpu.memory_space<vmem>>, vector<24x384xbf16>,
    %c0_28 = arith.constant 0 : index
    %c0_29 = arith.constant 0 : index
    %24 = vector.load %arg8[%c0_28, %c0_29] : memref<216x384xbf16, #tpu.memory_space<vmem>>, vector<216x384xbf16>
    %c0_30 = arith.constant 0 : index
    %c0_31 = arith.constant 0 : index
    %25 = vector.load %arg4[%c0_30, %c0_31] : memref<8x216xbf16, #tpu.memory_space<vmem>>, vector<8x216xbf16>
    %cst = arith.constant dense<0.000000e+00> : vector<8x384xf32>
    %26 = tpu.matmul %25, %24, %cst {dimension_numbers = #tpu.dot_dimension_numbers<[1], [0], [0], [1], [0, 0, 1, 1], [], []>} : vector<8x216xbf16>, vector<216x384xbf16>, vector<8x384xf32> -> vector<8x384xf32>
    %c0_32 = arith.constant 0 : index
    %c0_33 = arith.constant 0 : index
    %27 = vector.load %arg5[%c0_32, %c0_33] : memref<8x1xf32, #tpu.memory_space<vmem>>, vector<8x1xf32>
    %28 = vector.broadcast %27 : vector<8x1xf32> to vector<8x384xf32>
    %29 = arith.addf %26, %28 : vector<8x384xf32>
    %cst_34 = arith.constant 0.000000e+00 : f32
    %30 = vector.broadcast %cst_34 : f32 to vector<8x384xf32>
    %31 = arith.cmpf oge, %29, %30 : vector<8x384xf32>
    %cst_35 = arith.constant 0.00999999977 : f32
    %32 = vector.broadcast %cst_35 : f32 to vector<8x384xf32>
    %33 = arith.mulf %32, %29 : vector<8x384xf32>
    %34 = arith.select %31, %29, %33 : vector<8x384xi1>, vector<8x384xf32>
    %35 = arith.truncf %34 : vector<8x384xf32> to vector<8x384xbf16>
    %c0_36 = arith.constant 0 : index
    %c0_37 = arith.constant 0 : index
    %c0_38 = arith.constant 0 : index
    %36 = vector.load %arg6[%c0_36, %c0_37, %c0_38] : memref<1x8x384xbf16, #tpu.memory_space<vmem>>, vector<1x8x384xbf16>
    %37 = vector.shape_cast %36 : vector<1x8x384xbf16> to vector<8x384xbf16>
    %38 = vector.shape_cast %35 : vector<8x384xbf16> to vector<1x8x384xbf16>
    tpu.vector_store %arg6[%c0_36, %c0_37, %c0_38], %38 {strides = array<i32>} : memref<1x8x384xbf16, #tpu.memory_space<vmem>>, vector<1x8x384xbf16>,
    return
  }
  func.func @transform_0(%arg0: i32, %arg1: i32) -> (i32, i32, i32) {
    %c0_i32 = arith.constant 0 : i32
    %c0_i32_0 = arith.constant 0 : i32
    return %arg0, %c0_i32, %arg1 : i32, i32, i32
  }
  func.func @transform_1(%arg0: i32, %arg1: i32) -> (i32, i32, i32) {
    %c1_i32 = arith.constant 1 : i32
    %0 = arith.addi %arg1, %c1_i32 : i32
    %c3_i32 = arith.constant 3 : i32
    %1 = arith.muli %0, %c3_i32 : i32
    %c0_i32 = arith.constant 0 : i32
    %c0_i32_0 = arith.constant 0 : i32
    return %arg0, %c0_i32, %1 : i32, i32, i32
  }
  func.func @transform_2(%arg0: i32, %arg1: i32) -> (i32, i32) {
    %c0_i32 = arith.constant 0 : i32
    %c0_i32_0 = arith.constant 0 : i32
    %c0_i32_1 = arith.constant 0 : i32
    return %c0_i32, %c0_i32_0 : i32, i32
  }
  func.func @transform_3(%arg0: i32, %arg1: i32) -> (i32, i32) {
    %c0_i32 = arith.constant 0 : i32
    %c0_i32_0 = arith.constant 0 : i32
    %c0_i32_1 = arith.constant 0 : i32
    return %c0_i32, %c0_i32_0 : i32, i32
  }
  func.func @transform_4(%arg0: i32, %arg1: i32) -> (i32, i32, i32) {
    %c0_i32 = arith.constant 0 : i32
    %c0_i32_0 = arith.constant 0 : i32
    return %arg0, %c0_i32, %arg1 : i32, i32, i32
  }
}

module attributes {stable_mosaic.version = 11 : i64} {
  func.func @_csm_norm_kernel(%arg0: i32, %arg1: i32, %arg2: i32, %arg3: memref<1x10x1x256xf32, #tpu.memory_space<vmem>>, %arg4: memref<1x10x1x256xf32, #tpu.memory_space<vmem>>, %arg5: memref<1x10x1x256xf32, #tpu.memory_space<vmem>>, %arg6: memref<1x10x1x256xf32, #tpu.memory_space<vmem>>) attributes {dimension_semantics = [#tpu.dimension_semantics<parallel>, #tpu.dimension_semantics<parallel>, #tpu.dimension_semantics<parallel>], iteration_bounds = array<i64: 1, 1, 1>, scalar_prefetch = 0 : i64, scratch_operands = 0 : i64, tpu.core_type = #tpu.core_type<tc>, window_params = [{transform_indices = @transform_0, window_bounds = array<i64: 1, 10, 1, 256>}, {transform_indices = @transform_1, window_bounds = array<i64: 1, 10, 1, 256>}, {transform_indices = @transform_2, window_bounds = array<i64: 1, 10, 1, 256>}, {transform_indices = @transform_3, window_bounds = array<i64: 1, 10, 1, 256>}]} {
    %c0 = arith.constant 0 : index
    %c0_0 = arith.constant 0 : index
    %c0_1 = arith.constant 0 : index
    %c0_2 = arith.constant 0 : index
    %0 = vector.load %arg3[%c0, %c0_0, %c0_1, %c0_2] : memref<1x10x1x256xf32, #tpu.memory_space<vmem>>, vector<1x10x1x256xf32>
    %1 = vector.shape_cast %0 : vector<1x10x1x256xf32> to vector<10x256xf32>
    %c0_3 = arith.constant 0 : index
    %c0_4 = arith.constant 0 : index
    %c0_5 = arith.constant 0 : index
    %c0_6 = arith.constant 0 : index
    %2 = vector.load %arg4[%c0_3, %c0_4, %c0_5, %c0_6] : memref<1x10x1x256xf32, #tpu.memory_space<vmem>>, vector<1x10x1x256xf32>
    %3 = vector.shape_cast %2 : vector<1x10x1x256xf32> to vector<10x256xf32>
    %4 = arith.mulf %1, %1 : vector<10x256xf32>
    %5 = arith.mulf %3, %3 : vector<10x256xf32>
    %6 = arith.addf %4, %5 : vector<10x256xf32>
    %cst = arith.constant dense<0.000000e+00> : vector<256xf32>
    %7 = vector.multi_reduction <add>, %6, %cst [0] : vector<10x256xf32> to vector<256xf32>
    %8 = vector.shape_cast %7 : vector<256xf32> to vector<1x256xf32>
    %cst_7 = arith.constant 9.99999996E-13 : f32
    %9 = vector.broadcast %cst_7 : f32 to vector<1x256xf32>
    %10 = arith.addf %8, %9 : vector<1x256xf32>
    %11 = math.rsqrt %10 : vector<1x256xf32>
    %12 = vector.broadcast %11 : vector<1x256xf32> to vector<10x256xf32>
    %13 = arith.mulf %1, %12 : vector<10x256xf32>
    %c0_8 = arith.constant 0 : index
    %c0_9 = arith.constant 0 : index
    %c0_10 = arith.constant 0 : index
    %c0_11 = arith.constant 0 : index
    %14 = vector.load %arg5[%c0_8, %c0_9, %c0_10, %c0_11] : memref<1x10x1x256xf32, #tpu.memory_space<vmem>>, vector<1x10x1x256xf32>
    %15 = vector.shape_cast %14 : vector<1x10x1x256xf32> to vector<10x256xf32>
    %16 = vector.shape_cast %13 : vector<10x256xf32> to vector<1x10x1x256xf32>
    tpu.vector_store %arg5[%c0_8, %c0_9, %c0_10, %c0_11], %16 {strides = array<i32>} : memref<1x10x1x256xf32, #tpu.memory_space<vmem>>, vector<1x10x1x256xf32>,
    %17 = vector.broadcast %11 : vector<1x256xf32> to vector<10x256xf32>
    %18 = arith.mulf %3, %17 : vector<10x256xf32>
    %c0_12 = arith.constant 0 : index
    %c0_13 = arith.constant 0 : index
    %c0_14 = arith.constant 0 : index
    %c0_15 = arith.constant 0 : index
    %19 = vector.load %arg6[%c0_12, %c0_13, %c0_14, %c0_15] : memref<1x10x1x256xf32, #tpu.memory_space<vmem>>, vector<1x10x1x256xf32>
    %20 = vector.shape_cast %19 : vector<1x10x1x256xf32> to vector<10x256xf32>
    %21 = vector.shape_cast %18 : vector<10x256xf32> to vector<1x10x1x256xf32>
    tpu.vector_store %arg6[%c0_12, %c0_13, %c0_14, %c0_15], %21 {strides = array<i32>} : memref<1x10x1x256xf32, #tpu.memory_space<vmem>>, vector<1x10x1x256xf32>,
    return
  }
  func.func @transform_0(%arg0: i32, %arg1: i32, %arg2: i32) -> (i32, i32, i32, i32) {
    %c0_i32 = arith.constant 0 : i32
    %c0_i32_0 = arith.constant 0 : i32
    return %arg0, %c0_i32, %arg1, %arg2 : i32, i32, i32, i32
  }
  func.func @transform_1(%arg0: i32, %arg1: i32, %arg2: i32) -> (i32, i32, i32, i32) {
    %c0_i32 = arith.constant 0 : i32
    %c0_i32_0 = arith.constant 0 : i32
    return %arg0, %c0_i32, %arg1, %arg2 : i32, i32, i32, i32
  }
  func.func @transform_2(%arg0: i32, %arg1: i32, %arg2: i32) -> (i32, i32, i32, i32) {
    %c0_i32 = arith.constant 0 : i32
    %c0_i32_0 = arith.constant 0 : i32
    return %arg0, %c0_i32, %arg1, %arg2 : i32, i32, i32, i32
  }
  func.func @transform_3(%arg0: i32, %arg1: i32, %arg2: i32) -> (i32, i32, i32, i32) {
    %c0_i32 = arith.constant 0 : i32
    %c0_i32_0 = arith.constant 0 : i32
    return %arg0, %c0_i32, %arg1, %arg2 : i32, i32, i32, i32
  }
}

module attributes {stable_mosaic.version = 11 : i64} {
  func.func @_coil_combine_kernel(%arg0: i32, %arg1: i32, %arg2: i32, %arg3: i32, %arg4: memref<1x1x1x256xf32, #tpu.memory_space<vmem>>, %arg5: memref<1x1x1x256xf32, #tpu.memory_space<vmem>>, %arg6: memref<1x1x1x2x256xf32, #tpu.memory_space<vmem>>, %arg7: memref<1x1x1x2x256xf32, #tpu.memory_space<vmem>>, %arg8: memref<1x1x2x256xf32, #tpu.memory_space<vmem>>, %arg9: memref<1x1x2x256xf32, #tpu.memory_space<vmem>>) attributes {dimension_semantics = [#tpu.dimension_semantics<parallel>, #tpu.dimension_semantics<parallel>, #tpu.dimension_semantics<parallel>, #tpu.dimension_semantics<arbitrary>], iteration_bounds = array<i64: 1, 1, 1, 10>, scalar_prefetch = 0 : i64, scratch_operands = 0 : i64, tpu.core_type = #tpu.core_type<tc>, window_params = [{transform_indices = @transform_0, window_bounds = array<i64: 1, 1, 1, 256>}, {transform_indices = @transform_1, window_bounds = array<i64: 1, 1, 1, 256>}, {transform_indices = @transform_2, window_bounds = array<i64: 1, 1, 1, 2, 256>}, {transform_indices = @transform_3, window_bounds = array<i64: 1, 1, 1, 2, 256>}, {transform_indices = @transform_4, window_bounds = array<i64: 1, 1, 2, 256>}, {transform_indices = @transform_5, window_bounds = array<i64: 1, 1, 2, 256>}]} {
    %c0_i32 = arith.constant 0 : i32
    %0 = arith.cmpi eq, %arg3, %c0_i32 : i32
    %1 = arith.extui %0 : i1 to i32
    %c0_i32_0 = arith.constant 0 : i32
    %2 = arith.cmpi ne, %1, %c0_i32_0 : i32
    scf.if %2 {
      %cst = arith.constant 0.000000e+00 : f32
      %33 = vector.broadcast %cst : f32 to vector<1x1x2x256xf32>
      %c0_34 = arith.constant 0 : index
      %c0_35 = arith.constant 0 : index
      %c0_36 = arith.constant 0 : index
      %c0_37 = arith.constant 0 : index
      %34 = vector.load %arg8[%c0_34, %c0_35, %c0_36, %c0_37] : memref<1x1x2x256xf32, #tpu.memory_space<vmem>>, vector<1x1x2x256xf32>
      tpu.vector_store %arg8[%c0_34, %c0_35, %c0_36, %c0_37], %33 {strides = array<i32>} : memref<1x1x2x256xf32, #tpu.memory_space<vmem>>, vector<1x1x2x256xf32>,
      %cst_38 = arith.constant 0.000000e+00 : f32
      %35 = vector.broadcast %cst_38 : f32 to vector<1x1x2x256xf32>
      %c0_39 = arith.constant 0 : index
      %c0_40 = arith.constant 0 : index
      %c0_41 = arith.constant 0 : index
      %c0_42 = arith.constant 0 : index
      %36 = vector.load %arg9[%c0_39, %c0_40, %c0_41, %c0_42] : memref<1x1x2x256xf32, #tpu.memory_space<vmem>>, vector<1x1x2x256xf32>
      tpu.vector_store %arg9[%c0_39, %c0_40, %c0_41, %c0_42], %35 {strides = array<i32>} : memref<1x1x2x256xf32, #tpu.memory_space<vmem>>, vector<1x1x2x256xf32>,
    } else {
    }
    %c0 = arith.constant 0 : index
    %c0_1 = arith.constant 0 : index
    %c0_2 = arith.constant 0 : index
    %c0_3 = arith.constant 0 : index
    %3 = vector.load %arg4[%c0, %c0_1, %c0_2, %c0_3] : memref<1x1x1x256xf32, #tpu.memory_space<vmem>>, vector<1x1x1x256xf32>
    %4 = vector.shape_cast %3 : vector<1x1x1x256xf32> to vector<1x256xf32>
    %c0_4 = arith.constant 0 : index
    %c0_5 = arith.constant 0 : index
    %c0_6 = arith.constant 0 : index
    %c0_7 = arith.constant 0 : index
    %5 = vector.load %arg5[%c0_4, %c0_5, %c0_6, %c0_7] : memref<1x1x1x256xf32, #tpu.memory_space<vmem>>, vector<1x1x1x256xf32>
    %6 = vector.shape_cast %5 : vector<1x1x1x256xf32> to vector<1x256xf32>
    %c0_8 = arith.constant 0 : index
    %c0_9 = arith.constant 0 : index
    %c0_10 = arith.constant 0 : index
    %c0_11 = arith.constant 0 : index
    %c0_12 = arith.constant 0 : index
    %7 = vector.load %arg6[%c0_8, %c0_9, %c0_10, %c0_11, %c0_12] : memref<1x1x1x2x256xf32, #tpu.memory_space<vmem>>, vector<1x1x1x2x256xf32>
    %8 = vector.shape_cast %7 : vector<1x1x1x2x256xf32> to vector<2x256xf32>
    %c0_13 = arith.constant 0 : index
    %c0_14 = arith.constant 0 : index
    %c0_15 = arith.constant 0 : index
    %c0_16 = arith.constant 0 : index
    %c0_17 = arith.constant 0 : index
    %9 = vector.load %arg7[%c0_13, %c0_14, %c0_15, %c0_16, %c0_17] : memref<1x1x1x2x256xf32, #tpu.memory_space<vmem>>, vector<1x1x1x2x256xf32>
    %10 = vector.shape_cast %9 : vector<1x1x1x2x256xf32> to vector<2x256xf32>
    %c0_18 = arith.constant 0 : index
    %c0_19 = arith.constant 0 : index
    %c0_20 = arith.constant 0 : index
    %c0_21 = arith.constant 0 : index
    %11 = vector.load %arg8[%c0_18, %c0_19, %c0_20, %c0_21] : memref<1x1x2x256xf32, #tpu.memory_space<vmem>>, vector<1x1x2x256xf32>
    %12 = vector.shape_cast %11 : vector<1x1x2x256xf32> to vector<2x256xf32>
    %13 = vector.broadcast %4 : vector<1x256xf32> to vector<2x256xf32>
    %14 = arith.mulf %13, %8 : vector<2x256xf32>
    %15 = vector.broadcast %6 : vector<1x256xf32> to vector<2x256xf32>
    %16 = arith.mulf %15, %10 : vector<2x256xf32>
    %17 = arith.addf %14, %16 : vector<2x256xf32>
    %18 = arith.addf %12, %17 : vector<2x256xf32>
    %c0_22 = arith.constant 0 : index
    %c0_23 = arith.constant 0 : index
    %c0_24 = arith.constant 0 : index
    %c0_25 = arith.constant 0 : index
    %19 = vector.load %arg8[%c0_22, %c0_23, %c0_24, %c0_25] : memref<1x1x2x256xf32, #tpu.memory_space<vmem>>, vector<1x1x2x256xf32>
    %20 = vector.shape_cast %19 : vector<1x1x2x256xf32> to vector<2x256xf32>
    %21 = vector.shape_cast %18 : vector<2x256xf32> to vector<1x1x2x256xf32>
    tpu.vector_store %arg8[%c0_22, %c0_23, %c0_24, %c0_25], %21 {strides = array<i32>} : memref<1x1x2x256xf32, #tpu.memory_space<vmem>>, vector<1x1x2x256xf32>,
    %c0_26 = arith.constant 0 : index
    %c0_27 = arith.constant 0 : index
    %c0_28 = arith.constant 0 : index
    %c0_29 = arith.constant 0 : index
    %22 = vector.load %arg9[%c0_26, %c0_27, %c0_28, %c0_29] : memref<1x1x2x256xf32, #tpu.memory_space<vmem>>, vector<1x1x2x256xf32>
    %23 = vector.shape_cast %22 : vector<1x1x2x256xf32> to vector<2x256xf32>
    %24 = vector.broadcast %4 : vector<1x256xf32> to vector<2x256xf32>
    %25 = arith.mulf %24, %10 : vector<2x256xf32>
    %26 = vector.broadcast %6 : vector<1x256xf32> to vector<2x256xf32>
    %27 = arith.mulf %26, %8 : vector<2x256xf32>
    %28 = arith.subf %25, %27 : vector<2x256xf32>
    %29 = arith.addf %23, %28 : vector<2x256xf32>
    %c0_30 = arith.constant 0 : index
    %c0_31 = arith.constant 0 : index
    %c0_32 = arith.constant 0 : index
    %c0_33 = arith.constant 0 : index
    %30 = vector.load %arg9[%c0_30, %c0_31, %c0_32, %c0_33] : memref<1x1x2x256xf32, #tpu.memory_space<vmem>>, vector<1x1x2x256xf32>
    %31 = vector.shape_cast %30 : vector<1x1x2x256xf32> to vector<2x256xf32>
    %32 = vector.shape_cast %29 : vector<2x256xf32> to vector<1x1x2x256xf32>
    tpu.vector_store %arg9[%c0_30, %c0_31, %c0_32, %c0_33], %32 {strides = array<i32>} : memref<1x1x2x256xf32, #tpu.memory_space<vmem>>, vector<1x1x2x256xf32>,
    return
  }
  func.func @transform_0(%arg0: i32, %arg1: i32, %arg2: i32, %arg3: i32) -> (i32, i32, i32, i32) {
    %c0_i32 = arith.constant 0 : i32
    return %arg0, %arg3, %arg1, %arg2 : i32, i32, i32, i32
  }
  func.func @transform_1(%arg0: i32, %arg1: i32, %arg2: i32, %arg3: i32) -> (i32, i32, i32, i32) {
    %c0_i32 = arith.constant 0 : i32
    return %arg0, %arg3, %arg1, %arg2 : i32, i32, i32, i32
  }
  func.func @transform_2(%arg0: i32, %arg1: i32, %arg2: i32, %arg3: i32) -> (i32, i32, i32, i32, i32) {
    %c0_i32 = arith.constant 0 : i32
    %c0_i32_0 = arith.constant 0 : i32
    return %arg0, %arg3, %arg1, %c0_i32, %arg2 : i32, i32, i32, i32, i32
  }
  func.func @transform_3(%arg0: i32, %arg1: i32, %arg2: i32, %arg3: i32) -> (i32, i32, i32, i32, i32) {
    %c0_i32 = arith.constant 0 : i32
    %c0_i32_0 = arith.constant 0 : i32
    return %arg0, %arg3, %arg1, %c0_i32, %arg2 : i32, i32, i32, i32, i32
  }
  func.func @transform_4(%arg0: i32, %arg1: i32, %arg2: i32, %arg3: i32) -> (i32, i32, i32, i32) {
    %c0_i32 = arith.constant 0 : i32
    %c0_i32_0 = arith.constant 0 : i32
    return %arg0, %arg1, %c0_i32, %arg2 : i32, i32, i32, i32
  }
  func.func @transform_5(%arg0: i32, %arg1: i32, %arg2: i32, %arg3: i32) -> (i32, i32, i32, i32) {
    %c0_i32 = arith.constant 0 : i32
    %c0_i32_0 = arith.constant 0 : i32
    return %arg0, %arg1, %c0_i32, %arg2 : i32, i32, i32, i32
  }
}

module attributes {stable_mosaic.version = 11 : i64} {
  func.func @_shift_conv_kernel(%arg0: i32, %arg1: i32, %arg2: memref<1x2x768xbf16, #tpu.memory_space<vmem>>, %arg3: memref<1x2x128xbf16, #tpu.memory_space<vmem>>, %arg4: memref<8x18xbf16, #tpu.memory_space<vmem>>, %arg5: memref<8x1xf32, #tpu.memory_space<vmem>>, %arg6: memref<1x8x768xbf16, #tpu.memory_space<vmem>>, %arg7: memref<2x896xbf16, #tpu.memory_space<vmem>>, %arg8: memref<18x768xbf16, #tpu.memory_space<vmem>>) attributes {dimension_semantics = [#tpu.dimension_semantics<parallel>, #tpu.dimension_semantics<parallel>], iteration_bounds = array<i64: 1, 1>, scalar_prefetch = 0 : i64, scratch_operands = 2 : i64, tpu.core_type = #tpu.core_type<tc>, window_params = [{transform_indices = @transform_0, window_bounds = array<i64: 1, 2, 768>}, {transform_indices = @transform_1, window_bounds = array<i64: 1, 2, 128>}, {pipeline_mode = #tpu.pipeline_mode<synchronous>, transform_indices = @transform_2, window_bounds = array<i64: 8, 18>}, {pipeline_mode = #tpu.pipeline_mode<synchronous>, transform_indices = @transform_3, window_bounds = array<i64: 8, 1>}, {transform_indices = @transform_4, window_bounds = array<i64: 1, 8, 768>}]} {
    %c0 = arith.constant 0 : index
    %c0_0 = arith.constant 0 : index
    %c0_1 = arith.constant 0 : index
    %0 = vector.load %arg2[%c0, %c0_0, %c0_1] : memref<1x2x768xbf16, #tpu.memory_space<vmem>>, vector<1x2x768xbf16>
    %1 = vector.shape_cast %0 : vector<1x2x768xbf16> to vector<2x768xbf16>
    %c0_2 = arith.constant 0 : index
    %c0_3 = arith.constant 0 : index
    %2 = vector.load %arg7[%c0_2, %c0_3] : memref<2x896xbf16, #tpu.memory_space<vmem>>, vector<2x768xbf16>
    tpu.vector_store %arg7[%c0_2, %c0_3], %1 {strides = array<i32>} : memref<2x896xbf16, #tpu.memory_space<vmem>>, vector<2x768xbf16>,
    %c0_4 = arith.constant 0 : index
    %c0_5 = arith.constant 0 : index
    %c0_6 = arith.constant 0 : index
    %3 = vector.load %arg3[%c0_4, %c0_5, %c0_6] : memref<1x2x128xbf16, #tpu.memory_space<vmem>>, vector<1x2x128xbf16>
    %4 = vector.shape_cast %3 : vector<1x2x128xbf16> to vector<2x128xbf16>
    %c0_7 = arith.constant 0 : index
    %c768 = arith.constant 768 : index
    %5 = vector.load %arg7[%c0_7, %c768] : memref<2x896xbf16, #tpu.memory_space<vmem>>, vector<2x128xbf16>
    tpu.vector_store %arg7[%c0_7, %c768], %4 {strides = array<i32>} : memref<2x896xbf16, #tpu.memory_space<vmem>>, vector<2x128xbf16>,
    %c0_8 = arith.constant 0 : index
    %c0_9 = arith.constant 0 : index
    %6 = vector.load %arg7[%c0_8, %c0_9] : memref<2x896xbf16, #tpu.memory_space<vmem>>, vector<2x768xbf16>
    %c0_10 = arith.constant 0 : index
    %c0_11 = arith.constant 0 : index
    %7 = vector.load %arg8[%c0_10, %c0_11] : memref<18x768xbf16, #tpu.memory_space<vmem>>, vector<2x768xbf16>
    tpu.vector_store %arg8[%c0_10, %c0_11], %6 {strides = array<i32>} : memref<18x768xbf16, #tpu.memory_space<vmem>>, vector<2x768xbf16>,
    %c0_12 = arith.constant 0 : index
    %c1 = arith.constant 1 : index
    %8 = vector.load %arg7[%c0_12, %c1] : memref<2x896xbf16, #tpu.memory_space<vmem>>, vector<2x768xbf16>
    %c2 = arith.constant 2 : index
    %c0_13 = arith.constant 0 : index
    %9 = vector.load %arg8[%c2, %c0_13] : memref<18x768xbf16, #tpu.memory_space<vmem>>, vector<2x768xbf16>
    tpu.vector_store %arg8[%c2, %c0_13], %8 {strides = array<i32>} : memref<18x768xbf16, #tpu.memory_space<vmem>>, vector<2x768xbf16>,
    %c0_14 = arith.constant 0 : index
    %c2_15 = arith.constant 2 : index
    %10 = vector.load %arg7[%c0_14, %c2_15] : memref<2x896xbf16, #tpu.memory_space<vmem>>, vector<2x768xbf16>
    %c4 = arith.constant 4 : index
    %c0_16 = arith.constant 0 : index
    %11 = vector.load %arg8[%c4, %c0_16] : memref<18x768xbf16, #tpu.memory_space<vmem>>, vector<2x768xbf16>
    tpu.vector_store %arg8[%c4, %c0_16], %10 {strides = array<i32>} : memref<18x768xbf16, #tpu.memory_space<vmem>>, vector<2x768xbf16>,
    %c0_17 = arith.constant 0 : index
    %c18 = arith.constant 18 : index
    %12 = vector.load %arg7[%c0_17, %c18] : memref<2x896xbf16, #tpu.memory_space<vmem>>, vector<2x768xbf16>
    %c6 = arith.constant 6 : index
    %c0_18 = arith.constant 0 : index
    %13 = vector.load %arg8[%c6, %c0_18] : memref<18x768xbf16, #tpu.memory_space<vmem>>, vector<2x768xbf16>
    tpu.vector_store %arg8[%c6, %c0_18], %12 {strides = array<i32>} : memref<18x768xbf16, #tpu.memory_space<vmem>>, vector<2x768xbf16>,
    %c0_19 = arith.constant 0 : index
    %c19 = arith.constant 19 : index
    %14 = vector.load %arg7[%c0_19, %c19] : memref<2x896xbf16, #tpu.memory_space<vmem>>, vector<2x768xbf16>
    %c8 = arith.constant 8 : index
    %c0_20 = arith.constant 0 : index
    %15 = vector.load %arg8[%c8, %c0_20] : memref<18x768xbf16, #tpu.memory_space<vmem>>, vector<2x768xbf16>
    tpu.vector_store %arg8[%c8, %c0_20], %14 {strides = array<i32>} : memref<18x768xbf16, #tpu.memory_space<vmem>>, vector<2x768xbf16>,
    %c0_21 = arith.constant 0 : index
    %c20 = arith.constant 20 : index
    %16 = vector.load %arg7[%c0_21, %c20] : memref<2x896xbf16, #tpu.memory_space<vmem>>, vector<2x768xbf16>
    %c10 = arith.constant 10 : index
    %c0_22 = arith.constant 0 : index
    %17 = vector.load %arg8[%c10, %c0_22] : memref<18x768xbf16, #tpu.memory_space<vmem>>, vector<2x768xbf16>
    tpu.vector_store %arg8[%c10, %c0_22], %16 {strides = array<i32>} : memref<18x768xbf16, #tpu.memory_space<vmem>>, vector<2x768xbf16>,
    %c0_23 = arith.constant 0 : index
    %c36 = arith.constant 36 : index
    %18 = vector.load %arg7[%c0_23, %c36] : memref<2x896xbf16, #tpu.memory_space<vmem>>, vector<2x768xbf16>
    %c12 = arith.constant 12 : index
    %c0_24 = arith.constant 0 : index
    %19 = vector.load %arg8[%c12, %c0_24] : memref<18x768xbf16, #tpu.memory_space<vmem>>, vector<2x768xbf16>
    tpu.vector_store %arg8[%c12, %c0_24], %18 {strides = array<i32>} : memref<18x768xbf16, #tpu.memory_space<vmem>>, vector<2x768xbf16>,
    %c0_25 = arith.constant 0 : index
    %c37 = arith.constant 37 : index
    %20 = vector.load %arg7[%c0_25, %c37] : memref<2x896xbf16, #tpu.memory_space<vmem>>, vector<2x768xbf16>
    %c14 = arith.constant 14 : index
    %c0_26 = arith.constant 0 : index
    %21 = vector.load %arg8[%c14, %c0_26] : memref<18x768xbf16, #tpu.memory_space<vmem>>, vector<2x768xbf16>
    tpu.vector_store %arg8[%c14, %c0_26], %20 {strides = array<i32>} : memref<18x768xbf16, #tpu.memory_space<vmem>>, vector<2x768xbf16>,
    %c0_27 = arith.constant 0 : index
    %c38 = arith.constant 38 : index
    %22 = vector.load %arg7[%c0_27, %c38] : memref<2x896xbf16, #tpu.memory_space<vmem>>, vector<2x768xbf16>
    %c16 = arith.constant 16 : index
    %c0_28 = arith.constant 0 : index
    %23 = vector.load %arg8[%c16, %c0_28] : memref<18x768xbf16, #tpu.memory_space<vmem>>, vector<2x768xbf16>
    tpu.vector_store %arg8[%c16, %c0_28], %22 {strides = array<i32>} : memref<18x768xbf16, #tpu.memory_space<vmem>>, vector<2x768xbf16>,
    %c0_29 = arith.constant 0 : index
    %c0_30 = arith.constant 0 : index
    %24 = vector.load %arg8[%c0_29, %c0_30] : memref<18x768xbf16, #tpu.memory_space<vmem>>, vector<18x768xbf16>
    %c0_31 = arith.constant 0 : index
    %c0_32 = arith.constant 0 : index
    %25 = vector.load %arg4[%c0_31, %c0_32] : memref<8x18xbf16, #tpu.memory_space<vmem>>, vector<8x18xbf16>
    %cst = arith.constant dense<0.000000e+00> : vector<8x768xf32>
    %26 = tpu.matmul %25, %24, %cst {dimension_numbers = #tpu.dot_dimension_numbers<[1], [0], [0], [1], [0, 0, 1, 1], [], []>} : vector<8x18xbf16>, vector<18x768xbf16>, vector<8x768xf32> -> vector<8x768xf32>
    %c0_33 = arith.constant 0 : index
    %c0_34 = arith.constant 0 : index
    %27 = vector.load %arg5[%c0_33, %c0_34] : memref<8x1xf32, #tpu.memory_space<vmem>>, vector<8x1xf32>
    %28 = vector.broadcast %27 : vector<8x1xf32> to vector<8x768xf32>
    %29 = arith.addf %26, %28 : vector<8x768xf32>
    %cst_35 = arith.constant 0.000000e+00 : f32
    %30 = vector.broadcast %cst_35 : f32 to vector<8x768xf32>
    %31 = arith.cmpf oge, %29, %30 : vector<8x768xf32>
    %cst_36 = arith.constant 0.00999999977 : f32
    %32 = vector.broadcast %cst_36 : f32 to vector<8x768xf32>
    %33 = arith.mulf %32, %29 : vector<8x768xf32>
    %34 = arith.select %31, %29, %33 : vector<8x768xi1>, vector<8x768xf32>
    %35 = arith.truncf %34 : vector<8x768xf32> to vector<8x768xbf16>
    %c0_37 = arith.constant 0 : index
    %c0_38 = arith.constant 0 : index
    %c0_39 = arith.constant 0 : index
    %36 = vector.load %arg6[%c0_37, %c0_38, %c0_39] : memref<1x8x768xbf16, #tpu.memory_space<vmem>>, vector<1x8x768xbf16>
    %37 = vector.shape_cast %36 : vector<1x8x768xbf16> to vector<8x768xbf16>
    %38 = vector.shape_cast %35 : vector<8x768xbf16> to vector<1x8x768xbf16>
    tpu.vector_store %arg6[%c0_37, %c0_38, %c0_39], %38 {strides = array<i32>} : memref<1x8x768xbf16, #tpu.memory_space<vmem>>, vector<1x8x768xbf16>,
    return
  }
  func.func @transform_0(%arg0: i32, %arg1: i32) -> (i32, i32, i32) {
    %c0_i32 = arith.constant 0 : i32
    %c0_i32_0 = arith.constant 0 : i32
    return %arg0, %c0_i32, %arg1 : i32, i32, i32
  }
  func.func @transform_1(%arg0: i32, %arg1: i32) -> (i32, i32, i32) {
    %c1_i32 = arith.constant 1 : i32
    %0 = arith.addi %arg1, %c1_i32 : i32
    %c6_i32 = arith.constant 6 : i32
    %1 = arith.muli %0, %c6_i32 : i32
    %c0_i32 = arith.constant 0 : i32
    %c0_i32_0 = arith.constant 0 : i32
    return %arg0, %c0_i32, %1 : i32, i32, i32
  }
  func.func @transform_2(%arg0: i32, %arg1: i32) -> (i32, i32) {
    %c0_i32 = arith.constant 0 : i32
    %c0_i32_0 = arith.constant 0 : i32
    %c0_i32_1 = arith.constant 0 : i32
    return %c0_i32, %c0_i32_0 : i32, i32
  }
  func.func @transform_3(%arg0: i32, %arg1: i32) -> (i32, i32) {
    %c0_i32 = arith.constant 0 : i32
    %c0_i32_0 = arith.constant 0 : i32
    %c0_i32_1 = arith.constant 0 : i32
    return %c0_i32, %c0_i32_0 : i32, i32
  }
  func.func @transform_4(%arg0: i32, %arg1: i32) -> (i32, i32, i32) {
    %c0_i32 = arith.constant 0 : i32
    %c0_i32_0 = arith.constant 0 : i32
    return %arg0, %c0_i32, %arg1 : i32, i32, i32
  }
}

module attributes {stable_mosaic.version = 11 : i64} {
  func.func @_shift_conv_kernel(%arg0: i32, %arg1: i32, %arg2: memref<1x8x1024xbf16, #tpu.memory_space<vmem>>, %arg3: memref<1x8x512xbf16, #tpu.memory_space<vmem>>, %arg4: memref<8x24xbf16, #tpu.memory_space<vmem>>, %arg5: memref<8x1xf32, #tpu.memory_space<vmem>>, %arg6: memref<1x8x1024xbf16, #tpu.memory_space<vmem>>, %arg7: memref<8x1536xbf16, #tpu.memory_space<vmem>>, %arg8: memref<24x1024xbf16, #tpu.memory_space<vmem>>) attributes {dimension_semantics = [#tpu.dimension_semantics<parallel>, #tpu.dimension_semantics<parallel>], iteration_bounds = array<i64: 1, 1>, scalar_prefetch = 0 : i64, scratch_operands = 2 : i64, tpu.core_type = #tpu.core_type<tc>, window_params = [{transform_indices = @transform_0, window_bounds = array<i64: 1, 8, 1024>}, {transform_indices = @transform_1, window_bounds = array<i64: 1, 8, 512>}, {pipeline_mode = #tpu.pipeline_mode<synchronous>, transform_indices = @transform_2, window_bounds = array<i64: 8, 24>}, {pipeline_mode = #tpu.pipeline_mode<synchronous>, transform_indices = @transform_3, window_bounds = array<i64: 8, 1>}, {transform_indices = @transform_4, window_bounds = array<i64: 1, 8, 1024>}]} {
    %c0 = arith.constant 0 : index
    %c0_0 = arith.constant 0 : index
    %c0_1 = arith.constant 0 : index
    %0 = vector.load %arg2[%c0, %c0_0, %c0_1] : memref<1x8x1024xbf16, #tpu.memory_space<vmem>>, vector<1x8x1024xbf16>
    %1 = vector.shape_cast %0 : vector<1x8x1024xbf16> to vector<8x1024xbf16>
    %c0_2 = arith.constant 0 : index
    %c0_3 = arith.constant 0 : index
    %2 = vector.load %arg7[%c0_2, %c0_3] : memref<8x1536xbf16, #tpu.memory_space<vmem>>, vector<8x1024xbf16>
    tpu.vector_store %arg7[%c0_2, %c0_3], %1 {strides = array<i32>} : memref<8x1536xbf16, #tpu.memory_space<vmem>>, vector<8x1024xbf16>,
    %c0_4 = arith.constant 0 : index
    %c0_5 = arith.constant 0 : index
    %c0_6 = arith.constant 0 : index
    %3 = vector.load %arg3[%c0_4, %c0_5, %c0_6] : memref<1x8x512xbf16, #tpu.memory_space<vmem>>, vector<1x8x512xbf16>
    %4 = vector.shape_cast %3 : vector<1x8x512xbf16> to vector<8x512xbf16>
    %c0_7 = arith.constant 0 : index
    %c1024 = arith.constant 1024 : index
    %5 = vector.load %arg7[%c0_7, %c1024] : memref<8x1536xbf16, #tpu.memory_space<vmem>>, vector<8x512xbf16>
    tpu.vector_store %arg7[%c0_7, %c1024], %4 {strides = array<i32>} : memref<8x1536xbf16, #tpu.memory_space<vmem>>, vector<8x512xbf16>,
    %c0_8 = arith.constant 0 : index
    %c0_9 = arith.constant 0 : index
    %6 = vector.load %arg7[%c0_8, %c0_9] : memref<8x1536xbf16, #tpu.memory_space<vmem>>, vector<8x1024xbf16>
    %c0_10 = arith.constant 0 : index
    %c0_11 = arith.constant 0 : index
    %7 = vector.load %arg8[%c0_10, %c0_11] : memref<24x1024xbf16, #tpu.memory_space<vmem>>, vector<8x1024xbf16>
    tpu.vector_store %arg8[%c0_10, %c0_11], %6 {strides = array<i32>} : memref<24x1024xbf16, #tpu.memory_space<vmem>>, vector<8x1024xbf16>,
    %c0_12 = arith.constant 0 : index
    %c256 = arith.constant 256 : index
    %8 = vector.load %arg7[%c0_12, %c256] : memref<8x1536xbf16, #tpu.memory_space<vmem>>, vector<8x1024xbf16>
    %c8 = arith.constant 8 : index
    %c0_13 = arith.constant 0 : index
    %9 = vector.load %arg8[%c8, %c0_13] : memref<24x1024xbf16, #tpu.memory_space<vmem>>, vector<8x1024xbf16>
    tpu.vector_store %arg8[%c8, %c0_13], %8 {strides = array<i32>} : memref<24x1024xbf16, #tpu.memory_space<vmem>>, vector<8x1024xbf16>,
    %c0_14 = arith.constant 0 : index
    %c512 = arith.constant 512 : index
    %10 = vector.load %arg7[%c0_14, %c512] : memref<8x1536xbf16, #tpu.memory_space<vmem>>, vector<8x1024xbf16>
    %c16 = arith.constant 16 : index
    %c0_15 = arith.constant 0 : index
    %11 = vector.load %arg8[%c16, %c0_15] : memref<24x1024xbf16, #tpu.memory_space<vmem>>, vector<8x1024xbf16>
    tpu.vector_store %arg8[%c16, %c0_15], %10 {strides = array<i32>} : memref<24x1024xbf16, #tpu.memory_space<vmem>>, vector<8x1024xbf16>,
    %c0_16 = arith.constant 0 : index
    %c0_17 = arith.constant 0 : index
    %12 = vector.load %arg8[%c0_16, %c0_17] : memref<24x1024xbf16, #tpu.memory_space<vmem>>, vector<24x1024xbf16>
    %c0_18 = arith.constant 0 : index
    %c0_19 = arith.constant 0 : index
    %13 = vector.load %arg4[%c0_18, %c0_19] : memref<8x24xbf16, #tpu.memory_space<vmem>>, vector<8x24xbf16>
    %cst = arith.constant dense<0.000000e+00> : vector<8x1024xf32>
    %14 = tpu.matmul %13, %12, %cst {dimension_numbers = #tpu.dot_dimension_numbers<[1], [0], [0], [1], [0, 0, 1, 1], [], []>} : vector<8x24xbf16>, vector<24x1024xbf16>, vector<8x1024xf32> -> vector<8x1024xf32>
    %c0_20 = arith.constant 0 : index
    %c0_21 = arith.constant 0 : index
    %15 = vector.load %arg5[%c0_20, %c0_21] : memref<8x1xf32, #tpu.memory_space<vmem>>, vector<8x1xf32>
    %16 = vector.broadcast %15 : vector<8x1xf32> to vector<8x1024xf32>
    %17 = arith.addf %14, %16 : vector<8x1024xf32>
    %cst_22 = arith.constant 0.000000e+00 : f32
    %18 = vector.broadcast %cst_22 : f32 to vector<8x1024xf32>
    %19 = arith.cmpf oge, %17, %18 : vector<8x1024xf32>
    %cst_23 = arith.constant 0.00999999977 : f32
    %20 = vector.broadcast %cst_23 : f32 to vector<8x1024xf32>
    %21 = arith.mulf %20, %17 : vector<8x1024xf32>
    %22 = arith.select %19, %17, %21 : vector<8x1024xi1>, vector<8x1024xf32>
    %23 = arith.truncf %22 : vector<8x1024xf32> to vector<8x1024xbf16>
    %c0_24 = arith.constant 0 : index
    %c0_25 = arith.constant 0 : index
    %c0_26 = arith.constant 0 : index
    %24 = vector.load %arg6[%c0_24, %c0_25, %c0_26] : memref<1x8x1024xbf16, #tpu.memory_space<vmem>>, vector<1x8x1024xbf16>
    %25 = vector.shape_cast %24 : vector<1x8x1024xbf16> to vector<8x1024xbf16>
    %26 = vector.shape_cast %23 : vector<8x1024xbf16> to vector<1x8x1024xbf16>
    tpu.vector_store %arg6[%c0_24, %c0_25, %c0_26], %26 {strides = array<i32>} : memref<1x8x1024xbf16, #tpu.memory_space<vmem>>, vector<1x8x1024xbf16>,
    return
  }
  func.func @transform_0(%arg0: i32, %arg1: i32) -> (i32, i32, i32) {
    %c0_i32 = arith.constant 0 : i32
    %c0_i32_0 = arith.constant 0 : i32
    return %arg0, %c0_i32, %arg1 : i32, i32, i32
  }
  func.func @transform_1(%arg0: i32, %arg1: i32) -> (i32, i32, i32) {
    %c1_i32 = arith.constant 1 : i32
    %0 = arith.addi %arg1, %c1_i32 : i32
    %c2_i32 = arith.constant 2 : i32
    %1 = arith.muli %0, %c2_i32 : i32
    %c0_i32 = arith.constant 0 : i32
    %c0_i32_0 = arith.constant 0 : i32
    return %arg0, %c0_i32, %1 : i32, i32, i32
  }
  func.func @transform_2(%arg0: i32, %arg1: i32) -> (i32, i32) {
    %c0_i32 = arith.constant 0 : i32
    %c0_i32_0 = arith.constant 0 : i32
    %c0_i32_1 = arith.constant 0 : i32
    return %c0_i32, %c0_i32_0 : i32, i32
  }
  func.func @transform_3(%arg0: i32, %arg1: i32) -> (i32, i32) {
    %c0_i32 = arith.constant 0 : i32
    %c0_i32_0 = arith.constant 0 : i32
    %c0_i32_1 = arith.constant 0 : i32
    return %c0_i32, %c0_i32_0 : i32, i32
  }
  func.func @transform_4(%arg0: i32, %arg1: i32) -> (i32, i32, i32) {
    %c0_i32 = arith.constant 0 : i32
    %c0_i32_0 = arith.constant 0 : i32
    return %arg0, %c0_i32, %arg1 : i32, i32, i32
  }
}

module attributes {stable_mosaic.version = 11 : i64} {
  func.func @_shift_conv_kernel(%arg0: i32, %arg1: i32, %arg2: memref<1x8x256xbf16, #tpu.memory_space<vmem>>, %arg3: memref<1x8x128xbf16, #tpu.memory_space<vmem>>, %arg4: memref<12x72xbf16, #tpu.memory_space<vmem>>, %arg5: memref<12x1xf32, #tpu.memory_space<vmem>>, %arg6: memref<1x12x256xbf16, #tpu.memory_space<vmem>>, %arg7: memref<8x384xbf16, #tpu.memory_space<vmem>>, %arg8: memref<72x256xbf16, #tpu.memory_space<vmem>>) attributes {dimension_semantics = [#tpu.dimension_semantics<parallel>, #tpu.dimension_semantics<parallel>], iteration_bounds = array<i64: 1, 1>, scalar_prefetch = 0 : i64, scratch_operands = 2 : i64, tpu.core_type = #tpu.core_type<tc>, window_params = [{transform_indices = @transform_0, window_bounds = array<i64: 1, 8, 256>}, {transform_indices = @transform_1, window_bounds = array<i64: 1, 8, 128>}, {pipeline_mode = #tpu.pipeline_mode<synchronous>, transform_indices = @transform_2, window_bounds = array<i64: 12, 72>}, {pipeline_mode = #tpu.pipeline_mode<synchronous>, transform_indices = @transform_3, window_bounds = array<i64: 12, 1>}, {transform_indices = @transform_4, window_bounds = array<i64: 1, 12, 256>}]} {
    %c0 = arith.constant 0 : index
    %c0_0 = arith.constant 0 : index
    %c0_1 = arith.constant 0 : index
    %0 = vector.load %arg2[%c0, %c0_0, %c0_1] : memref<1x8x256xbf16, #tpu.memory_space<vmem>>, vector<1x8x256xbf16>
    %1 = vector.shape_cast %0 : vector<1x8x256xbf16> to vector<8x256xbf16>
    %c0_2 = arith.constant 0 : index
    %c0_3 = arith.constant 0 : index
    %2 = vector.load %arg7[%c0_2, %c0_3] : memref<8x384xbf16, #tpu.memory_space<vmem>>, vector<8x256xbf16>
    tpu.vector_store %arg7[%c0_2, %c0_3], %1 {strides = array<i32>} : memref<8x384xbf16, #tpu.memory_space<vmem>>, vector<8x256xbf16>,
    %c0_4 = arith.constant 0 : index
    %c0_5 = arith.constant 0 : index
    %c0_6 = arith.constant 0 : index
    %3 = vector.load %arg3[%c0_4, %c0_5, %c0_6] : memref<1x8x128xbf16, #tpu.memory_space<vmem>>, vector<1x8x128xbf16>
    %4 = vector.shape_cast %3 : vector<1x8x128xbf16> to vector<8x128xbf16>
    %c0_7 = arith.constant 0 : index
    %c256 = arith.constant 256 : index
    %5 = vector.load %arg7[%c0_7, %c256] : memref<8x384xbf16, #tpu.memory_space<vmem>>, vector<8x128xbf16>
    tpu.vector_store %arg7[%c0_7, %c256], %4 {strides = array<i32>} : memref<8x384xbf16, #tpu.memory_space<vmem>>, vector<8x128xbf16>,
    %c0_8 = arith.constant 0 : index
    %c0_9 = arith.constant 0 : index
    %6 = vector.load %arg7[%c0_8, %c0_9] : memref<8x384xbf16, #tpu.memory_space<vmem>>, vector<8x256xbf16>
    %c0_10 = arith.constant 0 : index
    %c0_11 = arith.constant 0 : index
    %7 = vector.load %arg8[%c0_10, %c0_11] : memref<72x256xbf16, #tpu.memory_space<vmem>>, vector<8x256xbf16>
    tpu.vector_store %arg8[%c0_10, %c0_11], %6 {strides = array<i32>} : memref<72x256xbf16, #tpu.memory_space<vmem>>, vector<8x256xbf16>,
    %c0_12 = arith.constant 0 : index
    %c1 = arith.constant 1 : index
    %8 = vector.load %arg7[%c0_12, %c1] : memref<8x384xbf16, #tpu.memory_space<vmem>>, vector<8x256xbf16>
    %c8 = arith.constant 8 : index
    %c0_13 = arith.constant 0 : index
    %9 = vector.load %arg8[%c8, %c0_13] : memref<72x256xbf16, #tpu.memory_space<vmem>>, vector<8x256xbf16>
    tpu.vector_store %arg8[%c8, %c0_13], %8 {strides = array<i32>} : memref<72x256xbf16, #tpu.memory_space<vmem>>, vector<8x256xbf16>,
    %c0_14 = arith.constant 0 : index
    %c2 = arith.constant 2 : index
    %10 = vector.load %arg7[%c0_14, %c2] : memref<8x384xbf16, #tpu.memory_space<vmem>>, vector<8x256xbf16>
    %c16 = arith.constant 16 : index
    %c0_15 = arith.constant 0 : index
    %11 = vector.load %arg8[%c16, %c0_15] : memref<72x256xbf16, #tpu.memory_space<vmem>>, vector<8x256xbf16>
    tpu.vector_store %arg8[%c16, %c0_15], %10 {strides = array<i32>} : memref<72x256xbf16, #tpu.memory_space<vmem>>, vector<8x256xbf16>,
    %c0_16 = arith.constant 0 : index
    %c10 = arith.constant 10 : index
    %12 = vector.load %arg7[%c0_16, %c10] : memref<8x384xbf16, #tpu.memory_space<vmem>>, vector<8x256xbf16>
    %c24 = arith.constant 24 : index
    %c0_17 = arith.constant 0 : index
    %13 = vector.load %arg8[%c24, %c0_17] : memref<72x256xbf16, #tpu.memory_space<vmem>>, vector<8x256xbf16>
    tpu.vector_store %arg8[%c24, %c0_17], %12 {strides = array<i32>} : memref<72x256xbf16, #tpu.memory_space<vmem>>, vector<8x256xbf16>,
    %c0_18 = arith.constant 0 : index
    %c11 = arith.constant 11 : index
    %14 = vector.load %arg7[%c0_18, %c11] : memref<8x384xbf16, #tpu.memory_space<vmem>>, vector<8x256xbf16>
    %c32 = arith.constant 32 : index
    %c0_19 = arith.constant 0 : index
    %15 = vector.load %arg8[%c32, %c0_19] : memref<72x256xbf16, #tpu.memory_space<vmem>>, vector<8x256xbf16>
    tpu.vector_store %arg8[%c32, %c0_19], %14 {strides = array<i32>} : memref<72x256xbf16, #tpu.memory_space<vmem>>, vector<8x256xbf16>,
    %c0_20 = arith.constant 0 : index
    %c12 = arith.constant 12 : index
    %16 = vector.load %arg7[%c0_20, %c12] : memref<8x384xbf16, #tpu.memory_space<vmem>>, vector<8x256xbf16>
    %c40 = arith.constant 40 : index
    %c0_21 = arith.constant 0 : index
    %17 = vector.load %arg8[%c40, %c0_21] : memref<72x256xbf16, #tpu.memory_space<vmem>>, vector<8x256xbf16>
    tpu.vector_store %arg8[%c40, %c0_21], %16 {strides = array<i32>} : memref<72x256xbf16, #tpu.memory_space<vmem>>, vector<8x256xbf16>,
    %c0_22 = arith.constant 0 : index
    %c20 = arith.constant 20 : index
    %18 = vector.load %arg7[%c0_22, %c20] : memref<8x384xbf16, #tpu.memory_space<vmem>>, vector<8x256xbf16>
    %c48 = arith.constant 48 : index
    %c0_23 = arith.constant 0 : index
    %19 = vector.load %arg8[%c48, %c0_23] : memref<72x256xbf16, #tpu.memory_space<vmem>>, vector<8x256xbf16>
    tpu.vector_store %arg8[%c48, %c0_23], %18 {strides = array<i32>} : memref<72x256xbf16, #tpu.memory_space<vmem>>, vector<8x256xbf16>,
    %c0_24 = arith.constant 0 : index
    %c21 = arith.constant 21 : index
    %20 = vector.load %arg7[%c0_24, %c21] : memref<8x384xbf16, #tpu.memory_space<vmem>>, vector<8x256xbf16>
    %c56 = arith.constant 56 : index
    %c0_25 = arith.constant 0 : index
    %21 = vector.load %arg8[%c56, %c0_25] : memref<72x256xbf16, #tpu.memory_space<vmem>>, vector<8x256xbf16>
    tpu.vector_store %arg8[%c56, %c0_25], %20 {strides = array<i32>} : memref<72x256xbf16, #tpu.memory_space<vmem>>, vector<8x256xbf16>,
    %c0_26 = arith.constant 0 : index
    %c22 = arith.constant 22 : index
    %22 = vector.load %arg7[%c0_26, %c22] : memref<8x384xbf16, #tpu.memory_space<vmem>>, vector<8x256xbf16>
    %c64 = arith.constant 64 : index
    %c0_27 = arith.constant 0 : index
    %23 = vector.load %arg8[%c64, %c0_27] : memref<72x256xbf16, #tpu.memory_space<vmem>>, vector<8x256xbf16>
    tpu.vector_store %arg8[%c64, %c0_27], %22 {strides = array<i32>} : memref<72x256xbf16, #tpu.memory_space<vmem>>, vector<8x256xbf16>,
    %c0_28 = arith.constant 0 : index
    %c0_29 = arith.constant 0 : index
    %24 = vector.load %arg8[%c0_28, %c0_29] : memref<72x256xbf16, #tpu.memory_space<vmem>>, vector<72x256xbf16>
    %c0_30 = arith.constant 0 : index
    %c0_31 = arith.constant 0 : index
    %25 = vector.load %arg4[%c0_30, %c0_31] : memref<12x72xbf16, #tpu.memory_space<vmem>>, vector<12x72xbf16>
    %cst = arith.constant dense<0.000000e+00> : vector<12x256xf32>
    %26 = tpu.matmul %25, %24, %cst {dimension_numbers = #tpu.dot_dimension_numbers<[1], [0], [0], [1], [0, 0, 1, 1], [], []>} : vector<12x72xbf16>, vector<72x256xbf16>, vector<12x256xf32> -> vector<12x256xf32>
    %c0_32 = arith.constant 0 : index
    %c0_33 = arith.constant 0 : index
    %27 = vector.load %arg5[%c0_32, %c0_33] : memref<12x1xf32, #tpu.memory_space<vmem>>, vector<12x1xf32>
    %28 = vector.broadcast %27 : vector<12x1xf32> to vector<12x256xf32>
    %29 = arith.addf %26, %28 : vector<12x256xf32>
    %cst_34 = arith.constant 0.000000e+00 : f32
    %30 = vector.broadcast %cst_34 : f32 to vector<12x256xf32>
    %31 = arith.cmpf oge, %29, %30 : vector<12x256xf32>
    %cst_35 = arith.constant 0.00999999977 : f32
    %32 = vector.broadcast %cst_35 : f32 to vector<12x256xf32>
    %33 = arith.mulf %32, %29 : vector<12x256xf32>
    %34 = arith.select %31, %29, %33 : vector<12x256xi1>, vector<12x256xf32>
    %35 = arith.truncf %34 : vector<12x256xf32> to vector<12x256xbf16>
    %c0_36 = arith.constant 0 : index
    %c0_37 = arith.constant 0 : index
    %c0_38 = arith.constant 0 : index
    %36 = vector.load %arg6[%c0_36, %c0_37, %c0_38] : memref<1x12x256xbf16, #tpu.memory_space<vmem>>, vector<1x12x256xbf16>
    %37 = vector.shape_cast %36 : vector<1x12x256xbf16> to vector<12x256xbf16>
    %38 = vector.shape_cast %35 : vector<12x256xbf16> to vector<1x12x256xbf16>
    tpu.vector_store %arg6[%c0_36, %c0_37, %c0_38], %38 {strides = array<i32>} : memref<1x12x256xbf16, #tpu.memory_space<vmem>>, vector<1x12x256xbf16>,
    return
  }
  func.func @transform_0(%arg0: i32, %arg1: i32) -> (i32, i32, i32) {
    %c0_i32 = arith.constant 0 : i32
    %c0_i32_0 = arith.constant 0 : i32
    return %arg0, %c0_i32, %arg1 : i32, i32, i32
  }
  func.func @transform_1(%arg0: i32, %arg1: i32) -> (i32, i32, i32) {
    %c1_i32 = arith.constant 1 : i32
    %0 = arith.addi %arg1, %c1_i32 : i32
    %c2_i32 = arith.constant 2 : i32
    %1 = arith.muli %0, %c2_i32 : i32
    %c0_i32 = arith.constant 0 : i32
    %c0_i32_0 = arith.constant 0 : i32
    return %arg0, %c0_i32, %1 : i32, i32, i32
  }
  func.func @transform_2(%arg0: i32, %arg1: i32) -> (i32, i32) {
    %c0_i32 = arith.constant 0 : i32
    %c0_i32_0 = arith.constant 0 : i32
    %c0_i32_1 = arith.constant 0 : i32
    return %c0_i32, %c0_i32_0 : i32, i32
  }
  func.func @transform_3(%arg0: i32, %arg1: i32) -> (i32, i32) {
    %c0_i32 = arith.constant 0 : i32
    %c0_i32_0 = arith.constant 0 : i32
    %c0_i32_1 = arith.constant 0 : i32
    return %c0_i32, %c0_i32_0 : i32, i32
  }
  func.func @transform_4(%arg0: i32, %arg1: i32) -> (i32, i32, i32) {
    %c0_i32 = arith.constant 0 : i32
    %c0_i32_0 = arith.constant 0 : i32
    return %arg0, %c0_i32, %arg1 : i32, i32, i32
  }
}

module attributes {stable_mosaic.version = 11 : i64} {
  func.func @_shift_conv_kernel(%arg0: i32, %arg1: i32, %arg2: memref<1x12x256xbf16, #tpu.memory_space<vmem>>, %arg3: memref<1x12x128xbf16, #tpu.memory_space<vmem>>, %arg4: memref<12x36xbf16, #tpu.memory_space<vmem>>, %arg5: memref<12x1xf32, #tpu.memory_space<vmem>>, %arg6: memref<1x12x256xbf16, #tpu.memory_space<vmem>>, %arg7: memref<12x384xbf16, #tpu.memory_space<vmem>>, %arg8: memref<36x256xbf16, #tpu.memory_space<vmem>>) attributes {dimension_semantics = [#tpu.dimension_semantics<parallel>, #tpu.dimension_semantics<parallel>], iteration_bounds = array<i64: 1, 1>, scalar_prefetch = 0 : i64, scratch_operands = 2 : i64, tpu.core_type = #tpu.core_type<tc>, window_params = [{transform_indices = @transform_0, window_bounds = array<i64: 1, 12, 256>}, {transform_indices = @transform_1, window_bounds = array<i64: 1, 12, 128>}, {pipeline_mode = #tpu.pipeline_mode<synchronous>, transform_indices = @transform_2, window_bounds = array<i64: 12, 36>}, {pipeline_mode = #tpu.pipeline_mode<synchronous>, transform_indices = @transform_3, window_bounds = array<i64: 12, 1>}, {transform_indices = @transform_4, window_bounds = array<i64: 1, 12, 256>}]} {
    %c0 = arith.constant 0 : index
    %c0_0 = arith.constant 0 : index
    %c0_1 = arith.constant 0 : index
    %0 = vector.load %arg2[%c0, %c0_0, %c0_1] : memref<1x12x256xbf16, #tpu.memory_space<vmem>>, vector<1x12x256xbf16>
    %1 = vector.shape_cast %0 : vector<1x12x256xbf16> to vector<12x256xbf16>
    %c0_2 = arith.constant 0 : index
    %c0_3 = arith.constant 0 : index
    %2 = vector.load %arg7[%c0_2, %c0_3] : memref<12x384xbf16, #tpu.memory_space<vmem>>, vector<12x256xbf16>
    tpu.vector_store %arg7[%c0_2, %c0_3], %1 {strides = array<i32>} : memref<12x384xbf16, #tpu.memory_space<vmem>>, vector<12x256xbf16>,
    %c0_4 = arith.constant 0 : index
    %c0_5 = arith.constant 0 : index
    %c0_6 = arith.constant 0 : index
    %3 = vector.load %arg3[%c0_4, %c0_5, %c0_6] : memref<1x12x128xbf16, #tpu.memory_space<vmem>>, vector<1x12x128xbf16>
    %4 = vector.shape_cast %3 : vector<1x12x128xbf16> to vector<12x128xbf16>
    %c0_7 = arith.constant 0 : index
    %c256 = arith.constant 256 : index
    %5 = vector.load %arg7[%c0_7, %c256] : memref<12x384xbf16, #tpu.memory_space<vmem>>, vector<12x128xbf16>
    tpu.vector_store %arg7[%c0_7, %c256], %4 {strides = array<i32>} : memref<12x384xbf16, #tpu.memory_space<vmem>>, vector<12x128xbf16>,
    %c0_8 = arith.constant 0 : index
    %c0_9 = arith.constant 0 : index
    %6 = vector.load %arg7[%c0_8, %c0_9] : memref<12x384xbf16, #tpu.memory_space<vmem>>, vector<12x256xbf16>
    %c0_10 = arith.constant 0 : index
    %c0_11 = arith.constant 0 : index
    %7 = vector.load %arg8[%c0_10, %c0_11] : memref<36x256xbf16, #tpu.memory_space<vmem>>, vector<12x256xbf16>
    tpu.vector_store %arg8[%c0_10, %c0_11], %6 {strides = array<i32>} : memref<36x256xbf16, #tpu.memory_space<vmem>>, vector<12x256xbf16>,
    %c0_12 = arith.constant 0 : index
    %c64 = arith.constant 64 : index
    %8 = vector.load %arg7[%c0_12, %c64] : memref<12x384xbf16, #tpu.memory_space<vmem>>, vector<12x256xbf16>
    %c12 = arith.constant 12 : index
    %c0_13 = arith.constant 0 : index
    %9 = vector.load %arg8[%c12, %c0_13] : memref<36x256xbf16, #tpu.memory_space<vmem>>, vector<12x256xbf16>
    tpu.vector_store %arg8[%c12, %c0_13], %8 {strides = array<i32>} : memref<36x256xbf16, #tpu.memory_space<vmem>>, vector<12x256xbf16>,
    %c0_14 = arith.constant 0 : index
    %c128 = arith.constant 128 : index
    %10 = vector.load %arg7[%c0_14, %c128] : memref<12x384xbf16, #tpu.memory_space<vmem>>, vector<12x256xbf16>
    %c24 = arith.constant 24 : index
    %c0_15 = arith.constant 0 : index
    %11 = vector.load %arg8[%c24, %c0_15] : memref<36x256xbf16, #tpu.memory_space<vmem>>, vector<12x256xbf16>
    tpu.vector_store %arg8[%c24, %c0_15], %10 {strides = array<i32>} : memref<36x256xbf16, #tpu.memory_space<vmem>>, vector<12x256xbf16>,
    %c0_16 = arith.constant 0 : index
    %c0_17 = arith.constant 0 : index
    %12 = vector.load %arg8[%c0_16, %c0_17] : memref<36x256xbf16, #tpu.memory_space<vmem>>, vector<36x256xbf16>
    %c0_18 = arith.constant 0 : index
    %c0_19 = arith.constant 0 : index
    %13 = vector.load %arg4[%c0_18, %c0_19] : memref<12x36xbf16, #tpu.memory_space<vmem>>, vector<12x36xbf16>
    %cst = arith.constant dense<0.000000e+00> : vector<12x256xf32>
    %14 = tpu.matmul %13, %12, %cst {dimension_numbers = #tpu.dot_dimension_numbers<[1], [0], [0], [1], [0, 0, 1, 1], [], []>} : vector<12x36xbf16>, vector<36x256xbf16>, vector<12x256xf32> -> vector<12x256xf32>
    %c0_20 = arith.constant 0 : index
    %c0_21 = arith.constant 0 : index
    %15 = vector.load %arg5[%c0_20, %c0_21] : memref<12x1xf32, #tpu.memory_space<vmem>>, vector<12x1xf32>
    %16 = vector.broadcast %15 : vector<12x1xf32> to vector<12x256xf32>
    %17 = arith.addf %14, %16 : vector<12x256xf32>
    %cst_22 = arith.constant 0.000000e+00 : f32
    %18 = vector.broadcast %cst_22 : f32 to vector<12x256xf32>
    %19 = arith.cmpf oge, %17, %18 : vector<12x256xf32>
    %cst_23 = arith.constant 0.00999999977 : f32
    %20 = vector.broadcast %cst_23 : f32 to vector<12x256xf32>
    %21 = arith.mulf %20, %17 : vector<12x256xf32>
    %22 = arith.select %19, %17, %21 : vector<12x256xi1>, vector<12x256xf32>
    %23 = arith.truncf %22 : vector<12x256xf32> to vector<12x256xbf16>
    %c0_24 = arith.constant 0 : index
    %c0_25 = arith.constant 0 : index
    %c0_26 = arith.constant 0 : index
    %24 = vector.load %arg6[%c0_24, %c0_25, %c0_26] : memref<1x12x256xbf16, #tpu.memory_space<vmem>>, vector<1x12x256xbf16>
    %25 = vector.shape_cast %24 : vector<1x12x256xbf16> to vector<12x256xbf16>
    %26 = vector.shape_cast %23 : vector<12x256xbf16> to vector<1x12x256xbf16>
    tpu.vector_store %arg6[%c0_24, %c0_25, %c0_26], %26 {strides = array<i32>} : memref<1x12x256xbf16, #tpu.memory_space<vmem>>, vector<1x12x256xbf16>,
    return
  }
  func.func @transform_0(%arg0: i32, %arg1: i32) -> (i32, i32, i32) {
    %c0_i32 = arith.constant 0 : i32
    %c0_i32_0 = arith.constant 0 : i32
    return %arg0, %c0_i32, %arg1 : i32, i32, i32
  }
  func.func @transform_1(%arg0: i32, %arg1: i32) -> (i32, i32, i32) {
    %c1_i32 = arith.constant 1 : i32
    %0 = arith.addi %arg1, %c1_i32 : i32
    %c2_i32 = arith.constant 2 : i32
    %1 = arith.muli %0, %c2_i32 : i32
    %c0_i32 = arith.constant 0 : i32
    %c0_i32_0 = arith.constant 0 : i32
    return %arg0, %c0_i32, %1 : i32, i32, i32
  }
  func.func @transform_2(%arg0: i32, %arg1: i32) -> (i32, i32) {
    %c0_i32 = arith.constant 0 : i32
    %c0_i32_0 = arith.constant 0 : i32
    %c0_i32_1 = arith.constant 0 : i32
    return %c0_i32, %c0_i32_0 : i32, i32
  }
  func.func @transform_3(%arg0: i32, %arg1: i32) -> (i32, i32) {
    %c0_i32 = arith.constant 0 : i32
    %c0_i32_0 = arith.constant 0 : i32
    %c0_i32_1 = arith.constant 0 : i32
    return %c0_i32, %c0_i32_0 : i32, i32
  }
  func.func @transform_4(%arg0: i32, %arg1: i32) -> (i32, i32, i32) {
    %c0_i32 = arith.constant 0 : i32
    %c0_i32_0 = arith.constant 0 : i32
    return %arg0, %c0_i32, %arg1 : i32, i32, i32
  }
}

module attributes {stable_mosaic.version = 11 : i64} {
  func.func @_shift_conv_kernel(%arg0: i32, %arg1: i32, %arg2: memref<1x20x768xbf16, #tpu.memory_space<vmem>>, %arg3: memref<1x20x128xbf16, #tpu.memory_space<vmem>>, %arg4: memref<8x180xbf16, #tpu.memory_space<vmem>>, %arg5: memref<8x1xf32, #tpu.memory_space<vmem>>, %arg6: memref<1x8x768xbf16, #tpu.memory_space<vmem>>, %arg7: memref<20x896xbf16, #tpu.memory_space<vmem>>, %arg8: memref<180x768xbf16, #tpu.memory_space<vmem>>) attributes {dimension_semantics = [#tpu.dimension_semantics<parallel>, #tpu.dimension_semantics<parallel>], iteration_bounds = array<i64: 1, 1>, scalar_prefetch = 0 : i64, scratch_operands = 2 : i64, tpu.core_type = #tpu.core_type<tc>, window_params = [{transform_indices = @transform_0, window_bounds = array<i64: 1, 20, 768>}, {transform_indices = @transform_1, window_bounds = array<i64: 1, 20, 128>}, {pipeline_mode = #tpu.pipeline_mode<synchronous>, transform_indices = @transform_2, window_bounds = array<i64: 8, 180>}, {pipeline_mode = #tpu.pipeline_mode<synchronous>, transform_indices = @transform_3, window_bounds = array<i64: 8, 1>}, {transform_indices = @transform_4, window_bounds = array<i64: 1, 8, 768>}]} {
    %c0 = arith.constant 0 : index
    %c0_0 = arith.constant 0 : index
    %c0_1 = arith.constant 0 : index
    %0 = vector.load %arg2[%c0, %c0_0, %c0_1] : memref<1x20x768xbf16, #tpu.memory_space<vmem>>, vector<1x20x768xbf16>
    %1 = vector.shape_cast %0 : vector<1x20x768xbf16> to vector<20x768xbf16>
    %c0_2 = arith.constant 0 : index
    %c0_3 = arith.constant 0 : index
    %2 = vector.load %arg7[%c0_2, %c0_3] : memref<20x896xbf16, #tpu.memory_space<vmem>>, vector<20x768xbf16>
    tpu.vector_store %arg7[%c0_2, %c0_3], %1 {strides = array<i32>} : memref<20x896xbf16, #tpu.memory_space<vmem>>, vector<20x768xbf16>,
    %c0_4 = arith.constant 0 : index
    %c0_5 = arith.constant 0 : index
    %c0_6 = arith.constant 0 : index
    %3 = vector.load %arg3[%c0_4, %c0_5, %c0_6] : memref<1x20x128xbf16, #tpu.memory_space<vmem>>, vector<1x20x128xbf16>
    %4 = vector.shape_cast %3 : vector<1x20x128xbf16> to vector<20x128xbf16>
    %c0_7 = arith.constant 0 : index
    %c768 = arith.constant 768 : index
    %5 = vector.load %arg7[%c0_7, %c768] : memref<20x896xbf16, #tpu.memory_space<vmem>>, vector<20x128xbf16>
    tpu.vector_store %arg7[%c0_7, %c768], %4 {strides = array<i32>} : memref<20x896xbf16, #tpu.memory_space<vmem>>, vector<20x128xbf16>,
    %c0_8 = arith.constant 0 : index
    %c0_9 = arith.constant 0 : index
    %6 = vector.load %arg7[%c0_8, %c0_9] : memref<20x896xbf16, #tpu.memory_space<vmem>>, vector<20x768xbf16>
    %c0_10 = arith.constant 0 : index
    %c0_11 = arith.constant 0 : index
    %7 = vector.load %arg8[%c0_10, %c0_11] : memref<180x768xbf16, #tpu.memory_space<vmem>>, vector<20x768xbf16>
    tpu.vector_store %arg8[%c0_10, %c0_11], %6 {strides = array<i32>} : memref<180x768xbf16, #tpu.memory_space<vmem>>, vector<20x768xbf16>,
    %c0_12 = arith.constant 0 : index
    %c1 = arith.constant 1 : index
    %8 = vector.load %arg7[%c0_12, %c1] : memref<20x896xbf16, #tpu.memory_space<vmem>>, vector<20x768xbf16>
    %c20 = arith.constant 20 : index
    %c0_13 = arith.constant 0 : index
    %9 = vector.load %arg8[%c20, %c0_13] : memref<180x768xbf16, #tpu.memory_space<vmem>>, vector<20x768xbf16>
    tpu.vector_store %arg8[%c20, %c0_13], %8 {strides = array<i32>} : memref<180x768xbf16, #tpu.memory_space<vmem>>, vector<20x768xbf16>,
    %c0_14 = arith.constant 0 : index
    %c2 = arith.constant 2 : index
    %10 = vector.load %arg7[%c0_14, %c2] : memref<20x896xbf16, #tpu.memory_space<vmem>>, vector<20x768xbf16>
    %c40 = arith.constant 40 : index
    %c0_15 = arith.constant 0 : index
    %11 = vector.load %arg8[%c40, %c0_15] : memref<180x768xbf16, #tpu.memory_space<vmem>>, vector<20x768xbf16>
    tpu.vector_store %arg8[%c40, %c0_15], %10 {strides = array<i32>} : memref<180x768xbf16, #tpu.memory_space<vmem>>, vector<20x768xbf16>,
    %c0_16 = arith.constant 0 : index
    %c18 = arith.constant 18 : index
    %12 = vector.load %arg7[%c0_16, %c18] : memref<20x896xbf16, #tpu.memory_space<vmem>>, vector<20x768xbf16>
    %c60 = arith.constant 60 : index
    %c0_17 = arith.constant 0 : index
    %13 = vector.load %arg8[%c60, %c0_17] : memref<180x768xbf16, #tpu.memory_space<vmem>>, vector<20x768xbf16>
    tpu.vector_store %arg8[%c60, %c0_17], %12 {strides = array<i32>} : memref<180x768xbf16, #tpu.memory_space<vmem>>, vector<20x768xbf16>,
    %c0_18 = arith.constant 0 : index
    %c19 = arith.constant 19 : index
    %14 = vector.load %arg7[%c0_18, %c19] : memref<20x896xbf16, #tpu.memory_space<vmem>>, vector<20x768xbf16>
    %c80 = arith.constant 80 : index
    %c0_19 = arith.constant 0 : index
    %15 = vector.load %arg8[%c80, %c0_19] : memref<180x768xbf16, #tpu.memory_space<vmem>>, vector<20x768xbf16>
    tpu.vector_store %arg8[%c80, %c0_19], %14 {strides = array<i32>} : memref<180x768xbf16, #tpu.memory_space<vmem>>, vector<20x768xbf16>,
    %c0_20 = arith.constant 0 : index
    %c20_21 = arith.constant 20 : index
    %16 = vector.load %arg7[%c0_20, %c20_21] : memref<20x896xbf16, #tpu.memory_space<vmem>>, vector<20x768xbf16>
    %c100 = arith.constant 100 : index
    %c0_22 = arith.constant 0 : index
    %17 = vector.load %arg8[%c100, %c0_22] : memref<180x768xbf16, #tpu.memory_space<vmem>>, vector<20x768xbf16>
    tpu.vector_store %arg8[%c100, %c0_22], %16 {strides = array<i32>} : memref<180x768xbf16, #tpu.memory_space<vmem>>, vector<20x768xbf16>,
    %c0_23 = arith.constant 0 : index
    %c36 = arith.constant 36 : index
    %18 = vector.load %arg7[%c0_23, %c36] : memref<20x896xbf16, #tpu.memory_space<vmem>>, vector<20x768xbf16>
    %c120 = arith.constant 120 : index
    %c0_24 = arith.constant 0 : index
    %19 = vector.load %arg8[%c120, %c0_24] : memref<180x768xbf16, #tpu.memory_space<vmem>>, vector<20x768xbf16>
    tpu.vector_store %arg8[%c120, %c0_24], %18 {strides = array<i32>} : memref<180x768xbf16, #tpu.memory_space<vmem>>, vector<20x768xbf16>,
    %c0_25 = arith.constant 0 : index
    %c37 = arith.constant 37 : index
    %20 = vector.load %arg7[%c0_25, %c37] : memref<20x896xbf16, #tpu.memory_space<vmem>>, vector<20x768xbf16>
    %c140 = arith.constant 140 : index
    %c0_26 = arith.constant 0 : index
    %21 = vector.load %arg8[%c140, %c0_26] : memref<180x768xbf16, #tpu.memory_space<vmem>>, vector<20x768xbf16>
    tpu.vector_store %arg8[%c140, %c0_26], %20 {strides = array<i32>} : memref<180x768xbf16, #tpu.memory_space<vmem>>, vector<20x768xbf16>,
    %c0_27 = arith.constant 0 : index
    %c38 = arith.constant 38 : index
    %22 = vector.load %arg7[%c0_27, %c38] : memref<20x896xbf16, #tpu.memory_space<vmem>>, vector<20x768xbf16>
    %c160 = arith.constant 160 : index
    %c0_28 = arith.constant 0 : index
    %23 = vector.load %arg8[%c160, %c0_28] : memref<180x768xbf16, #tpu.memory_space<vmem>>, vector<20x768xbf16>
    tpu.vector_store %arg8[%c160, %c0_28], %22 {strides = array<i32>} : memref<180x768xbf16, #tpu.memory_space<vmem>>, vector<20x768xbf16>,
    %c0_29 = arith.constant 0 : index
    %c0_30 = arith.constant 0 : index
    %24 = vector.load %arg8[%c0_29, %c0_30] : memref<180x768xbf16, #tpu.memory_space<vmem>>, vector<180x768xbf16>
    %c0_31 = arith.constant 0 : index
    %c0_32 = arith.constant 0 : index
    %25 = vector.load %arg4[%c0_31, %c0_32] : memref<8x180xbf16, #tpu.memory_space<vmem>>, vector<8x180xbf16>
    %cst = arith.constant dense<0.000000e+00> : vector<8x768xf32>
    %26 = tpu.matmul %25, %24, %cst {dimension_numbers = #tpu.dot_dimension_numbers<[1], [0], [0], [1], [0, 0, 1, 1], [], []>} : vector<8x180xbf16>, vector<180x768xbf16>, vector<8x768xf32> -> vector<8x768xf32>
    %c0_33 = arith.constant 0 : index
    %c0_34 = arith.constant 0 : index
    %27 = vector.load %arg5[%c0_33, %c0_34] : memref<8x1xf32, #tpu.memory_space<vmem>>, vector<8x1xf32>
    %28 = vector.broadcast %27 : vector<8x1xf32> to vector<8x768xf32>
    %29 = arith.addf %26, %28 : vector<8x768xf32>
    %cst_35 = arith.constant 0.000000e+00 : f32
    %30 = vector.broadcast %cst_35 : f32 to vector<8x768xf32>
    %31 = arith.cmpf oge, %29, %30 : vector<8x768xf32>
    %cst_36 = arith.constant 0.00999999977 : f32
    %32 = vector.broadcast %cst_36 : f32 to vector<8x768xf32>
    %33 = arith.mulf %32, %29 : vector<8x768xf32>
    %34 = arith.select %31, %29, %33 : vector<8x768xi1>, vector<8x768xf32>
    %35 = arith.truncf %34 : vector<8x768xf32> to vector<8x768xbf16>
    %c0_37 = arith.constant 0 : index
    %c0_38 = arith.constant 0 : index
    %c0_39 = arith.constant 0 : index
    %36 = vector.load %arg6[%c0_37, %c0_38, %c0_39] : memref<1x8x768xbf16, #tpu.memory_space<vmem>>, vector<1x8x768xbf16>
    %37 = vector.shape_cast %36 : vector<1x8x768xbf16> to vector<8x768xbf16>
    %38 = vector.shape_cast %35 : vector<8x768xbf16> to vector<1x8x768xbf16>
    tpu.vector_store %arg6[%c0_37, %c0_38, %c0_39], %38 {strides = array<i32>} : memref<1x8x768xbf16, #tpu.memory_space<vmem>>, vector<1x8x768xbf16>,
    return
  }
  func.func @transform_0(%arg0: i32, %arg1: i32) -> (i32, i32, i32) {
    %c0_i32 = arith.constant 0 : i32
    %c0_i32_0 = arith.constant 0 : i32
    return %arg0, %c0_i32, %arg1 : i32, i32, i32
  }
  func.func @transform_1(%arg0: i32, %arg1: i32) -> (i32, i32, i32) {
    %c1_i32 = arith.constant 1 : i32
    %0 = arith.addi %arg1, %c1_i32 : i32
    %c6_i32 = arith.constant 6 : i32
    %1 = arith.muli %0, %c6_i32 : i32
    %c0_i32 = arith.constant 0 : i32
    %c0_i32_0 = arith.constant 0 : i32
    return %arg0, %c0_i32, %1 : i32, i32, i32
  }
  func.func @transform_2(%arg0: i32, %arg1: i32) -> (i32, i32) {
    %c0_i32 = arith.constant 0 : i32
    %c0_i32_0 = arith.constant 0 : i32
    %c0_i32_1 = arith.constant 0 : i32
    return %c0_i32, %c0_i32_0 : i32, i32
  }
  func.func @transform_3(%arg0: i32, %arg1: i32) -> (i32, i32) {
    %c0_i32 = arith.constant 0 : i32
    %c0_i32_0 = arith.constant 0 : i32
    %c0_i32_1 = arith.constant 0 : i32
    return %c0_i32, %c0_i32_0 : i32, i32
  }
  func.func @transform_4(%arg0: i32, %arg1: i32) -> (i32, i32, i32) {
    %c0_i32 = arith.constant 0 : i32
    %c0_i32_0 = arith.constant 0 : i32
    return %arg0, %c0_i32, %arg1 : i32, i32, i32
  }
}

module attributes {stable_mosaic.version = 11 : i64} {
  func.func @_shift_conv_kernel(%arg0: i32, %arg1: i32, %arg2: memref<1x8x512xbf16, #tpu.memory_space<vmem>>, %arg3: memref<1x8x128xbf16, #tpu.memory_space<vmem>>, %arg4: memref<2x8xbf16, #tpu.memory_space<vmem>>, %arg5: memref<2x1xf32, #tpu.memory_space<vmem>>, %arg6: memref<1x2x512xf32, #tpu.memory_space<vmem>>, %arg7: memref<8x640xbf16, #tpu.memory_space<vmem>>, %arg8: memref<8x512xbf16, #tpu.memory_space<vmem>>) attributes {dimension_semantics = [#tpu.dimension_semantics<parallel>, #tpu.dimension_semantics<parallel>], iteration_bounds = array<i64: 1, 1>, scalar_prefetch = 0 : i64, scratch_operands = 2 : i64, tpu.core_type = #tpu.core_type<tc>, window_params = [{transform_indices = @transform_0, window_bounds = array<i64: 1, 8, 512>}, {transform_indices = @transform_1, window_bounds = array<i64: 1, 8, 128>}, {pipeline_mode = #tpu.pipeline_mode<synchronous>, transform_indices = @transform_2, window_bounds = array<i64: 2, 8>}, {pipeline_mode = #tpu.pipeline_mode<synchronous>, transform_indices = @transform_3, window_bounds = array<i64: 2, 1>}, {transform_indices = @transform_4, window_bounds = array<i64: 1, 2, 512>}]} {
    %c0 = arith.constant 0 : index
    %c0_0 = arith.constant 0 : index
    %c0_1 = arith.constant 0 : index
    %0 = vector.load %arg2[%c0, %c0_0, %c0_1] : memref<1x8x512xbf16, #tpu.memory_space<vmem>>, vector<1x8x512xbf16>
    %1 = vector.shape_cast %0 : vector<1x8x512xbf16> to vector<8x512xbf16>
    %c0_2 = arith.constant 0 : index
    %c0_3 = arith.constant 0 : index
    %2 = vector.load %arg4[%c0_2, %c0_3] : memref<2x8xbf16, #tpu.memory_space<vmem>>, vector<2x8xbf16>
    %cst = arith.constant dense<0.000000e+00> : vector<2x512xf32>
    %3 = tpu.matmul %2, %1, %cst {dimension_numbers = #tpu.dot_dimension_numbers<[1], [0], [0], [1], [0, 0, 1, 1], [], []>} : vector<2x8xbf16>, vector<8x512xbf16>, vector<2x512xf32> -> vector<2x512xf32>
    %c0_4 = arith.constant 0 : index
    %c0_5 = arith.constant 0 : index
    %4 = vector.load %arg5[%c0_4, %c0_5] : memref<2x1xf32, #tpu.memory_space<vmem>>, vector<2x1xf32>
    %5 = vector.broadcast %4 : vector<2x1xf32> to vector<2x512xf32>
    %6 = arith.addf %3, %5 : vector<2x512xf32>
    %c0_6 = arith.constant 0 : index
    %c0_7 = arith.constant 0 : index
    %c0_8 = arith.constant 0 : index
    %7 = vector.load %arg6[%c0_6, %c0_7, %c0_8] : memref<1x2x512xf32, #tpu.memory_space<vmem>>, vector<1x2x512xf32>
    %8 = vector.shape_cast %7 : vector<1x2x512xf32> to vector<2x512xf32>
    %9 = vector.shape_cast %6 : vector<2x512xf32> to vector<1x2x512xf32>
    tpu.vector_store %arg6[%c0_6, %c0_7, %c0_8], %9 {strides = array<i32>} : memref<1x2x512xf32, #tpu.memory_space<vmem>>, vector<1x2x512xf32>,
    return
  }
  func.func @transform_0(%arg0: i32, %arg1: i32) -> (i32, i32, i32) {
    %c0_i32 = arith.constant 0 : i32
    %c0_i32_0 = arith.constant 0 : i32
    return %arg0, %c0_i32, %arg1 : i32, i32, i32
  }
  func.func @transform_1(%arg0: i32, %arg1: i32) -> (i32, i32, i32) {
    %c1_i32 = arith.constant 1 : i32
    %0 = arith.addi %arg1, %c1_i32 : i32
    %c4_i32 = arith.constant 4 : i32
    %1 = arith.muli %0, %c4_i32 : i32
    %c0_i32 = arith.constant 0 : i32
    %c0_i32_0 = arith.constant 0 : i32
    return %arg0, %c0_i32, %1 : i32, i32, i32
  }
  func.func @transform_2(%arg0: i32, %arg1: i32) -> (i32, i32) {
    %c0_i32 = arith.constant 0 : i32
    %c0_i32_0 = arith.constant 0 : i32
    %c0_i32_1 = arith.constant 0 : i32
    return %c0_i32, %c0_i32_0 : i32, i32
  }
  func.func @transform_3(%arg0: i32, %arg1: i32) -> (i32, i32) {
    %c0_i32 = arith.constant 0 : i32
    %c0_i32_0 = arith.constant 0 : i32
    %c0_i32_1 = arith.constant 0 : i32
    return %c0_i32, %c0_i32_0 : i32, i32
  }
  func.func @transform_4(%arg0: i32, %arg1: i32) -> (i32, i32, i32) {
    %c0_i32 = arith.constant 0 : i32
    %c0_i32_0 = arith.constant 0 : i32
    return %arg0, %c0_i32, %arg1 : i32, i32, i32
  }
}

module attributes {stable_mosaic.version = 11 : i64} {
  func.func @_apply_c_kernel(%arg0: i32, %arg1: i32, %arg2: i32, %arg3: i32, %arg4: memref<1x1x1x256xf32, #tpu.memory_space<vmem>>, %arg5: memref<1x1x1x256xf32, #tpu.memory_space<vmem>>, %arg6: memref<1x1x2x256xf32, #tpu.memory_space<vmem>>, %arg7: memref<1x1x2x256xf32, #tpu.memory_space<vmem>>, %arg8: memref<1x1x1x2x256xf32, #tpu.memory_space<vmem>>, %arg9: memref<1x1x1x2x256xf32, #tpu.memory_space<vmem>>) attributes {dimension_semantics = [#tpu.dimension_semantics<parallel>, #tpu.dimension_semantics<parallel>, #tpu.dimension_semantics<parallel>, #tpu.dimension_semantics<parallel>], iteration_bounds = array<i64: 1, 1, 1, 10>, scalar_prefetch = 0 : i64, scratch_operands = 0 : i64, tpu.core_type = #tpu.core_type<tc>, window_params = [{transform_indices = @transform_0, window_bounds = array<i64: 1, 1, 1, 256>}, {transform_indices = @transform_1, window_bounds = array<i64: 1, 1, 1, 256>}, {transform_indices = @transform_2, window_bounds = array<i64: 1, 1, 2, 256>}, {transform_indices = @transform_3, window_bounds = array<i64: 1, 1, 2, 256>}, {transform_indices = @transform_4, window_bounds = array<i64: 1, 1, 1, 2, 256>}, {transform_indices = @transform_5, window_bounds = array<i64: 1, 1, 1, 2, 256>}]} {
    %c0 = arith.constant 0 : index
    %c0_0 = arith.constant 0 : index
    %c0_1 = arith.constant 0 : index
    %c0_2 = arith.constant 0 : index
    %0 = vector.load %arg4[%c0, %c0_0, %c0_1, %c0_2] : memref<1x1x1x256xf32, #tpu.memory_space<vmem>>, vector<1x1x1x256xf32>
    %1 = vector.shape_cast %0 : vector<1x1x1x256xf32> to vector<1x256xf32>
    %c0_3 = arith.constant 0 : index
    %c0_4 = arith.constant 0 : index
    %c0_5 = arith.constant 0 : index
    %c0_6 = arith.constant 0 : index
    %2 = vector.load %arg5[%c0_3, %c0_4, %c0_5, %c0_6] : memref<1x1x1x256xf32, #tpu.memory_space<vmem>>, vector<1x1x1x256xf32>
    %3 = vector.shape_cast %2 : vector<1x1x1x256xf32> to vector<1x256xf32>
    %c0_7 = arith.constant 0 : index
    %c0_8 = arith.constant 0 : index
    %c0_9 = arith.constant 0 : index
    %c0_10 = arith.constant 0 : index
    %4 = vector.load %arg6[%c0_7, %c0_8, %c0_9, %c0_10] : memref<1x1x2x256xf32, #tpu.memory_space<vmem>>, vector<1x1x2x256xf32>
    %5 = vector.shape_cast %4 : vector<1x1x2x256xf32> to vector<2x256xf32>
    %c0_11 = arith.constant 0 : index
    %c0_12 = arith.constant 0 : index
    %c0_13 = arith.constant 0 : index
    %c0_14 = arith.constant 0 : index
    %6 = vector.load %arg7[%c0_11, %c0_12, %c0_13, %c0_14] : memref<1x1x2x256xf32, #tpu.memory_space<vmem>>, vector<1x1x2x256xf32>
    %7 = vector.shape_cast %6 : vector<1x1x2x256xf32> to vector<2x256xf32>
    %8 = vector.broadcast %1 : vector<1x256xf32> to vector<2x256xf32>
    %9 = arith.mulf %8, %5 : vector<2x256xf32>
    %10 = vector.broadcast %3 : vector<1x256xf32> to vector<2x256xf32>
    %11 = arith.mulf %10, %7 : vector<2x256xf32>
    %12 = arith.subf %9, %11 : vector<2x256xf32>
    %c0_15 = arith.constant 0 : index
    %c0_16 = arith.constant 0 : index
    %c0_17 = arith.constant 0 : index
    %c0_18 = arith.constant 0 : index
    %c0_19 = arith.constant 0 : index
    %13 = vector.load %arg8[%c0_15, %c0_16, %c0_17, %c0_18, %c0_19] : memref<1x1x1x2x256xf32, #tpu.memory_space<vmem>>, vector<1x1x1x2x256xf32>
    %14 = vector.shape_cast %13 : vector<1x1x1x2x256xf32> to vector<2x256xf32>
    %15 = vector.shape_cast %12 : vector<2x256xf32> to vector<1x1x1x2x256xf32>
    tpu.vector_store %arg8[%c0_15, %c0_16, %c0_17, %c0_18, %c0_19], %15 {strides = array<i32>} : memref<1x1x1x2x256xf32, #tpu.memory_space<vmem>>, vector<1x1x1x2x256xf32>,
    %16 = vector.broadcast %1 : vector<1x256xf32> to vector<2x256xf32>
    %17 = arith.mulf %16, %7 : vector<2x256xf32>
    %18 = vector.broadcast %3 : vector<1x256xf32> to vector<2x256xf32>
    %19 = arith.mulf %18, %5 : vector<2x256xf32>
    %20 = arith.addf %17, %19 : vector<2x256xf32>
    %c0_20 = arith.constant 0 : index
    %c0_21 = arith.constant 0 : index
    %c0_22 = arith.constant 0 : index
    %c0_23 = arith.constant 0 : index
    %c0_24 = arith.constant 0 : index
    %21 = vector.load %arg9[%c0_20, %c0_21, %c0_22, %c0_23, %c0_24] : memref<1x1x1x2x256xf32, #tpu.memory_space<vmem>>, vector<1x1x1x2x256xf32>
    %22 = vector.shape_cast %21 : vector<1x1x1x2x256xf32> to vector<2x256xf32>
    %23 = vector.shape_cast %20 : vector<2x256xf32> to vector<1x1x1x2x256xf32>
    tpu.vector_store %arg9[%c0_20, %c0_21, %c0_22, %c0_23, %c0_24], %23 {strides = array<i32>} : memref<1x1x1x2x256xf32, #tpu.memory_space<vmem>>, vector<1x1x1x2x256xf32>,
    return
  }
  func.func @transform_0(%arg0: i32, %arg1: i32, %arg2: i32, %arg3: i32) -> (i32, i32, i32, i32) {
    %c0_i32 = arith.constant 0 : i32
    return %arg0, %arg3, %arg1, %arg2 : i32, i32, i32, i32
  }
  func.func @transform_1(%arg0: i32, %arg1: i32, %arg2: i32, %arg3: i32) -> (i32, i32, i32, i32) {
    %c0_i32 = arith.constant 0 : i32
    return %arg0, %arg3, %arg1, %arg2 : i32, i32, i32, i32
  }
  func.func @transform_2(%arg0: i32, %arg1: i32, %arg2: i32, %arg3: i32) -> (i32, i32, i32, i32) {
    %c0_i32 = arith.constant 0 : i32
    %c0_i32_0 = arith.constant 0 : i32
    return %arg0, %arg1, %c0_i32, %arg2 : i32, i32, i32, i32
  }
  func.func @transform_3(%arg0: i32, %arg1: i32, %arg2: i32, %arg3: i32) -> (i32, i32, i32, i32) {
    %c0_i32 = arith.constant 0 : i32
    %c0_i32_0 = arith.constant 0 : i32
    return %arg0, %arg1, %c0_i32, %arg2 : i32, i32, i32, i32
  }
  func.func @transform_4(%arg0: i32, %arg1: i32, %arg2: i32, %arg3: i32) -> (i32, i32, i32, i32, i32) {
    %c0_i32 = arith.constant 0 : i32
    %c0_i32_0 = arith.constant 0 : i32
    return %arg0, %arg3, %arg1, %c0_i32, %arg2 : i32, i32, i32, i32, i32
  }
  func.func @transform_5(%arg0: i32, %arg1: i32, %arg2: i32, %arg3: i32) -> (i32, i32, i32, i32, i32) {
    %c0_i32 = arith.constant 0 : i32
    %c0_i32_0 = arith.constant 0 : i32
    return %arg0, %arg3, %arg1, %c0_i32, %arg2 : i32, i32, i32, i32, i32
  }
}

module attributes {stable_mosaic.version = 11 : i64} {
  func.func @_dc_kernel(%arg0: i32, %arg1: i32, %arg2: i32, %arg3: i32, %arg4: memref<1xf32, #tpu.memory_space<smem>>, %arg5: memref<1x1x1x2x256xf32, #tpu.memory_space<vmem>>, %arg6: memref<1x1x1x2x256xf32, #tpu.memory_space<vmem>>, %arg7: memref<1x1x1x2x256xf32, #tpu.memory_space<vmem>>, %arg8: memref<1x1x1x2x256xf32, #tpu.memory_space<vmem>>, %arg9: memref<1x1x2x256xf32, #tpu.memory_space<vmem>>, %arg10: memref<1x1x1x2x256xf32, #tpu.memory_space<vmem>>, %arg11: memref<1x1x1x2x256xf32, #tpu.memory_space<vmem>>, %arg12: memref<1x1x1x2x256xf32, #tpu.memory_space<vmem>>, %arg13: memref<1x1x1x2x256xf32, #tpu.memory_space<vmem>>) attributes {dimension_semantics = [#tpu.dimension_semantics<parallel>, #tpu.dimension_semantics<parallel>, #tpu.dimension_semantics<parallel>, #tpu.dimension_semantics<parallel>], iteration_bounds = array<i64: 1, 1, 1, 10>, scalar_prefetch = 0 : i64, scratch_operands = 0 : i64, tpu.core_type = #tpu.core_type<tc>, window_params = [{transform_indices = @transform_0, window_bounds = array<i64: 1>}, {transform_indices = @transform_1, window_bounds = array<i64: 1, 1, 1, 2, 256>}, {transform_indices = @transform_2, window_bounds = array<i64: 1, 1, 1, 2, 256>}, {transform_indices = @transform_3, window_bounds = array<i64: 1, 1, 1, 2, 256>}, {transform_indices = @transform_4, window_bounds = array<i64: 1, 1, 1, 2, 256>}, {transform_indices = @transform_5, window_bounds = array<i64: 1, 1, 2, 256>}, {transform_indices = @transform_6, window_bounds = array<i64: 1, 1, 1, 2, 256>}, {transform_indices = @transform_7, window_bounds = array<i64: 1, 1, 1, 2, 256>}, {transform_indices = @transform_8, window_bounds = array<i64: 1, 1, 1, 2, 256>}, {transform_indices = @transform_9, window_bounds = array<i64: 1, 1, 1, 2, 256>}]} {
    %c0 = arith.constant 0 : index
    %0 = memref.load %arg4[%c0] : memref<1xf32, #tpu.memory_space<smem>>
    %c0_0 = arith.constant 0 : index
    %c0_1 = arith.constant 0 : index
    %c0_2 = arith.constant 0 : index
    %c0_3 = arith.constant 0 : index
    %1 = vector.load %arg9[%c0_0, %c0_1, %c0_2, %c0_3] : memref<1x1x2x256xf32, #tpu.memory_space<vmem>>, vector<1x1x2x256xf32>
    %2 = vector.shape_cast %1 : vector<1x1x2x256xf32> to vector<2x256xf32>
    %3 = vector.broadcast %0 : f32 to vector<2x256xf32>
    %4 = arith.mulf %3, %2 : vector<2x256xf32>
    %c0_4 = arith.constant 0 : index
    %c0_5 = arith.constant 0 : index
    %c0_6 = arith.constant 0 : index
    %c0_7 = arith.constant 0 : index
    %c0_8 = arith.constant 0 : index
    %5 = vector.load %arg5[%c0_4, %c0_5, %c0_6, %c0_7, %c0_8] : memref<1x1x1x2x256xf32, #tpu.memory_space<vmem>>, vector<1x1x1x2x256xf32>
    %6 = vector.shape_cast %5 : vector<1x1x1x2x256xf32> to vector<2x256xf32>
    %c0_9 = arith.constant 0 : index
    %c0_10 = arith.constant 0 : index
    %c0_11 = arith.constant 0 : index
    %c0_12 = arith.constant 0 : index
    %c0_13 = arith.constant 0 : index
    %7 = vector.load %arg6[%c0_9, %c0_10, %c0_11, %c0_12, %c0_13] : memref<1x1x1x2x256xf32, #tpu.memory_space<vmem>>, vector<1x1x1x2x256xf32>
    %8 = vector.shape_cast %7 : vector<1x1x1x2x256xf32> to vector<2x256xf32>
    %c0_14 = arith.constant 0 : index
    %c0_15 = arith.constant 0 : index
    %c0_16 = arith.constant 0 : index
    %c0_17 = arith.constant 0 : index
    %c0_18 = arith.constant 0 : index
    %9 = vector.load %arg7[%c0_14, %c0_15, %c0_16, %c0_17, %c0_18] : memref<1x1x1x2x256xf32, #tpu.memory_space<vmem>>, vector<1x1x1x2x256xf32>
    %10 = vector.shape_cast %9 : vector<1x1x1x2x256xf32> to vector<2x256xf32>
    %11 = arith.subf %6, %10 : vector<2x256xf32>
    %12 = arith.mulf %4, %11 : vector<2x256xf32>
    %13 = arith.subf %6, %12 : vector<2x256xf32>
    %c0_19 = arith.constant 0 : index
    %c0_20 = arith.constant 0 : index
    %c0_21 = arith.constant 0 : index
    %c0_22 = arith.constant 0 : index
    %c0_23 = arith.constant 0 : index
    %14 = vector.load %arg10[%c0_19, %c0_20, %c0_21, %c0_22, %c0_23] : memref<1x1x1x2x256xf32, #tpu.memory_space<vmem>>, vector<1x1x1x2x256xf32>
    %15 = vector.shape_cast %14 : vector<1x1x1x2x256xf32> to vector<2x256xf32>
    %16 = arith.addf %13, %15 : vector<2x256xf32>
    %c0_24 = arith.constant 0 : index
    %c0_25 = arith.constant 0 : index
    %c0_26 = arith.constant 0 : index
    %c0_27 = arith.constant 0 : index
    %c0_28 = arith.constant 0 : index
    %17 = vector.load %arg12[%c0_24, %c0_25, %c0_26, %c0_27, %c0_28] : memref<1x1x1x2x256xf32, #tpu.memory_space<vmem>>, vector<1x1x1x2x256xf32>
    %18 = vector.shape_cast %17 : vector<1x1x1x2x256xf32> to vector<2x256xf32>
    %19 = vector.shape_cast %16 : vector<2x256xf32> to vector<1x1x1x2x256xf32>
    tpu.vector_store %arg12[%c0_24, %c0_25, %c0_26, %c0_27, %c0_28], %19 {strides = array<i32>} : memref<1x1x1x2x256xf32, #tpu.memory_space<vmem>>, vector<1x1x1x2x256xf32>,
    %c0_29 = arith.constant 0 : index
    %c0_30 = arith.constant 0 : index
    %c0_31 = arith.constant 0 : index
    %c0_32 = arith.constant 0 : index
    %c0_33 = arith.constant 0 : index
    %20 = vector.load %arg8[%c0_29, %c0_30, %c0_31, %c0_32, %c0_33] : memref<1x1x1x2x256xf32, #tpu.memory_space<vmem>>, vector<1x1x1x2x256xf32>
    %21 = vector.shape_cast %20 : vector<1x1x1x2x256xf32> to vector<2x256xf32>
    %22 = arith.subf %8, %21 : vector<2x256xf32>
    %23 = arith.mulf %4, %22 : vector<2x256xf32>
    %24 = arith.subf %8, %23 : vector<2x256xf32>
    %c0_34 = arith.constant 0 : index
    %c0_35 = arith.constant 0 : index
    %c0_36 = arith.constant 0 : index
    %c0_37 = arith.constant 0 : index
    %c0_38 = arith.constant 0 : index
    %25 = vector.load %arg11[%c0_34, %c0_35, %c0_36, %c0_37, %c0_38] : memref<1x1x1x2x256xf32, #tpu.memory_space<vmem>>, vector<1x1x1x2x256xf32>
    %26 = vector.shape_cast %25 : vector<1x1x1x2x256xf32> to vector<2x256xf32>
    %27 = arith.addf %24, %26 : vector<2x256xf32>
    %c0_39 = arith.constant 0 : index
    %c0_40 = arith.constant 0 : index
    %c0_41 = arith.constant 0 : index
    %c0_42 = arith.constant 0 : index
    %c0_43 = arith.constant 0 : index
    %28 = vector.load %arg13[%c0_39, %c0_40, %c0_41, %c0_42, %c0_43] : memref<1x1x1x2x256xf32, #tpu.memory_space<vmem>>, vector<1x1x1x2x256xf32>
    %29 = vector.shape_cast %28 : vector<1x1x1x2x256xf32> to vector<2x256xf32>
    %30 = vector.shape_cast %27 : vector<2x256xf32> to vector<1x1x1x2x256xf32>
    tpu.vector_store %arg13[%c0_39, %c0_40, %c0_41, %c0_42, %c0_43], %30 {strides = array<i32>} : memref<1x1x1x2x256xf32, #tpu.memory_space<vmem>>, vector<1x1x1x2x256xf32>,
    return
  }
  func.func @transform_0(%arg0: i32, %arg1: i32, %arg2: i32, %arg3: i32) -> i32 {
    %c0_i32 = arith.constant 0 : i32
    %c0_i32_0 = arith.constant 0 : i32
    return %c0_i32 : i32
  }
  func.func @transform_1(%arg0: i32, %arg1: i32, %arg2: i32, %arg3: i32) -> (i32, i32, i32, i32, i32) {
    %c0_i32 = arith.constant 0 : i32
    %c0_i32_0 = arith.constant 0 : i32
    return %arg0, %arg3, %arg1, %c0_i32, %arg2 : i32, i32, i32, i32, i32
  }
  func.func @transform_2(%arg0: i32, %arg1: i32, %arg2: i32, %arg3: i32) -> (i32, i32, i32, i32, i32) {
    %c0_i32 = arith.constant 0 : i32
    %c0_i32_0 = arith.constant 0 : i32
    return %arg0, %arg3, %arg1, %c0_i32, %arg2 : i32, i32, i32, i32, i32
  }
  func.func @transform_3(%arg0: i32, %arg1: i32, %arg2: i32, %arg3: i32) -> (i32, i32, i32, i32, i32) {
    %c0_i32 = arith.constant 0 : i32
    %c0_i32_0 = arith.constant 0 : i32
    return %arg0, %arg3, %arg1, %c0_i32, %arg2 : i32, i32, i32, i32, i32
  }
  func.func @transform_4(%arg0: i32, %arg1: i32, %arg2: i32, %arg3: i32) -> (i32, i32, i32, i32, i32) {
    %c0_i32 = arith.constant 0 : i32
    %c0_i32_0 = arith.constant 0 : i32
    return %arg0, %arg3, %arg1, %c0_i32, %arg2 : i32, i32, i32, i32, i32
  }
  func.func @transform_5(%arg0: i32, %arg1: i32, %arg2: i32, %arg3: i32) -> (i32, i32, i32, i32) {
    %c0_i32 = arith.constant 0 : i32
    %c0_i32_0 = arith.constant 0 : i32
    return %arg0, %arg1, %c0_i32, %arg2 : i32, i32, i32, i32
  }
  func.func @transform_6(%arg0: i32, %arg1: i32, %arg2: i32, %arg3: i32) -> (i32, i32, i32, i32, i32) {
    %c0_i32 = arith.constant 0 : i32
    %c0_i32_0 = arith.constant 0 : i32
    return %arg0, %arg3, %arg1, %c0_i32, %arg2 : i32, i32, i32, i32, i32
  }
  func.func @transform_7(%arg0: i32, %arg1: i32, %arg2: i32, %arg3: i32) -> (i32, i32, i32, i32, i32) {
    %c0_i32 = arith.constant 0 : i32
    %c0_i32_0 = arith.constant 0 : i32
    return %arg0, %arg3, %arg1, %c0_i32, %arg2 : i32, i32, i32, i32, i32
  }
  func.func @transform_8(%arg0: i32, %arg1: i32, %arg2: i32, %arg3: i32) -> (i32, i32, i32, i32, i32) {
    %c0_i32 = arith.constant 0 : i32
    %c0_i32_0 = arith.constant 0 : i32
    return %arg0, %arg3, %arg1, %c0_i32, %arg2 : i32, i32, i32, i32, i32
  }
  func.func @transform_9(%arg0: i32, %arg1: i32, %arg2: i32, %arg3: i32) -> (i32, i32, i32, i32, i32) {
    %c0_i32 = arith.constant 0 : i32
    %c0_i32_0 = arith.constant 0 : i32
    return %arg0, %arg3, %arg1, %c0_i32, %arg2 : i32, i32, i32, i32, i32
  }
}

module attributes {stable_mosaic.version = 11 : i64} {
  func.func @_rss_kernel(%arg0: i32, %arg1: i32, %arg2: i32, %arg3: i32, %arg4: memref<1x1x1x2x256xf32, #tpu.memory_space<vmem>>, %arg5: memref<1x1x1x2x256xf32, #tpu.memory_space<vmem>>, %arg6: memref<1x1x2x256xf32, #tpu.memory_space<vmem>>) attributes {dimension_semantics = [#tpu.dimension_semantics<parallel>, #tpu.dimension_semantics<parallel>, #tpu.dimension_semantics<parallel>, #tpu.dimension_semantics<arbitrary>], iteration_bounds = array<i64: 1, 1, 1, 10>, scalar_prefetch = 0 : i64, scratch_operands = 0 : i64, tpu.core_type = #tpu.core_type<tc>, window_params = [{transform_indices = @transform_0, window_bounds = array<i64: 1, 1, 1, 2, 256>}, {transform_indices = @transform_1, window_bounds = array<i64: 1, 1, 1, 2, 256>}, {transform_indices = @transform_2, window_bounds = array<i64: 1, 1, 2, 256>}]} {
    %c0_i32 = arith.constant 0 : i32
    %0 = arith.cmpi eq, %arg3, %c0_i32 : i32
    %1 = arith.extui %0 : i1 to i32
    %c0_i32_0 = arith.constant 0 : i32
    %2 = arith.cmpi ne, %1, %c0_i32_0 : i32
    scf.if %2 {
      %cst = arith.constant 0.000000e+00 : f32
      %19 = vector.broadcast %cst : f32 to vector<1x1x2x256xf32>
      %c0_19 = arith.constant 0 : index
      %c0_20 = arith.constant 0 : index
      %c0_21 = arith.constant 0 : index
      %c0_22 = arith.constant 0 : index
      %20 = vector.load %arg6[%c0_19, %c0_20, %c0_21, %c0_22] : memref<1x1x2x256xf32, #tpu.memory_space<vmem>>, vector<1x1x2x256xf32>
      tpu.vector_store %arg6[%c0_19, %c0_20, %c0_21, %c0_22], %19 {strides = array<i32>} : memref<1x1x2x256xf32, #tpu.memory_space<vmem>>, vector<1x1x2x256xf32>,
    } else {
    }
    %c0 = arith.constant 0 : index
    %c0_1 = arith.constant 0 : index
    %c0_2 = arith.constant 0 : index
    %c0_3 = arith.constant 0 : index
    %c0_4 = arith.constant 0 : index
    %3 = vector.load %arg4[%c0, %c0_1, %c0_2, %c0_3, %c0_4] : memref<1x1x1x2x256xf32, #tpu.memory_space<vmem>>, vector<1x1x1x2x256xf32>
    %4 = vector.shape_cast %3 : vector<1x1x1x2x256xf32> to vector<2x256xf32>
    %c0_5 = arith.constant 0 : index
    %c0_6 = arith.constant 0 : index
    %c0_7 = arith.constant 0 : index
    %c0_8 = arith.constant 0 : index
    %c0_9 = arith.constant 0 : index
    %5 = vector.load %arg5[%c0_5, %c0_6, %c0_7, %c0_8, %c0_9] : memref<1x1x1x2x256xf32, #tpu.memory_space<vmem>>, vector<1x1x1x2x256xf32>
    %6 = vector.shape_cast %5 : vector<1x1x1x2x256xf32> to vector<2x256xf32>
    %c0_10 = arith.constant 0 : index
    %c0_11 = arith.constant 0 : index
    %c0_12 = arith.constant 0 : index
    %c0_13 = arith.constant 0 : index
    %7 = vector.load %arg6[%c0_10, %c0_11, %c0_12, %c0_13] : memref<1x1x2x256xf32, #tpu.memory_space<vmem>>, vector<1x1x2x256xf32>
    %8 = vector.shape_cast %7 : vector<1x1x2x256xf32> to vector<2x256xf32>
    %9 = arith.mulf %4, %4 : vector<2x256xf32>
    %10 = arith.mulf %6, %6 : vector<2x256xf32>
    %11 = arith.addf %9, %10 : vector<2x256xf32>
    %12 = arith.addf %8, %11 : vector<2x256xf32>
    %c0_14 = arith.constant 0 : index
    %c0_15 = arith.constant 0 : index
    %c0_16 = arith.constant 0 : index
    %c0_17 = arith.constant 0 : index
    %13 = vector.load %arg6[%c0_14, %c0_15, %c0_16, %c0_17] : memref<1x1x2x256xf32, #tpu.memory_space<vmem>>, vector<1x1x2x256xf32>
    %14 = vector.shape_cast %13 : vector<1x1x2x256xf32> to vector<2x256xf32>
    %15 = vector.shape_cast %12 : vector<2x256xf32> to vector<1x1x2x256xf32>
    tpu.vector_store %arg6[%c0_14, %c0_15, %c0_16, %c0_17], %15 {strides = array<i32>} : memref<1x1x2x256xf32, #tpu.memory_space<vmem>>, vector<1x1x2x256xf32>,
    %c9_i32 = arith.constant 9 : i32
    %16 = arith.cmpi eq, %arg3, %c9_i32 : i32
    %17 = arith.extui %16 : i1 to i32
    %c0_i32_18 = arith.constant 0 : i32
    %18 = arith.cmpi ne, %17, %c0_i32_18 : i32
    scf.if %18 {
      %c0_19 = arith.constant 0 : index
      %c0_20 = arith.constant 0 : index
      %c0_21 = arith.constant 0 : index
      %c0_22 = arith.constant 0 : index
      %19 = vector.load %arg6[%c0_19, %c0_20, %c0_21, %c0_22] : memref<1x1x2x256xf32, #tpu.memory_space<vmem>>, vector<1x1x2x256xf32>
      %20 = vector.shape_cast %19 : vector<1x1x2x256xf32> to vector<2x256xf32>
      %21 = math.sqrt %20 : vector<2x256xf32>
      %c0_23 = arith.constant 0 : index
      %c0_24 = arith.constant 0 : index
      %c0_25 = arith.constant 0 : index
      %c0_26 = arith.constant 0 : index
      %22 = vector.load %arg6[%c0_23, %c0_24, %c0_25, %c0_26] : memref<1x1x2x256xf32, #tpu.memory_space<vmem>>, vector<1x1x2x256xf32>
      %23 = vector.shape_cast %22 : vector<1x1x2x256xf32> to vector<2x256xf32>
      %24 = vector.shape_cast %21 : vector<2x256xf32> to vector<1x1x2x256xf32>
      tpu.vector_store %arg6[%c0_23, %c0_24, %c0_25, %c0_26], %24 {strides = array<i32>} : memref<1x1x2x256xf32, #tpu.memory_space<vmem>>, vector<1x1x2x256xf32>,
    } else {
    }
    return
  }
  func.func @transform_0(%arg0: i32, %arg1: i32, %arg2: i32, %arg3: i32) -> (i32, i32, i32, i32, i32) {
    %c0_i32 = arith.constant 0 : i32
    %c0_i32_0 = arith.constant 0 : i32
    return %arg0, %arg3, %arg1, %c0_i32, %arg2 : i32, i32, i32, i32, i32
  }
  func.func @transform_1(%arg0: i32, %arg1: i32, %arg2: i32, %arg3: i32) -> (i32, i32, i32, i32, i32) {
    %c0_i32 = arith.constant 0 : i32
    %c0_i32_0 = arith.constant 0 : i32
    return %arg0, %arg3, %arg1, %c0_i32, %arg2 : i32, i32, i32, i32, i32
  }
  func.func @transform_2(%arg0: i32, %arg1: i32, %arg2: i32, %arg3: i32) -> (i32, i32, i32, i32) {
    %c0_i32 = arith.constant 0 : i32
    %c0_i32_0 = arith.constant 0 : i32
    return %arg0, %arg1, %c0_i32, %arg2 : i32, i32, i32, i32
  }
}

</mosaic_0001>

<bundles_post_ra>
// kernel: custom-call
= control target key start
LH: loop header
LB: loop body
LE: loop exit
PB: predicated region body
PF: predicated region fallthrough
CT: control target
= control target key end

     0   :  { %s488_s0 = inlined_call_operand.vmem [shape: c64[1,10,1,2,16,16], index: 0, kind: input, shape index: {}]   ;;  %s489_s1 = inlined_call_operand.vmem [shape: f32[1,10,1,2,16,16], index: 1, kind: output, shape index: {}]  }
   0x1   :  { %v2_v0 = vld [vmem:[%s488_s0] sm:$0xff]  ;;  %v160_v1 = vld [vmem:[%s488_s0 + $0x8] sm:$0xff]  ;;  %v162_v2 = vld [vmem:[%s488_s0 + $0x10] sm:$0xff] }
   0x2   :  { %3 = vst [vmem:[%s489_s1] sm:$0xff] %v2_v0  ;;  %v164_v3 = vld [vmem:[%s488_s0 + $0x18] sm:$0xff]  ;;  %v166_v4 = vld [vmem:[%s488_s0 + $0x20] sm:$0xff]  ;;  %v168_v5 = vld [vmem:[%s488_s0 + $0x28] sm:$0xff] }
   0x3   :  { %161 = vst [vmem:[%s489_s1 + $0x8] sm:$0xff] %v160_v1  ;;  %v170_v6 = vld [vmem:[%s488_s0 + $0x30] sm:$0xff]  ;;  %v172_v7 = vld [vmem:[%s488_s0 + $0x38] sm:$0xff]  ;;  %v174_v8 = vld [vmem:[%s488_s0 + $0x40] sm:$0xff] }
   0x4   :  { %163 = vst [vmem:[%s489_s1 + $0x10] sm:$0xff] %v162_v2  ;;  %v176_v9 = vld [vmem:[%s488_s0 + $0x48] sm:$0xff]  ;;  %v178_v10 = vld [vmem:[%s488_s0 + $0x50] sm:$0xff]  ;;  %v180_v11 = vld [vmem:[%s488_s0 + $0x58] sm:$0xff] }
   0x5   :  { %165 = vst [vmem:[%s489_s1 + $0x18] sm:$0xff] %v164_v3  ;;  %v182_v12 = vld [vmem:[%s488_s0 + $0x60] sm:$0xff]  ;;  %v184_v13 = vld [vmem:[%s488_s0 + $0x68] sm:$0xff]  ;;  %v186_v14 = vld [vmem:[%s488_s0 + $0x70] sm:$0xff] }
   0x6   :  { %167 = vst [vmem:[%s489_s1 + $0x20] sm:$0xff] %v166_v4  ;;  %v188_v15 = vld [vmem:[%s488_s0 + $0x78] sm:$0xff]  ;;  %v190_v16 = vld [vmem:[%s488_s0 + $0x80] sm:$0xff]  ;;  %v192_v17 = vld [vmem:[%s488_s0 + $0x88] sm:$0xff] }
   0x7   :  { %169 = vst [vmem:[%s489_s1 + $0x28] sm:$0xff] %v168_v5  ;;  %v194_v18 = vld [vmem:[%s488_s0 + $0x90] sm:$0xff]  ;;  %v196_v19 = vld [vmem:[%s488_s0 + $0x98] sm:$0xff]  ;;  %v198_v20 = vld [vmem:[%s488_s0 + $0xa0] sm:$0xff] }
   0x8   :  { %171 = vst [vmem:[%s489_s1 + $0x30] sm:$0xff] %v170_v6  ;;  %v200_v21 = vld [vmem:[%s488_s0 + $0xa8] sm:$0xff]  ;;  %v202_v22 = vld [vmem:[%s488_s0 + $0xb0] sm:$0xff]  ;;  %v204_v23 = vld [vmem:[%s488_s0 + $0xb8] sm:$0xff] }
   0x9   :  { %173 = vst [vmem:[%s489_s1 + $0x38] sm:$0xff] %v172_v7  ;;  %v206_v24 = vld [vmem:[%s488_s0 + $0xc0] sm:$0xff]  ;;  %v208_v25 = vld [vmem:[%s488_s0 + $0xc8] sm:$0xff]  ;;  %v210_v26 = vld [vmem:[%s488_s0 + $0xd0] sm:$0xff] }
   0xa   :  { %175 = vst [vmem:[%s489_s1 + $0x40] sm:$0xff] %v174_v8  ;;  %v212_v27 = vld [vmem:[%s488_s0 + $0xd8] sm:$0xff]  ;;  %v214_v28 = vld [vmem:[%s488_s0 + $0xe0] sm:$0xff]  ;;  %v216_v29 = vld [vmem:[%s488_s0 + $0xe8] sm:$0xff] }
   0xb   :  { %177 = vst [vmem:[%s489_s1 + $0x48] sm:$0xff] %v176_v9  ;;  %v218_v30 = vld [vmem:[%s488_s0 + $0xf0] sm:$0xff]  ;;  %v220_v31 = vld [vmem:[%s488_s0 + $0xf8] sm:$0xff]  ;;  %v222_v32 = vld [vmem:[%s488_s0 + $0x100] sm:$0xff] }
   0xc   :  { %179 = vst [vmem:[%s489_s1 + $0x50] sm:$0xff] %v178_v10  ;;  %v224_v33 = vld [vmem:[%s488_s0 + $0x108] sm:$0xff]  ;;  %v226_v34 = vld [vmem:[%s488_s0 + $0x110] sm:$0xff]  ;;  %v228_v35 = vld [vmem:[%s488_s0 + $0x118] sm:$0xff] }
   0xd   :  { %181 = vst [vmem:[%s489_s1 + $0x58] sm:$0xff] %v180_v11  ;;  %v230_v36 = vld [vmem:[%s488_s0 + $0x120] sm:$0xff]  ;;  %v232_v37 = vld [vmem:[%s488_s0 + $0x128] sm:$0xff]  ;;  %v234_v38 = vld [vmem:[%s488_s0 + $0x130] sm:$0xff] }
   0xe   :  { %183 = vst [vmem:[%s489_s1 + $0x60] sm:$0xff] %v182_v12  ;;  %v236_v39 = vld [vmem:[%s488_s0 + $0x138] sm:$0xff] }
   0xf   :  { %185 = vst [vmem:[%s489_s1 + $0x68] sm:$0xff] %v184_v13 }
  0x10   :  { %187 = vst [vmem:[%s489_s1 + $0x70] sm:$0xff] %v186_v14 }
  0x11   :  { %189 = vst [vmem:[%s489_s1 + $0x78] sm:$0xff] %v188_v15 }
  0x12   :  { %191 = vst [vmem:[%s489_s1 + $0x80] sm:$0xff] %v190_v16 }
  0x13   :  { %193 = vst [vmem:[%s489_s1 + $0x88] sm:$0xff] %v192_v17 }
  0x14   :  { %195 = vst [vmem:[%s489_s1 + $0x90] sm:$0xff] %v194_v18 }
  0x15   :  { %197 = vst [vmem:[%s489_s1 + $0x98] sm:$0xff] %v196_v19 }
  0x16   :  { %199 = vst [vmem:[%s489_s1 + $0xa0] sm:$0xff] %v198_v20 }
  0x17   :  { %201 = vst [vmem:[%s489_s1 + $0xa8] sm:$0xff] %v200_v21 }
  0x18   :  { %203 = vst [vmem:[%s489_s1 + $0xb0] sm:$0xff] %v202_v22 }
  0x19   :  { %205 = vst [vmem:[%s489_s1 + $0xb8] sm:$0xff] %v204_v23 }
  0x1a   :  { %207 = vst [vmem:[%s489_s1 + $0xc0] sm:$0xff] %v206_v24 }
  0x1b   :  { %209 = vst [vmem:[%s489_s1 + $0xc8] sm:$0xff] %v208_v25 }
  0x1c   :  { %211 = vst [vmem:[%s489_s1 + $0xd0] sm:$0xff] %v210_v26 }
  0x1d   :  { %213 = vst [vmem:[%s489_s1 + $0xd8] sm:$0xff] %v212_v27 }
  0x1e   :  { %215 = vst [vmem:[%s489_s1 + $0xe0] sm:$0xff] %v214_v28 }
  0x1f   :  { %217 = vst [vmem:[%s489_s1 + $0xe8] sm:$0xff] %v216_v29 }
  0x20   :  { %219 = vst [vmem:[%s489_s1 + $0xf0] sm:$0xff] %v218_v30 }
  0x21   :  { %221 = vst [vmem:[%s489_s1 + $0xf8] sm:$0xff] %v220_v31 }
  0x22   :  { %223 = vst [vmem:[%s489_s1 + $0x100] sm:$0xff] %v222_v32 }
  0x23   :  { %225 = vst [vmem:[%s489_s1 + $0x108] sm:$0xff] %v224_v33 }
  0x24   :  { %227 = vst [vmem:[%s489_s1 + $0x110] sm:$0xff] %v226_v34 }
  0x25   :  { %229 = vst [vmem:[%s489_s1 + $0x118] sm:$0xff] %v228_v35 }
  0x26   :  { %231 = vst [vmem:[%s489_s1 + $0x120] sm:$0xff] %v230_v36 }
  0x27   :  { %233 = vst [vmem:[%s489_s1 + $0x128] sm:$0xff] %v232_v37 }
  0x28   :  { %235 = vst [vmem:[%s489_s1 + $0x130] sm:$0xff] %v234_v38 }
  0x29   :  { %237 = vst [vmem:[%s489_s1 + $0x138] sm:$0xff] %v236_v39 }

// kernel: custom-call.1
= control target key start
LH: loop header
LB: loop body
LE: loop exit
PB: predicated region body
PF: predicated region fallthrough
CT: control target
= control target key end

     0   :  { %s529_s0 = inlined_call_operand.vmem [shape: c64[1,10,1,2,16,16], index: 0, kind: input, shape index: {}]   ;;  %s530_s1 = inlined_call_operand.vmem [shape: f32[1,10,1,2,16,16], index: 1, kind: output, shape index: {}]  }
   0x1   :  { %v200_v0 = vld [vmem:[%s529_s0 + $0x140] sm:$0xff]  ;;  %v201_v1 = vld [vmem:[%s529_s0 + $0x148] sm:$0xff]  ;;  %v203_v2 = vld [vmem:[%s529_s0 + $0x150] sm:$0xff] }
   0x2   :  { %4 = vst [vmem:[%s530_s1] sm:$0xff] %v200_v0  ;;  %v205_v3 = vld [vmem:[%s529_s0 + $0x158] sm:$0xff]  ;;  %v207_v4 = vld [vmem:[%s529_s0 + $0x160] sm:$0xff]  ;;  %v209_v5 = vld [vmem:[%s529_s0 + $0x168] sm:$0xff] }
   0x3   :  { %202 = vst [vmem:[%s530_s1 + $0x8] sm:$0xff] %v201_v1  ;;  %v211_v6 = vld [vmem:[%s529_s0 + $0x170] sm:$0xff]  ;;  %v213_v7 = vld [vmem:[%s529_s0 + $0x178] sm:$0xff]  ;;  %v215_v8 = vld [vmem:[%s529_s0 + $0x180] sm:$0xff] }
   0x4   :  { %204 = vst [vmem:[%s530_s1 + $0x10] sm:$0xff] %v203_v2  ;;  %v217_v9 = vld [vmem:[%s529_s0 + $0x188] sm:$0xff]  ;;  %v219_v10 = vld [vmem:[%s529_s0 + $0x190] sm:$0xff]  ;;  %v221_v11 = vld [vmem:[%s529_s0 + $0x198] sm:$0xff] }
   0x5   :  { %206 = vst [vmem:[%s530_s1 + $0x18] sm:$0xff] %v205_v3  ;;  %v223_v12 = vld [vmem:[%s529_s0 + $0x1a0] sm:$0xff]  ;;  %v225_v13 = vld [vmem:[%s529_s0 + $0x1a8] sm:$0xff]  ;;  %v227_v14 = vld [vmem:[%s529_s0 + $0x1b0] sm:$0xff] }
   0x6   :  { %208 = vst [vmem:[%s530_s1 + $0x20] sm:$0xff] %v207_v4  ;;  %v229_v15 = vld [vmem:[%s529_s0 + $0x1b8] sm:$0xff]  ;;  %v231_v16 = vld [vmem:[%s529_s0 + $0x1c0] sm:$0xff]  ;;  %v233_v17 = vld [vmem:[%s529_s0 + $0x1c8] sm:$0xff] }
   0x7   :  { %210 = vst [vmem:[%s530_s1 + $0x28] sm:$0xff] %v209_v5  ;;  %v235_v18 = vld [vmem:[%s529_s0 + $0x1d0] sm:$0xff]  ;;  %v237_v19 = vld [vmem:[%s529_s0 + $0x1d8] sm:$0xff]  ;;  %v239_v20 = vld [vmem:[%s529_s0 + $0x1e0] sm:$0xff] }
   0x8   :  { %212 = vst [vmem:[%s530_s1 + $0x30] sm:$0xff] %v211_v6  ;;  %v241_v21 = vld [vmem:[%s529_s0 + $0x1e8] sm:$0xff]  ;;  %v243_v22 = vld [vmem:[%s529_s0 + $0x1f0] sm:$0xff]  ;;  %v245_v23 = vld [vmem:[%s529_s0 + $0x1f8] sm:$0xff] }
   0x9   :  { %214 = vst [vmem:[%s530_s1 + $0x38] sm:$0xff] %v213_v7  ;;  %v247_v24 = vld [vmem:[%s529_s0 + $0x200] sm:$0xff]  ;;  %v249_v25 = vld [vmem:[%s529_s0 + $0x208] sm:$0xff]  ;;  %v251_v26 = vld [vmem:[%s529_s0 + $0x210] sm:$0xff] }
   0xa   :  { %216 = vst [vmem:[%s530_s1 + $0x40] sm:$0xff] %v215_v8  ;;  %v253_v27 = vld [vmem:[%s529_s0 + $0x218] sm:$0xff]  ;;  %v255_v28 = vld [vmem:[%s529_s0 + $0x220] sm:$0xff]  ;;  %v257_v29 = vld [vmem:[%s529_s0 + $0x228] sm:$0xff] }
   0xb   :  { %218 = vst [vmem:[%s530_s1 + $0x48] sm:$0xff] %v217_v9  ;;  %v259_v30 = vld [vmem:[%s529_s0 + $0x230] sm:$0xff]  ;;  %v261_v31 = vld [vmem:[%s529_s0 + $0x238] sm:$0xff]  ;;  %v263_v32 = vld [vmem:[%s529_s0 + $0x240] sm:$0xff] }
   0xc   :  { %220 = vst [vmem:[%s530_s1 + $0x50] sm:$0xff] %v219_v10  ;;  %v265_v33 = vld [vmem:[%s529_s0 + $0x248] sm:$0xff]  ;;  %v267_v34 = vld [vmem:[%s529_s0 + $0x250] sm:$0xff]  ;;  %v269_v35 = vld [vmem:[%s529_s0 + $0x258] sm:$0xff] }
   0xd   :  { %222 = vst [vmem:[%s530_s1 + $0x58] sm:$0xff] %v221_v11  ;;  %v271_v36 = vld [vmem:[%s529_s0 + $0x260] sm:$0xff]  ;;  %v273_v37 = vld [vmem:[%s529_s0 + $0x268] sm:$0xff]  ;;  %v275_v38 = vld [vmem:[%s529_s0 + $0x270] sm:$0xff] }
   0xe   :  { %224 = vst [vmem:[%s530_s1 + $0x60] sm:$0xff] %v223_v12  ;;  %v277_v39 = vld [vmem:[%s529_s0 + $0x278] sm:$0xff] }
   0xf   :  { %226 = vst [vmem:[%s530_s1 + $0x68] sm:$0xff] %v225_v13 }
  0x10   :  { %228 = vst [vmem:[%s530_s1 + $0x70] sm:$0xff] %v227_v14 }
  0x11   :  { %230 = vst [vmem:[%s530_s1 + $0x78] sm:$0xff] %v229_v15 }
  0x12   :  { %232 = vst [vmem:[%s530_s1 + $0x80] sm:$0xff] %v231_v16 }
  0x13   :  { %234 = vst [vmem:[%s530_s1 + $0x88] sm:$0xff] %v233_v17 }
  0x14   :  { %236 = vst [vmem:[%s530_s1 + $0x90] sm:$0xff] %v235_v18 }
  0x15   :  { %238 = vst [vmem:[%s530_s1 + $0x98] sm:$0xff] %v237_v19 }
  0x16   :  { %240 = vst [vmem:[%s530_s1 + $0xa0] sm:$0xff] %v239_v20 }
  0x17   :  { %242 = vst [vmem:[%s530_s1 + $0xa8] sm:$0xff] %v241_v21 }
  0x18   :  { %244 = vst [vmem:[%s530_s1 + $0xb0] sm:$0xff] %v243_v22 }
  0x19   :  { %246 = vst [vmem:[%s530_s1 + $0xb8] sm:$0xff] %v245_v23 }
  0x1a   :  { %248 = vst [vmem:[%s530_s1 + $0xc0] sm:$0xff] %v247_v24 }
  0x1b   :  { %250 = vst [vmem:[%s530_s1 + $0xc8] sm:$0xff] %v249_v25 }
  0x1c   :  { %252 = vst [vmem:[%s530_s1 + $0xd0] sm:$0xff] %v251_v26 }
  0x1d   :  { %254 = vst [vmem:[%s530_s1 + $0xd8] sm:$0xff] %v253_v27 }
  0x1e   :  { %256 = vst [vmem:[%s530_s1 + $0xe0] sm:$0xff] %v255_v28 }
  0x1f   :  { %258 = vst [vmem:[%s530_s1 + $0xe8] sm:$0xff] %v257_v29 }
  0x20   :  { %260 = vst [vmem:[%s530_s1 + $0xf0] sm:$0xff] %v259_v30 }
  0x21   :  { %262 = vst [vmem:[%s530_s1 + $0xf8] sm:$0xff] %v261_v31 }
  0x22   :  { %264 = vst [vmem:[%s530_s1 + $0x100] sm:$0xff] %v263_v32 }
  0x23   :  { %266 = vst [vmem:[%s530_s1 + $0x108] sm:$0xff] %v265_v33 }
  0x24   :  { %268 = vst [vmem:[%s530_s1 + $0x110] sm:$0xff] %v267_v34 }
  0x25   :  { %270 = vst [vmem:[%s530_s1 + $0x118] sm:$0xff] %v269_v35 }
  0x26   :  { %272 = vst [vmem:[%s530_s1 + $0x120] sm:$0xff] %v271_v36 }
  0x27   :  { %274 = vst [vmem:[%s530_s1 + $0x128] sm:$0xff] %v273_v37 }
  0x28   :  { %276 = vst [vmem:[%s530_s1 + $0x130] sm:$0xff] %v275_v38 }
  0x29   :  { %278 = vst [vmem:[%s530_s1 + $0x138] sm:$0xff] %v277_v39 }

// kernel: e2e_varnet_forward.28
= control target key start
LH: loop header
LB: loop body
LE: loop exit
PB: predicated region body
PF: predicated region fallthrough
CT: control target
= control target key end

     0   :  { %s253_s19 = smov 106   ;;  %s254_s20 = smov 107   ;;  %vm82_vm0 = vcmask 949248   ;;  %vm55_vm1 = vcmask 1031168   ;;  %vm109_vm2 = vcmask 867328   ;;  %vm100_vm3 = vcmask 875520   ;;  %s305_s0 = inlined_call_operand.vmem [shape: bf16[1,8,256], index: 0, kind: input, shape index: {}, may-alias: {0,1}]   ;;  %s306_s1 = inlined_call_operand.vmem [shape: bf16[1,8,256], index: 1, kind: input, shape index: {}, may-alias: {0,1}]   ;;  %s307_s3 = inlined_call_operand.vmem [shape: f32[16,1], index: 3, kind: input, shape index: {}]   ;;  %s308_s2 = inlined_call_operand.vmem [shape: bf16[16,72], index: 2, kind: input, shape index: {}]   ;;  %s309_s4 = inlined_call_operand.vmem [shape: bf16[1,16,128], index: 4, kind: output, shape index: {}]  }
   0x1   :  { %v35_v0 = vld [vmem:[%s305_s0] sm:$0xf]  ;;  %v210_v1 = vld [vmem:[%s306_s1 + $0x4] sm:$0xf]  ;;  %s255_s21 = smov 116   ;;  %s256_s22 = smov 108  }
   0x2   :  { %36 = vst [vmem:[#allocation2] sm:$0xf] %v35_v0  ;;  %s257_s23 = smov 117   ;;  %s258_s24 = smov 126   ;;  %v125_v16 = vld [vmem:[%s307_s3 + $0x8] sm:$0xff]  ;;  %v124_v17 = vld [vmem:[%s307_s3] sm:$0xff] }
   0x3   :  { %38 = vst [vmem:[#allocation2 + $0x4] sm:$0xf] %v210_v1  ;;  %s259_s0 = smov 118   ;;  %s260_s25 = smov 127   ;;  %v261_v18 = vmov 0   ;;  %vm91_vm4 = vcmask 883712  }
   0x4   :  { %252 = vset.pattern.permute.xlu0 %v261_v18  ;;  %251 = vset.pattern.permute.xlu2 %v261_v18  ;;  %vm73_vm5 = vcmask 957440   ;;  %vm172_vm6 = vcmask 1043456   ;;  %vm64_vm7 = vcmask 965632   ;;  %vm46_vm8 = vcmask 1039360   ;;  %v236_v39 = vld [vmem:[%s308_s2] sm:$0xff] }
   0x5   :  { %vm168_vm9 = vcmask 588800  }
   0x9   :  { %v39_v9 = vld [vmem:[#allocation2] sm:$0xf] }
   0xa   :  { %v104_v2 = vld [vmem:[#allocation2] sm:$0xff]  ;;  %40 = vst [vmem:[#allocation3] sm:$0xf] %v39_v9 }
   0xb   :  { %106 = vrot.lane.b32.xlu0 %v104_v2, %s253_s19  ;;  %97 = vrot.lane.b32.xlu1 %v104_v2, %s254_s20 }
   0xc   :  { %79 = vrot.lane.b32.xlu2 %v104_v2, %s255_s21 }
  0x13   :  { %88 = vrot.lane.b32.xlu0 %v104_v2, %s256_s22  ;;  %70 = vrot.lane.b32.xlu1 %v104_v2, %s257_s23 }
  0x14   :  { %52 = vrot.lane.b32.xlu2 %v104_v2, %s258_s24 }
  0x1b   :  { %61 = vrot.lane.b32.xlu0 %v104_v2, %s259_s0  ;;  %43 = vrot.lane.b32.xlu1 %v104_v2, %s260_s25 }
  0x1c   :  { %128 = vperm.xlu2 %251, %v124_v17  }
  0x23   :  { %133 = vperm.xlu0 %252, %v125_v16  }
  0x66   :  { %v80_v3 = vpop.permute.xlu2 %79 }
  0x67   :  { %v81_v4 = vrot.slane %v80_v3, 4 }
  0x69   :  { %v83_v5 = vsel %vm82_vm0, %v80_v3, %v81_v4 }
  0x6a   :  { %85 = vst [vmem:[#allocation3 + $0x14] sm:$0xf] %v83_v5 }
  0x6e   :  { %v53_v6 = vpop.permute.xlu2 %52 }
  0x6f   :  { %v54_v7 = vrot.slane %v53_v6, 4 }
  0x71   :  { %v56_v8 = vsel %vm55_vm1, %v53_v6, %v54_v7 }
  0x72   :  { %58 = vst [vmem:[#allocation3 + $0x8] sm:$0xf] %v56_v8 }
  0x76   :  { %v129_v41 = vpop.permute.xlu2 %128 }
  0x7d   :  { %v107_v10 = vpop.permute.xlu0 %106  ;;  %v98_v11 = vpop.permute.xlu1 %97 }
  0x7e   :  { %v108_v12 = vrot.slane %v107_v10, 4  ;;  %v99_v13 = vrot.slane %v98_v11, 4 }
  0x80   :  { %v110_v14 = vsel %vm109_vm2, %v107_v10, %v108_v12  ;;  %v101_v15 = vsel %vm100_vm3, %v98_v11, %v99_v13 }
  0x81   :  { %112 = vst [vmem:[#allocation3 + $0x20] sm:$0xf] %v110_v14 }
  0x82   :  { %103 = vst [vmem:[#allocation3 + $0x1c] sm:$0xf] %v101_v15 }
  0x85   :  { %v89_v19 = vpop.permute.xlu0 %88  ;;  %v71_v20 = vpop.permute.xlu1 %70 }
  0x86   :  { %v90_v21 = vrot.slane %v89_v19, 4  ;;  %v72_v22 = vrot.slane %v71_v20, 4 }
  0x88   :  { %v92_v23 = vsel %vm91_vm4, %v89_v19, %v90_v21  ;;  %v74_v24 = vsel %vm73_vm5, %v71_v20, %v72_v22  ;;  %v121_v25 = vld [vmem:[#allocation3 + $0x20] sm:$0xf] }
  0x89   :  { %94 = vst [vmem:[#allocation3 + $0x18] sm:$0xf] %v92_v23  ;;  %v158_v26 = vunpack.c.l.b16 %v121_v25 }
  0x8a   :  { %76 = vst [vmem:[#allocation3 + $0x10] sm:$0xf] %v74_v24 }
  0x8b   :  { %v163_v27 = vpack.c.b16 %v158_v26, %v158_v26 }
  0x8d   :  { %v62_v28 = vpop.permute.xlu0 %61  ;;  %v174_v29 = vsel %vm172_vm6, %v163_v27, 0  ;;  %v44_v30 = vpop.permute.xlu1 %43 }
  0x8e   :  { %v63_v31 = vrot.slane %v62_v28, 4  ;;  %179 = vmatpush.bf16.msra.mxu0 %v174_v29  ;;  %v45_v32 = vrot.slane %v44_v30, 4 }
  0x90   :  { %v65_v33 = vsel %vm64_vm7, %v62_v28, %v63_v31  ;;  %v47_v34 = vsel %vm46_vm8, %v44_v30, %v45_v32  ;;  %v235_v35 = vld [vmem:[#allocation3 + $0x18] sm:$0xff] }
  0x91   :  { %67 = vst [vmem:[#allocation3 + $0xc] sm:$0xf] %v65_v33  ;;  %v234_v36 = vld [vmem:[#allocation3 + $0x10] sm:$0xff] }
  0x92   :  { %49 = vst [vmem:[#allocation3 + $0x4] sm:$0xf] %v47_v34  ;;  %180 = vmatpush.bf16.msra.mxu0 %v235_v35 }
  0x95   :  { %v134_v43 = vpop.permute.xlu0 %133 }
  0x96   :  { %181 = vmatpush.bf16.msra.mxu0 %v234_v36 }
  0x98   :  { %v233_v37 = vld [vmem:[#allocation3 + $0x8] sm:$0xff] }
  0x99   :  { %v232_v38 = vld [vmem:[#allocation3] sm:$0xff] }
  0x9a   :  { %182 = vmatpush.bf16.msra.mxu0 %v233_v37 }
  0x9e   :  { %183 = vmatpush.bf16.msra.mxu0 %v232_v38 }
  0xa1   :  { %231 = vmatmul.msk.bf16.vlgmr.msra.gmra.mxu0 %vm168_vm9, %v236_v39 }
 0x11e   :  { %v185_v40 = vpop.f32.mrf.mxu0 }
 0x11f   :  { %v186_v42 = vadd.f32 %v185_v40, %v129_v41 }
 0x121   :  { %v192_v45 = vmul.f32 0.01, %v186_v42  ;;  %vm190_vm10 = vcmp.ge.f32.partialorder %v186_v42, 0.0 }
 0x123   :  { %v194_v48 = vsel %vm190_vm10, %v186_v42, %v192_v45 }
 0x126   :  { %v187_v44 = vpop.f32.mrf.mxu0 }
 0x127   :  { %v188_v46 = vadd.f32 %v187_v44, %v134_v43 }
 0x129   :  { %vm191_vm11 = vcmp.ge.f32.partialorder %v188_v46, 0.0  ;;  %v193_v47 = vmul.f32 0.01, %v188_v46 }
 0x12b   :  { %v195_v49 = vsel %vm191_vm11, %v188_v46, %v193_v47 }
 0x12c   :  { %v240_v50 = vpack.c.bf16 %v195_v49, %v194_v48 }
 0x12e   :  { %241 = vst [vmem:[%s309_s4] sm:$0xff] %v240_v50  }

// kernel: e2e_varnet_forward.27
= control target key start
LH: loop header
LB: loop body
LE: loop exit
PB: predicated region body
PF: predicated region fallthrough
CT: control target
= control target key end

     0   :  { %s1169_s25 = smov 92   ;;  %vm156_vm0 = vcmask 1041408   ;;  %vm157_vm1 = vcmask 1045508   ;;  %s1170_s8 = smov 109   ;;  %vm191_vm3 = vcmask 1043456   ;;  %vm481_vm4 = vcmask 752640   ;;  %s1503_s0 = inlined_call_operand.vmem [shape: bf16[1,20,512], index: 0, kind: input, shape index: {}, may-alias: {0,1}]   ;;  %s1504_s1 = inlined_call_operand.vmem [shape: bf16[1,20,512], index: 1, kind: input, shape index: {}, may-alias: {0,1}]   ;;  %s1505_s2 = inlined_call_operand.vmem [shape: bf16[8,180], index: 2, kind: input, shape index: {}]   ;;  %s1506_s3 = inlined_call_operand.vmem [shape: f32[8,1], index: 3, kind: input, shape index: {}]   ;;  %s1507_s4 = inlined_call_operand.vmem [shape: bf16[1,8,384], index: 4, kind: output, shape index: {}]  }
   0x1   :  { %v987_v0 = vld [vmem:[%s1503_s0 + $0x28] sm:$0xf]  ;;  %v990_v1 = vld [vmem:[%s1504_s1 + $0x2c] sm:$0xf]  ;;  %v29_v2 = vld [vmem:[%s1503_s0 + $0x20] sm:$0xff]  ;;  %s1173_s9 = smov 91  }
   0x2   :  { %46 = vst [vmem:[#allocation4 + $0x20] sm:$0xf] %v987_v0  ;;  %v1215_v3 = vld [vmem:[%s1503_s0] sm:$0xff]  ;;  %v1220_v4 = vld [vmem:[%s1503_s0 + $0x10] sm:$0xff]  ;;  %v986_v5 = vld [vmem:[%s1503_s0 + $0x18] sm:$0xf] }
   0x3   :  { %75 = vst [vmem:[#allocation5 + $0x8] sm:$0xf] %v990_v1  ;;  %462 = vrot.lane.b32.xlu2 %v1215_v3, %s1169_s25  ;;  %v989_v8 = vld [vmem:[%s1504_s1 + $0x1c] sm:$0xf]  ;;  %v985_v10 = vld [vmem:[%s1503_s0 + $0x8] sm:$0xf]  ;;  %vm1244_vm2 = vmor %vm156_vm0, %vm157_vm1 }
   0x4   :  { %30 = vst [vmem:[#allocation4 + $0x18] sm:$0xff] %v29_v2  ;;  %v988_v11 = vld [vmem:[%s1504_s1 + $0xc] sm:$0xf]  ;;  %v399_v12 = vrot.slane %v1220_v4, 6  ;;  %s1171_s0 = smov 90   ;;  %s1172_s1 = smov 108  }
   0x5   :  { %122 = vst [vmem:[#allocation2 + $0x10] sm:$0xff] %v1220_v4  ;;  %v1259_v31 = vrot.slane %v1215_v3, 6  ;;  %s1174_s10 = smov 110   ;;  %s1175_s11 = smov 126   ;;  %vm363_vm5 = vcmask 891904   ;;  %vm429_vm6 = vcmask 883712  }
   0x6   :  { %120 = vst [vmem:[#allocation2] sm:$0xff] %v1215_v3  ;;  %v1241_v17 = vrot.slane %v399_v12, 4  ;;  %s1176_s12 = smov 127   ;;  %vm599_vm7 = vcmask 736256   ;;  %vm547_vm8 = vcmask 744448   ;;  %vm311_vm9 = vcmask 900096  }
   0x7   :  { %44 = vst [vmem:[#allocation4 + $0x14] sm:$0xf] %v986_v5  ;;  %v398_v34 = vrot.slane %v1259_v31, 4  ;;  %vm245_vm10 = vcmask 1031168   ;;  %vm193_vm11 = vcmask 1039360   ;;  %vm863_vm12 = vcmask 424960  }
   0x8   :  { %73 = vst [vmem:[#allocation5 + $0x4] sm:$0xf] %v989_v8 }
   0x9   :  { %v119_v6 = vld [vmem:[#allocation4 + $0x20] sm:$0x3]  ;;  %42 = vst [vmem:[#allocation4 + $0x8] sm:$0xf] %v985_v10  ;;  %v1273_v37 = vsel %vm1244_vm2, %v398_v34, %v399_v12 }
   0xa   :  { %125 = vst [vmem:[#allocation2 + $0x28] sm:$0x3] %v119_v6  ;;  %v128_v7 = vld [vmem:[#allocation5 + $0x8] sm:$0x3] }
   0xb   :  { %131 = vst [vmem:[#allocation2 + $0x2c] sm:$0x3] %v128_v7  ;;  %v118_v9 = vld [vmem:[#allocation4 + $0x18] sm:$0x33] }
   0xc   :  { %124 = vst [vmem:[#allocation2 + $0x20] sm:$0x33] %v118_v9 }
   0xd   :  { %71 = vst [vmem:[#allocation5] sm:$0xf] %v988_v11 }
   0xe   :  { %v117_v13 = vld [vmem:[#allocation4 + $0x14] sm:$0xf] }
   0xf   :  { %123 = vst [vmem:[#allocation2 + $0x18] sm:$0xf] %v117_v13  ;;  %v127_v19 = vld [vmem:[#allocation5 + $0x4] sm:$0xf] }
  0x10   :  { %130 = vst [vmem:[#allocation2 + $0x1c] sm:$0xf] %v127_v19  ;;  %v115_v21 = vld [vmem:[#allocation4 + $0x8] sm:$0xf] }
  0x11   :  { %121 = vst [vmem:[#allocation2 + $0x8] sm:$0xf] %v115_v21 }
  0x12   :  { %v337_v14 = vld [vmem:[#allocation2 + $0x28] sm:$0x33] }
  0x13   :  { %354 = vrot.lane.b32.xlu1 %v337_v14, %s1170_s8  ;;  %v572_v15 = vld [vmem:[#allocation2 + $0x20] sm:$0x33]  ;;  %v573_v24 = vld [vmem:[#allocation2 + $0x28] sm:$0x33] }
  0x14   :  { %v388_v16 = vld [vmem:[#allocation2 + $0x20] sm:$0x33]  ;;  %588 = vrot.lane.b32.xlu0 %v572_v15, %s1171_s0  ;;  %v126_v22 = vld [vmem:[#allocation5] sm:$0xf] }
  0x15   :  { %v405_v18 = vrot.slane %v388_v16, 6  ;;  %129 = vst [vmem:[#allocation2 + $0xc] sm:$0xf] %v126_v22  ;;  %v389_v25 = vld [vmem:[#allocation2 + $0x28] sm:$0x33] }
  0x16   :  { %v408_v28 = vrot.slane %v389_v25, 6  ;;  %v336_v32 = vld [vmem:[#allocation2 + $0x20] sm:$0x33]  ;;  %v507_v41 = vld [vmem:[#allocation2 + $0x28] sm:$0x33] }
  0x17   :  { %v406_v23 = vsel %vm1244_vm2, %v1241_v17, %v405_v18  ;;  %v387_v26 = vld [vmem:[#allocation2 + $0x18] sm:$0xff]  ;;  %v506_v39 = vld [vmem:[#allocation2 + $0x20] sm:$0x33]  ;;  %v526_v43 = vrot.slane %v507_v41, 6  ;;  %v271_v47 = vld [vmem:[#allocation2 + $0x28] sm:$0x33] }
  0x18   :  { %v402_v27 = vrot.slane %v387_v26, 6  ;;  %v523_v40 = vrot.slane %v506_v39, 6  ;;  %v270_v45 = vld [vmem:[#allocation2 + $0x20] sm:$0x33]  ;;  %v290_v49 = vrot.slane %v271_v47, 6 }
  0x19   :  { %v287_v46 = vrot.slane %v270_v45, 6  ;;  %v455_v51 = vld [vmem:[#allocation2 + $0x28] sm:$0x33]  ;;  %v454_v52 = vld [vmem:[#allocation2 + $0x20] sm:$0x33] }
  0x1a   :  { %v1254_v30 = vrot.slane %v402_v27, 4  ;;  %v524_v42 = vsel %vm1244_vm2, %v1241_v17, %v523_v40  ;;  %v219_v54 = vld [vmem:[#allocation2 + $0x28] sm:$0x33]  ;;  %v218_v55 = vld [vmem:[#allocation2 + $0x20] sm:$0x33] }
  0x1b   :  { %418 = vrot.lane.b32.xlu1 %v406_v23, %s1172_s1  ;;  %v288_v48 = vsel %vm1244_vm2, %v1241_v17, %v287_v46  ;;  %v148_v56 = vld [vmem:[#allocation2 + $0x20] sm:$0x33]  ;;  %v149_v58 = vld [vmem:[#allocation2 + $0x28] sm:$0x33] }
  0x1c   :  { %590 = vrot.lane.b32.xlu0 %v573_v24, %s1171_s0  ;;  %v1252_v29 = vld [vmem:[#allocation2 + $0x8] sm:$0xff]  ;;  %v409_v33 = vsel %vm1244_vm2, %v1254_v30, %v408_v28  ;;  %v527_v44 = vsel %vm1244_vm2, %v1254_v30, %v526_v43  ;;  %v291_v50 = vsel %vm1244_vm2, %v1254_v30, %v290_v49  ;;  %v168_v57 = vrot.slane %v148_v56, 6 }
  0x1d   :  { %464 = vrot.lane.b32.xlu2 %v1252_v29, %s1169_s25  ;;  %v1267_v35 = vrot.slane %v1252_v29, 6  ;;  %v171_v61 = vrot.slane %v149_v58, 6 }
  0x1e   :  { %v169_v60 = vsel %vm1244_vm2, %v1241_v17, %v168_v57 }
  0x1f   :  { %v401_v36 = vrot.slane %v1267_v35, 4  ;;  %v172_v2 = vsel %vm1244_vm2, %v1254_v30, %v171_v61 }
  0x21   :  { %v1279_v38 = vsel %vm1244_vm2, %v401_v36, %v402_v27 }
  0x23   :  { %420 = vrot.lane.b32.xlu1 %v409_v33, %s1172_s1 }
  0x24   :  { %352 = vrot.lane.b32.xlu0 %v336_v32, %s1170_s8 }
  0x25   :  { %410 = vrot.lane.b32.xlu2 %v1259_v31, %s1172_s1 }
  0x2b   :  { %414 = vrot.lane.b32.xlu1 %v1273_v37, %s1172_s1 }
  0x2c   :  { %412 = vrot.lane.b32.xlu0 %v1267_v35, %s1172_s1 }
  0x2d   :  { %416 = vrot.lane.b32.xlu2 %v1279_v38, %s1172_s1 }
  0x33   :  { %582 = vrot.lane.b32.xlu1 %v1252_v29, %s1171_s0 }
  0x34   :  { %580 = vrot.lane.b32.xlu0 %v1215_v3, %s1171_s0 }
  0x35   :  { %584 = vrot.lane.b32.xlu2 %v1220_v4, %s1171_s0 }
  0x3b   :  { %344 = vrot.lane.b32.xlu1 %v1215_v3, %s1170_s8 }
  0x3c   :  { %586 = vrot.lane.b32.xlu0 %v387_v26, %s1171_s0 }
  0x3d   :  { %346 = vrot.lane.b32.xlu2 %v1252_v29, %s1170_s8 }
  0x43   :  { %350 = vrot.lane.b32.xlu1 %v387_v26, %s1170_s8 }
  0x44   :  { %348 = vrot.lane.b32.xlu0 %v1220_v4, %s1170_s8 }
  0x45   :  { %532 = vrot.lane.b32.xlu2 %v1273_v37, %s1173_s9 }
  0x4b   :  { %536 = vrot.lane.b32.xlu1 %v524_v42, %s1173_s9 }
  0x4c   :  { %534 = vrot.lane.b32.xlu0 %v1279_v38, %s1173_s9 }
  0x4d   :  { %538 = vrot.lane.b32.xlu2 %v527_v44, %s1173_s9 }
  0x53   :  { %298 = vrot.lane.b32.xlu1 %v1279_v38, %s1174_s10 }
  0x54   :  { %296 = vrot.lane.b32.xlu0 %v1273_v37, %s1174_s10 }
  0x55   :  { %300 = vrot.lane.b32.xlu2 %v288_v48, %s1174_s10 }
  0x5b   :  { %466 = vrot.lane.b32.xlu1 %v1220_v4, %s1169_s25 }
  0x5c   :  { %302 = vrot.lane.b32.xlu0 %v291_v50, %s1174_s10 }
  0x5d   :  { %468 = vrot.lane.b32.xlu2 %v387_v26, %s1169_s25  ;;  %v463_v53 = vpop.permute.xlu2 %462 }
  0x5e   :  { %v474_v59 = vrot.slane %v463_v53, 4 }
  0x63   :  { %472 = vrot.lane.b32.xlu1 %v455_v51, %s1169_s25 }
  0x64   :  { %470 = vrot.lane.b32.xlu0 %v454_v52, %s1169_s25 }
  0x65   :  { %528 = vrot.lane.b32.xlu2 %v1259_v31, %s1173_s9 }
  0x6b   :  { %230 = vrot.lane.b32.xlu1 %v1220_v4, %s1175_s11 }
  0x6c   :  { %530 = vrot.lane.b32.xlu0 %v1267_v35, %s1173_s9 }
  0x6d   :  { %232 = vrot.lane.b32.xlu2 %v387_v26, %s1175_s11 }
  0x73   :  { %236 = vrot.lane.b32.xlu1 %v219_v54, %s1175_s11 }
  0x74   :  { %234 = vrot.lane.b32.xlu0 %v218_v55, %s1175_s11 }
  0x75   :  { %292 = vrot.lane.b32.xlu2 %v1259_v31, %s1174_s10 }
  0x77   :  { %v465_v62 = vpop.permute.xlu2 %464 }
  0x78   :  { %v475_v63 = vrot.slane %v465_v62, 4 }
  0x7a   :  { %v480_v0 = vsel %vm191_vm3, %v474_v59, %v475_v63  ;;  %v483_v1 = vsel %vm481_vm4, %v465_v62, %v475_v63 }
  0x7b   :  { %181 = vrot.lane.b32.xlu1 %v169_v60, %s1176_s12  ;;  %v482_v4 = vsel %vm481_vm4, %v463_v53, %v480_v0  ;;  %497 = vst [vmem:[#allocation3 + $0xbc] sm:$0xf] %v483_v1 }
  0x7c   :  { %294 = vrot.lane.b32.xlu0 %v1267_v35, %s1174_s10  ;;  %496 = vst [vmem:[#allocation3 + $0xb4] sm:$0xff] %v482_v4 }
  0x7d   :  { %183 = vrot.lane.b32.xlu2 %v172_v2, %s1176_s12 }
  0x7f   :  { %v1343_v5 = vpop.permute.xlu2 %410 }
  0x80   :  { %v422_v41 = vrot.slane %v1343_v5, 4 }
  0x83   :  { %228 = vrot.lane.b32.xlu1 %v1252_v29, %s1175_s11  ;;  %v1148_v46 = vld [vmem:[#allocation3 + $0xb0] sm:$0xf0]  ;;  %v1079_v52 = vld [vmem:[#allocation3 + $0xb4] sm:$0xf0] }
  0x84   :  { %226 = vrot.lane.b32.xlu0 %v1215_v3, %s1175_s11 }
  0x85   :  { %v355_v6 = vpop.permute.xlu1 %354  ;;  %173 = vrot.lane.b32.xlu2 %v1259_v31, %s1176_s12 }
  0x86   :  { %v361_v7 = vrot.slane %v355_v6, 4  ;;  %v589_v8 = vpop.permute.xlu0 %588 }
  0x87   :  { %v417_v10 = vpop.permute.xlu2 %416  ;;  %v596_v14 = vrot.slane %v589_v8, 4 }
  0x88   :  { %v371_v9 = vsel %vm363_vm5, %v355_v6, %v361_v7  ;;  %v425_v11 = vrot.slane %v417_v10, 4 }
  0x89   :  { %383 = vst [vmem:[#allocation3 + $0x98] sm:$0x3] %v371_v9 }
  0x8a   :  { %v434_v3 = vsel %vm429_vm6, %v417_v10, %v425_v11 }
  0x8b   :  { %177 = vrot.lane.b32.xlu1 %v1273_v37, %s1176_s12  ;;  %447 = vst [vmem:[#allocation3 + $0xa4] sm:$0xf] %v434_v3 }
  0x8c   :  { %175 = vrot.lane.b32.xlu0 %v1267_v35, %s1176_s12 }
  0x8d   :  { %v419_v12 = vpop.permute.xlu1 %418  ;;  %179 = vrot.lane.b32.xlu2 %v1279_v38, %s1176_s12 }
  0x8e   :  { %v591_v13 = vpop.permute.xlu0 %590  ;;  %v426_v21 = vrot.slane %v419_v12, 4 }
  0x8f   :  { %v597_v15 = vrot.slane %v591_v13, 4  ;;  %v1361_v18 = vpop.permute.xlu2 %584 }
  0x91   :  { %v605_v16 = vsel %vm191_vm3, %v596_v14, %v597_v15  ;;  %v607_v17 = vsel %vm599_vm7, %v591_v13, %v597_v15 }
  0x92   :  { %v606_v19 = vsel %vm599_vm7, %v589_v8, %v605_v16  ;;  %619 = vst [vmem:[#allocation3 + $0x110] sm:$0x3] %v607_v17 }
  0x93   :  { %618 = vst [vmem:[#allocation3 + $0x108] sm:$0x33] %v606_v19 }
  0x95   :  { %v421_v20 = vpop.permute.xlu1 %420 }
  0x96   :  { %v353_v22 = vpop.permute.xlu0 %352  ;;  %v427_v23 = vrot.slane %v421_v20, 4 }
  0x97   :  { %v360_v24 = vrot.slane %v353_v22, 4  ;;  %v1368_v29 = vpop.permute.xlu2 %346 }
  0x98   :  { %v435_v25 = vsel %vm191_vm3, %v426_v21, %v427_v23  ;;  %v437_v26 = vsel %vm429_vm6, %v421_v20, %v427_v23  ;;  %v357_v32 = vrot.slane %v1368_v29, 4 }
  0x99   :  { %v369_v27 = vsel %vm191_vm3, %v360_v24, %v361_v7  ;;  %v436_v28 = vsel %vm429_vm6, %v419_v12, %v435_v25  ;;  %449 = vst [vmem:[#allocation3 + $0xb0] sm:$0xf] %v437_v26  ;;  %v594_v12 = vrot.slane %v1361_v18, 4 }
  0x9a   :  { %v370_v30 = vsel %vm363_vm5, %v353_v22, %v369_v27  ;;  %448 = vst [vmem:[#allocation3 + $0xa8] sm:$0xff] %v436_v28  ;;  %v664_v31 = vld [vmem:[#allocation3 + $0x108] sm:$0x33]  ;;  %v365_v35 = vsel %vm363_vm5, %v1368_v29, %v357_v32 }
  0x9b   :  { %382 = vst [vmem:[#allocation3 + $0x90] sm:$0x33] %v370_v30  ;;  %v791_v33 = vunpack.c.l.b16 %v664_v31  ;;  %v792_v34 = vunpack.c.h.b16 %v664_v31 }
  0x9c   :  { %379 = vst [vmem:[#allocation3 + $0x80] sm:$0xf] %v365_v35 }
  0x9d   :  { %v415_v36 = vpop.permute.xlu1 %414  ;;  %v827_v37 = vpack.c.b16 %v791_v33, %v791_v33  ;;  %v828_v38 = vpack.c.b16 %v792_v34, %v792_v34 }
  0x9e   :  { %v413_v39 = vpop.permute.xlu0 %412  ;;  %v424_v40 = vrot.slane %v415_v36, 4 }
  0x9f   :  { %v423_v42 = vrot.slane %v413_v39, 4  ;;  %v869_v43 = vsel %vm156_vm0, %v827_v37, 0  ;;  %v872_v44 = vsel %vm156_vm0, %v828_v38, 0  ;;  %v1381_v53 = vpop.permute.xlu2 %532 }
  0xa0   :  { %v432_v45 = vsel %vm191_vm3, %v424_v40, %v425_v11  ;;  %894 = vmatpush.bf16.msra.mxu1 %v869_v43  ;;  %920 = vmatpush.bf16.msra.mxu3 %v872_v44 }
  0xa1   :  { %v428_v47 = vsel %vm191_vm3, %v422_v41, %v423_v42  ;;  %v431_v48 = vsel %vm429_vm6, %v413_v39, %v423_v42  ;;  %v433_v49 = vsel %vm429_vm6, %v415_v36, %v432_v45  ;;  %v1077_v50 = vld [vmem:[#allocation3 + $0xa8] sm:$0xf]  ;;  %v1147_v51 = vld [vmem:[#allocation3 + $0xac] sm:$0xf]  ;;  %v542_v39 = vrot.slane %v1381_v53, 4 }
  0xa2   :  { %v430_v54 = vsel %vm429_vm6, %v1343_v5, %v428_v47  ;;  %445 = vst [vmem:[#allocation3 + $0x98] sm:$0xc] %v431_v48  ;;  %v1078_v55 = vor.u32 %v1148_v46, %v1077_v50  ;;  %v1082_v56 = vor.u32 %v1147_v51, %v1079_v52 }
  0xa3   :  { %444 = vst [vmem:[#allocation3 + $0x90] sm:$0xcc] %v430_v54 }
  0xa4   :  { %446 = vst [vmem:[#allocation3 + $0x9c] sm:$0xff] %v433_v49  ;;  %877 = vmatpush.bf16.msra.mxu0 %v1078_v55  ;;  %903 = vmatpush.bf16.msra.mxu2 %v1082_v56 }
  0xa5   :  { %v583_v57 = vpop.permute.xlu1 %582 }
  0xa6   :  { %v581_v58 = vpop.permute.xlu0 %580  ;;  %v593_v59 = vrot.slane %v583_v57, 4 }
  0xa7   :  { %v592_v60 = vrot.slane %v581_v58, 4  ;;  %v539_v63 = vpop.permute.xlu2 %538 }
  0xa8   :  { %v601_v61 = vsel %vm599_vm7, %v583_v57, %v593_v59  ;;  %v545_v4 = vrot.slane %v539_v63, 4 }
  0xa9   :  { %v598_v62 = vsel %vm191_vm3, %v592_v60, %v593_v59  ;;  %615 = vst [vmem:[#allocation3 + $0xf8] sm:$0xf] %v601_v61 }
  0xaa   :  { %v600_v0 = vsel %vm599_vm7, %v581_v58, %v598_v62  ;;  %v1065_v1 = vld [vmem:[#allocation3 + $0x90] sm:$0xf]  ;;  %v1144_v2 = vld [vmem:[#allocation3 + $0x94] sm:$0xf]  ;;  %v555_v9 = vsel %vm547_vm8, %v539_v63, %v545_v4 }
  0xab   :  { %614 = vst [vmem:[#allocation3 + $0xf0] sm:$0xff] %v600_v0  ;;  %v1145_v5 = vld [vmem:[#allocation3 + $0x98] sm:$0xf0]  ;;  %v1067_v6 = vld [vmem:[#allocation3 + $0x9c] sm:$0xf0] }
  0xac   :  { %v1066_v7 = vor.u32 %v1145_v5, %v1065_v1  ;;  %v1070_v8 = vor.u32 %v1144_v2, %v1067_v6  ;;  %567 = vst [vmem:[#allocation3 + $0xec] sm:$0xf] %v555_v9 }
  0xad   :  { %v345_v10 = vpop.permute.xlu1 %344 }
  0xae   :  { %878 = vmatpush.bf16.msra.mxu0 %v1066_v7  ;;  %904 = vmatpush.bf16.msra.mxu2 %v1070_v8  ;;  %v587_v11 = vpop.permute.xlu0 %586  ;;  %v356_v3 = vrot.slane %v345_v10, 4 }
  0xaf   :  { %v595_v13 = vrot.slane %v587_v11, 4  ;;  %v1394_v19 = vpop.permute.xlu2 %300 }
  0xb0   :  { %v362_v14 = vsel %vm191_vm3, %v356_v3, %v357_v32  ;;  %v308_v9 = vrot.slane %v1394_v19, 4 }
  0xb1   :  { %v602_v15 = vsel %vm191_vm3, %v594_v12, %v595_v13  ;;  %v604_v16 = vsel %vm599_vm7, %v587_v11, %v595_v13  ;;  %v364_v17 = vsel %vm363_vm5, %v345_v10, %v362_v14 }
  0xb2   :  { %v603_v20 = vsel %vm599_vm7, %v1361_v18, %v602_v15  ;;  %617 = vst [vmem:[#allocation3 + $0x104] sm:$0xf] %v604_v16  ;;  %v1113_v27 = vld [vmem:[#allocation3 + $0xf0] sm:$0xf]  ;;  %v1156_v28 = vld [vmem:[#allocation3 + $0xf4] sm:$0xf] }
  0xb3   :  { %616 = vst [vmem:[#allocation3 + $0xfc] sm:$0xff] %v603_v20 }
  0xb4   :  { %378 = vst [vmem:[#allocation3 + $0x78] sm:$0xff] %v364_v17 }
  0xb5   :  { %v351_v21 = vpop.permute.xlu1 %350 }
  0xb6   :  { %v349_v22 = vpop.permute.xlu0 %348  ;;  %v359_v23 = vrot.slane %v351_v21, 4 }
  0xb7   :  { %v358_v24 = vrot.slane %v349_v22, 4  ;;  %v1400_v29 = vpop.permute.xlu2 %468 }
  0xb8   :  { %v368_v25 = vsel %vm363_vm5, %v351_v21, %v359_v23  ;;  %v477_v32 = vrot.slane %v1400_v29, 4 }
  0xb9   :  { %v366_v26 = vsel %vm191_vm3, %v358_v24, %v359_v23  ;;  %381 = vst [vmem:[#allocation3 + $0x8c] sm:$0xf] %v368_v25 }
  0xba   :  { %v367_v30 = vsel %vm363_vm5, %v349_v22, %v366_v26  ;;  %v1157_v31 = vld [vmem:[#allocation3 + $0xf8] sm:$0xf0]  ;;  %v1115_v18 = vld [vmem:[#allocation3 + $0xfc] sm:$0xf0]  ;;  %v486_v35 = vsel %vm481_vm4, %v1400_v29, %v477_v32 }
  0xbb   :  { %380 = vst [vmem:[#allocation3 + $0x84] sm:$0xff] %v367_v30  ;;  %v1114_v33 = vor.u32 %v1157_v31, %v1113_v27  ;;  %v1118_v34 = vor.u32 %v1156_v28, %v1115_v18  ;;  %v1053_v45 = vld [vmem:[#allocation3 + $0x78] sm:$0xf]  ;;  %v1141_v46 = vld [vmem:[#allocation3 + $0x7c] sm:$0xf] }
  0xbc   :  { %499 = vst [vmem:[#allocation3 + $0xc8] sm:$0xf] %v486_v35 }
  0xbd   :  { %895 = vmatpush.bf16.msra.mxu1 %v1114_v33  ;;  %921 = vmatpush.bf16.msra.mxu3 %v1118_v34  ;;  %v537_v36 = vpop.permute.xlu1 %536 }
  0xbe   :  { %v535_v37 = vpop.permute.xlu0 %534  ;;  %v544_v38 = vrot.slane %v537_v36, 4 }
  0xbf   :  { %v543_v40 = vrot.slane %v535_v37, 4  ;;  %v1411_v47 = vpop.permute.xlu2 %528 }
  0xc0   :  { %v553_v41 = vsel %vm191_vm3, %v544_v38, %v545_v4  ;;  %v540_v35 = vrot.slane %v1411_v47, 4 }
  0xc1   :  { %v550_v42 = vsel %vm191_vm3, %v542_v39, %v543_v40  ;;  %v552_v43 = vsel %vm547_vm8, %v535_v37, %v543_v40  ;;  %v554_v44 = vsel %vm547_vm8, %v537_v36, %v553_v41 }
  0xc2   :  { %v551_v48 = vsel %vm547_vm8, %v1381_v53, %v550_v42  ;;  %565 = vst [vmem:[#allocation3 + $0xe0] sm:$0xf] %v552_v43  ;;  %v1142_v49 = vld [vmem:[#allocation3 + $0x80] sm:$0xf0]  ;;  %v1055_v50 = vld [vmem:[#allocation3 + $0x84] sm:$0xf0] }
  0xc3   :  { %564 = vst [vmem:[#allocation3 + $0xd8] sm:$0xff] %v551_v48  ;;  %v1054_v51 = vor.u32 %v1142_v49, %v1053_v45  ;;  %v1058_v52 = vor.u32 %v1141_v46, %v1055_v50  ;;  %v665_v43 = vld [vmem:[#allocation3 + $0x110] sm:$0x3] }
  0xc4   :  { %566 = vst [vmem:[#allocation3 + $0xe4] sm:$0xff] %v554_v44  ;;  %v137_v44 = vld [vmem:[#allocation2 + $0x28] sm:$0x3]  ;;  %v136_v45 = vld [vmem:[#allocation2 + $0x20] sm:$0x33]  ;;  %v793_v48 = vunpack.c.l.b16 %v665_v43  ;;  %v1177_v43 = vmov 0  }
  0xc5   :  { %879 = vmatpush.bf16.msra.mxu0 %v1054_v51  ;;  %905 = vmatpush.bf16.msra.mxu2 %v1058_v52  ;;  %v299_v54 = vpop.permute.xlu1 %298  ;;  %v1450_v49 = vld [vmem:[%s1505_s2] sm:$0xff]  ;;  %143 = vst [vmem:[#allocation3 + $0x20] sm:$0x3] %v137_v44 }
  0xc6   :  { %v307_v55 = vrot.slane %v299_v54, 4  ;;  %v297_v56 = vpop.permute.xlu0 %296  ;;  %142 = vst [vmem:[#allocation3 + $0x18] sm:$0x33] %v136_v45  ;;  %1168 = vset.pattern.permute.xlu0 %v1177_v43 }
  0xc7   :  { %v306_v57 = vrot.slane %v297_v56, 4  ;;  %v233_v53 = vpop.permute.xlu2 %232 }
  0xc8   :  { %v316_v58 = vsel %vm311_vm9, %v299_v54, %v307_v55  ;;  %v241_v63 = vrot.slane %v233_v53, 4  ;;  %v1085_v54 = vld [vmem:[#allocation3 + $0xb0] sm:$0xf] }
  0xc9   :  { %329 = vst [vmem:[#allocation3 + $0x68] sm:$0xf] %v316_v58  ;;  %v314_v59 = vsel %vm191_vm3, %v306_v57, %v307_v55  ;;  %v133_v55 = vld [vmem:[#allocation2 + $0x8] sm:$0xf]  ;;  %v675_v57 = vunpack.c.h.b16 %v1450_v49  ;;  %v132_v58 = vld [vmem:[#allocation2] sm:$0xff] }
  0xca   :  { %v315_v60 = vsel %vm311_vm9, %v297_v56, %v314_v59  ;;  %v1101_v61 = vld [vmem:[#allocation3 + $0xd8] sm:$0xf]  ;;  %v1153_v62 = vld [vmem:[#allocation3 + $0xdc] sm:$0xf]  ;;  %v250_v5 = vsel %vm245_vm10, %v233_v53, %v241_v63  ;;  %139 = vst [vmem:[#allocation3 + $0x8] sm:$0xf] %v133_v55 }
  0xcb   :  { %328 = vst [vmem:[#allocation3 + $0x60] sm:$0xff] %v315_v60  ;;  %v1154_v0 = vld [vmem:[#allocation3 + $0xe0] sm:$0xf0]  ;;  %v1103_v1 = vld [vmem:[#allocation3 + $0xe4] sm:$0xf0]  ;;  %v829_v60 = vpack.c.b16 %v793_v48, %v793_v48 }
  0xcc   :  { %v1102_v2 = vor.u32 %v1154_v0, %v1101_v61  ;;  %v1106_v4 = vor.u32 %v1153_v62, %v1103_v1  ;;  %263 = vst [vmem:[#allocation3 + $0x50] sm:$0xf] %v250_v5  ;;  %v135_v62 = vld [vmem:[#allocation2 + $0x18] sm:$0xf] }
  0xcd   :  { %v467_v6 = vpop.permute.xlu1 %466  ;;  %138 = vst [vmem:[#allocation3] sm:$0xff] %v132_v58 }
  0xce   :  { %896 = vmatpush.bf16.msra.mxu1 %v1102_v2  ;;  %922 = vmatpush.bf16.msra.mxu3 %v1106_v4  ;;  %v476_v7 = vrot.slane %v467_v6, 4  ;;  %v303_v8 = vpop.permute.xlu0 %302  ;;  %141 = vst [vmem:[#allocation3 + $0x14] sm:$0xf] %v135_v62 }
  0xcf   :  { %v309_v10 = vrot.slane %v303_v8, 4  ;;  %v1424_v14 = vpop.permute.xlu2 %292 }
  0xd0   :  { %v484_v11 = vsel %vm191_vm3, %v476_v7, %v477_v32  ;;  %v134_v7 = vld [vmem:[#allocation2 + $0x10] sm:$0xff] }
  0xd1   :  { %v485_v3 = vsel %vm481_vm4, %v467_v6, %v484_v11  ;;  %v317_v12 = vsel %vm191_vm3, %v308_v9, %v309_v10  ;;  %v319_v13 = vsel %vm311_vm9, %v303_v8, %v309_v10  ;;  %v1149_v6 = vld [vmem:[#allocation3 + $0xb8] sm:$0xf0]  ;;  %v1073_v9 = vld [vmem:[#allocation3 + $0x98] sm:$0xf]  ;;  %v1463_v11 = vpack.c.b16 %v675_v57, %v675_v57  ;;  %140 = vst [vmem:[#allocation3 + $0xc] sm:$0xff] %v134_v7 }
  0xd2   :  { %498 = vst [vmem:[#allocation3 + $0xc0] sm:$0xff] %v485_v3  ;;  %v318_v15 = vsel %vm311_vm9, %v1394_v19, %v317_v12  ;;  %v1041_v24 = vld [vmem:[#allocation3 + $0x60] sm:$0xf]  ;;  %v1138_v25 = vld [vmem:[#allocation3 + $0x64] sm:$0xf]  ;;  %v1086_v8 = vor.u32 %v1149_v6, %v1085_v54  ;;  %v875_v12 = vsel %vm156_vm0, %v829_v60, 0 }
  0xd3   :  { %330 = vst [vmem:[#allocation3 + $0x6c] sm:$0xff] %v318_v15  ;;  %v1037_v57 = vld [vmem:[#allocation3 + $0x50] sm:$0xf] }
  0xd4   :  { %331 = vst [vmem:[#allocation3 + $0x74] sm:$0xf] %v319_v13  ;;  %v1158_v13 = vld [vmem:[#allocation3 + $0x100] sm:$0xf0] }
  0xd5   :  { %v473_v16 = vpop.permute.xlu1 %472 }
  0xd6   :  { %v479_v17 = vrot.slane %v473_v16, 4  ;;  %v471_v20 = vpop.permute.xlu0 %470 }
  0xd7   :  { %v478_v21 = vrot.slane %v471_v20, 4  ;;  %v1430_v26 = vpop.permute.xlu2 %183 }
  0xd8   :  { %v489_v22 = vsel %vm481_vm4, %v473_v16, %v479_v17  ;;  %v190_v29 = vrot.slane %v1430_v26, 4 }
  0xd9   :  { %501 = vst [vmem:[#allocation3 + $0xd4] sm:$0x3] %v489_v22  ;;  %v487_v23 = vsel %vm191_vm3, %v478_v21, %v479_v17  ;;  %v1089_v56 = vld [vmem:[#allocation3 + $0xc0] sm:$0xf]  ;;  %v1150_v53 = vld [vmem:[#allocation3 + $0xc4] sm:$0xf] }
  0xda   :  { %v488_v27 = vsel %vm481_vm4, %v471_v20, %v487_v23  ;;  %v1139_v28 = vld [vmem:[#allocation3 + $0x68] sm:$0xf0]  ;;  %v1043_v19 = vld [vmem:[#allocation3 + $0x6c] sm:$0xf0]  ;;  %v201_v18 = vsel %vm193_vm11, %v1430_v26, %v190_v29  ;;  %v304_v17 = vrot.slane %v1424_v14, 4 }
  0xdb   :  { %500 = vst [vmem:[#allocation3 + $0xcc] sm:$0x33] %v488_v27  ;;  %v1042_v30 = vor.u32 %v1139_v28, %v1041_v24  ;;  %v1046_v31 = vor.u32 %v1138_v25, %v1043_v19  ;;  %v1146_v21 = vld [vmem:[#allocation3 + $0xa0] sm:$0xf0]  ;;  %v1121_v22 = vld [vmem:[#allocation3 + $0xf8] sm:$0xf] }
  0xdc   :  { %213 = vst [vmem:[#allocation3 + $0x38] sm:$0xf] %v201_v18  ;;  %v1074_v24 = vor.u32 %v1146_v21, %v1073_v9  ;;  %v1122_v25 = vor.u32 %v1158_v13, %v1121_v22  ;;  %v1155_v18 = vld [vmem:[#allocation3 + $0xe8] sm:$0xf0]  ;;  %v993_v21 = vld [vmem:[#allocation3] sm:$0xf] }
  0xdd   :  { %880 = vmatpush.bf16.msra.mxu0 %v1042_v30  ;;  %906 = vmatpush.bf16.msra.mxu2 %v1046_v31  ;;  %v231_v32 = vpop.permute.xlu1 %230  ;;  %v1143_v30 = vld [vmem:[#allocation3 + $0x88] sm:$0xf0]  ;;  %v1109_v31 = vld [vmem:[#allocation3 + $0xe0] sm:$0xf]  ;;  %v1126_v22 = vld [vmem:[#allocation3 + $0x4] sm:$0xf] }
  0xde   :  { %v240_v33 = vrot.slane %v231_v32, 4  ;;  %v531_v34 = vpop.permute.xlu0 %530 }
  0xdf   :  { %v541_v36 = vrot.slane %v531_v34, 4  ;;  %v1443_v41 = vpop.permute.xlu2 %173 }
  0xe0   :  { %v248_v37 = vsel %vm191_vm3, %v240_v33, %v241_v63  ;;  %v1110_v33 = vor.u32 %v1155_v18, %v1109_v31 }
  0xe1   :  { %v249_v38 = vsel %vm245_vm10, %v231_v32, %v248_v37  ;;  %v546_v39 = vsel %vm191_vm3, %v540_v35, %v541_v36  ;;  %v549_v40 = vsel %vm547_vm8, %v531_v34, %v541_v36  ;;  %v1140_v35 = vld [vmem:[#allocation3 + $0x70] sm:$0xf0] }
  0xe2   :  { %262 = vst [vmem:[#allocation3 + $0x48] sm:$0xff] %v249_v38  ;;  %v548_v42 = vsel %vm547_vm8, %v1411_v47, %v546_v39  ;;  %v667_v37 = vld [vmem:[%s1506_s3] sm:$0xff] }
  0xe3   :  { %562 = vst [vmem:[#allocation3 + $0xcc] sm:$0xcc] %v548_v42  ;;  %v1097_v42 = vld [vmem:[#allocation3 + $0xc8] sm:$0xf]  ;;  %670 = vperm.xlu0 %1168, %v667_v37  }
  0xe4   :  { %563 = vst [vmem:[#allocation3 + $0xd4] sm:$0xc] %v549_v40  ;;  %v1049_v40 = vld [vmem:[#allocation3 + $0x68] sm:$0xf] }
  0xe5   :  { %v237_v46 = vpop.permute.xlu1 %236  ;;  %v1050_v45 = vor.u32 %v1140_v35, %v1049_v40 }
  0xe6   :  { %v243_v50 = vrot.slane %v237_v46, 4  ;;  %v235_v51 = vpop.permute.xlu0 %234 }
  0xe7   :  { %v242_v52 = vrot.slane %v235_v51, 4  ;;  %v1455_v61 = vpop.permute.xlu2 %179 }
  0xe8   :  { %v253_v47 = vsel %vm245_vm10, %v237_v46, %v243_v50  ;;  %v188_v2 = vrot.slane %v1455_v61, 4 }
  0xe9   :  { %265 = vst [vmem:[#allocation3 + $0x5c] sm:$0x3] %v253_v47  ;;  %v251_v59 = vsel %vm191_vm3, %v242_v52, %v243_v50  ;;  %v1029_v50 = vld [vmem:[#allocation3 + $0x48] sm:$0xf]  ;;  %v1135_v54 = vld [vmem:[#allocation3 + $0x4c] sm:$0xf] }
  0xea   :  { %v252_v63 = vsel %vm245_vm10, %v235_v51, %v251_v59  ;;  %v1151_v0 = vld [vmem:[#allocation3 + $0xc8] sm:$0xf0]  ;;  %v1091_v1 = vld [vmem:[#allocation3 + $0xcc] sm:$0xf0]  ;;  %v198_v10 = vsel %vm193_vm11, %v1455_v61, %v188_v2 }
  0xeb   :  { %264 = vst [vmem:[#allocation3 + $0x54] sm:$0x33] %v252_v63  ;;  %v1090_v4 = vor.u32 %v1151_v0, %v1089_v56  ;;  %v1094_v5 = vor.u32 %v1150_v53, %v1091_v1  ;;  %v1152_v36 = vld [vmem:[#allocation3 + $0xd0] sm:$0xf0]  ;;  %v185_v63 = vrot.slane %v1443_v41, 4 }
  0xec   :  { %211 = vst [vmem:[#allocation3 + $0x2c] sm:$0xf] %v198_v10  ;;  %v1098_v46 = vor.u32 %v1152_v36, %v1097_v42 }
  0xed   :  { %897 = vmatpush.bf16.msra.mxu1 %v1090_v4  ;;  %923 = vmatpush.bf16.msra.mxu3 %v1094_v5  ;;  %v182_v3 = vpop.permute.xlu1 %181  ;;  %v1025_v4 = vld [vmem:[#allocation3 + $0x38] sm:$0xf] }
  0xee   :  { %v189_v15 = vrot.slane %v182_v3, 4  ;;  %v295_v16 = vpop.permute.xlu0 %294 }
  0xef   :  { %v305_v20 = vrot.slane %v295_v16, 4 }
  0xf0   :  { %v199_v23 = vsel %vm191_vm3, %v189_v15, %v190_v29  ;;  %1124 = vmatmul.msk.bf16.vlgmr.msra.gmra.mxu3 %vm863_vm12, %v1463_v11  ;;  %1123 = vmatmul.msk.bf16.vlgmr.msra.gmra.mxu1 %vm863_vm12, %v1463_v11  ;;  %v1061_v29 = vld [vmem:[#allocation3 + $0x80] sm:$0xf] }
  0xf1   :  { %929 = vmatpush.bf16.msrb.mxu1 %v1086_v8  ;;  %946 = vmatpush.bf16.msrb.mxu3 %v875_v12  ;;  %v200_v27 = vsel %vm193_vm11, %v182_v3, %v199_v23  ;;  %v310_v28 = vsel %vm191_vm3, %v304_v17, %v305_v20  ;;  %v313_v19 = vsel %vm311_vm9, %v295_v16, %v305_v20  ;;  %v1128_v20 = vld [vmem:[#allocation3 + $0x10] sm:$0xf0] }
  0xf2   :  { %212 = vst [vmem:[#allocation3 + $0x30] sm:$0xff] %v200_v27  ;;  %v312_v26 = vsel %vm311_vm9, %v1424_v14, %v310_v28  ;;  %v1062_v32 = vor.u32 %v1143_v30, %v1061_v29  ;;  %v674_v30 = vunpack.c.l.b16 %v1450_v49 }
  0xf3   :  { %326 = vst [vmem:[#allocation3 + $0x54] sm:$0xcc] %v312_v26  ;;  %v1131_v17 = vld [vmem:[#allocation3 + $0x28] sm:$0xf0] }
  0xf4   :  { %327 = vst [vmem:[#allocation3 + $0x5c] sm:$0xc] %v313_v19  ;;  %v995_v19 = vld [vmem:[#allocation3 + $0xc] sm:$0xf0] }
  0xf5   :  { %930 = vmatpush.bf16.msrb.mxu1 %v1074_v24  ;;  %947 = vmatpush.bf16.msrb.mxu3 %v1122_v25  ;;  %v229_v34 = vpop.permute.xlu1 %228 }
  0xf6   :  { %v239_v38 = vrot.slane %v229_v34, 4  ;;  %v227_v39 = vpop.permute.xlu0 %226 }
  0xf7   :  { %v238_v14 = vrot.slane %v227_v39, 4 }
  0xf8   :  { %v247_v44 = vsel %vm245_vm10, %v229_v34, %v239_v38 }
  0xf9   :  { %931 = vmatpush.bf16.msrb.mxu1 %v1062_v32  ;;  %948 = vmatpush.bf16.msrb.mxu3 %v1110_v33  ;;  %261 = vst [vmem:[#allocation3 + $0x44] sm:$0xf] %v247_v44  ;;  %v244_v48 = vsel %vm191_vm3, %v238_v14, %v239_v38  ;;  %v1017_v10 = vld [vmem:[#allocation3 + $0x30] sm:$0xf]  ;;  %v1132_v3 = vld [vmem:[#allocation3 + $0x34] sm:$0xf]  ;;  %v998_v32 = vor.u32 %v1126_v22, %v995_v19 }
  0xfa   :  { %v246_v51 = vsel %vm245_vm10, %v227_v39, %v244_v48  ;;  %v1136_v52 = vld [vmem:[#allocation3 + $0x50] sm:$0xf0]  ;;  %v1031_v55 = vld [vmem:[#allocation3 + $0x54] sm:$0xf0]  ;;  %v676_v33 = vpack.c.b16 %v674_v30, %v674_v30 }
  0xfb   :  { %260 = vst [vmem:[#allocation3 + $0x3c] sm:$0xff] %v246_v51  ;;  %v1030_v47 = vor.u32 %v1136_v52, %v1029_v50  ;;  %v1034_v56 = vor.u32 %v1135_v54, %v1031_v55  ;;  %v1137_v58 = vld [vmem:[#allocation3 + $0x58] sm:$0xf0] }
  0xfc   :  { %v1038_v59 = vor.u32 %v1137_v58, %v1037_v57 }
  0xfd   :  { %932 = vmatpush.bf16.msrb.mxu1 %v1050_v45  ;;  %949 = vmatpush.bf16.msrb.mxu3 %v1098_v46  ;;  %v178_v53 = vpop.permute.xlu1 %177 }
  0xfe   :  { %881 = vmatpush.bf16.msra.mxu0 %v1030_v47  ;;  %907 = vmatpush.bf16.msra.mxu2 %v1034_v56  ;;  %v176_v60 = vpop.permute.xlu0 %175  ;;  %v187_v62 = vrot.slane %v178_v53, 4 }
  0xff   :  { %v186_v0 = vrot.slane %v176_v60, 4 }
 0x100   :  { %v196_v1 = vsel %vm191_vm3, %v187_v62, %v188_v2  ;;  %v1134_v5 = vld [vmem:[#allocation3 + $0x40] sm:$0xf0]  ;;  %1125 = vmatmul.msk.bf16.vlgmr.msrb.gmra.mxu3 %vm863_vm12, %v1463_v11  ;;  %v1001_v11 = vld [vmem:[#allocation3 + $0x8] sm:$0xf] }
 0x101   :  { %933 = vmatpush.bf16.msrb.mxu1 %v1038_v59  ;;  %v192_v6 = vsel %vm191_vm3, %v185_v63, %v186_v0  ;;  %v195_v7 = vsel %vm193_vm11, %v176_v60, %v186_v0  ;;  %v197_v8 = vsel %vm193_vm11, %v178_v53, %v196_v1  ;;  %v1026_v9 = vor.u32 %v1134_v5, %v1025_v4 }
 0x102   :  { %v194_v12 = vsel %vm193_vm11, %v1443_v41, %v192_v6  ;;  %209 = vst [vmem:[#allocation3 + $0x20] sm:$0xc] %v195_v7  ;;  %v1133_v61 = vld [vmem:[#allocation3 + $0x38] sm:$0xf0]  ;;  %v1019_v2 = vld [vmem:[#allocation3 + $0x3c] sm:$0xf0]  ;;  %v1002_v29 = vor.u32 %v1128_v20, %v1001_v11 }
 0x103   :  { %208 = vst [vmem:[#allocation3 + $0x18] sm:$0xcc] %v194_v12  ;;  %v1018_v13 = vor.u32 %v1133_v61, %v1017_v10  ;;  %v1022_v15 = vor.u32 %v1132_v3, %v1019_v2  ;;  %v1127_v41 = vld [vmem:[#allocation3 + $0x8] sm:$0xf0] }
 0x104   :  { %210 = vst [vmem:[#allocation3 + $0x24] sm:$0xff] %v197_v8  ;;  %v994_v18 = vor.u32 %v1127_v41, %v993_v21 }
 0x105   :  { %934 = vmatpush.bf16.msrb.mxu1 %v1026_v9  ;;  %882 = vmatpush.bf16.msra.mxu0 %v1018_v13 }
 0x106   :  { %908 = vmatpush.bf16.msra.mxu2 %v1022_v15 }
 0x109   :  { %v1013_v16 = vld [vmem:[#allocation3 + $0x20] sm:$0xf] }
 0x10a   :  { %v1014_v23 = vor.u32 %v1131_v17, %v1013_v16  ;;  %v1005_v24 = vld [vmem:[#allocation3 + $0x18] sm:$0xf]  ;;  %v1129_v25 = vld [vmem:[#allocation3 + $0x1c] sm:$0xf] }
 0x10b   :  { %v1130_v27 = vld [vmem:[#allocation3 + $0x20] sm:$0xf0]  ;;  %v1007_v28 = vld [vmem:[#allocation3 + $0x24] sm:$0xf0] }
 0x10c   :  { %935 = vmatpush.bf16.msrb.mxu1 %v1014_v23  ;;  %v1006_v31 = vor.u32 %v1130_v27, %v1005_v24  ;;  %v1010_v26 = vor.u32 %v1129_v25, %v1007_v28 }
 0x10e   :  { %883 = vmatpush.bf16.msra.mxu0 %v1006_v31  ;;  %909 = vmatpush.bf16.msra.mxu2 %v1010_v26 }
 0x110   :  { %936 = vmatpush.bf16.msrb.mxu1 %v1002_v29 }
 0x112   :  { %884 = vmatpush.bf16.msra.mxu0 %v994_v18  ;;  %910 = vmatpush.bf16.msra.mxu2 %v998_v32 }
 0x113   :  { %937 = vmatmul.bf16.vlgmr.msrb.gmra.mxu1 %v676_v33 }
 0x115   :  { %885 = vmatmul.bf16.vlgmr.msra.gmra.mxu0 %v676_v33  ;;  %911 = vmatmul.bf16.vlgmr.msra.gmra.mxu2 %v676_v33 }
 0x155   :  { %v671_v14 = vpop.permute.xlu0 %670 }
 0x16d   :  { %v899_v34 = vpop.f32.mrf.mxu1 }
 0x173   :  { %v925_v35 = vpop.f32.mrf.mxu3 }
 0x175   :  { %v901_v36 = vpop.f32.mrf.mxu1 }
 0x17b   :  { %v927_v37 = vpop.f32.mrf.mxu3 }
 0x183   :  { %v951_v49 = vpop.f32.mrf.mxu3 }
 0x18b   :  { %v953_v38 = vpop.f32.mrf.mxu3 }
 0x190   :  { %v938_v39 = vpop.f32.mrf.mxu1 }
 0x191   :  { %v939_v40 = vadd.f32 %v938_v39, %v671_v14 }
 0x192   :  { %v886_v42 = vpop.f32.mrf.mxu0 }
 0x193   :  { %v952_v43 = vadd.f32 %v951_v49, %v939_v40  ;;  %v887_v44 = vadd.f32 %v886_v42, %v671_v14 }
 0x195   :  { %vm957_vm13 = vcmp.ge.f32.partialorder %v952_v43, 0.0  ;;  %v960_v45 = vmul.f32 0.01, %v952_v43  ;;  %v900_v48 = vadd.f32 %v899_v34, %v887_v44 }
 0x197   :  { %v963_v46 = vsel %vm957_vm13, %v952_v43, %v960_v45  ;;  %v958_v47 = vmul.f32 0.01, %v900_v48  ;;  %vm955_vm14 = vcmp.ge.f32.partialorder %v900_v48, 0.0 }
 0x198   :  { %v965_v50 = vpack.c.bf16 %v963_v46, %v963_v46  ;;  %v912_v51 = vpop.f32.mrf.mxu2  ;;  %v940_v52 = vpop.f32.mrf.mxu1 }
 0x199   :  { %v913_v54 = vadd.f32 %v912_v51, %v671_v14  ;;  %v961_v58 = vsel %vm955_vm14, %v900_v48, %v958_v47 }
 0x19a   :  { %967 = vst [vmem:[%s1507_s4 + $0x8] sm:$0xf] %v965_v50  ;;  %v888_v55 = vpop.f32.mrf.mxu0 }
 0x19b   :  { %v926_v56 = vadd.f32 %v925_v35, %v913_v54 }
 0x19d   :  { %vm956_vm15 = vcmp.ge.f32.partialorder %v926_v56, 0.0  ;;  %v959_v57 = vmul.f32 0.01, %v926_v56 }
 0x19f   :  { %v962_v59 = vsel %vm956_vm15, %v926_v56, %v959_v57 }
 0x1a0   :  { %v964_v53 = vpack.c.bf16 %v962_v59, %v961_v58  ;;  %v914_v60 = vpop.f32.mrf.mxu2 }
 0x1a2   :  { %966 = vst [vmem:[%s1507_s4] sm:$0xff] %v964_v53 }

// kernel: squeeze.8
= control target key start
LH: loop header
LB: loop body
LE: loop exit
PB: predicated region body
PF: predicated region fallthrough
CT: control target
= control target key end

     0   :  { %vm4_vm0 = vcmask 1047556   ;;  %s426_s8 = smov 112   ;;  %s427_s25 = smov 96   ;;  %vm6_vm1 = vcmask 130048   ;;  %vm33_vm2 = vcmask 1048448   ;;  %vm64_vm3 = vcmask 917248   ;;  %s674_s0 = inlined_call_operand.vmem [shape: f32[1,1,10,1,16,16], index: 0, kind: input, shape index: {}]   ;;  %s675_s1 = inlined_call_operand.vmem [shape: f32[1,10,1,256], index: 1, kind: output, shape index: {}]  }
   0x1   :  { %v369_v0 = vld [vmem:[%s674_s0 + $0x87] ss:$8 sm:$0xf]   ;;  %v370_v4 = vld [vmem:[%s674_s0 + $0x6] ss:$8 sm:$0xf]  }
   0x2   :  { %51 = vrot.lane.b32.xlu1 %v369_v0, %s426_s8  ;;  %v365_v1 = vld [vmem:[%s674_s0 + $0x7] ss:$8 sm:$0xf]   ;;  %v371_v5 = vld [vmem:[%s674_s0 + $0x6] ss:$8 sm:$0xf0]  }
   0x3   :  { %v366_v2 = vld [vmem:[%s674_s0 + $0x7] ss:$8 sm:$0xf0]   ;;  %v61_v8 = vsel %vm4_vm0, %v371_v5, %v370_v4  ;;  %v372_v9 = vld [vmem:[%s674_s0 + $0x46] ss:$8 sm:$0xf]  }
   0x4   :  { %v30_v3 = vsel %vm4_vm0, %v366_v2, %v365_v1  ;;  %v367_v6 = vld [vmem:[%s674_s0 + $0x47] ss:$8 sm:$0xf]   ;;  %v373_v10 = vld [vmem:[%s674_s0 + $0x46] ss:$8 sm:$0xf0]  }
   0x5   :  { %31 = vrot.lane.b32.xlu0 %v30_v3, %s426_s8  ;;  %v368_v7 = vld [vmem:[%s674_s0 + $0x47] ss:$8 sm:$0xf0]   ;;  %v72_v12 = vsel %vm4_vm0, %v373_v10, %v372_v9  ;;  %v377_v13 = vld [vmem:[%s674_s0 + $0x45] ss:$8 sm:$0xf]  }
   0x6   :  { %v41_v11 = vsel %vm4_vm0, %v368_v7, %v367_v6  ;;  %73 = vrot.lane.b32.xlu2 %v72_v12, %s427_s25  ;;  %v378_v14 = vld [vmem:[%s674_s0 + $0x45] ss:$8 sm:$0xf0]   ;;  %v374_v18 = vld [vmem:[%s674_s0 + $0x86] ss:$8 sm:$0xf]  }
   0x7   :  { %v375_v15 = vld [vmem:[%s674_s0 + $0x5] ss:$8 sm:$0xf]   ;;  %v103_v17 = vsel %vm4_vm0, %v378_v14, %v377_v13  ;;  %s428_s7 = smov 80   ;;  %s429_s18 = smov 64   ;;  %vm95_vm4 = vcmask 786048  }
   0x8   :  { %v376_v16 = vld [vmem:[%s674_s0 + $0x5] ss:$8 sm:$0xf0]   ;;  %v382_v20 = vld [vmem:[%s674_s0 + $0x44] ss:$8 sm:$0xf]  }
   0x9   :  { %v92_v19 = vsel %vm4_vm0, %v376_v16, %v375_v15  ;;  %v383_v21 = vld [vmem:[%s674_s0 + $0x44] ss:$8 sm:$0xf0]   ;;  %v379_v25 = vld [vmem:[%s674_s0 + $0x85] ss:$8 sm:$0xf]  }
   0xa   :  { %62 = vrot.lane.b32.xlu1 %v61_v8, %s427_s25  ;;  %v380_v22 = vld [vmem:[%s674_s0 + $0x4] ss:$8 sm:$0xf]   ;;  %v134_v24 = vsel %vm4_vm0, %v383_v21, %v382_v20  ;;  %v387_v27 = vld [vmem:[%s674_s0 + $0x43] ss:$8 sm:$0xf]  }
   0xb   :  { %v381_v23 = vld [vmem:[%s674_s0 + $0x4] ss:$8 sm:$0xf0]   ;;  %v388_v28 = vld [vmem:[%s674_s0 + $0x43] ss:$8 sm:$0xf0]  }
   0xc   :  { %v123_v26 = vsel %vm4_vm0, %v381_v23, %v380_v22  ;;  %v385_v29 = vld [vmem:[%s674_s0 + $0x3] ss:$8 sm:$0xf]   ;;  %v165_v31 = vsel %vm4_vm0, %v388_v28, %v387_v27  ;;  %v384_v32 = vld [vmem:[%s674_s0 + $0x84] ss:$8 sm:$0xf]  }
   0xd   :  { %42 = vrot.lane.b32.xlu0 %v41_v11, %s426_s8  ;;  %v386_v30 = vld [vmem:[%s674_s0 + $0x3] ss:$8 sm:$0xf0]   ;;  %s430_s29 = smov 48   ;;  %s431_s11 = smov 32   ;;  %vm126_vm5 = vcmask 654848  }
   0xe   :  { %82 = vrot.lane.b32.xlu2 %v374_v18, %s427_s25  ;;  %v154_v33 = vsel %vm4_vm0, %v386_v30, %v385_v29  ;;  %v392_v34 = vld [vmem:[%s674_s0 + $0x42] ss:$8 sm:$0xf]   ;;  %v389_v39 = vld [vmem:[%s674_s0 + $0x83] ss:$8 sm:$0xf]  }
   0xf   :  { %v393_v35 = vld [vmem:[%s674_s0 + $0x42] ss:$8 sm:$0xf0]   ;;  %v397_v41 = vld [vmem:[%s674_s0 + $0x41] ss:$8 sm:$0xf]  }
  0x10   :  { %v390_v36 = vld [vmem:[%s674_s0 + $0x2] ss:$8 sm:$0xf]   ;;  %v196_v38 = vsel %vm4_vm0, %v393_v35, %v392_v34  ;;  %v398_v42 = vld [vmem:[%s674_s0 + $0x41] ss:$8 sm:$0xf0]  }
  0x11   :  { %v391_v37 = vld [vmem:[%s674_s0 + $0x2] ss:$8 sm:$0xf0]   ;;  %v395_v43 = vld [vmem:[%s674_s0 + $0x1] ss:$8 sm:$0xf]   ;;  %v227_v45 = vsel %vm4_vm0, %v398_v42, %v397_v41 }
  0x12   :  { %104 = vrot.lane.b32.xlu1 %v103_v17, %s428_s7  ;;  %v185_v40 = vsel %vm4_vm0, %v391_v37, %v390_v36  ;;  %v396_v44 = vld [vmem:[%s674_s0 + $0x1] ss:$8 sm:$0xf0]   ;;  %v394_v46 = vld [vmem:[%s674_s0 + $0x82] ss:$8 sm:$0xf]  }
  0x13   :  { %v216_v47 = vsel %vm4_vm0, %v396_v44, %v395_v43  ;;  %s432_s22 = smov 16   ;;  %v399_v48 = vld [vmem:[%s674_s0 + $0x81] ss:$8 sm:$0xf]   ;;  %vm157_vm6 = vcmask 523648   ;;  %vm188_vm7 = vcmask 392448  }
  0x14   :  { %v364_v49 = vld [vmem:[%s674_s0 + $0x80] ss:$8 sm:$0xf]   ;;  %vm219_vm8 = vcmask 261248  }
  0x15   :  { %93 = vrot.lane.b32.xlu0 %v92_v19, %s428_s7  ;;  %24 = vst.msk [vmem:[#allocation0 + $0x80] ss:$8 sm:$0xf] %vm6_vm1, %v364_v49   ;;  %v2_v50 = vld [vmem:[%s674_s0] ss:$8 sm:$0xf]  }
  0x16   :  { %113 = vrot.lane.b32.xlu2 %v379_v25, %s428_s7  ;;  %v3_v51 = vld [vmem:[%s674_s0] ss:$8 sm:$0xf0]  }
  0x17   :  { %v5_v52 = vsel %vm4_vm0, %v3_v51, %v2_v50  ;;  %v362_v53 = vld [vmem:[%s674_s0 + $0x40] ss:$8 sm:$0xf]  }
  0x18   :  { %7 = vst.msk [vmem:[#allocation0] ss:$8 sm:$0xf] %vm6_vm1, %v5_v52   ;;  %v363_v54 = vld [vmem:[%s674_s0 + $0x40] ss:$8 sm:$0xf0]  }
  0x19   :  { %8 = vst.msk [vmem:[#allocation0] ss:$8 sm:$0xf0] %vm6_vm1, %v5_v52   ;;  %v14_v55 = vsel %vm4_vm0, %v363_v54, %v362_v53 }
  0x1a   :  { %135 = vrot.lane.b32.xlu1 %v134_v24, %s429_s18  ;;  %17 = vst.msk [vmem:[#allocation0 + $0x40] ss:$8 sm:$0xf] %vm6_vm1, %v14_v55  }
  0x1b   :  { %19 = vst.msk [vmem:[#allocation0 + $0x40] ss:$8 sm:$0xf0] %vm6_vm1, %v14_v55  }
  0x1d   :  { %124 = vrot.lane.b32.xlu0 %v123_v26, %s429_s18 }
  0x1e   :  { %144 = vrot.lane.b32.xlu2 %v384_v32, %s429_s18 }
  0x22   :  { %166 = vrot.lane.b32.xlu1 %v165_v31, %s430_s29 }
  0x25   :  { %155 = vrot.lane.b32.xlu0 %v154_v33, %s430_s29 }
  0x26   :  { %175 = vrot.lane.b32.xlu2 %v389_v39, %s430_s29 }
  0x2a   :  { %197 = vrot.lane.b32.xlu1 %v196_v38, %s431_s11 }
  0x2d   :  { %186 = vrot.lane.b32.xlu0 %v185_v40, %s431_s11 }
  0x2e   :  { %206 = vrot.lane.b32.xlu2 %v394_v46, %s431_s11 }
  0x32   :  { %228 = vrot.lane.b32.xlu1 %v227_v45, %s432_s22 }
  0x35   :  { %217 = vrot.lane.b32.xlu0 %v216_v47, %s432_s22 }
  0x36   :  { %237 = vrot.lane.b32.xlu2 %v399_v48, %s432_s22 }
  0x60   :  { %v74_v56 = vpop.permute.xlu2 %73  }
  0x68   :  { %v83_v57 = vpop.permute.xlu2 %82  }
  0x70   :  { %v114_v59 = vpop.permute.xlu2 %113  }
  0x74   :  { %v52_v58 = vpop.permute.xlu1 %51  }
  0x75   :  { %55 = vst.msk [vmem:[#allocation0 + $0x80] ss:$8 sm:$0xf] %vm33_vm2, %v52_v58  }
  0x76   :  { %86 = vst.msk [vmem:[#allocation0 + $0x80] ss:$8 sm:$0xf] %vm64_vm3, %v83_v57  }
  0x77   :  { %v32_v60 = vpop.permute.xlu0 %31   ;;  %117 = vst.msk [vmem:[#allocation0 + $0x80] ss:$8 sm:$0xf] %vm95_vm4, %v114_v59  }
  0x78   :  { %34 = vst.msk [vmem:[#allocation0] ss:$8 sm:$0xf] %vm33_vm2, %v32_v60   ;;  %v145_v62 = vpop.permute.xlu2 %144  }
  0x79   :  { %35 = vst.msk [vmem:[#allocation0] ss:$8 sm:$0xf0] %vm33_vm2, %v32_v60  }
  0x7a   :  { %148 = vst.msk [vmem:[#allocation0 + $0x80] ss:$8 sm:$0xf] %vm126_vm5, %v145_v62  }
  0x7c   :  { %v63_v61 = vpop.permute.xlu1 %62  }
  0x7d   :  { %65 = vst.msk [vmem:[#allocation0] ss:$8 sm:$0xf] %vm64_vm3, %v63_v61  }
  0x7e   :  { %66 = vst.msk [vmem:[#allocation0] ss:$8 sm:$0xf0] %vm64_vm3, %v63_v61  }
  0x7f   :  { %v43_v63 = vpop.permute.xlu0 %42  }
  0x80   :  { %46 = vst.msk [vmem:[#allocation0 + $0x40] ss:$8 sm:$0xf] %vm33_vm2, %v43_v63   ;;  %v176_v1 = vpop.permute.xlu2 %175  }
  0x81   :  { %48 = vst.msk [vmem:[#allocation0 + $0x40] ss:$8 sm:$0xf0] %vm33_vm2, %v43_v63  }
  0x82   :  { %77 = vst.msk [vmem:[#allocation0 + $0x40] ss:$8 sm:$0xf] %vm64_vm3, %v74_v56  }
  0x83   :  { %79 = vst.msk [vmem:[#allocation0 + $0x40] ss:$8 sm:$0xf0] %vm64_vm3, %v74_v56  }
  0x84   :  { %v105_v0 = vpop.permute.xlu1 %104   ;;  %179 = vst.msk [vmem:[#allocation0 + $0x80] ss:$8 sm:$0xf] %vm157_vm6, %v176_v1  }
  0x85   :  { %108 = vst.msk [vmem:[#allocation0 + $0x40] ss:$8 sm:$0xf] %vm95_vm4, %v105_v0  }
  0x86   :  { %110 = vst.msk [vmem:[#allocation0 + $0x40] ss:$8 sm:$0xf0] %vm95_vm4, %v105_v0  }
  0x87   :  { %v94_v2 = vpop.permute.xlu0 %93  }
  0x88   :  { %96 = vst.msk [vmem:[#allocation0] ss:$8 sm:$0xf] %vm95_vm4, %v94_v2   ;;  %v207_v4 = vpop.permute.xlu2 %206  }
  0x89   :  { %97 = vst.msk [vmem:[#allocation0] ss:$8 sm:$0xf0] %vm95_vm4, %v94_v2  }
  0x8a   :  { %210 = vst.msk [vmem:[#allocation0 + $0x80] ss:$8 sm:$0xf] %vm188_vm7, %v207_v4  }
  0x8c   :  { %v136_v3 = vpop.permute.xlu1 %135  }
  0x8d   :  { %139 = vst.msk [vmem:[#allocation0 + $0x40] ss:$8 sm:$0xf] %vm126_vm5, %v136_v3  }
  0x8e   :  { %141 = vst.msk [vmem:[#allocation0 + $0x40] ss:$8 sm:$0xf0] %vm126_vm5, %v136_v3  }
  0x8f   :  { %v125_v5 = vpop.permute.xlu0 %124  }
  0x90   :  { %127 = vst.msk [vmem:[#allocation0] ss:$8 sm:$0xf] %vm126_vm5, %v125_v5   ;;  %v238_v7 = vpop.permute.xlu2 %237  }
  0x91   :  { %128 = vst.msk [vmem:[#allocation0] ss:$8 sm:$0xf0] %vm126_vm5, %v125_v5  }
  0x92   :  { %241 = vst.msk [vmem:[#allocation0 + $0x80] ss:$8 sm:$0xf] %vm219_vm8, %v238_v7  }
  0x94   :  { %v167_v6 = vpop.permute.xlu1 %166  }
  0x95   :  { %170 = vst.msk [vmem:[#allocation0 + $0x40] ss:$8 sm:$0xf] %vm157_vm6, %v167_v6  }
  0x96   :  { %172 = vst.msk [vmem:[#allocation0 + $0x40] ss:$8 sm:$0xf0] %vm157_vm6, %v167_v6  }
  0x97   :  { %v156_v8 = vpop.permute.xlu0 %155  }
  0x98   :  { %158 = vst.msk [vmem:[#allocation0] ss:$8 sm:$0xf] %vm157_vm6, %v156_v8  }
  0x99   :  { %159 = vst.msk [vmem:[#allocation0] ss:$8 sm:$0xf0] %vm157_vm6, %v156_v8   ;;  %v339_v11 = vld [vmem:[#allocation0 + $0x80] sm:$0x1] }
  0x9a   :  { %415 = vst [vmem:[%s675_s1 + $0x10] sm:$0x1] %v339_v11  ;;  %v345_v12 = vld [vmem:[#allocation0 + $0x88] sm:$0x1]  ;;  %v351_v13 = vld [vmem:[#allocation0 + $0x90] sm:$0x1] }
  0x9b   :  { %416 = vst [vmem:[%s675_s1 + $0x11] sm:$0x1] %v345_v12  ;;  %v357_v14 = vld [vmem:[#allocation0 + $0x98] sm:$0x1] }
  0x9c   :  { %v198_v9 = vpop.permute.xlu1 %197   ;;  %417 = vst [vmem:[%s675_s1 + $0x12] sm:$0x1] %v351_v13 }
  0x9d   :  { %201 = vst.msk [vmem:[#allocation0 + $0x40] ss:$8 sm:$0xf] %vm188_vm7, %v198_v9  }
  0x9e   :  { %203 = vst.msk [vmem:[#allocation0 + $0x40] ss:$8 sm:$0xf0] %vm188_vm7, %v198_v9  }
  0x9f   :  { %v187_v10 = vpop.permute.xlu0 %186   ;;  %418 = vst [vmem:[%s675_s1 + $0x13] sm:$0x1] %v357_v14 }
  0xa0   :  { %189 = vst.msk [vmem:[#allocation0] ss:$8 sm:$0xf] %vm188_vm7, %v187_v10  }
  0xa1   :  { %190 = vst.msk [vmem:[#allocation0] ss:$8 sm:$0xf0] %vm188_vm7, %v187_v10  }
  0xa4   :  { %v229_v15 = vpop.permute.xlu1 %228  }
  0xa5   :  { %232 = vst.msk [vmem:[#allocation0 + $0x40] ss:$8 sm:$0xf] %vm219_vm8, %v229_v15  }
  0xa6   :  { %234 = vst.msk [vmem:[#allocation0 + $0x40] ss:$8 sm:$0xf0] %vm219_vm8, %v229_v15  }
  0xa7   :  { %v218_v16 = vpop.permute.xlu0 %217  }
  0xa8   :  { %220 = vst.msk [vmem:[#allocation0] ss:$8 sm:$0xf] %vm219_vm8, %v218_v16  }
  0xa9   :  { %221 = vst.msk [vmem:[#allocation0] ss:$8 sm:$0xf0] %vm219_vm8, %v218_v16  }
  0xac   :  { %v291_v17 = vld [vmem:[#allocation0 + $0x40] sm:$0x1]  ;;  %v297_v18 = vld [vmem:[#allocation0 + $0x48] sm:$0x1]  ;;  %v303_v19 = vld [vmem:[#allocation0 + $0x50] sm:$0x1] }
  0xad   :  { %407 = vst [vmem:[%s675_s1 + $0x8] sm:$0x1] %v291_v17  ;;  %v309_v20 = vld [vmem:[#allocation0 + $0x58] sm:$0x1]  ;;  %v315_v21 = vld [vmem:[#allocation0 + $0x60] sm:$0x1] }
  0xae   :  { %408 = vst [vmem:[%s675_s1 + $0x9] sm:$0x1] %v297_v18  ;;  %v321_v22 = vld [vmem:[#allocation0 + $0x68] sm:$0x1]  ;;  %v327_v23 = vld [vmem:[#allocation0 + $0x70] sm:$0x1] }
  0xaf   :  { %409 = vst [vmem:[%s675_s1 + $0xa] sm:$0x1] %v303_v19  ;;  %v333_v24 = vld [vmem:[#allocation0 + $0x78] sm:$0x1]  ;;  %v244_v25 = vld [vmem:[#allocation0] sm:$0x1] }
  0xb0   :  { %410 = vst [vmem:[%s675_s1 + $0xb] sm:$0x1] %v309_v20  ;;  %v249_v26 = vld [vmem:[#allocation0 + $0x8] sm:$0x1]  ;;  %v255_v27 = vld [vmem:[#allocation0 + $0x10] sm:$0x1] }
  0xb1   :  { %411 = vst [vmem:[%s675_s1 + $0xc] sm:$0x1] %v315_v21  ;;  %v261_v28 = vld [vmem:[#allocation0 + $0x18] sm:$0x1]  ;;  %v267_v29 = vld [vmem:[#allocation0 + $0x20] sm:$0x1] }
  0xb2   :  { %412 = vst [vmem:[%s675_s1 + $0xd] sm:$0x1] %v321_v22  ;;  %v273_v30 = vld [vmem:[#allocation0 + $0x28] sm:$0x1]  ;;  %v279_v31 = vld [vmem:[#allocation0 + $0x30] sm:$0x1] }
  0xb3   :  { %413 = vst [vmem:[%s675_s1 + $0xe] sm:$0x1] %v327_v23  ;;  %v285_v32 = vld [vmem:[#allocation0 + $0x38] sm:$0x1] }
  0xb4   :  { %414 = vst [vmem:[%s675_s1 + $0xf] sm:$0x1] %v333_v24 }
  0xb5   :  { %247 = vst [vmem:[%s675_s1] sm:$0x1] %v244_v25 }
  0xb6   :  { %400 = vst [vmem:[%s675_s1 + $0x1] sm:$0x1] %v249_v26 }
  0xb7   :  { %401 = vst [vmem:[%s675_s1 + $0x2] sm:$0x1] %v255_v27 }
  0xb8   :  { %402 = vst [vmem:[%s675_s1 + $0x3] sm:$0x1] %v261_v28 }
  0xb9   :  { %403 = vst [vmem:[%s675_s1 + $0x4] sm:$0x1] %v267_v29 }
  0xba   :  { %404 = vst [vmem:[%s675_s1 + $0x5] sm:$0x1] %v273_v30 }
  0xbb   :  { %405 = vst [vmem:[%s675_s1 + $0x6] sm:$0x1] %v279_v31 }
  0xbc   :  { %406 = vst [vmem:[%s675_s1 + $0x7] sm:$0x1] %v285_v32 }

// kernel: e2e_varnet_forward.30
= control target key start
LH: loop header
LB: loop body
LE: loop exit
PB: predicated region body
PF: predicated region fallthrough
CT: control target
= control target key end

     0   :  { %v155_v2 = vmov 0   ;;  %vm82_vm0 = vcmask 1043456   ;;  %vm75_vm1 = vcmask 64512   ;;  %s217_s0 = inlined_call_operand.vmem [shape: bf16[1,8,384], index: 0, kind: input, shape index: {}, may-alias: {0,1}]   ;;  %s218_s1 = inlined_call_operand.vmem [shape: bf16[1,8,384], index: 1, kind: input, shape index: {}, may-alias: {0,1}]   ;;  %s219_s2 = inlined_call_operand.vmem [shape: bf16[20,8], index: 2, kind: input, shape index: {}]   ;;  %s220_s3 = inlined_call_operand.vmem [shape: f32[20,1], index: 3, kind: input, shape index: {}]   ;;  %s221_s4 = inlined_call_operand.vmem [shape: f32[1,20,256], index: 4, kind: output, shape index: {}]  }
   0x1   :  { %v40_v0 = vld [vmem:[%s217_s0] sm:$0xff]  ;;  %v43_v1 = vld [vmem:[%s219_s2 + $0x8] sm:$0x3]  ;;  %153 = vset.pattern.permute.xlu0 %v155_v2  ;;  %154 = vset.pattern.permute.xlu1 %v155_v2  ;;  %v46_v7 = vld [vmem:[%s220_s3 + $0x10] sm:$0xf] }
   0x2   :  { %v71_v3 = vunpack.c.l.b16 %v40_v0  ;;  %v72_v4 = vunpack.c.h.b16 %v40_v0  ;;  %v67_v5 = vunpack.c.l.b16 %v43_v1  ;;  %v44_v6 = vld [vmem:[%s220_s3] sm:$0xff]  ;;  %59 = vperm.xlu1 %154, %v46_v7   ;;  %v45_v14 = vld [vmem:[%s220_s3 + $0x8] sm:$0xff] }
   0x3   :  { %49 = vperm.xlu0 %153, %v44_v6   ;;  %v149_v12 = vld [vmem:[%s219_s2] sm:$0xff] }
   0x4   :  { %v73_v8 = vpack.c.b16 %v71_v3, %v71_v3  ;;  %v74_v9 = vpack.c.b16 %v72_v4, %v72_v4  ;;  %v69_v13 = vpack.c.b16 %v67_v5, %v67_v5 }
   0x6   :  { %v84_v10 = vsel %vm82_vm0, %v73_v8, 0  ;;  %v87_v11 = vsel %vm82_vm0, %v74_v9, 0 }
   0x7   :  { %96 = vmatpush.bf16.msra.mxu0 %v84_v10  ;;  %150 = vmatpush.bf16.msra.mxu2 %v84_v10 }
   0x8   :  { %114 = vmatpush.bf16.msra.mxu1 %v87_v11  ;;  %151 = vmatpush.bf16.msra.mxu3 %v87_v11 }
   0xa   :  { %145 = vmatmul.msk.bf16.vlgmr.msra.gmra.mxu0 %vm75_vm1, %v149_v12  ;;  %146 = vmatmul.msk.bf16.vlgmr.msra.gmra.mxu2 %vm75_vm1, %v69_v13 }
   0xb   :  { %147 = vmatmul.msk.bf16.vlgmr.msra.gmra.mxu1 %vm75_vm1, %v149_v12  ;;  %148 = vmatmul.msk.bf16.vlgmr.msra.gmra.mxu3 %vm75_vm1, %v69_v13 }
   0xc   :  { %54 = vperm.xlu0 %153, %v45_v14  }
  0x74   :  { %v60_v20 = vpop.permute.xlu1 %59 }
  0x75   :  { %v50_v15 = vpop.permute.xlu0 %49 }
  0x7e   :  { %v55_v24 = vpop.permute.xlu0 %54 }
  0x87   :  { %v98_v16 = vpop.f32.mrf.mxu0 }
  0x88   :  { %v99_v17 = vadd.f32 %v98_v16, %v50_v15  ;;  %v116_v18 = vpop.f32.mrf.mxu1 }
  0x89   :  { %v117_v19 = vadd.f32 %v116_v18, %v50_v15 }
  0x8a   :  { %125 = vst [vmem:[%s221_s4] sm:$0xff] %v99_v17 }
  0x8b   :  { %126 = vst [vmem:[%s221_s4 + $0x8] sm:$0xff] %v117_v19 }
  0x8d   :  { %v103_v21 = vpop.f32.mrf.mxu2 }
  0x8e   :  { %v104_v22 = vadd.f32 %v103_v21, %v60_v20  ;;  %v121_v23 = vpop.f32.mrf.mxu3 }
  0x8f   :  { %v122_v25 = vadd.f32 %v121_v23, %v60_v20  ;;  %v100_v26 = vpop.f32.mrf.mxu0 }
  0x90   :  { %129 = vst [vmem:[%s221_s4 + $0x20] sm:$0xf] %v104_v22  ;;  %v101_v27 = vadd.f32 %v100_v26, %v55_v24  ;;  %v118_v28 = vpop.f32.mrf.mxu1 }
  0x91   :  { %130 = vst [vmem:[%s221_s4 + $0x28] sm:$0xf] %v122_v25  ;;  %v119_v29 = vadd.f32 %v118_v28, %v55_v24 }
  0x92   :  { %127 = vst [vmem:[%s221_s4 + $0x10] sm:$0xff] %v101_v27 }
  0x93   :  { %128 = vst [vmem:[%s221_s4 + $0x18] sm:$0xff] %v119_v29 }
  0x95   :  { %v105_v30 = vpop.f32.mrf.mxu2 }
  0x96   :  { %v123_v31 = vpop.f32.mrf.mxu3 }

// kernel: e2e_varnet_forward.31
= control target key start
LH: loop header
LB: loop body
LE: loop exit
PB: predicated region body
PF: predicated region fallthrough
CT: control target
= control target key end

     0   :  { %vm98_vm0 = vcmask 1041408   ;;  %vm142_vm7 = vcmask 1040384   ;;  %vm144_vm8 = vcmask 1041409   ;;  %vm147_vm9 = vcmask 1042434   ;;  %s517_s0 = inlined_call_operand.vmem [shape: f32[1,10,1,256], index: 0, kind: input, shape index: {}]   ;;  %s518_s1 = inlined_call_operand.vmem [shape: f32[1,10,1,256], index: 1, kind: input, shape index: {}]   ;;  %s519_s2 = inlined_call_operand.vmem [shape: f32[1,10,1,256], index: 2, kind: output, shape index: {0}]   ;;  %s520_s3 = inlined_call_operand.vmem [shape: f32[1,10,1,256], index: 3, kind: output, shape index: {1}]  }
   0x1   :  { %v252_v0 = vld [vmem:[%s517_s0] sm:$0x3]  ;;  %v262_v2 = vld [vmem:[%s517_s0 + $0x2] sm:$0x3]  ;;  %v278_v7 = vld [vmem:[%s517_s0 + $0x4] sm:$0x3] }
   0x2   :  { %v257_v1 = vld [vmem:[%s518_s1] sm:$0x3]  ;;  %v33_v3 = vmul.f32 %v252_v0, %v252_v0  ;;  %v271_v5 = vld [vmem:[%s518_s1 + $0x2] sm:$0x3]  ;;  %v34_v6 = vmul.f32 %v262_v2, %v262_v2  ;;  %v283_v8 = vld [vmem:[%s518_s1 + $0x4] sm:$0x3]  ;;  %v35_v10 = vmul.f32 %v278_v7, %v278_v7 }
   0x3   :  { %v43_v4 = vmul.f32 %v257_v1, %v257_v1  ;;  %v44_v9 = vmul.f32 %v271_v5, %v271_v5  ;;  %v45_v11 = vmul.f32 %v283_v8, %v283_v8  ;;  %v294_v12 = vld [vmem:[%s517_s0 + $0x6] sm:$0x3]  ;;  %v304_v14 = vld [vmem:[%s517_s0 + $0x8] sm:$0x3]  ;;  %v320_v20 = vld [vmem:[%s517_s0 + $0xa] sm:$0x3] }
   0x4   :  { %v299_v13 = vld [vmem:[%s518_s1 + $0x6] sm:$0x3]  ;;  %v36_v16 = vmul.f32 %v294_v12, %v294_v12  ;;  %v313_v18 = vld [vmem:[%s518_s1 + $0x8] sm:$0x3]  ;;  %v37_v19 = vmul.f32 %v304_v14, %v304_v14  ;;  %v325_v21 = vld [vmem:[%s518_s1 + $0xa] sm:$0x3]  ;;  %v38_v25 = vmul.f32 %v320_v20, %v320_v20 }
   0x5   :  { %v53_v15 = vadd.f32 %v43_v4, %v33_v3  ;;  %v46_v17 = vmul.f32 %v299_v13, %v299_v13  ;;  %v54_v22 = vadd.f32 %v44_v9, %v34_v6  ;;  %v55_v23 = vadd.f32 %v45_v11, %v35_v10  ;;  %v334_v26 = vld [vmem:[%s517_s0 + $0xc] sm:$0x3]  ;;  %v344_v28 = vld [vmem:[%s517_s0 + $0xe] sm:$0x3]  ;;  %v364_v40 = vld [vmem:[%s517_s0 + $0x10] sm:$0x3] }
   0x6   :  { %v47_v24 = vmul.f32 %v313_v18, %v313_v18  ;;  %v339_v27 = vld [vmem:[%s518_s1 + $0xc] sm:$0x3]  ;;  %v48_v30 = vmul.f32 %v325_v21, %v325_v21  ;;  %v39_v31 = vmul.f32 %v334_v26, %v334_v26  ;;  %v355_v33 = vld [vmem:[%s518_s1 + $0xe] sm:$0x3]  ;;  %v40_v35 = vmul.f32 %v344_v28, %v344_v28  ;;  %v369_v41 = vld [vmem:[%s518_s1 + $0x10] sm:$0x3] }
   0x7   :  { %73 = vst [vmem:[#allocation1] ss:$9 sm:$0xff] %v53_v15  ;;  %v56_v29 = vadd.f32 %v46_v17, %v36_v16  ;;  %v49_v32 = vmul.f32 %v339_v27, %v339_v27  ;;  %v50_v36 = vmul.f32 %v355_v33, %v355_v33  ;;  %v374_v42 = vld [vmem:[%s517_s0 + $0x12] sm:$0x3]  ;;  %v41_v44 = vmul.f32 %v364_v40, %v364_v40 }
   0x8   :  { %75 = vst [vmem:[#allocation1 + $0x1] ss:$9 sm:$0xff] %v54_v22  ;;  %v57_v34 = vadd.f32 %v47_v24, %v37_v19  ;;  %v58_v37 = vadd.f32 %v48_v30, %v38_v25  ;;  %v379_v43 = vld [vmem:[%s518_s1 + $0x12] sm:$0x3]  ;;  %v51_v45 = vmul.f32 %v369_v41, %v369_v41  ;;  %v42_v46 = vmul.f32 %v374_v42, %v374_v42 }
   0x9   :  { %77 = vst [vmem:[#allocation1 + $0x2] ss:$9 sm:$0xff] %v55_v23  ;;  %v59_v38 = vadd.f32 %v49_v32, %v39_v31  ;;  %v60_v39 = vadd.f32 %v50_v36, %v40_v35  ;;  %v52_v47 = vmul.f32 %v379_v43, %v379_v43  ;;  %v183_v36 = vlaneseq }
   0xa   :  { %79 = vst [vmem:[#allocation1 + $0x3] ss:$9 sm:$0xff] %v56_v29  ;;  %v61_v48 = vadd.f32 %v51_v45, %v41_v44  ;;  %vm150_vm10 = vcmask 1043459   ;;  %vm153_vm12 = vcmask 1044484   ;;  %vm156_vm13 = vcmask 1045509  }
   0xb   :  { %81 = vst [vmem:[#allocation1 + $0x4] ss:$9 sm:$0xff] %v57_v34  ;;  %v62_v49 = vadd.f32 %v52_v47, %v42_v46  ;;  %vm389_vm11 = vcmp.lt.s32.totalorder %v183_v36, 256  ;;  %vm159_vm14 = vcmask 1046534   ;;  %vm162_vm15 = vcmask 1046528  }
   0xc   :  { %83 = vst [vmem:[#allocation1 + $0x5] ss:$9 sm:$0xff] %v58_v37 }
   0xd   :  { %85 = vst [vmem:[#allocation1 + $0x6] ss:$9 sm:$0xff] %v59_v38 }
   0xe   :  { %87 = vst [vmem:[#allocation1 + $0x7] ss:$9 sm:$0xff] %v60_v39 }
  0x15   :  { %v88_v50 = vld [vmem:[#allocation1] sm:$0xff]  ;;  %v89_v51 = vld [vmem:[#allocation1 + $0x9] sm:$0xff] }
  0x16   :  { %90 = vst [vmem:[#allocation1] ss:$9 sm:$0xff] %v61_v48 }
  0x17   :  { %91 = vst [vmem:[#allocation1 + $0x1] ss:$9 sm:$0xff] %v62_v49 }
  0x1e   :  { %v92_v52 = vld [vmem:[#allocation1] sm:$0xff]  ;;  %v93_v53 = vld [vmem:[#allocation1 + $0x9] sm:$0xff] }
  0x1f   :  { %v99_v54 = vsel %vm98_vm0, %v92_v52, 0.0  ;;  %v107_v55 = vsel %vm98_vm0, %v93_v53, 0.0 }
  0x20   :  { %v100_v56 = vadd.f32 %v99_v54, %v88_v50  ;;  %v108_v57 = vadd.f32 %v107_v55, %v89_v51 }
  0x22   :  { %v101_v58 = vrot.slane %v100_v56, 4  ;;  %v109_v59 = vrot.slane %v108_v57, 4 }
  0x24   :  { %v102_v60 = vadd.f32 %v101_v58, %v100_v56  ;;  %v110_v61 = vadd.f32 %v109_v59, %v108_v57 }
  0x26   :  { %v103_v62 = vrot.slane %v102_v60, 2  ;;  %v111_v63 = vrot.slane %v110_v61, 2 }
  0x28   :  { %v104_v3 = vadd.f32 %v103_v62, %v102_v60  ;;  %v112_v4 = vadd.f32 %v111_v63, %v110_v61 }
  0x2a   :  { %v105_v6 = vrot.slane %v104_v3, 1  ;;  %v113_v9 = vrot.slane %v112_v4, 1 }
  0x2c   :  { %v106_v10 = vadd.f32 %v105_v6, %v104_v3  ;;  %v114_v11 = vadd.f32 %v113_v9, %v112_v4 }
  0x2e   :  { %v115_v15 = vadd.f32 1e-12, %v106_v10  ;;  %v116_v16 = vadd.f32 1e-12, %v114_v11 }
  0x30   :  { %225 = vrsqrt.f32 %v115_v15  ;;  %vm123_vm3 = vweird.f32 %v115_v15  ;;  %vm133_vm5 = vweird.f32 %v116_v16 }
  0x31   :  { %227 = vrsqrt.f32 %v116_v16 }
  0x36   :  { %v226_v17 = vpop.eup %225 }
  0x37   :  { %v228_v19 = vpop.eup %227  ;;  %v118_v22 = vmul.f32 %v226_v17, %v115_v15  ;;  %vm124_vm1 = vweird.f32 %v226_v17 }
  0x38   :  { %v128_v23 = vmul.f32 %v228_v19, %v116_v16  ;;  %vm134_vm2 = vweird.f32 %v228_v19  ;;  %vm125_vm4 = vmor %vm123_vm3, %vm124_vm1 }
  0x39   :  { %v119_v24 = vmul.f32 %v226_v17, %v118_v22  ;;  %vm135_vm6 = vmor %vm133_vm5, %vm134_vm2 }
  0x3a   :  { %v129_v25 = vmul.f32 %v228_v19, %v128_v23 }
  0x3b   :  { %v120_v29 = vmul.f32 0.5, %v119_v24 }
  0x3c   :  { %v130_v30 = vmul.f32 0.5, %v129_v25 }
  0x3d   :  { %v121_v31 = vsub.f32 1.5, %v120_v29 }
  0x3e   :  { %v131_v32 = vsub.f32 1.5, %v130_v30 }
  0x3f   :  { %v122_v34 = vmul.f32 %v226_v17, %v121_v31 }
  0x40   :  { %v132_v35 = vmul.f32 %v228_v19, %v131_v32 }
  0x41   :  { %v126_v37 = vsel %vm125_vm4, %v226_v17, %v122_v34 }
  0x42   :  { %v136_v38 = vsel %vm135_vm6, %v228_v19, %v132_v35  ;;  %v137_v44 = vperm.slane %v126_v37, 0 }
  0x43   :  { %v138_v39 = vperm.slane %v136_v38, 0 }
  0x45   :  { %v141_v45 = vrot.slane %v138_v39, 7 }
  0x47   :  { %v143_v47 = vsel %vm142_vm7, %v137_v44, %v141_v45  ;;  %v145_v48 = vsel %vm144_vm8, %v137_v44, %v141_v45  ;;  %v148_v49 = vsel %vm147_vm9, %v137_v44, %v141_v45  ;;  %v151_v50 = vsel %vm150_vm10, %v137_v44, %v141_v45 }
  0x48   :  { %v173_v51 = vmul.f32 %v143_v47, %v252_v0  ;;  %v181_v52 = vmul.f32 %v143_v47, %v364_v40  ;;  %v197_v53 = vmul.f32 %v143_v47, %v257_v1  ;;  %v205_v54 = vmul.f32 %v143_v47, %v369_v41 }
  0x49   :  { %v146_v55 = vrot.slane %v145_v48, 1  ;;  %v149_v56 = vrot.slane %v148_v49, 2  ;;  %v152_v57 = vrot.slane %v151_v50, 3  ;;  %v154_v58 = vsel %vm153_vm12, %v137_v44, %v141_v45 }
  0x4a   :  { %187 = vst.msk [vmem:[%s519_s2] sm:$0x3] %vm389_vm11, %v173_v51  ;;  %v155_v59 = vrot.slane %v154_v58, 4  ;;  %v157_v0 = vsel %vm156_vm13, %v137_v44, %v141_v45  ;;  %v160_v40 = vsel %vm159_vm14, %v137_v44, %v141_v45  ;;  %v163_v1 = vsel %vm162_vm15, %v141_v45, %v137_v44 }
  0x4b   :  { %195 = vst.msk [vmem:[%s519_s2 + $0x10] sm:$0x3] %vm389_vm11, %v181_v52  ;;  %v174_v41 = vmul.f32 %v146_v55, %v262_v2  ;;  %v175_v60 = vmul.f32 %v149_v56, %v278_v7  ;;  %v158_v61 = vrot.slane %v157_v0, 5  ;;  %v176_v62 = vmul.f32 %v152_v57, %v294_v12 }
  0x4c   :  { %207 = vst.msk [vmem:[%s520_s3] sm:$0x3] %vm389_vm11, %v197_v53  ;;  %v161_v63 = vrot.slane %v160_v40, 6  ;;  %v164_v3 = vrot.slane %v163_v1, 7  ;;  %v177_v2 = vmul.f32 %v155_v59, %v304_v14 }
  0x4d   :  { %215 = vst.msk [vmem:[%s520_s3 + $0x10] sm:$0x3] %vm389_vm11, %v205_v54  ;;  %v178_v7 = vmul.f32 %v158_v61, %v320_v20  ;;  %v182_v20 = vmul.f32 %v146_v55, %v374_v42  ;;  %v200_v42 = vmul.f32 %v152_v57, %v299_v13 }
  0x4e   :  { %188 = vst.msk [vmem:[%s519_s2 + $0x2] sm:$0x3] %vm389_vm11, %v174_v41  ;;  %v179_v12 = vmul.f32 %v161_v63, %v334_v26  ;;  %v180_v14 = vmul.f32 %v164_v3, %v344_v28  ;;  %v198_v26 = vmul.f32 %v146_v55, %v271_v5  ;;  %v199_v28 = vmul.f32 %v149_v56, %v283_v8 }
  0x4f   :  { %189 = vst.msk [vmem:[%s519_s2 + $0x4] sm:$0x3] %vm389_vm11, %v175_v60  ;;  %v201_v5 = vmul.f32 %v155_v59, %v313_v18  ;;  %v202_v8 = vmul.f32 %v158_v61, %v325_v21  ;;  %v203_v13 = vmul.f32 %v161_v63, %v339_v27  ;;  %v204_v18 = vmul.f32 %v164_v3, %v355_v33 }
  0x50   :  { %190 = vst.msk [vmem:[%s519_s2 + $0x6] sm:$0x3] %vm389_vm11, %v176_v62  ;;  %v206_v21 = vmul.f32 %v146_v55, %v379_v43 }
  0x51   :  { %191 = vst.msk [vmem:[%s519_s2 + $0x8] sm:$0x3] %vm389_vm11, %v177_v2 }
  0x52   :  { %192 = vst.msk [vmem:[%s519_s2 + $0xa] sm:$0x3] %vm389_vm11, %v178_v7 }
  0x53   :  { %193 = vst.msk [vmem:[%s519_s2 + $0xc] sm:$0x3] %vm389_vm11, %v179_v12 }
  0x54   :  { %194 = vst.msk [vmem:[%s519_s2 + $0xe] sm:$0x3] %vm389_vm11, %v180_v14 }
  0x55   :  { %196 = vst.msk [vmem:[%s519_s2 + $0x12] sm:$0x3] %vm389_vm11, %v182_v20 }
  0x56   :  { %208 = vst.msk [vmem:[%s520_s3 + $0x2] sm:$0x3] %vm389_vm11, %v198_v26 }
  0x57   :  { %209 = vst.msk [vmem:[%s520_s3 + $0x4] sm:$0x3] %vm389_vm11, %v199_v28 }
  0x58   :  { %210 = vst.msk [vmem:[%s520_s3 + $0x6] sm:$0x3] %vm389_vm11, %v200_v42 }
  0x59   :  { %211 = vst.msk [vmem:[%s520_s3 + $0x8] sm:$0x3] %vm389_vm11, %v201_v5 }
  0x5a   :  { %212 = vst.msk [vmem:[%s520_s3 + $0xa] sm:$0x3] %vm389_vm11, %v202_v8 }
  0x5b   :  { %213 = vst.msk [vmem:[%s520_s3 + $0xc] sm:$0x3] %vm389_vm11, %v203_v13 }
  0x5c   :  { %214 = vst.msk [vmem:[%s520_s3 + $0xe] sm:$0x3] %vm389_vm11, %v204_v18 }
  0x5d   :  { %216 = vst.msk [vmem:[%s520_s3 + $0x12] sm:$0x3] %vm389_vm11, %v206_v21 }

// kernel: e2e_varnet_forward.29
= control target key start
LH: loop header
LB: loop body
LE: loop exit
PB: predicated region body
PF: predicated region fallthrough
CT: control target
= control target key end

     0   :  { %s1180_s19 = smov 90   ;;  %s1183_s8 = smov 91   ;;  %vm174_vm0 = vcmask 1043456   ;;  %vm540_vm1 = vcmask 736256   ;;  %vm488_vm2 = vcmask 744448   ;;  %vm332_vm3 = vcmask 891904   ;;  %s1465_s0 = inlined_call_operand.vmem [shape: bf16[1,24,512], index: 0, kind: input, shape index: {}, may-alias: {0,1}]   ;;  %s1466_s1 = inlined_call_operand.vmem [shape: bf16[1,24,512], index: 1, kind: input, shape index: {}, may-alias: {0,1}]   ;;  %s1467_s2 = inlined_call_operand.vmem [shape: bf16[8,216], index: 2, kind: input, shape index: {}]   ;;  %s1468_s3 = inlined_call_operand.vmem [shape: f32[8,1], index: 3, kind: input, shape index: {}]   ;;  %s1469_s4 = inlined_call_operand.vmem [shape: bf16[1,8,384], index: 4, kind: output, shape index: {}]  }
   0x1   :  { %v1217_v0 = vld [vmem:[%s1465_s0 + $0x20] sm:$0xff]  ;;  %v968_v2 = vld [vmem:[%s1465_s0 + $0x28] sm:$0xf]  ;;  %v1235_v3 = vld [vmem:[%s1465_s0 + $0x10] sm:$0xff]  ;;  %s1184_s9 = smov 92   ;;  %s1185_s10 = smov 110  }
   0x2   :  { %v1222_v1 = vld [vmem:[%s1465_s0] sm:$0xff]  ;;  %529 = vrot.lane.b32.xlu0 %v1217_v0, %s1180_s19  ;;  %124 = vst [vmem:[#allocation2 + $0x20] sm:$0xff] %v1217_v0  ;;  %v971_v4 = vld [vmem:[%s1466_s1 + $0x2c] sm:$0xf]  ;;  %525 = vrot.lane.b32.xlu2 %v1235_v3, %s1180_s19  ;;  %s1186_s11 = smov 126   ;;  %s1187_s12 = smov 127  }
   0x3   :  { %521 = vrot.lane.b32.xlu1 %v1222_v1, %s1180_s19  ;;  %120 = vst [vmem:[#allocation2] sm:$0xff] %v1222_v1  ;;  %v966_v5 = vld [vmem:[%s1465_s0 + $0x8] sm:$0xf]  ;;  %v969_v6 = vld [vmem:[%s1466_s1 + $0xc] sm:$0xf]  ;;  %vm384_vm4 = vcmask 883712  }
   0x4   :  { %46 = vst [vmem:[#allocation4 + $0x20] sm:$0xf] %v968_v2  ;;  %v967_v7 = vld [vmem:[%s1465_s0 + $0x18] sm:$0xf]  ;;  %v970_v8 = vld [vmem:[%s1466_s1 + $0x1c] sm:$0xf] }
   0x5   :  { %75 = vst [vmem:[#allocation5 + $0x8] sm:$0xf] %v971_v4  ;;  %s1181_s0 = smov 109   ;;  %s1182_s1 = smov 108   ;;  %vm280_vm5 = vcmask 900096   ;;  %vm436_vm6 = vcmask 752640  }
   0x6   :  { %42 = vst [vmem:[#allocation4 + $0x8] sm:$0xf] %v966_v5  ;;  %vm228_vm7 = vcmask 1031168   ;;  %vm176_vm8 = vcmask 1039360   ;;  %vm844_vm9 = vcmask 719872  }
   0x7   :  { %71 = vst [vmem:[#allocation5] sm:$0xf] %v969_v6 }
   0x8   :  { %44 = vst [vmem:[#allocation4 + $0x14] sm:$0xf] %v967_v7 }
   0x9   :  { %73 = vst [vmem:[#allocation5 + $0x4] sm:$0xf] %v970_v8 }
   0xa   :  { %140 = vst [vmem:[#allocation3 + $0xc] sm:$0xff] %v1235_v3 }
   0xb   :  { %v119_v9 = vld [vmem:[#allocation4 + $0x20] sm:$0xf] }
   0xc   :  { %125 = vst [vmem:[#allocation2 + $0x28] sm:$0xf] %v119_v9  ;;  %v128_v10 = vld [vmem:[#allocation5 + $0x8] sm:$0xf] }
   0xd   :  { %131 = vst [vmem:[#allocation2 + $0x2c] sm:$0xf] %v128_v10  ;;  %v115_v11 = vld [vmem:[#allocation4 + $0x8] sm:$0xf] }
   0xe   :  { %121 = vst [vmem:[#allocation2 + $0x8] sm:$0xf] %v115_v11  ;;  %v126_v12 = vld [vmem:[#allocation5] sm:$0xf] }
   0xf   :  { %129 = vst [vmem:[#allocation2 + $0xc] sm:$0xf] %v126_v12  ;;  %v117_v13 = vld [vmem:[#allocation4 + $0x14] sm:$0xf] }
  0x10   :  { %123 = vst [vmem:[#allocation2 + $0x18] sm:$0xf] %v117_v13  ;;  %v127_v14 = vld [vmem:[#allocation5 + $0x4] sm:$0xf] }
  0x11   :  { %130 = vst [vmem:[#allocation2 + $0x1c] sm:$0xf] %v127_v14 }
  0x14   :  { %v1256_v15 = vld [vmem:[#allocation2 + $0x28] sm:$0xff] }
  0x15   :  { %531 = vrot.lane.b32.xlu0 %v1256_v15, %s1180_s19 }
  0x16   :  { %v1260_v16 = vld [vmem:[#allocation2 + $0x8] sm:$0xff] }
  0x17   :  { %523 = vrot.lane.b32.xlu1 %v1260_v16, %s1180_s19 }
  0x18   :  { %v512_v17 = vld [vmem:[#allocation2 + $0x18] sm:$0xff] }
  0x19   :  { %527 = vrot.lane.b32.xlu2 %v512_v17, %s1180_s19 }
  0x1d   :  { %321 = vrot.lane.b32.xlu0 %v1217_v0, %s1181_s0 }
  0x1f   :  { %323 = vrot.lane.b32.xlu1 %v1256_v15, %s1181_s0 }
  0x21   :  { %365 = vrot.lane.b32.xlu2 %v1222_v1, %s1182_s1 }
  0x25   :  { %367 = vrot.lane.b32.xlu0 %v1260_v16, %s1182_s1 }
  0x27   :  { %473 = vrot.lane.b32.xlu1 %v1235_v3, %s1183_s8 }
  0x29   :  { %475 = vrot.lane.b32.xlu2 %v512_v17, %s1183_s8 }
  0x2d   :  { %477 = vrot.lane.b32.xlu0 %v1217_v0, %s1183_s8 }
  0x2f   :  { %479 = vrot.lane.b32.xlu1 %v1256_v15, %s1183_s8 }
  0x31   :  { %313 = vrot.lane.b32.xlu2 %v1222_v1, %s1181_s0 }
  0x35   :  { %315 = vrot.lane.b32.xlu0 %v1260_v16, %s1181_s0 }
  0x37   :  { %317 = vrot.lane.b32.xlu1 %v1235_v3, %s1181_s0 }
  0x39   :  { %319 = vrot.lane.b32.xlu2 %v512_v17, %s1181_s0 }
  0x3d   :  { %425 = vrot.lane.b32.xlu0 %v1217_v0, %s1184_s9 }
  0x3f   :  { %427 = vrot.lane.b32.xlu1 %v1256_v15, %s1184_s9 }
  0x41   :  { %469 = vrot.lane.b32.xlu2 %v1222_v1, %s1183_s8 }
  0x45   :  { %471 = vrot.lane.b32.xlu0 %v1260_v16, %s1183_s8 }
  0x47   :  { %265 = vrot.lane.b32.xlu1 %v1235_v3, %s1185_s10 }
  0x49   :  { %267 = vrot.lane.b32.xlu2 %v512_v17, %s1185_s10 }
  0x4d   :  { %269 = vrot.lane.b32.xlu0 %v1217_v0, %s1185_s10 }
  0x4f   :  { %271 = vrot.lane.b32.xlu1 %v1256_v15, %s1185_s10 }
  0x51   :  { %417 = vrot.lane.b32.xlu2 %v1222_v1, %s1184_s9 }
  0x55   :  { %419 = vrot.lane.b32.xlu0 %v1260_v16, %s1184_s9 }
  0x57   :  { %421 = vrot.lane.b32.xlu1 %v1235_v3, %s1184_s9 }
  0x59   :  { %423 = vrot.lane.b32.xlu2 %v512_v17, %s1184_s9 }
  0x5c   :  { %v526_v18 = vpop.permute.xlu2 %525 }
  0x5d   :  { %217 = vrot.lane.b32.xlu0 %v1217_v0, %s1186_s11  ;;  %v535_v19 = vrot.slane %v526_v18, 4 }
  0x5f   :  { %219 = vrot.lane.b32.xlu1 %v1256_v15, %s1186_s11 }
  0x61   :  { %261 = vrot.lane.b32.xlu2 %v1222_v1, %s1185_s10 }
  0x65   :  { %263 = vrot.lane.b32.xlu0 %v1260_v16, %s1185_s10 }
  0x67   :  { %369 = vrot.lane.b32.xlu1 %v1235_v3, %s1182_s1 }
  0x69   :  { %371 = vrot.lane.b32.xlu2 %v512_v17, %s1182_s1 }
  0x6d   :  { %373 = vrot.lane.b32.xlu0 %v1217_v0, %s1182_s1 }
  0x6f   :  { %375 = vrot.lane.b32.xlu1 %v1256_v15, %s1182_s1 }
  0x71   :  { %209 = vrot.lane.b32.xlu2 %v1222_v1, %s1186_s11 }
  0x73   :  { %v528_v20 = vpop.permute.xlu2 %527 }
  0x74   :  { %v536_v21 = vrot.slane %v528_v20, 4  ;;  %v530_v25 = vpop.permute.xlu0 %529 }
  0x75   :  { %211 = vrot.lane.b32.xlu0 %v1260_v16, %s1186_s11  ;;  %v522_v27 = vpop.permute.xlu1 %521  ;;  %v537_v31 = vrot.slane %v530_v25, 4 }
  0x76   :  { %v543_v22 = vsel %vm174_vm0, %v535_v19, %v536_v21  ;;  %v545_v23 = vsel %vm540_vm1, %v528_v20, %v536_v21  ;;  %v533_v35 = vrot.slane %v522_v27, 4 }
  0x77   :  { %213 = vrot.lane.b32.xlu1 %v1235_v3, %s1186_s11  ;;  %v544_v24 = vsel %vm540_vm1, %v526_v18, %v543_v22  ;;  %558 = vst [vmem:[#allocation3 + $0x134] sm:$0xf] %v545_v23 }
  0x78   :  { %557 = vst [vmem:[#allocation3 + $0x12c] sm:$0xff] %v544_v24 }
  0x79   :  { %215 = vrot.lane.b32.xlu2 %v512_v17, %s1186_s11 }
  0x7b   :  { %v1305_v26 = vpop.permute.xlu2 %365 }
  0x7c   :  { %v377_v2 = vrot.slane %v1305_v26, 4 }
  0x7d   :  { %160 = vrot.lane.b32.xlu0 %v1235_v3, %s1187_s12 }
  0x7f   :  { %162 = vrot.lane.b32.xlu1 %v512_v17, %s1187_s12  ;;  %v1168_v56 = vld [vmem:[#allocation3 + $0x128] sm:$0xf0]  ;;  %v1120_v57 = vld [vmem:[#allocation3 + $0x12c] sm:$0xf0] }
  0x81   :  { %164 = vrot.lane.b32.xlu2 %v1217_v0, %s1187_s12 }
  0x83   :  { %v1309_v28 = vpop.permute.xlu2 %475 }
  0x84   :  { %v484_v29 = vrot.slane %v1309_v28, 4 }
  0x85   :  { %166 = vrot.lane.b32.xlu0 %v1256_v15, %s1187_s12 }
  0x86   :  { %v493_v33 = vsel %vm488_vm2, %v1309_v28, %v484_v29 }
  0x87   :  { %156 = vrot.lane.b32.xlu1 %v1222_v1, %s1187_s12  ;;  %v532_v30 = vpop.permute.xlu0 %531  ;;  %506 = vst [vmem:[#allocation3 + $0x110] sm:$0xf] %v493_v33 }
  0x88   :  { %v538_v32 = vrot.slane %v532_v30, 4 }
  0x89   :  { %v524_v34 = vpop.permute.xlu1 %523  ;;  %158 = vrot.lane.b32.xlu2 %v1260_v16, %s1187_s12 }
  0x8a   :  { %v546_v36 = vsel %vm174_vm0, %v537_v31, %v538_v32  ;;  %v548_v37 = vsel %vm540_vm1, %v532_v30, %v538_v32  ;;  %v534_v38 = vrot.slane %v524_v34, 4 }
  0x8b   :  { %v547_v39 = vsel %vm540_vm1, %v530_v25, %v546_v36  ;;  %560 = vst [vmem:[#allocation3 + $0x140] sm:$0xf] %v548_v37  ;;  %v1324_v45 = vpop.permute.xlu2 %313 }
  0x8c   :  { %v539_v40 = vsel %vm174_vm0, %v533_v35, %v534_v38  ;;  %v542_v41 = vsel %vm540_vm1, %v524_v34, %v534_v38  ;;  %v760_v42 = vunpack.c.l.b16 %v547_v39  ;;  %v761_v43 = vunpack.c.h.b16 %v547_v39 }
  0x8d   :  { %v541_v44 = vsel %vm540_vm1, %v522_v27, %v539_v40  ;;  %556 = vst [vmem:[#allocation3 + $0x128] sm:$0xf] %v542_v41 }
  0x8e   :  { %555 = vst [vmem:[#allocation3 + $0x120] sm:$0xff] %v541_v44  ;;  %v802_v46 = vpack.c.b16 %v760_v42, %v760_v42  ;;  %v803_v47 = vpack.c.b16 %v761_v43, %v761_v43 }
  0x8f   :  { %v322_v48 = vpop.permute.xlu0 %321 }
  0x90   :  { %v329_v49 = vrot.slane %v322_v48, 4  ;;  %v850_v50 = vsel %vm174_vm0, %v802_v46, 0  ;;  %v853_v51 = vsel %vm174_vm0, %v803_v47, 0 }
  0x91   :  { %v324_v52 = vpop.permute.xlu1 %323  ;;  %873 = vmatpush.bf16.msra.mxu1 %v850_v50  ;;  %899 = vmatpush.bf16.msra.mxu3 %v853_v51 }
  0x92   :  { %v330_v53 = vrot.slane %v324_v52, 4 }
  0x93   :  { %v320_v61 = vpop.permute.xlu2 %319 }
  0x94   :  { %v338_v54 = vsel %vm174_vm0, %v329_v49, %v330_v53  ;;  %v340_v55 = vsel %vm332_vm3, %v324_v52, %v330_v53  ;;  %v328_v0 = vrot.slane %v320_v61, 4 }
  0x95   :  { %v339_v58 = vsel %vm332_vm3, %v322_v48, %v338_v54  ;;  %352 = vst [vmem:[#allocation3 + $0xb0] sm:$0xf] %v340_v55  ;;  %v1118_v59 = vld [vmem:[#allocation3 + $0x120] sm:$0xf]  ;;  %v1167_v60 = vld [vmem:[#allocation3 + $0x124] sm:$0xf] }
  0x96   :  { %351 = vst [vmem:[#allocation3 + $0xa8] sm:$0xff] %v339_v58  ;;  %v1119_v62 = vor.u32 %v1168_v56, %v1118_v59  ;;  %v1123_v63 = vor.u32 %v1167_v60, %v1120_v57  ;;  %v337_v4 = vsel %vm332_vm3, %v320_v61, %v328_v0 }
  0x97   :  { %v368_v1 = vpop.permute.xlu0 %367  ;;  %350 = vst [vmem:[#allocation3 + $0xa4] sm:$0xf] %v337_v4 }
  0x98   :  { %v378_v3 = vrot.slane %v368_v1, 4  ;;  %874 = vmatpush.bf16.msra.mxu1 %v1119_v62  ;;  %900 = vmatpush.bf16.msra.mxu3 %v1123_v63 }
  0x99   :  { %v474_v5 = vpop.permute.xlu1 %473 }
  0x9a   :  { %v383_v6 = vsel %vm174_vm0, %v377_v2, %v378_v3  ;;  %v386_v7 = vsel %vm384_vm4, %v368_v1, %v378_v3  ;;  %v483_v8 = vrot.slane %v474_v5, 4 }
  0x9b   :  { %v385_v9 = vsel %vm384_vm4, %v1305_v26, %v383_v6  ;;  %400 = vst [vmem:[#allocation3 + $0xbc] sm:$0xf] %v386_v7  ;;  %v1341_v12 = vpop.permute.xlu2 %469 }
  0x9c   :  { %399 = vst [vmem:[#allocation3 + $0xb4] sm:$0xff] %v385_v9  ;;  %v491_v10 = vsel %vm174_vm0, %v483_v8, %v484_v29  ;;  %v325_v29 = vrot.slane %v1324_v45, 4  ;;  %v481_v62 = vrot.slane %v1341_v12, 4 }
  0x9d   :  { %v492_v11 = vsel %vm488_vm2, %v474_v5, %v491_v10  ;;  %v1058_v17 = vld [vmem:[#allocation3 + $0xa8] sm:$0xf]  ;;  %v1152_v19 = vld [vmem:[#allocation3 + $0xac] sm:$0xf] }
  0x9e   :  { %505 = vst [vmem:[#allocation3 + $0x108] sm:$0xff] %v492_v11 }
  0x9f   :  { %v478_v13 = vpop.permute.xlu0 %477 }
  0xa0   :  { %v485_v14 = vrot.slane %v478_v13, 4 }
  0xa1   :  { %v480_v15 = vpop.permute.xlu1 %479 }
  0xa2   :  { %v486_v16 = vrot.slane %v480_v15, 4 }
  0xa3   :  { %v1153_v18 = vld [vmem:[#allocation3 + $0xb0] sm:$0xf0]  ;;  %v1060_v20 = vld [vmem:[#allocation3 + $0xb4] sm:$0xf0]  ;;  %v1346_v26 = vpop.permute.xlu2 %267 }
  0xa4   :  { %v494_v21 = vsel %vm174_vm0, %v485_v14, %v486_v16  ;;  %v496_v22 = vsel %vm488_vm2, %v480_v15, %v486_v16  ;;  %v1059_v23 = vor.u32 %v1153_v18, %v1058_v17  ;;  %v1063_v24 = vor.u32 %v1152_v19, %v1060_v20 }
  0xa5   :  { %v495_v25 = vsel %vm488_vm2, %v478_v13, %v494_v21  ;;  %508 = vst [vmem:[#allocation3 + $0x11c] sm:$0xf] %v496_v22  ;;  %v276_v27 = vrot.slane %v1346_v26, 4  ;;  %v1106_v38 = vld [vmem:[#allocation3 + $0x108] sm:$0xf] }
  0xa6   :  { %507 = vst [vmem:[#allocation3 + $0x114] sm:$0xff] %v495_v25  ;;  %858 = vmatpush.bf16.msra.mxu0 %v1059_v23  ;;  %884 = vmatpush.bf16.msra.mxu2 %v1063_v24  ;;  %v1164_v41 = vld [vmem:[#allocation3 + $0x10c] sm:$0xf] }
  0xa7   :  { %v316_v28 = vpop.permute.xlu0 %315  ;;  %v285_v31 = vsel %vm280_vm5, %v1346_v26, %v276_v27 }
  0xa8   :  { %v326_v30 = vrot.slane %v316_v28, 4  ;;  %298 = vst [vmem:[#allocation3 + $0x80] sm:$0xf] %v285_v31 }
  0xa9   :  { %v318_v32 = vpop.permute.xlu1 %317 }
  0xaa   :  { %v331_v33 = vsel %vm174_vm0, %v325_v29, %v326_v30  ;;  %v334_v34 = vsel %vm332_vm3, %v316_v28, %v326_v30  ;;  %v327_v35 = vrot.slane %v318_v32, 4 }
  0xab   :  { %v333_v36 = vsel %vm332_vm3, %v1324_v45, %v331_v33  ;;  %348 = vst [vmem:[#allocation3 + $0x98] sm:$0xf] %v334_v34  ;;  %v1358_v43 = vpop.permute.xlu2 %417 }
  0xac   :  { %347 = vst [vmem:[#allocation3 + $0x90] sm:$0xff] %v333_v36  ;;  %v335_v37 = vsel %vm174_vm0, %v327_v35, %v328_v0  ;;  %v429_v25 = vrot.slane %v1358_v43, 4 }
  0xad   :  { %v336_v39 = vsel %vm332_vm3, %v318_v32, %v335_v37  ;;  %v1165_v40 = vld [vmem:[#allocation3 + $0x110] sm:$0xf0]  ;;  %v1108_v42 = vld [vmem:[#allocation3 + $0x114] sm:$0xf0] }
  0xae   :  { %349 = vst [vmem:[#allocation3 + $0x9c] sm:$0xff] %v336_v39  ;;  %v1107_v44 = vor.u32 %v1165_v40, %v1106_v38  ;;  %v1111_v46 = vor.u32 %v1164_v41, %v1108_v42 }
  0xaf   :  { %v426_v47 = vpop.permute.xlu0 %425 }
  0xb0   :  { %875 = vmatpush.bf16.msra.mxu1 %v1107_v44  ;;  %901 = vmatpush.bf16.msra.mxu3 %v1111_v46  ;;  %v433_v48 = vrot.slane %v426_v47, 4 }
  0xb1   :  { %v428_v45 = vpop.permute.xlu1 %427 }
  0xb2   :  { %v434_v49 = vrot.slane %v428_v45, 4 }
  0xb3   :  { %v1046_v50 = vld [vmem:[#allocation3 + $0x90] sm:$0xf]  ;;  %v1149_v51 = vld [vmem:[#allocation3 + $0x94] sm:$0xf]  ;;  %v424_v57 = vpop.permute.xlu2 %423 }
  0xb4   :  { %v442_v52 = vsel %vm174_vm0, %v433_v48, %v434_v49  ;;  %v444_v53 = vsel %vm436_vm6, %v428_v45, %v434_v49  ;;  %v432_v60 = vrot.slane %v424_v57, 4 }
  0xb5   :  { %v443_v54 = vsel %vm436_vm6, %v426_v47, %v442_v52  ;;  %456 = vst [vmem:[#allocation3 + $0xf8] sm:$0xf] %v444_v53  ;;  %v1150_v55 = vld [vmem:[#allocation3 + $0x98] sm:$0xf0]  ;;  %v1048_v56 = vld [vmem:[#allocation3 + $0x9c] sm:$0xf0] }
  0xb6   :  { %455 = vst [vmem:[#allocation3 + $0xf0] sm:$0xff] %v443_v54  ;;  %v1047_v58 = vor.u32 %v1150_v55, %v1046_v50  ;;  %v1051_v59 = vor.u32 %v1149_v51, %v1048_v56  ;;  %v441_v0 = vsel %vm436_vm6, %v424_v57, %v432_v60 }
  0xb7   :  { %v472_v61 = vpop.permute.xlu0 %471  ;;  %454 = vst [vmem:[#allocation3 + $0xec] sm:$0xf] %v441_v0 }
  0xb8   :  { %859 = vmatpush.bf16.msra.mxu0 %v1047_v58  ;;  %885 = vmatpush.bf16.msra.mxu2 %v1051_v59  ;;  %v482_v63 = vrot.slane %v472_v61, 4 }
  0xb9   :  { %v266_v1 = vpop.permute.xlu1 %265 }
  0xba   :  { %v487_v2 = vsel %vm174_vm0, %v481_v62, %v482_v63  ;;  %v490_v3 = vsel %vm488_vm2, %v472_v61, %v482_v63  ;;  %v275_v4 = vrot.slane %v266_v1, 4 }
  0xbb   :  { %v489_v5 = vsel %vm488_vm2, %v1341_v12, %v487_v2  ;;  %504 = vst [vmem:[#allocation3 + $0x104] sm:$0xf] %v490_v3  ;;  %v1371_v8 = vpop.permute.xlu2 %261 }
  0xbc   :  { %503 = vst [vmem:[#allocation3 + $0xfc] sm:$0xff] %v489_v5  ;;  %v283_v6 = vsel %vm174_vm0, %v275_v4, %v276_v27  ;;  %v273_v58 = vrot.slane %v1371_v8, 4  ;;  %v137_v5 = vld [vmem:[#allocation2 + $0x28] sm:$0xf] }
  0xbd   :  { %v284_v7 = vsel %vm280_vm5, %v266_v1, %v283_v6  ;;  %v1094_v14 = vld [vmem:[#allocation3 + $0xf0] sm:$0xf]  ;;  %v1161_v16 = vld [vmem:[#allocation3 + $0xf4] sm:$0xf]  ;;  %143 = vst [vmem:[#allocation3 + $0x20] sm:$0xf] %v137_v5 }
  0xbe   :  { %297 = vst [vmem:[#allocation3 + $0x78] sm:$0xff] %v284_v7  ;;  %v136_v6 = vld [vmem:[#allocation2 + $0x20] sm:$0xff] }
  0xbf   :  { %v270_v9 = vpop.permute.xlu0 %269  ;;  %142 = vst [vmem:[#allocation3 + $0x18] sm:$0xff] %v136_v6  ;;  %v1166_v6 = vld [vmem:[#allocation3 + $0x118] sm:$0xf0] }
  0xc0   :  { %v277_v10 = vrot.slane %v270_v9, 4 }
  0xc1   :  { %v272_v11 = vpop.permute.xlu1 %271 }
  0xc2   :  { %v278_v13 = vrot.slane %v272_v11, 4 }
  0xc3   :  { %v1162_v15 = vld [vmem:[#allocation3 + $0xf8] sm:$0xf0]  ;;  %v1096_v17 = vld [vmem:[#allocation3 + $0xfc] sm:$0xf0]  ;;  %v1376_v22 = vpop.permute.xlu2 %371 }
  0xc4   :  { %v286_v18 = vsel %vm174_vm0, %v277_v10, %v278_v13  ;;  %v288_v12 = vsel %vm280_vm5, %v272_v11, %v278_v13  ;;  %v1095_v19 = vor.u32 %v1162_v15, %v1094_v14  ;;  %v1099_v20 = vor.u32 %v1161_v16, %v1096_v17 }
  0xc5   :  { %v287_v21 = vsel %vm280_vm5, %v270_v9, %v286_v18  ;;  %300 = vst [vmem:[#allocation3 + $0x8c] sm:$0xf] %v288_v12  ;;  %v380_v23 = vrot.slane %v1376_v22, 4  ;;  %v1034_v34 = vld [vmem:[#allocation3 + $0x78] sm:$0xf] }
  0xc6   :  { %299 = vst [vmem:[#allocation3 + $0x84] sm:$0xff] %v287_v21  ;;  %876 = vmatpush.bf16.msra.mxu1 %v1095_v19  ;;  %902 = vmatpush.bf16.msra.mxu3 %v1099_v20  ;;  %v1146_v37 = vld [vmem:[#allocation3 + $0x7c] sm:$0xf]  ;;  %v614_v19 = vld [vmem:[#allocation3 + $0x140] sm:$0xf] }
  0xc7   :  { %v420_v24 = vpop.permute.xlu0 %419  ;;  %v389_v27 = vsel %vm384_vm4, %v1376_v22, %v380_v23  ;;  %v133_v20 = vld [vmem:[#allocation2 + $0x8] sm:$0xf] }
  0xc8   :  { %v430_v26 = vrot.slane %v420_v24, 4  ;;  %402 = vst [vmem:[#allocation3 + $0xc8] sm:$0xf] %v389_v27  ;;  %v132_v27 = vld [vmem:[#allocation2] sm:$0xff] }
  0xc9   :  { %v422_v28 = vpop.permute.xlu1 %421  ;;  %139 = vst [vmem:[#allocation3 + $0x8] sm:$0xf] %v133_v20  ;;  %v1163_v20 = vld [vmem:[#allocation3 + $0x100] sm:$0xf0] }
  0xca   :  { %v435_v29 = vsel %vm174_vm0, %v429_v25, %v430_v26  ;;  %v438_v30 = vsel %vm436_vm6, %v420_v24, %v430_v26  ;;  %v431_v31 = vrot.slane %v422_v28, 4  ;;  %v762_v26 = vunpack.c.l.b16 %v614_v19  ;;  %138 = vst [vmem:[#allocation3] sm:$0xff] %v132_v27 }
  0xcb   :  { %v437_v32 = vsel %vm436_vm6, %v1358_v43, %v435_v29  ;;  %452 = vst [vmem:[#allocation3 + $0xe0] sm:$0xf] %v438_v30  ;;  %v1388_v39 = vpop.permute.xlu2 %209 }
  0xcc   :  { %451 = vst [vmem:[#allocation3 + $0xd8] sm:$0xff] %v437_v32  ;;  %v439_v33 = vsel %vm174_vm0, %v431_v31, %v432_v60  ;;  %v1423_v31 = vld [vmem:[%s1467_s2] sm:$0xff]  ;;  %v1148_v5 = vld [vmem:[#allocation3 + $0x88] sm:$0xf0] }
  0xcd   :  { %v440_v35 = vsel %vm436_vm6, %v422_v28, %v439_v33  ;;  %v1147_v36 = vld [vmem:[#allocation3 + $0x80] sm:$0xf0]  ;;  %v1036_v38 = vld [vmem:[#allocation3 + $0x84] sm:$0xf0]  ;;  %v221_v28 = vrot.slane %v1388_v39, 4 }
  0xce   :  { %453 = vst [vmem:[#allocation3 + $0xe4] sm:$0xff] %v440_v35  ;;  %v1035_v40 = vor.u32 %v1147_v36, %v1034_v34  ;;  %v1039_v41 = vor.u32 %v1146_v37, %v1036_v38  ;;  %v804_v37 = vpack.c.b16 %v762_v26, %v762_v26  ;;  %v624_v38 = vunpack.c.h.b16 %v1423_v31 }
  0xcf   :  { %v218_v42 = vpop.permute.xlu0 %217 }
  0xd0   :  { %860 = vmatpush.bf16.msra.mxu0 %v1035_v40  ;;  %886 = vmatpush.bf16.msra.mxu2 %v1039_v41  ;;  %v225_v44 = vrot.slane %v218_v42, 4 }
  0xd1   :  { %v220_v43 = vpop.permute.xlu1 %219 }
  0xd2   :  { %v226_v46 = vrot.slane %v220_v43, 4 }
  0xd3   :  { %v1082_v47 = vld [vmem:[#allocation3 + $0xd8] sm:$0xf]  ;;  %v1158_v48 = vld [vmem:[#allocation3 + $0xdc] sm:$0xf]  ;;  %v1393_v53 = vpop.permute.xlu2 %215 }
  0xd4   :  { %v234_v45 = vsel %vm174_vm0, %v225_v44, %v226_v46  ;;  %v236_v49 = vsel %vm228_vm7, %v220_v43, %v226_v46  ;;  %v224_v56 = vrot.slane %v1393_v53, 4 }
  0xd5   :  { %v235_v50 = vsel %vm228_vm7, %v218_v42, %v234_v45  ;;  %248 = vst [vmem:[#allocation3 + $0x68] sm:$0xf] %v236_v49  ;;  %v1159_v51 = vld [vmem:[#allocation3 + $0xe0] sm:$0xf0]  ;;  %v1084_v52 = vld [vmem:[#allocation3 + $0xe4] sm:$0xf0] }
  0xd6   :  { %247 = vst [vmem:[#allocation3 + $0x60] sm:$0xff] %v235_v50  ;;  %v1083_v54 = vor.u32 %v1159_v51, %v1082_v47  ;;  %v1087_v55 = vor.u32 %v1158_v48, %v1084_v52  ;;  %v233_v60 = vsel %vm228_vm7, %v1393_v53, %v224_v56  ;;  %v1154_v42 = vld [vmem:[#allocation3 + $0xb8] sm:$0xf0]  ;;  %v856_v51 = vsel %vm174_vm0, %v804_v37, 0  ;;  %v1126_v52 = vld [vmem:[#allocation3 + $0x128] sm:$0xf] }
  0xd7   :  { %v264_v57 = vpop.permute.xlu0 %263  ;;  %246 = vst [vmem:[#allocation3 + $0x5c] sm:$0xf] %v233_v60  ;;  %v1435_v53 = vpack.c.b16 %v624_v38, %v624_v38 }
  0xd8   :  { %877 = vmatpush.bf16.msra.mxu1 %v1083_v54  ;;  %903 = vmatpush.bf16.msra.mxu3 %v1087_v55  ;;  %v274_v59 = vrot.slane %v264_v57, 4  ;;  %v1169_v54 = vld [vmem:[#allocation3 + $0x130] sm:$0xf0] }
  0xd9   :  { %v370_v61 = vpop.permute.xlu1 %369 }
  0xda   :  { %v279_v62 = vsel %vm174_vm0, %v273_v58, %v274_v59  ;;  %v282_v63 = vsel %vm280_vm5, %v264_v57, %v274_v59  ;;  %v379_v0 = vrot.slane %v370_v61, 4  ;;  %v1151_v57 = vld [vmem:[#allocation3 + $0xa0] sm:$0xf0]  ;;  %v616_v59 = vld [vmem:[%s1468_s3] sm:$0xff] }
  0xdb   :  { %v281_v1 = vsel %vm280_vm5, %v1371_v8, %v279_v62  ;;  %296 = vst [vmem:[#allocation3 + $0x74] sm:$0xf] %v282_v63  ;;  %v1407_v4 = vpop.permute.xlu2 %164  ;;  %v1127_v63 = vor.u32 %v1169_v54, %v1126_v52  ;;  %v986_v52 = vld [vmem:[#allocation3 + $0x18] sm:$0xf] }
  0xdc   :  { %295 = vst [vmem:[#allocation3 + $0x6c] sm:$0xff] %v281_v1  ;;  %v387_v2 = vsel %vm174_vm0, %v379_v0, %v380_v23  ;;  %v135_v23 = vld [vmem:[#allocation2 + $0x18] sm:$0xf] }
  0xdd   :  { %v388_v3 = vsel %vm384_vm4, %v370_v61, %v387_v2  ;;  %v1022_v13 = vld [vmem:[#allocation3 + $0x60] sm:$0xf]  ;;  %v1143_v8 = vld [vmem:[#allocation3 + $0x64] sm:$0xf]  ;;  %141 = vst [vmem:[#allocation3 + $0x14] sm:$0xf] %v135_v23 }
  0xde   :  { %401 = vst [vmem:[#allocation3 + $0xc0] sm:$0xff] %v388_v3  ;;  %v1188_v61 = vmov 0   ;;  %v1030_v27 = vld [vmem:[#allocation3 + $0x68] sm:$0xf]  ;;  %v1142_v37 = vld [vmem:[#allocation3 + $0x58] sm:$0xf0] }
  0xdf   :  { %v374_v7 = vpop.permute.xlu0 %373  ;;  %1179 = vset.pattern.permute.xlu0 %v1188_v61  ;;  %v974_v61 = vld [vmem:[#allocation3] sm:$0xf] }
  0xe0   :  { %v381_v9 = vrot.slane %v374_v7, 4  ;;  %619 = vperm.xlu0 %1179, %v616_v59   ;;  %v1132_v59 = vld [vmem:[#allocation3 + $0x8] sm:$0xf0] }
  0xe1   :  { %v376_v10 = vpop.permute.xlu1 %375 }
  0xe2   :  { %v382_v11 = vrot.slane %v376_v10, 4  ;;  %v1145_v19 = vld [vmem:[#allocation3 + $0x70] sm:$0xf0] }
  0xe3   :  { %v1144_v14 = vld [vmem:[#allocation3 + $0x68] sm:$0xf0]  ;;  %v1024_v15 = vld [vmem:[#allocation3 + $0x6c] sm:$0xf0]  ;;  %v1412_v22 = vpop.permute.xlu2 %158 }
  0xe4   :  { %v390_v16 = vsel %vm174_vm0, %v381_v9, %v382_v11  ;;  %v392_v17 = vsel %vm384_vm4, %v376_v10, %v382_v11  ;;  %v1023_v18 = vor.u32 %v1144_v14, %v1022_v13  ;;  %v1027_v12 = vor.u32 %v1143_v8, %v1024_v15  ;;  %v1042_v14 = vld [vmem:[#allocation3 + $0x80] sm:$0xf]  ;;  %v1114_v8 = vld [vmem:[#allocation3 + $0x110] sm:$0xf] }
  0xe5   :  { %v391_v21 = vsel %vm384_vm4, %v374_v7, %v390_v16  ;;  %404 = vst [vmem:[#allocation3 + $0xd4] sm:$0xf] %v392_v17  ;;  %v169_v24 = vrot.slane %v1412_v22, 4  ;;  %v1070_v41 = vld [vmem:[#allocation3 + $0xc0] sm:$0xf]  ;;  %v1043_v16 = vor.u32 %v1148_v5, %v1042_v14  ;;  %v1115_v17 = vor.u32 %v1166_v6, %v1114_v8 }
  0xe6   :  { %403 = vst [vmem:[#allocation3 + $0xcc] sm:$0xff] %v391_v21  ;;  %861 = vmatpush.bf16.msra.mxu0 %v1023_v18  ;;  %887 = vmatpush.bf16.msra.mxu2 %v1027_v12  ;;  %v1155_v46 = vld [vmem:[#allocation3 + $0xc4] sm:$0xf]  ;;  %v172_v18 = vrot.slane %v1407_v4, 4  ;;  %v975_v5 = vor.u32 %v1132_v59, %v974_v61 }
  0xe7   :  { %v212_v25 = vpop.permute.xlu0 %211  ;;  %v178_v30 = vsel %vm176_vm8, %v1412_v22, %v169_v24 }
  0xe8   :  { %v222_v29 = vrot.slane %v212_v25, 4  ;;  %192 = vst [vmem:[#allocation3 + $0x2c] sm:$0xf] %v178_v30  ;;  %v1031_v30 = vor.u32 %v1145_v19, %v1030_v27 }
  0xe9   :  { %v214_v32 = vpop.permute.xlu1 %213 }
  0xea   :  { %v227_v33 = vsel %vm174_vm0, %v221_v28, %v222_v29  ;;  %v230_v34 = vsel %vm228_vm7, %v212_v25, %v222_v29  ;;  %v223_v35 = vrot.slane %v214_v32, 4  ;;  %v1102_v28 = vld [vmem:[#allocation3 + $0xf8] sm:$0xf] }
  0xeb   :  { %v229_v36 = vsel %vm228_vm7, %v1388_v39, %v227_v33  ;;  %244 = vst [vmem:[#allocation3 + $0x50] sm:$0xf] %v230_v34  ;;  %v1066_v39 = vld [vmem:[#allocation3 + $0xb0] sm:$0xf]  ;;  %v1090_v33 = vld [vmem:[#allocation3 + $0xe0] sm:$0xf] }
  0xec   :  { %243 = vst [vmem:[#allocation3 + $0x48] sm:$0xff] %v229_v36  ;;  %v231_v40 = vsel %vm174_vm0, %v223_v35, %v224_v56  ;;  %v1067_v50 = vor.u32 %v1154_v42, %v1066_v39  ;;  %v1054_v56 = vld [vmem:[#allocation3 + $0x98] sm:$0xf]  ;;  %v1160_v34 = vld [vmem:[#allocation3 + $0xe8] sm:$0xf0] }
  0xed   :  { %v232_v44 = vsel %vm228_vm7, %v214_v32, %v231_v40  ;;  %v1156_v43 = vld [vmem:[#allocation3 + $0xc8] sm:$0xf0]  ;;  %v1072_v47 = vld [vmem:[#allocation3 + $0xcc] sm:$0xf0]  ;;  %v1055_v62 = vor.u32 %v1151_v57, %v1054_v56  ;;  %v1103_v32 = vor.u32 %v1163_v20, %v1102_v28  ;;  %v1078_v42 = vld [vmem:[#allocation3 + $0xc8] sm:$0xf] }
  0xee   :  { %245 = vst [vmem:[#allocation3 + $0x54] sm:$0xff] %v232_v44  ;;  %v1071_v48 = vor.u32 %v1156_v43, %v1070_v41  ;;  %v1075_v45 = vor.u32 %v1155_v46, %v1072_v47  ;;  %v1091_v41 = vor.u32 %v1160_v34, %v1090_v33  ;;  %v982_v57 = vld [vmem:[#allocation3 + $0x8] sm:$0xf] }
  0xef   :  { %v161_v49 = vpop.permute.xlu0 %160 }
  0xf0   :  { %878 = vmatpush.bf16.msra.mxu1 %v1071_v48  ;;  %904 = vmatpush.bf16.msra.mxu3 %v1075_v45  ;;  %v170_v55 = vrot.slane %v161_v49, 4 }
  0xf1   :  { %v163_v58 = vpop.permute.xlu1 %162 }
  0xf2   :  { %v171_v60 = vrot.slane %v163_v58, 4  ;;  %v1018_v36 = vld [vmem:[#allocation3 + $0x50] sm:$0xf] }
  0xf3   :  { %v1010_v0 = vld [vmem:[#allocation3 + $0x48] sm:$0xf]  ;;  %v1140_v1 = vld [vmem:[#allocation3 + $0x4c] sm:$0xf]  ;;  %1129 = vmatmul.msk.bf16.vlgmr.msra.gmra.mxu3 %vm844_vm9, %v1435_v53  ;;  %1128 = vmatmul.msk.bf16.vlgmr.msra.gmra.mxu1 %vm844_vm9, %v1435_v53  ;;  %v1019_v40 = vor.u32 %v1142_v37, %v1018_v36 }
  0xf4   :  { %910 = vmatpush.bf16.msrb.mxu1 %v1067_v50  ;;  %925 = vmatpush.bf16.msrb.mxu3 %v856_v51  ;;  %v179_v2 = vsel %vm174_vm0, %v170_v55, %v171_v60  ;;  %v181_v3 = vsel %vm176_vm8, %v163_v58, %v171_v60  ;;  %v994_v50 = vld [vmem:[#allocation3 + $0x20] sm:$0xf]  ;;  %v1136_v51 = vld [vmem:[#allocation3 + $0x28] sm:$0xf0]  ;;  %v1134_v55 = vld [vmem:[#allocation3 + $0x1c] sm:$0xf] }
  0xf5   :  { %v180_v7 = vsel %vm176_vm8, %v161_v49, %v179_v2  ;;  %194 = vst [vmem:[#allocation3 + $0x38] sm:$0xf] %v181_v3  ;;  %v1141_v9 = vld [vmem:[#allocation3 + $0x50] sm:$0xf0]  ;;  %v1012_v10 = vld [vmem:[#allocation3 + $0x54] sm:$0xf0]  ;;  %v995_v60 = vor.u32 %v1136_v51, %v994_v50  ;;  %v623_v2 = vunpack.c.l.b16 %v1423_v31 }
  0xf6   :  { %193 = vst [vmem:[#allocation3 + $0x30] sm:$0xff] %v180_v7  ;;  %v1011_v11 = vor.u32 %v1141_v9, %v1010_v0  ;;  %v1015_v13 = vor.u32 %v1140_v1, %v1012_v10  ;;  %v1133_v58 = vld [vmem:[#allocation3 + $0x10] sm:$0xf0] }
  0xf7   :  { %v167_v15 = vpop.permute.xlu0 %166  ;;  %v983_v3 = vor.u32 %v1133_v58, %v982_v57  ;;  %v625_v7 = vpack.c.b16 %v623_v2, %v623_v2 }
  0xf8   :  { %911 = vmatpush.bf16.msrb.mxu1 %v1055_v62  ;;  %926 = vmatpush.bf16.msrb.mxu3 %v1127_v63  ;;  %v173_v12 = vrot.slane %v167_v15, 4  ;;  %v1131_v62 = vld [vmem:[#allocation3 + $0x4] sm:$0xf]  ;;  %v976_v63 = vld [vmem:[#allocation3 + $0xc] sm:$0xf0] }
  0xf9   :  { %862 = vmatpush.bf16.msra.mxu0 %v1011_v11  ;;  %888 = vmatpush.bf16.msra.mxu2 %v1015_v13  ;;  %v157_v21 = vpop.permute.xlu1 %156  ;;  %v979_v6 = vor.u32 %v1131_v62, %v976_v63 }
  0xfa   :  { %v182_v23 = vsel %vm174_vm0, %v172_v18, %v173_v12  ;;  %v184_v25 = vsel %vm176_vm8, %v167_v15, %v173_v12  ;;  %v168_v26 = vrot.slane %v157_v21, 4 }
  0xfb   :  { %v183_v29 = vsel %vm176_vm8, %v1407_v4, %v182_v23  ;;  %196 = vst [vmem:[#allocation3 + $0x44] sm:$0xf] %v184_v25  ;;  %v1157_v4 = vld [vmem:[#allocation3 + $0xd0] sm:$0xf0] }
  0xfc   :  { %912 = vmatpush.bf16.msrb.mxu1 %v1043_v16  ;;  %927 = vmatpush.bf16.msrb.mxu3 %v1115_v17  ;;  %195 = vst [vmem:[#allocation3 + $0x3c] sm:$0xff] %v183_v29  ;;  %v175_v35 = vsel %vm174_vm0, %v168_v26, %v169_v24  ;;  %v1006_v44 = vld [vmem:[#allocation3 + $0x38] sm:$0xf]  ;;  %v1079_v47 = vor.u32 %v1157_v4, %v1078_v42 }
  0xfd   :  { %v177_v38 = vsel %vm176_vm8, %v157_v21, %v175_v35  ;;  %v998_v46 = vld [vmem:[#allocation3 + $0x30] sm:$0xf]  ;;  %v1137_v24 = vld [vmem:[#allocation3 + $0x34] sm:$0xf] }
  0xfe   :  { %191 = vst [vmem:[#allocation3 + $0x24] sm:$0xff] %v177_v38 }
 0x100   :  { %913 = vmatpush.bf16.msrb.mxu1 %v1031_v30  ;;  %928 = vmatpush.bf16.msrb.mxu3 %v1103_v32 }
 0x102   :  { %v1139_v43 = vld [vmem:[#allocation3 + $0x40] sm:$0xf0] }
 0x103   :  { %v1007_v22 = vor.u32 %v1139_v43, %v1006_v44  ;;  %v1138_v48 = vld [vmem:[#allocation3 + $0x38] sm:$0xf0]  ;;  %v1000_v45 = vld [vmem:[#allocation3 + $0x3c] sm:$0xf0] }
 0x104   :  { %914 = vmatpush.bf16.msrb.mxu1 %v1019_v40  ;;  %929 = vmatpush.bf16.msrb.mxu3 %v1091_v41  ;;  %v999_v39 = vor.u32 %v1138_v48, %v998_v46  ;;  %v1003_v49 = vor.u32 %v1137_v24, %v1000_v45 }
 0x105   :  { %v1135_v54 = vld [vmem:[#allocation3 + $0x20] sm:$0xf0]  ;;  %v988_v56 = vld [vmem:[#allocation3 + $0x24] sm:$0xf0] }
 0x106   :  { %863 = vmatpush.bf16.msra.mxu0 %v999_v39  ;;  %889 = vmatpush.bf16.msra.mxu2 %v1003_v49  ;;  %v987_v0 = vor.u32 %v1135_v54, %v986_v52  ;;  %v991_v1 = vor.u32 %v1134_v55, %v988_v56 }
 0x108   :  { %930 = vmatpush.bf16.msrb.mxu3 %v1079_v47  ;;  %915 = vmatpush.bf16.msrb.mxu1 %v1007_v22 }
 0x10a   :  { %864 = vmatpush.bf16.msra.mxu0 %v987_v0  ;;  %890 = vmatpush.bf16.msra.mxu2 %v991_v1 }
 0x10b   :  { %1130 = vmatmul.msk.bf16.vlgmr.msrb.gmra.mxu3 %vm844_vm9, %v1435_v53 }
 0x10c   :  { %916 = vmatpush.bf16.msrb.mxu1 %v995_v60 }
 0x10e   :  { %865 = vmatpush.bf16.msra.mxu0 %v975_v5  ;;  %891 = vmatpush.bf16.msra.mxu2 %v979_v6 }
 0x110   :  { %917 = vmatpush.bf16.msrb.mxu1 %v983_v3 }
 0x111   :  { %866 = vmatmul.bf16.vlgmr.msra.gmra.mxu0 %v625_v7  ;;  %892 = vmatmul.bf16.vlgmr.msra.gmra.mxu2 %v625_v7 }
 0x113   :  { %918 = vmatmul.bf16.vlgmr.msrb.gmra.mxu1 %v625_v7 }
 0x152   :  { %v620_v14 = vpop.permute.xlu0 %619 }
 0x170   :  { %v880_v9 = vpop.f32.mrf.mxu1 }
 0x176   :  { %v906_v10 = vpop.f32.mrf.mxu3 }
 0x178   :  { %v882_v11 = vpop.f32.mrf.mxu1 }
 0x17e   :  { %v908_v13 = vpop.f32.mrf.mxu3 }
 0x18e   :  { %v932_v53 = vpop.f32.mrf.mxu3  ;;  %v867_v15 = vpop.f32.mrf.mxu0 }
 0x18f   :  { %v868_v16 = vadd.f32 %v867_v15, %v620_v14 }
 0x190   :  { %v919_v31 = vpop.f32.mrf.mxu1 }
 0x191   :  { %v920_v8 = vadd.f32 %v919_v31, %v620_v14  ;;  %v881_v12 = vadd.f32 %v880_v9, %v868_v16 }
 0x193   :  { %v933_v17 = vadd.f32 %v932_v53, %v920_v8  ;;  %v939_v28 = vmul.f32 0.01, %v881_v12  ;;  %vm936_vm11 = vcmp.ge.f32.partialorder %v881_v12, 0.0 }
 0x194   :  { %v893_v21 = vpop.f32.mrf.mxu2 }
 0x195   :  { %vm938_vm10 = vcmp.ge.f32.partialorder %v933_v17, 0.0  ;;  %v941_v18 = vmul.f32 0.01, %v933_v17  ;;  %v894_v25 = vadd.f32 %v893_v21, %v620_v14  ;;  %v942_v32 = vsel %vm936_vm11, %v881_v12, %v939_v28 }
 0x196   :  { %v934_v19 = vpop.f32.mrf.mxu3  ;;  %v869_v27 = vpop.f32.mrf.mxu0 }
 0x197   :  { %v944_v20 = vsel %vm938_vm10, %v933_v17, %v941_v18  ;;  %v907_v29 = vadd.f32 %v906_v10, %v894_v25 }
 0x198   :  { %v946_v23 = vpack.c.bf16 %v944_v20, %v944_v20  ;;  %v921_v26 = vpop.f32.mrf.mxu1 }
 0x199   :  { %vm937_vm12 = vcmp.ge.f32.partialorder %v907_v29, 0.0  ;;  %v940_v30 = vmul.f32 0.01, %v907_v29 }
 0x19a   :  { %948 = vst [vmem:[%s1469_s4 + $0x8] sm:$0xf] %v946_v23 }
 0x19b   :  { %v943_v33 = vsel %vm937_vm12, %v907_v29, %v940_v30 }
 0x19c   :  { %v945_v34 = vpack.c.bf16 %v943_v33, %v942_v32  ;;  %v895_v35 = vpop.f32.mrf.mxu2 }
 0x19e   :  { %947 = vst [vmem:[%s1469_s4] sm:$0xff] %v945_v34 }

// kernel: e2e_varnet_forward.32
= control target key start
LH: loop header
LB: loop body
LE: loop exit
PB: predicated region body
PF: predicated region fallthrough
CT: control target
= control target key end

     0   :  { %s971_s18 = smov 0   ;;  %s973_s19 = smov 0   ;;  %s1030_s0 = inlined_call_operand.vmem [shape: f32[1,10,1,256], index: 0, kind: input, shape index: {}]   ;;  %s1031_s1 = inlined_call_operand.vmem [shape: f32[1,10,1,256], index: 1, kind: input, shape index: {}]   ;;  %s1032_s2 = inlined_call_operand.vmem [shape: f32[1,10,1,2,256], index: 2, kind: input, shape index: {}]   ;;  %s1033_s3 = inlined_call_operand.vmem [shape: f32[1,10,1,2,256], index: 3, kind: input, shape index: {}]   ;;  %s1034_s4 = inlined_call_operand.vmem [shape: f32[1,1,2,256], index: 4, kind: output, shape index: {0}]   ;;  %s1035_s5 = inlined_call_operand.vmem [shape: f32[1,1,2,256], index: 5, kind: output, shape index: {1}]  }
   0x1   :  { %s975_s20 = smov 0  }
   0x2 LB: > { %s31_s21 = sadd.s32 1, %s934_s19  ;;  %p875_p0 = scmp.ge.s32.totalorder %s938_s20, 1  ;;  %s938_s20 = sphi %s975_s20, %s16_s20   ;;  %s934_s19 = sphi %s973_s19, %s1037_s19   ;;  %s930_s18 = sphi %s971_s18, %s1036_s18  }
   0x3   : > { %p32_p1 = scmp.ge.s32.totalorder %s31_s21, 10  ;;  %p328_p2 = scmp.lt.s32.totalorder %s938_s20, 11 }
   0x5   : > { %s1039_s21 = smov (%p32_p1, %s31_s21), 0  ;;  %p329_p3 = pnand %p875_p0, %p328_p2 }
   0x6   : > { %p441_p4 = scmp.lt.s32.totalorder (!%p329_p3), %s930_s18, 9  ;;  %p882_p5 = scmp.ne.s32.totalorder (!%p329_p3), %s930_s18, 0 }
   0x7   : > { %332 = sbr.rel (%p329_p3) target bundleno = 64 (0x40), region = 36 }
   0xc   : > { %s442_s22 = scalar_select %p441_p4, %s930_s18, 9 }
   0xd   : > { %539 = sbr.rel (%p882_p5) target bundleno = 21 (0x15), region = 40 }
   0xe   : > { %s876_s23 = sshll.u32 %s442_s22, 1  ;;  %s889_s24 = sshll.u32 %s442_s22, 2 }
   0xf   : > { %s453_s27 = scalar_lea.vmem %s1030_s0, %s876_s23  ;;  %s470_s30 = scalar_lea.vmem %s1031_s1, %s876_s23 }
  0x10   : > { %s488_s8 = scalar_lea.vmem %s1032_s2, %s889_s24  ;;  %s506_s11 = scalar_lea.vmem %s1033_s3, %s889_s24 }
  0x12   : > { %v940_v0 = vmov 0.0  }
  0x13   : > { %540 = vst [vmem:[%s1034_s4] sm:$0xf] %v940_v0 }
  0x14   : > { %541 = vst [vmem:[%s1035_s5] sm:$0xf] %v940_v0 }
  0x15 PF: > { %v544_v1 = vld [vmem:[%s488_s8] sm:$0xf]  ;;  %vm578_vm0 = vcmask 1041408  }
  0x16   : > { %553 = vst [vmem:[#allocation1] ss:$4 sm:$0xff] %v544_v1  ;;  %v545_v2 = vld [vmem:[%s506_s11] sm:$0xf] }
  0x17   : > { %v542_v5 = vld [vmem:[%s453_s27] sm:$0x3] }
  0x18   : > { %v543_v6 = vld [vmem:[%s470_s30] sm:$0x3]  ;;  %v549_v7 = vperm.slane %v542_v5, 1  ;;  %v548_v10 = vperm.slane %v542_v5, 0 }
  0x19   : > { %v561_v8 = vperm.slane %v543_v6, 0  ;;  %v562_v9 = vperm.slane %v543_v6, 1 }
  0x1a   : > { %v546_v18 = vld [vmem:[%s1034_s4] sm:$0xf] }
  0x1b   : > { %v583_v32 = vld [vmem:[%s1035_s5] sm:$0xf] }
  0x1d   : > { %v554_v3 = vld.sshfl [vmem:[#allocation1] sm:$0xff pattern:$0x73625140]  ;;  %v555_v4 = vld.sshfl [vmem:[#allocation1 + $0x8] sm:$0xff pattern:$0x73625140] }
  0x1e   : > { %566 = vst [vmem:[#allocation1] ss:$4 sm:$0xff] %v545_v2  ;;  %v559_v13 = vmul.f32 %v555_v4, %v549_v7  ;;  %v558_v16 = vmul.f32 %v554_v3, %v548_v10 }
  0x25   : > { %v567_v11 = vld.sshfl [vmem:[#allocation1] sm:$0xff pattern:$0x73625140]  ;;  %v568_v12 = vld.sshfl [vmem:[#allocation1 + $0x8] sm:$0xff pattern:$0x73625140] }
  0x26   : > { %584 = vst [vmem:[#allocation1] ss:$4 sm:$0xff] %v545_v2  ;;  %v571_v14 = vmul.f32 %v567_v11, %v561_v8  ;;  %v572_v15 = vmul.f32 %v568_v12, %v562_v9 }
  0x28   : > { %v574_v17 = vadd.f32 %v572_v15, %v559_v13  ;;  %v573_v19 = vadd.f32 %v571_v14, %v558_v16 }
  0x2a   : > { %v577_v20 = vrot.slane %v574_v17, 6 }
  0x2c   : > { %v579_v21 = vsel %vm578_vm0, %v573_v19, %v577_v20 }
  0x2d   : > { %v585_v22 = vld.sshfl [vmem:[#allocation1] sm:$0xff pattern:$0x73625140]  ;;  %v586_v23 = vld.sshfl [vmem:[#allocation1 + $0x8] sm:$0xff pattern:$0x73625140]  ;;  %v581_v24 = vadd.f32 %v579_v21, %v546_v18 }
  0x2e   : > { %591 = vst [vmem:[#allocation1] ss:$4 sm:$0xff] %v544_v1  ;;  %v590_v27 = vmul.f32 %v586_v23, %v549_v7  ;;  %v589_v30 = vmul.f32 %v585_v22, %v548_v10 }
  0x2f   : > { %582 = vst [vmem:[%s1034_s4] sm:$0xf] %v581_v24 }
  0x35   : > { %v592_v25 = vld.sshfl [vmem:[#allocation1] sm:$0xff pattern:$0x73625140]  ;;  %v593_v26 = vld.sshfl [vmem:[#allocation1 + $0x8] sm:$0xff pattern:$0x73625140] }
  0x36   : > { %v596_v28 = vmul.f32 %v592_v25, %v561_v8  ;;  %v597_v29 = vmul.f32 %v593_v26, %v562_v9 }
  0x38   : > { %v599_v31 = vsub.f32 %v590_v27, %v597_v29  ;;  %v598_v33 = vsub.f32 %v589_v30, %v596_v28 }
  0x3a   : > { %v602_v34 = vrot.slane %v599_v31, 6 }
  0x3c   : > { %v603_v35 = vsel %vm578_vm0, %v598_v33, %v602_v34 }
  0x3d   : > { %v605_v36 = vadd.f32 %v603_v35, %v583_v32 }
  0x3f   : > { %606 = vst [vmem:[%s1035_s5] sm:$0xf] %v605_v36 }
  0x40 PF: > { %s16_s20 = sadd.s32 1, %s938_s20   ;;  %s1036_s18 = smov %s934_s19 }
  0x41   : > { %p13_p6 = scmp.ge.s32.totalorder %s16_s20, 12   ;;  %s1037_s19 = smov %s1039_s21 }
  0x43   :  { %15 = sbr.rel (!%p13_p6) target bundleno = 2 (0x2), region = 91 }

// kernel: e2e_varnet_forward.33
= control target key start
LH: loop header
LB: loop body
LE: loop exit
PB: predicated region body
PF: predicated region fallthrough
CT: control target
= control target key end

     0   :  { %s591_s19 = smov 110   ;;  %s592_s20 = smov 109   ;;  %vm116_vm0 = vcmask 1031168   ;;  %vm77_vm1 = vcmask 1043456   ;;  %vm79_vm2 = vcmask 1039360   ;;  %vm153_vm3 = vcmask 900096   ;;  %s757_s0 = inlined_call_operand.vmem [shape: bf16[1,2,896], index: 0, kind: input, shape index: {}, may-alias: {0,1}]   ;;  %s758_s1 = inlined_call_operand.vmem [shape: bf16[1,2,896], index: 1, kind: input, shape index: {}, may-alias: {0,1}]   ;;  %s759_s3 = inlined_call_operand.vmem [shape: f32[8,1], index: 3, kind: input, shape index: {}]   ;;  %s760_s2 = inlined_call_operand.vmem [shape: bf16[8,18], index: 2, kind: input, shape index: {}]   ;;  %s761_s4 = inlined_call_operand.vmem [shape: bf16[1,8,768], index: 4, kind: output, shape index: {}]  }
   0x1   :  { %v37_v0 = vld [vmem:[%s757_s0] sm:$0x3f]  ;;  %v541_v1 = vld [vmem:[%s758_s1 + $0x6] sm:$0x1]  ;;  %s589_s0 = smov 127   ;;  %s590_s1 = smov 126  }
   0x2   :  { %38 = vst [vmem:[#allocation2] sm:$0x3f] %v37_v0  ;;  %s593_s21 = smov 108   ;;  %s594_s22 = smov 92   ;;  %vm189_vm4 = vcmask 891904   ;;  %vm226_vm5 = vcmask 883712  }
   0x3   :  { %40 = vst [vmem:[#allocation2 + $0x6] sm:$0x1] %v541_v1  ;;  %s595_s23 = smov 91   ;;  %s596_s24 = smov 90   ;;  %vm263_vm6 = vcmask 752640   ;;  %vm300_vm7 = vcmask 744448  }
   0x4   :  { %vm336_vm8 = vcmask 736256   ;;  %vm413_vm9 = vcmask 1040384   ;;  %vm409_vm10 = vcmask 146432  }
   0x9   :  { %v41_v2 = vld [vmem:[#allocation2] sm:$0x3f] }
   0xa   :  { %43 = vst [vmem:[#allocation1] ss:$4 sm:$0xff] %v41_v2  ;;  %v53_v3 = vld [vmem:[#allocation2] sm:$0x7f] }
   0xb   :  { %v91_v7 = vld [vmem:[#allocation2] sm:$0x7f] }
   0xc   :  { %v128_v12 = vld [vmem:[#allocation2] sm:$0x7f] }
   0xd   :  { %v165_v17 = vld [vmem:[#allocation2] sm:$0x7f] }
   0xe   :  { %v201_v22 = vld [vmem:[#allocation2] sm:$0x7f] }
   0xf   :  { %v238_v27 = vld [vmem:[#allocation2] sm:$0x7f] }
  0x10   :  { %v275_v32 = vld [vmem:[#allocation2] sm:$0x7f] }
  0x11   :  { %v44_v4 = vld [vmem:[#allocation1] sm:$0xff]  ;;  %v45_v5 = vld [vmem:[#allocation1 + $0x8] sm:$0xff]  ;;  %v46_v6 = vld [vmem:[#allocation1 + $0x10] sm:$0xff] }
  0x12   :  { %56 = vst [vmem:[#allocation1 + $0x1] ss:$4 sm:$0xff] %v53_v3  ;;  %v312_v37 = vld [vmem:[#allocation2] sm:$0x7f] }
  0x13   :  { %50 = vst [vmem:[#allocation3] sm:$0x11] %v44_v4 }
  0x14   :  { %51 = vst [vmem:[#allocation3 + $0x8] sm:$0x11] %v45_v5 }
  0x15   :  { %52 = vst [vmem:[#allocation3 + $0x10] sm:$0x11] %v46_v6 }
  0x19   :  { %v57_v8 = vld [vmem:[#allocation1] sm:$0xff]  ;;  %v61_v9 = vld [vmem:[#allocation1 + $0x10] sm:$0xff]  ;;  %v59_v10 = vld [vmem:[#allocation1 + $0x8] sm:$0xff] }
  0x1a   :  { %65 = vrot.lane.b32.xlu1 %v57_v8, %s589_s0  ;;  %69 = vrot.lane.b32.xlu0 %v61_v9, %s589_s0  ;;  %v63_v11 = vld [vmem:[#allocation1 + $0x18] sm:$0xff] }
  0x1b   :  { %94 = vst [vmem:[#allocation1 + $0x2] ss:$4 sm:$0xff] %v91_v7 }
  0x22   :  { %67 = vrot.lane.b32.xlu1 %v59_v10, %s589_s0  ;;  %v101_v13 = vld [vmem:[#allocation1 + $0x18] sm:$0xff]  ;;  %v95_v14 = vld [vmem:[#allocation1] sm:$0xff]  ;;  %v99_v15 = vld [vmem:[#allocation1 + $0x10] sm:$0xff] }
  0x23   :  { %103 = vrot.lane.b32.xlu2 %v95_v14, %s590_s1  ;;  %v97_v16 = vld [vmem:[#allocation1 + $0x8] sm:$0xff] }
  0x24   :  { %131 = vst [vmem:[#allocation1 + $0x3] ss:$4 sm:$0xff] %v128_v12 }
  0x2a   :  { %107 = vrot.lane.b32.xlu1 %v99_v15, %s590_s1 }
  0x2b   :  { %105 = vrot.lane.b32.xlu2 %v97_v16, %s590_s1  ;;  %v132_v18 = vld [vmem:[#allocation1] sm:$0xff]  ;;  %v138_v19 = vld [vmem:[#allocation1 + $0x18] sm:$0xff]  ;;  %v136_v20 = vld [vmem:[#allocation1 + $0x10] sm:$0xff] }
  0x2c   :  { %140 = vrot.lane.b32.xlu0 %v132_v18, %s591_s19  ;;  %v134_v21 = vld [vmem:[#allocation1 + $0x8] sm:$0xff] }
  0x2d   :  { %167 = vst [vmem:[#allocation1] ss:$4 sm:$0xff] %v165_v17 }
  0x32   :  { %142 = vrot.lane.b32.xlu1 %v134_v21, %s591_s19 }
  0x33   :  { %144 = vrot.lane.b32.xlu2 %v136_v20, %s591_s19 }
  0x34   :  { %v170_v23 = vld [vmem:[#allocation1 + $0x8] sm:$0xff]  ;;  %v174_v24 = vld [vmem:[#allocation1 + $0x18] sm:$0xff]  ;;  %v172_v25 = vld [vmem:[#allocation1 + $0x10] sm:$0xff] }
  0x35   :  { %178 = vrot.lane.b32.xlu0 %v170_v23, %s592_s20  ;;  %v168_v26 = vld [vmem:[#allocation1] sm:$0xff] }
  0x36   :  { %204 = vst [vmem:[#allocation1 + $0x1] ss:$4 sm:$0xff] %v201_v22 }
  0x3b   :  { %176 = vrot.lane.b32.xlu2 %v168_v26, %s592_s20 }
  0x3d   :  { %180 = vrot.lane.b32.xlu0 %v172_v25, %s592_s20  ;;  %v211_v28 = vld [vmem:[#allocation1 + $0x18] sm:$0xff]  ;;  %v205_v29 = vld [vmem:[#allocation1] sm:$0xff]  ;;  %v207_v30 = vld [vmem:[#allocation1 + $0x8] sm:$0xff] }
  0x3e   :  { %213 = vrot.lane.b32.xlu1 %v205_v29, %s593_s21  ;;  %v209_v31 = vld [vmem:[#allocation1 + $0x10] sm:$0xff] }
  0x3f   :  { %241 = vst [vmem:[#allocation1 + $0x2] ss:$4 sm:$0xff] %v238_v27 }
  0x43   :  { %215 = vrot.lane.b32.xlu2 %v207_v30, %s593_s21 }
  0x46   :  { %217 = vrot.lane.b32.xlu1 %v209_v31, %s593_s21  ;;  %v248_v33 = vld [vmem:[#allocation1 + $0x18] sm:$0xff]  ;;  %v242_v34 = vld [vmem:[#allocation1] sm:$0xff]  ;;  %v246_v35 = vld [vmem:[#allocation1 + $0x10] sm:$0xff] }
  0x47   :  { %250 = vrot.lane.b32.xlu0 %v242_v34, %s594_s22  ;;  %v244_v36 = vld [vmem:[#allocation1 + $0x8] sm:$0xff] }
  0x48   :  { %278 = vst [vmem:[#allocation1 + $0x3] ss:$4 sm:$0xff] %v275_v32 }
  0x4b   :  { %254 = vrot.lane.b32.xlu2 %v246_v35, %s594_s22 }
  0x4e   :  { %252 = vrot.lane.b32.xlu1 %v244_v36, %s594_s22 }
  0x4f   :  { %v283_v38 = vld [vmem:[#allocation1 + $0x10] sm:$0xff]  ;;  %v285_v39 = vld [vmem:[#allocation1 + $0x18] sm:$0xff]  ;;  %v281_v40 = vld [vmem:[#allocation1 + $0x8] sm:$0xff] }
  0x50   :  { %289 = vrot.lane.b32.xlu0 %v281_v40, %s595_s23  ;;  %v279_v41 = vld [vmem:[#allocation1] sm:$0xff] }
  0x51   :  { %314 = vst [vmem:[#allocation1] ss:$4 sm:$0xff] %v312_v37 }
  0x53   :  { %287 = vrot.lane.b32.xlu2 %v279_v41, %s595_s23 }
  0x56   :  { %71 = vrot.lane.b32.xlu1 %v63_v11, %s589_s0 }
  0x58   :  { %v315_v42 = vld [vmem:[#allocation1] sm:$0xff]  ;;  %v319_v43 = vld [vmem:[#allocation1 + $0x10] sm:$0xff]  ;;  %v317_v44 = vld [vmem:[#allocation1 + $0x8] sm:$0xff] }
  0x59   :  { %323 = vrot.lane.b32.xlu0 %v315_v42, %s596_s24  ;;  %v321_v45 = vld [vmem:[#allocation1 + $0x18] sm:$0xff] }
  0x5b   :  { %109 = vrot.lane.b32.xlu2 %v101_v13, %s590_s1 }
  0x5e   :  { %327 = vrot.lane.b32.xlu1 %v319_v43, %s596_s24 }
  0x61   :  { %325 = vrot.lane.b32.xlu0 %v317_v44, %s596_s24 }
  0x63   :  { %329 = vrot.lane.b32.xlu2 %v321_v45, %s596_s24 }
  0x66   :  { %182 = vrot.lane.b32.xlu1 %v174_v24, %s592_s20 }
  0x69   :  { %291 = vrot.lane.b32.xlu0 %v283_v38, %s595_s23 }
  0x6b   :  { %219 = vrot.lane.b32.xlu2 %v211_v28, %s593_s21 }
  0x6e   :  { %293 = vrot.lane.b32.xlu1 %v285_v39, %s595_s23 }
  0x71   :  { %146 = vrot.lane.b32.xlu0 %v138_v19, %s591_s19 }
  0x79   :  { %256 = vrot.lane.b32.xlu0 %v248_v33, %s594_s22 }
  0x7d   :  { %v104_v46 = vpop.permute.xlu2 %103 }
  0x7e   :  { %v111_v47 = vrot.slane %v104_v46, 4 }
  0x85   :  { %v106_v48 = vpop.permute.xlu2 %105 }
  0x86   :  { %v112_v49 = vrot.slane %v106_v48, 4 }
  0x88   :  { %v115_v50 = vsel %vm77_vm1, %v111_v47, %v112_v49 }
  0x89   :  { %v117_v51 = vsel %vm116_vm0, %v104_v46, %v115_v50 }
  0x8a   :  { %125 = vst [vmem:[#allocation3] sm:$0x44] %v117_v51 }
  0x8c   :  { %v66_v52 = vpop.permute.xlu1 %65  ;;  %v657_v54 = vpop.permute.xlu0 %69 }
  0x8d   :  { %v655_v53 = vpop.permute.xlu2 %144  ;;  %v73_v55 = vrot.slane %v66_v52, 4  ;;  %v75_v56 = vrot.slane %v657_v54, 4 }
  0x8e   :  { %v150_v6 = vrot.slane %v655_v53, 4 }
  0x94   :  { %v68_v57 = vpop.permute.xlu1 %67 }
  0x95   :  { %v74_v58 = vrot.slane %v68_v57, 4  ;;  %v177_v59 = vpop.permute.xlu2 %176 }
  0x96   :  { %v184_v11 = vrot.slane %v177_v59, 4 }
  0x97   :  { %v78_v60 = vsel %vm77_vm1, %v73_v55, %v74_v58  ;;  %v81_v61 = vsel %vm77_vm1, %v74_v58, %v75_v56 }
  0x98   :  { %v80_v62 = vsel %vm79_vm2, %v66_v52, %v78_v60  ;;  %v82_v63 = vsel %vm79_vm2, %v68_v57, %v81_v61 }
  0x99   :  { %88 = vst [vmem:[#allocation3] sm:$0x22] %v80_v62 }
  0x9a   :  { %89 = vst [vmem:[#allocation3 + $0x8] sm:$0x22] %v82_v63 }
  0x9c   :  { %v108_v0 = vpop.permute.xlu1 %107 }
  0x9d   :  { %v113_v1 = vrot.slane %v108_v0, 4  ;;  %v216_v2 = vpop.permute.xlu2 %215 }
  0x9e   :  { %v141_v3 = vpop.permute.xlu0 %140  ;;  %v222_v21 = vrot.slane %v216_v2, 4 }
  0x9f   :  { %v118_v4 = vsel %vm77_vm1, %v112_v49, %v113_v1  ;;  %v148_v8 = vrot.slane %v141_v3, 4 }
  0xa0   :  { %v119_v5 = vsel %vm116_vm0, %v106_v48, %v118_v4 }
  0xa1   :  { %126 = vst [vmem:[#allocation3 + $0x8] sm:$0x44] %v119_v5 }
  0xa4   :  { %v143_v7 = vpop.permute.xlu1 %142 }
  0xa5   :  { %v149_v9 = vrot.slane %v143_v7, 4  ;;  %v669_v10 = vpop.permute.xlu2 %254 }
  0xa6   :  { %v260_v40 = vrot.slane %v669_v10, 4 }
  0xa7   :  { %v152_v12 = vsel %vm77_vm1, %v148_v8, %v149_v9  ;;  %v155_v13 = vsel %vm77_vm1, %v149_v9, %v150_v6  ;;  %v179_v14 = vpop.permute.xlu0 %178 }
  0xa8   :  { %v154_v15 = vsel %vm153_vm3, %v141_v3, %v152_v12  ;;  %v156_v16 = vsel %vm153_vm3, %v143_v7, %v155_v13  ;;  %v185_v17 = vrot.slane %v179_v14, 4 }
  0xa9   :  { %162 = vst [vmem:[#allocation3] sm:$0x88] %v154_v15 }
  0xaa   :  { %163 = vst [vmem:[#allocation3 + $0x8] sm:$0x88] %v156_v16  ;;  %v188_v18 = vsel %vm77_vm1, %v184_v11, %v185_v17 }
  0xab   :  { %v190_v19 = vsel %vm189_vm4, %v177_v59, %v188_v18 }
  0xac   :  { %198 = vst [vmem:[#allocation3 + $0x18] sm:$0x11] %v190_v19 }
  0xad   :  { %v288_v20 = vpop.permute.xlu2 %287 }
  0xae   :  { %v295_v42 = vrot.slane %v288_v20, 4 }
  0xaf   :  { %v679_v22 = vpop.permute.xlu0 %180 }
  0xb0   :  { %v186_v23 = vrot.slane %v679_v22, 4  ;;  %v214_v24 = vpop.permute.xlu1 %213 }
  0xb1   :  { %v221_v25 = vrot.slane %v214_v24, 4 }
  0xb2   :  { %v191_v26 = vsel %vm77_vm1, %v185_v17, %v186_v23 }
  0xb3   :  { %v192_v27 = vsel %vm189_vm4, %v179_v14, %v191_v26  ;;  %v225_v28 = vsel %vm77_vm1, %v221_v25, %v222_v21  ;;  %v597_v25 = vmov 0  }
  0xb4   :  { %199 = vst [vmem:[#allocation3 + $0x20] sm:$0x11] %v192_v27  ;;  %v227_v29 = vsel %vm226_vm5, %v214_v24, %v225_v28  ;;  %587 = vset.pattern.permute.xlu2 %v597_v25  ;;  %588 = vset.pattern.permute.xlu0 %v597_v25 }
  0xb5   :  { %235 = vst [vmem:[#allocation3 + $0x18] sm:$0x22] %v227_v29  ;;  %v110_v30 = vpop.permute.xlu2 %109 }
  0xb6   :  { %v114_v31 = vrot.slane %v110_v30, 4 }
  0xb8   :  { %v218_v32 = vpop.permute.xlu1 %217  ;;  %v120_v33 = vsel %vm77_vm1, %v113_v1, %v114_v31 }
  0xb9   :  { %v223_v34 = vrot.slane %v218_v32, 4  ;;  %v251_v35 = vpop.permute.xlu0 %250  ;;  %v121_v36 = vsel %vm116_vm0, %v108_v0, %v120_v33 }
  0xba   :  { %127 = vst [vmem:[#allocation3 + $0x10] sm:$0x44] %v121_v36  ;;  %v258_v43 = vrot.slane %v251_v35, 4 }
  0xbb   :  { %v228_v37 = vsel %vm77_vm1, %v222_v21, %v223_v34 }
  0xbc   :  { %v229_v38 = vsel %vm226_vm5, %v216_v2, %v228_v37 }
  0xbd   :  { %236 = vst [vmem:[#allocation3 + $0x20] sm:$0x22] %v229_v38  ;;  %v330_v39 = vpop.permute.xlu2 %329 }
  0xbe   :  { %v334_v1 = vrot.slane %v330_v39, 4 }
  0xc0   :  { %v253_v41 = vpop.permute.xlu1 %252 }
  0xc1   :  { %v259_v44 = vrot.slane %v253_v41, 4 }
  0xc2   :  { %v290_v45 = vpop.permute.xlu0 %289 }
  0xc3   :  { %v262_v46 = vsel %vm77_vm1, %v258_v43, %v259_v44  ;;  %v265_v47 = vsel %vm77_vm1, %v259_v44, %v260_v40  ;;  %v296_v48 = vrot.slane %v290_v45, 4 }
  0xc4   :  { %v264_v49 = vsel %vm263_vm6, %v251_v35, %v262_v46  ;;  %v266_v50 = vsel %vm263_vm6, %v253_v41, %v265_v47 }
  0xc5   :  { %272 = vst [vmem:[#allocation3 + $0x18] sm:$0x44] %v264_v49  ;;  %v299_v51 = vsel %vm77_vm1, %v295_v42, %v296_v48  ;;  %v220_v52 = vpop.permute.xlu2 %219 }
  0xc6   :  { %273 = vst [vmem:[#allocation3 + $0x20] sm:$0x44] %v266_v50  ;;  %v301_v55 = vsel %vm300_vm7, %v288_v20, %v299_v51  ;;  %v224_v57 = vrot.slane %v220_v52, 4  ;;  %v358_v20 = vld [vmem:[%s759_s3] sm:$0xff]  ;;  %v544_v52 = vld [vmem:[#allocation3] sm:$0xf] }
  0xc7   :  { %309 = vst [vmem:[#allocation3 + $0x18] sm:$0x88] %v301_v55  ;;  %361 = vperm.xlu2 %587, %v358_v20   ;;  %v572_v55 = vld [vmem:[#allocation3 + $0x4] sm:$0xf] }
  0xc8   :  { %v72_v58 = vpop.permute.xlu1 %71  ;;  %v230_v59 = vsel %vm77_vm1, %v223_v34, %v224_v57  ;;  %v552_v57 = vld [vmem:[#allocation3 + $0x8] sm:$0xf] }
  0xc9   :  { %v76_v60 = vrot.slane %v72_v58, 4  ;;  %v231_v61 = vsel %vm226_vm5, %v218_v32, %v230_v59 }
  0xca   :  { %237 = vst [vmem:[#allocation3 + $0x28] sm:$0x22] %v231_v61 }
  0xcb   :  { %v83_v62 = vsel %vm77_vm1, %v75_v56, %v76_v60  ;;  %v324_v63 = vpop.permute.xlu0 %323 }
  0xcc   :  { %v84_v0 = vsel %vm79_vm2, %v657_v54, %v83_v62  ;;  %v331_v7 = vrot.slane %v324_v63, 4  ;;  %v573_v62 = vld [vmem:[#allocation3 + $0xc] sm:$0xf] }
  0xcd   :  { %90 = vst [vmem:[#allocation3 + $0x10] sm:$0x22] %v84_v0 }
  0xce   :  { %v575_v42 = vld [vmem:[#allocation3 + $0x14] sm:$0xf0] }
  0xcf   :  { %v545_v59 = vor.u32 %v575_v42, %v544_v52 }
  0xd0   :  { %v328_v2 = vpop.permute.xlu1 %327 }
  0xd1   :  { %v333_v3 = vrot.slane %v328_v2, 4 }
  0xd3   :  { %v340_v4 = vsel %vm77_vm1, %v333_v3, %v334_v1  ;;  %v326_v5 = vpop.permute.xlu0 %325 }
  0xd4   :  { %v341_v8 = vsel %vm336_vm8, %v328_v2, %v340_v4  ;;  %v332_v9 = vrot.slane %v326_v5, 4 }
  0xd5   :  { %347 = vst [vmem:[#allocation3 + $0x40] sm:$0x11] %v341_v8 }
  0xd6   :  { %v335_v11 = vsel %vm77_vm1, %v331_v7, %v332_v9  ;;  %v338_v56 = vsel %vm77_vm1, %v332_v9, %v333_v3  ;;  %v357_v3 = vld [vmem:[%s760_s2] sm:$0xf] }
  0xd7   :  { %v337_v12 = vsel %vm336_vm8, %v324_v63, %v335_v11  ;;  %v339_v13 = vsel %vm336_vm8, %v326_v5, %v338_v56 }
  0xd8   :  { %345 = vst [vmem:[#allocation3 + $0x30] sm:$0x11] %v337_v12  ;;  %v183_v54 = vpop.permute.xlu1 %182 }
  0xd9   :  { %346 = vst [vmem:[#allocation3 + $0x38] sm:$0x11] %v339_v13  ;;  %v187_v14 = vrot.slane %v183_v54, 4 }
  0xdb   :  { %v193_v15 = vsel %vm77_vm1, %v186_v23, %v187_v14  ;;  %v292_v16 = vpop.permute.xlu0 %291 }
  0xdc   :  { %v194_v17 = vsel %vm189_vm4, %v679_v22, %v193_v15  ;;  %v297_v18 = vrot.slane %v292_v16, 4  ;;  %v356_v19 = vld [vmem:[#allocation3 + $0x40] sm:$0x11] }
  0xdd   :  { %200 = vst [vmem:[#allocation3 + $0x28] sm:$0x11] %v194_v17  ;;  %v389_v24 = vunpack.c.l.b16 %v356_v19  ;;  %v390_v27 = vunpack.c.h.b16 %v356_v19 }
  0xde   :  { %v302_v21 = vsel %vm77_vm1, %v296_v48, %v297_v18  ;;  %v546_v48 = vld [vmem:[#allocation3 + $0x18] sm:$0xf0] }
  0xdf   :  { %v303_v26 = vsel %vm300_vm7, %v290_v45, %v302_v21  ;;  %v354_v23 = vld [vmem:[#allocation3 + $0x30] sm:$0x11]  ;;  %v401_v36 = vpack.c.b16 %v389_v24, %v389_v24  ;;  %v402_v43 = vpack.c.b16 %v390_v27, %v390_v27  ;;  %v549_v60 = vor.u32 %v572_v55, %v546_v48 }
  0xe0   :  { %310 = vst [vmem:[#allocation3 + $0x20] sm:$0x88] %v303_v26  ;;  %v294_v22 = vpop.permute.xlu1 %293  ;;  %v385_v28 = vunpack.c.l.b16 %v354_v23  ;;  %v386_v29 = vunpack.c.h.b16 %v354_v23  ;;  %v355_v30 = vld [vmem:[#allocation3 + $0x38] sm:$0x11] }
  0xe1   :  { %v298_v31 = vrot.slane %v294_v22, 4  ;;  %v387_v32 = vunpack.c.l.b16 %v355_v30  ;;  %v388_v33 = vunpack.c.h.b16 %v355_v30  ;;  %v427_v2 = vsel %vm413_vm9, %v401_v36, 0 }
  0xe2   :  { %v397_v34 = vpack.c.b16 %v385_v28, %v385_v28  ;;  %v398_v35 = vpack.c.b16 %v386_v29, %v386_v29 }
  0xe3   :  { %v304_v37 = vsel %vm77_vm1, %v297_v18, %v298_v31  ;;  %v147_v38 = vpop.permute.xlu0 %146  ;;  %v399_v39 = vpack.c.b16 %v387_v32, %v387_v32  ;;  %v400_v41 = vpack.c.b16 %v388_v33, %v388_v33 }
  0xe4   :  { %v305_v44 = vsel %vm300_vm7, %v292_v16, %v304_v37  ;;  %v151_v45 = vrot.slane %v147_v38, 4  ;;  %v415_v46 = vsel %vm413_vm9, %v397_v34, 0  ;;  %v418_v47 = vsel %vm413_vm9, %v398_v35, 0 }
  0xe5   :  { %311 = vst [vmem:[#allocation3 + $0x28] sm:$0x88] %v305_v44  ;;  %438 = vmatpush.bf16.msra.mxu0 %v415_v46  ;;  %451 = vmatpush.bf16.msra.mxu1 %v418_v47  ;;  %v421_v49 = vsel %vm413_vm9, %v399_v39, 0  ;;  %v424_v50 = vsel %vm413_vm9, %v400_v41, 0 }
  0xe6   :  { %v157_v51 = vsel %vm77_vm1, %v150_v6, %v151_v45  ;;  %464 = vmatpush.bf16.msra.mxu2 %v421_v49  ;;  %477 = vmatpush.bf16.msra.mxu3 %v424_v50  ;;  %v430_v6 = vsel %vm413_vm9, %v402_v43, 0 }
  0xe7   :  { %v158_v58 = vsel %vm153_vm3, %v655_v53, %v157_v51  ;;  %v576_v61 = vld [vmem:[#allocation3 + $0x1c] sm:$0xf0]  ;;  %v554_v63 = vld [vmem:[#allocation3 + $0x20] sm:$0xf0] }
  0xe8   :  { %164 = vst [vmem:[#allocation3 + $0x10] sm:$0x88] %v158_v58  ;;  %v553_v0 = vor.u32 %v576_v61, %v552_v57  ;;  %v557_v1 = vor.u32 %v573_v62, %v554_v63 }
  0xe9   :  { %439 = vmatpush.bf16.msra.mxu0 %v545_v59  ;;  %452 = vmatpush.bf16.msra.mxu1 %v549_v60 }
  0xea   :  { %465 = vmatpush.bf16.msra.mxu2 %v553_v0  ;;  %478 = vmatpush.bf16.msra.mxu3 %v557_v1 }
  0xeb   :  { %v257_v53 = vpop.permute.xlu0 %256 }
  0xec   :  { %v261_v4 = vrot.slane %v257_v53, 4  ;;  %566 = vmatmul.msk.bf16.vlgmr.msra.gmra.mxu0 %vm409_vm10, %v357_v3  ;;  %567 = vmatmul.msk.bf16.vlgmr.msra.gmra.mxu1 %vm409_vm10, %v357_v3 }
  0xed   :  { %490 = vmatpush.bf16.msrb.mxu0 %v427_v2  ;;  %503 = vmatpush.bf16.msrb.mxu1 %v430_v6 }
  0xee   :  { %568 = vmatmul.msk.bf16.vlgmr.msra.gmra.mxu2 %vm409_vm10, %v357_v3  ;;  %569 = vmatmul.msk.bf16.vlgmr.msra.gmra.mxu3 %vm409_vm10, %v357_v3  ;;  %v267_v5 = vsel %vm77_vm1, %v260_v40, %v261_v4 }
  0xef   :  { %v268_v7 = vsel %vm263_vm6, %v669_v10, %v267_v5  ;;  %v560_v8 = vld [vmem:[#allocation3 + $0x10] sm:$0xf]  ;;  %v574_v11 = vld [vmem:[#allocation3 + $0x14] sm:$0xf] }
  0xf0   :  { %274 = vst [vmem:[#allocation3 + $0x28] sm:$0x44] %v268_v7 }
  0xf7   :  { %v577_v9 = vld [vmem:[#allocation3 + $0x24] sm:$0xf0]  ;;  %v562_v56 = vld [vmem:[#allocation3 + $0x28] sm:$0xf0] }
  0xf8   :  { %v561_v12 = vor.u32 %v577_v9, %v560_v8  ;;  %v565_v13 = vor.u32 %v574_v11, %v562_v56 }
  0xfa   :  { %491 = vmatpush.bf16.msrb.mxu0 %v561_v12  ;;  %504 = vmatpush.bf16.msrb.mxu1 %v565_v13 }
  0xfd   :  { %570 = vmatmul.msk.bf16.vlgmr.msrb.gmra.mxu0 %vm409_vm10, %v357_v3  ;;  %571 = vmatmul.msk.bf16.vlgmr.msrb.gmra.mxu1 %vm409_vm10, %v357_v3 }
 0x121   :  { %v362_v54 = vpop.permute.xlu2 %361 }
 0x169   :  { %v441_v14 = vpop.f32.mrf.mxu0  ;;  %v454_v15 = vpop.f32.mrf.mxu1 }
 0x16a   :  { %v442_v40 = vadd.f32 %v441_v14, %v362_v54  ;;  %v455_v16 = vadd.f32 %v454_v15, %v362_v54 }
 0x16c   :  { %vm510_vm11 = vcmp.ge.f32.partialorder %v442_v40, 0.0  ;;  %vm511_vm12 = vcmp.ge.f32.partialorder %v455_v16, 0.0  ;;  %v516_v10 = vmul.f32 0.01, %v442_v40  ;;  %v517_v17 = vmul.f32 0.01, %v455_v16 }
 0x16e   :  { %v522_v18 = vsel %vm510_vm11, %v442_v40, %v516_v10  ;;  %v523_v19 = vsel %vm511_vm12, %v455_v16, %v517_v17 }
 0x16f   :  { %v528_v20 = vpack.c.bf16 %v523_v19, %v522_v18 }
 0x171   :  { %v467_v21 = vpop.f32.mrf.mxu2  ;;  %v480_v24 = vpop.f32.mrf.mxu3  ;;  %531 = vst [vmem:[%s761_s4] sm:$0xff] %v528_v20 }
 0x172   :  { %v443_v25 = vpop.f32.mrf.mxu0  ;;  %v456_v26 = vpop.f32.mrf.mxu1  ;;  %v468_v23 = vadd.f32 %v467_v21, %v362_v54  ;;  %v481_v27 = vadd.f32 %v480_v24, %v362_v54 }
 0x174   :  { %vm512_vm13 = vcmp.ge.f32.partialorder %v468_v23, 0.0  ;;  %v518_v22 = vmul.f32 0.01, %v468_v23  ;;  %vm513_vm14 = vcmp.ge.f32.partialorder %v481_v27, 0.0  ;;  %v519_v28 = vmul.f32 0.01, %v481_v27 }
 0x176   :  { %v524_v29 = vsel %vm512_vm13, %v468_v23, %v518_v22  ;;  %v525_v30 = vsel %vm513_vm14, %v481_v27, %v519_v28 }
 0x177   :  { %v529_v31 = vpack.c.bf16 %v525_v30, %v524_v29 }
 0x179   :  { %532 = vst [vmem:[%s761_s4 + $0x8] sm:$0xff] %v529_v31  ;;  %v469_v32 = vpop.f32.mrf.mxu2  ;;  %v482_v33 = vpop.f32.mrf.mxu3 }
 0x17a   :  { %v493_v34 = vpop.f32.mrf.mxu0  ;;  %v506_v35 = vpop.f32.mrf.mxu1 }
 0x17b   :  { %v494_v36 = vadd.f32 %v493_v34, %v362_v54  ;;  %v507_v37 = vadd.f32 %v506_v35, %v362_v54 }
 0x17d   :  { %vm514_vm15 = vcmp.ge.f32.partialorder %v494_v36, 0.0  ;;  %v520_v38 = vmul.f32 0.01, %v494_v36  ;;  %vm515_vm0 = vcmp.ge.f32.partialorder %v507_v37, 0.0  ;;  %v521_v39 = vmul.f32 0.01, %v507_v37 }
 0x17f   :  { %v526_v41 = vsel %vm514_vm15, %v494_v36, %v520_v38  ;;  %v527_v42 = vsel %vm515_vm0, %v507_v37, %v521_v39 }
 0x180   :  { %v530_v43 = vpack.c.bf16 %v527_v42, %v526_v41 }
 0x182   :  { %533 = vst [vmem:[%s761_s4 + $0x10] sm:$0xff] %v530_v43  ;;  %v495_v44 = vpop.f32.mrf.mxu0  ;;  %v508_v45 = vpop.f32.mrf.mxu1 }

// kernel: e2e_varnet_forward.34
= control target key start
LH: loop header
LB: loop body
LE: loop exit
PB: predicated region body
PF: predicated region fallthrough
CT: control target
= control target key end

     0   :  { %v387_v2 = vmov 0   ;;  %vm164_vm0 = vcmask 1043456   ;;  %vm160_vm1 = vcmask 195584   ;;  %s465_s0 = inlined_call_operand.vmem [shape: bf16[1,8,1536], index: 0, kind: input, shape index: {}, may-alias: {0,1}]   ;;  %s466_s3 = inlined_call_operand.vmem [shape: f32[8,1], index: 3, kind: input, shape index: {}]   ;;  %s467_s1 = inlined_call_operand.vmem [shape: bf16[1,8,1536], index: 1, kind: input, shape index: {}, may-alias: {0,1}]   ;;  %s468_s2 = inlined_call_operand.vmem [shape: bf16[8,24], index: 2, kind: input, shape index: {}]   ;;  %s469_s4 = inlined_call_operand.vmem [shape: bf16[1,8,1024], index: 4, kind: output, shape index: {}]  }
   0x1   :  { %v47_v0 = vld [vmem:[%s465_s0 + $0x10] sm:$0xff]  ;;  %v48_v1 = vld [vmem:[%s465_s0 + $0x18] sm:$0xff]  ;;  %386 = vset.pattern.permute.xlu0 %v387_v2  ;;  %v94_v7 = vld [vmem:[%s466_s3] sm:$0xff] }
   0x2   :  { %v128_v3 = vunpack.c.l.b16 %v47_v0  ;;  %v129_v4 = vunpack.c.h.b16 %v47_v0  ;;  %v130_v5 = vunpack.c.l.b16 %v48_v1  ;;  %v131_v6 = vunpack.c.h.b16 %v48_v1  ;;  %63 = vst [vmem:[#allocation3 + $0x10] sm:$0xff] %v47_v0  ;;  %v45_v12 = vld [vmem:[%s465_s0] sm:$0xff]  ;;  %97 = vperm.xlu0 %386, %v94_v7   ;;  %v46_v17 = vld [vmem:[%s465_s0 + $0x8] sm:$0xff] }
   0x3   :  { %70 = vst [vmem:[#allocation3 + $0x28] sm:$0xff] %v47_v0  ;;  %v336_v18 = vld [vmem:[%s467_s1 + $0x28] sm:$0xff]  ;;  %v335_v19 = vld [vmem:[%s467_s1 + $0x20] sm:$0xff] }
   0x4   :  { %v144_v8 = vpack.c.b16 %v128_v3, %v128_v3  ;;  %v145_v9 = vpack.c.b16 %v129_v4, %v129_v4  ;;  %v146_v10 = vpack.c.b16 %v130_v5, %v130_v5  ;;  %v147_v11 = vpack.c.b16 %v131_v6, %v131_v6  ;;  %64 = vst [vmem:[#allocation3 + $0x18] sm:$0xff] %v48_v1  ;;  %v93_v44 = vld [vmem:[%s468_s2] sm:$0xf] }
   0x5   :  { %71 = vst [vmem:[#allocation3 + $0x30] sm:$0xff] %v48_v1  ;;  %v134_v20 = vunpack.c.l.b16 %v336_v18  ;;  %v135_v21 = vunpack.c.h.b16 %v336_v18  ;;  %v132_v22 = vunpack.c.l.b16 %v335_v19  ;;  %v133_v23 = vunpack.c.h.b16 %v335_v19 }
   0x6   :  { %v166_v13 = vsel %vm164_vm0, %v144_v8, 0  ;;  %v169_v14 = vsel %vm164_vm0, %v145_v9, 0  ;;  %v172_v15 = vsel %vm164_vm0, %v146_v10, 0  ;;  %v175_v16 = vsel %vm164_vm0, %v147_v11, 0  ;;  %61 = vst [vmem:[#allocation3] sm:$0xff] %v45_v12 }
   0x7   :  { %195 = vmatpush.bf16.msra.mxu0 %v166_v13  ;;  %208 = vmatpush.bf16.msra.mxu1 %v169_v14  ;;  %69 = vst [vmem:[#allocation3 + $0x20] sm:$0xff] %v46_v17  ;;  %v150_v25 = vpack.c.b16 %v134_v20, %v134_v20  ;;  %v151_v26 = vpack.c.b16 %v135_v21, %v135_v21 }
   0x8   :  { %221 = vmatpush.bf16.msra.mxu2 %v172_v15  ;;  %234 = vmatpush.bf16.msra.mxu3 %v175_v16  ;;  %62 = vst [vmem:[#allocation3 + $0x8] sm:$0xff] %v46_v17  ;;  %v148_v30 = vpack.c.b16 %v132_v22, %v132_v22  ;;  %v149_v31 = vpack.c.b16 %v133_v23, %v133_v23 }
   0x9   :  { %72 = vst [vmem:[#allocation3 + $0x38] sm:$0xff] %v335_v19  ;;  %v184_v40 = vsel %vm164_vm0, %v150_v25, 0  ;;  %v187_v41 = vsel %vm164_vm0, %v151_v26, 0  ;;  %v355_v49 = vld [vmem:[#allocation3 + $0x10] sm:$0xf] }
   0xa   :  { %v382_v24 = vld [vmem:[#allocation3 + $0x24] sm:$0xf0]  ;;  %v349_v29 = vld [vmem:[#allocation3 + $0x28] sm:$0xf0]  ;;  %v178_v45 = vsel %vm164_vm0, %v148_v30, 0  ;;  %v181_v46 = vsel %vm164_vm0, %v149_v31, 0 }
   0xb   :  { %v363_v42 = vld [vmem:[#allocation3 + $0x18] sm:$0xf]  ;;  %v380_v43 = vld [vmem:[#allocation3 + $0x1c] sm:$0xf]  ;;  %v379_v53 = vld [vmem:[#allocation3 + $0x14] sm:$0xf] }
   0xc   :  { %v383_v52 = vld [vmem:[#allocation3 + $0x2c] sm:$0xf0]  ;;  %v357_v54 = vld [vmem:[#allocation3 + $0x30] sm:$0xf0] }
   0xd   :  { %v339_v27 = vld [vmem:[#allocation3] sm:$0xf]  ;;  %v377_v28 = vld [vmem:[#allocation3 + $0x4] sm:$0xf]  ;;  %v356_v55 = vor.u32 %v383_v52, %v355_v49  ;;  %v360_v56 = vor.u32 %v379_v53, %v357_v54 }
   0xe   :  { %v381_v32 = vld [vmem:[#allocation3 + $0x1c] sm:$0xf0]  ;;  %v341_v33 = vld [vmem:[#allocation3 + $0x20] sm:$0xf0] }
   0xf   :  { %v340_v34 = vor.u32 %v381_v32, %v339_v27  ;;  %v344_v35 = vor.u32 %v377_v28, %v341_v33  ;;  %v347_v36 = vld [vmem:[#allocation3 + $0x8] sm:$0xf]  ;;  %v378_v37 = vld [vmem:[#allocation3 + $0xc] sm:$0xf] }
  0x10   :  { %v348_v38 = vor.u32 %v382_v24, %v347_v36  ;;  %v352_v39 = vor.u32 %v378_v37, %v349_v29  ;;  %v384_v47 = vld [vmem:[#allocation3 + $0x34] sm:$0xf0]  ;;  %v365_v48 = vld [vmem:[#allocation3 + $0x38] sm:$0xf0] }
  0x11   :  { %196 = vmatpush.bf16.msra.mxu0 %v340_v34  ;;  %209 = vmatpush.bf16.msra.mxu1 %v344_v35  ;;  %v364_v50 = vor.u32 %v384_v47, %v363_v42  ;;  %v368_v51 = vor.u32 %v380_v43, %v365_v48 }
  0x12   :  { %222 = vmatpush.bf16.msra.mxu2 %v348_v38  ;;  %235 = vmatpush.bf16.msra.mxu3 %v352_v39 }
  0x14   :  { %369 = vmatmul.msk.bf16.vlgmr.msra.gmra.mxu0 %vm160_vm1, %v93_v44  ;;  %370 = vmatmul.msk.bf16.vlgmr.msra.gmra.mxu1 %vm160_vm1, %v93_v44 }
  0x15   :  { %371 = vmatmul.msk.bf16.vlgmr.msra.gmra.mxu2 %vm160_vm1, %v93_v44  ;;  %372 = vmatmul.msk.bf16.vlgmr.msra.gmra.mxu3 %vm160_vm1, %v93_v44 }
  0x16   :  { %273 = vmatpush.bf16.msrb.mxu2 %v184_v40  ;;  %286 = vmatpush.bf16.msrb.mxu3 %v187_v41 }
  0x17   :  { %247 = vmatpush.bf16.msrb.mxu0 %v178_v45  ;;  %260 = vmatpush.bf16.msrb.mxu1 %v181_v46 }
  0x1a   :  { %274 = vmatpush.bf16.msrb.mxu2 %v364_v50  ;;  %287 = vmatpush.bf16.msrb.mxu3 %v368_v51 }
  0x1b   :  { %248 = vmatpush.bf16.msrb.mxu0 %v356_v55  ;;  %261 = vmatpush.bf16.msrb.mxu1 %v360_v56 }
  0x24   :  { %373 = vmatmul.msk.bf16.vlgmr.msrb.gmra.mxu0 %vm160_vm1, %v93_v44  ;;  %374 = vmatmul.msk.bf16.vlgmr.msrb.gmra.mxu1 %vm160_vm1, %v93_v44 }
  0x25   :  { %375 = vmatmul.msk.bf16.vlgmr.msrb.gmra.mxu2 %vm160_vm1, %v93_v44  ;;  %376 = vmatmul.msk.bf16.vlgmr.msrb.gmra.mxu3 %vm160_vm1, %v93_v44 }
  0x74   :  { %v98_v57 = vpop.permute.xlu0 %97 }
  0x91   :  { %v198_v58 = vpop.f32.mrf.mxu0  ;;  %v211_v59 = vpop.f32.mrf.mxu1 }
  0x92   :  { %v199_v60 = vadd.f32 %v198_v58, %v98_v57  ;;  %v212_v61 = vadd.f32 %v211_v59, %v98_v57 }
  0x94   :  { %vm293_vm2 = vcmp.ge.f32.partialorder %v199_v60, 0.0  ;;  %vm294_vm3 = vcmp.ge.f32.partialorder %v212_v61, 0.0  ;;  %v301_v62 = vmul.f32 0.01, %v199_v60  ;;  %v302_v63 = vmul.f32 0.01, %v212_v61 }
  0x96   :  { %v309_v0 = vsel %vm293_vm2, %v199_v60, %v301_v62  ;;  %v310_v1 = vsel %vm294_vm3, %v212_v61, %v302_v63 }
  0x97   :  { %v317_v2 = vpack.c.bf16 %v310_v1, %v309_v0 }
  0x98   :  { %v224_v3 = vpop.f32.mrf.mxu2  ;;  %v237_v4 = vpop.f32.mrf.mxu3 }
  0x99   :  { %v225_v5 = vadd.f32 %v224_v3, %v98_v57  ;;  %v238_v6 = vadd.f32 %v237_v4, %v98_v57  ;;  %321 = vst [vmem:[%s469_s4] sm:$0xff] %v317_v2  ;;  %v200_v7 = vpop.f32.mrf.mxu0  ;;  %v213_v8 = vpop.f32.mrf.mxu1 }
  0x9b   :  { %vm295_vm4 = vcmp.ge.f32.partialorder %v225_v5, 0.0  ;;  %v303_v9 = vmul.f32 0.01, %v225_v5  ;;  %vm296_vm5 = vcmp.ge.f32.partialorder %v238_v6, 0.0  ;;  %v304_v10 = vmul.f32 0.01, %v238_v6 }
  0x9d   :  { %v311_v11 = vsel %vm295_vm4, %v225_v5, %v303_v9  ;;  %v312_v12 = vsel %vm296_vm5, %v238_v6, %v304_v10 }
  0x9e   :  { %v318_v13 = vpack.c.bf16 %v312_v12, %v311_v11 }
  0xa0   :  { %322 = vst [vmem:[%s469_s4 + $0x8] sm:$0xff] %v318_v13  ;;  %v226_v14 = vpop.f32.mrf.mxu2  ;;  %v239_v15 = vpop.f32.mrf.mxu3 }
  0xa1   :  { %v250_v16 = vpop.f32.mrf.mxu0  ;;  %v263_v17 = vpop.f32.mrf.mxu1 }
  0xa2   :  { %v251_v18 = vadd.f32 %v250_v16, %v98_v57  ;;  %v264_v19 = vadd.f32 %v263_v17, %v98_v57 }
  0xa4   :  { %vm297_vm6 = vcmp.ge.f32.partialorder %v251_v18, 0.0  ;;  %v305_v20 = vmul.f32 0.01, %v251_v18  ;;  %vm298_vm7 = vcmp.ge.f32.partialorder %v264_v19, 0.0  ;;  %v306_v21 = vmul.f32 0.01, %v264_v19 }
  0xa6   :  { %v313_v22 = vsel %vm297_vm6, %v251_v18, %v305_v20  ;;  %v314_v23 = vsel %vm298_vm7, %v264_v19, %v306_v21 }
  0xa7   :  { %v319_v24 = vpack.c.bf16 %v314_v23, %v313_v22 }
  0xa8   :  { %v276_v25 = vpop.f32.mrf.mxu2  ;;  %v289_v26 = vpop.f32.mrf.mxu3 }
  0xa9   :  { %323 = vst [vmem:[%s469_s4 + $0x10] sm:$0xff] %v319_v24  ;;  %v277_v27 = vadd.f32 %v276_v25, %v98_v57  ;;  %v290_v28 = vadd.f32 %v289_v26, %v98_v57  ;;  %v252_v29 = vpop.f32.mrf.mxu0  ;;  %v265_v30 = vpop.f32.mrf.mxu1 }
  0xab   :  { %vm299_vm8 = vcmp.ge.f32.partialorder %v277_v27, 0.0  ;;  %v307_v31 = vmul.f32 0.01, %v277_v27  ;;  %vm300_vm9 = vcmp.ge.f32.partialorder %v290_v28, 0.0  ;;  %v308_v32 = vmul.f32 0.01, %v290_v28 }
  0xad   :  { %v315_v33 = vsel %vm299_vm8, %v277_v27, %v307_v31  ;;  %v316_v34 = vsel %vm300_vm9, %v290_v28, %v308_v32 }
  0xae   :  { %v320_v35 = vpack.c.bf16 %v316_v34, %v315_v33 }
  0xb0   :  { %324 = vst [vmem:[%s469_s4 + $0x18] sm:$0xff] %v320_v35  ;;  %v278_v36 = vpop.f32.mrf.mxu2  ;;  %v291_v37 = vpop.f32.mrf.mxu3 }

// kernel: e2e_varnet_forward.35
= control target key start
LH: loop header
LB: loop body
LE: loop exit
PB: predicated region body
PF: predicated region fallthrough
CT: control target
= control target key end

     0   :  { %s365_s19 = smov 106   ;;  %s366_s20 = smov 108   ;;  %vm56_vm0 = vcmask 1043456   ;;  %vm148_vm1 = vcmask 875520   ;;  %vm163_vm2 = vcmask 867328   ;;  %vm133_vm3 = vcmask 883712   ;;  %s433_s0 = inlined_call_operand.vmem [shape: bf16[1,8,384], index: 0, kind: input, shape index: {}, may-alias: {0,1}]   ;;  %s434_s1 = inlined_call_operand.vmem [shape: bf16[1,8,384], index: 1, kind: input, shape index: {}, may-alias: {0,1}]   ;;  %s435_s3 = inlined_call_operand.vmem [shape: f32[12,1], index: 3, kind: input, shape index: {}]   ;;  %s436_s2 = inlined_call_operand.vmem [shape: bf16[12,72], index: 2, kind: input, shape index: {}]   ;;  %s437_s4 = inlined_call_operand.vmem [shape: bf16[1,12,256], index: 4, kind: output, shape index: {}]  }
   0x1   :  { %v40_v0 = vld [vmem:[%s433_s0] sm:$0xff]  ;;  %v305_v1 = vld [vmem:[%s434_s1 + $0x8] sm:$0xf]  ;;  %s367_s21 = smov 107   ;;  %s368_s0 = smov 117   ;;  %vm103_vm4 = vcmask 957440  }
   0x2   :  { %156 = vrot.lane.b32.xlu0 %v40_v0, %s365_s19  ;;  %126 = vrot.lane.b32.xlu1 %v40_v0, %s366_s20  ;;  %43 = vst [vmem:[#allocation2 + $0x8] sm:$0xf] %v305_v1  ;;  %s369_s22 = smov 116   ;;  %s370_s1 = smov 126   ;;  %vm118_vm5 = vcmask 949248   ;;  %vm73_vm6 = vcmask 1031168  }
   0x3   :  { %141 = vrot.lane.b32.xlu2 %v40_v0, %s367_s21  ;;  %45 = vst [vmem:[#allocation3] sm:$0xff] %v40_v0  ;;  %s371_s23 = smov 118   ;;  %s372_s24 = smov 127   ;;  %v178_v54 = vld [vmem:[%s435_s3] sm:$0xff]  ;;  %v179_v55 = vld [vmem:[%s435_s3 + $0x8] sm:$0xf] }
   0x4   :  { %v373_v58 = vmov 0   ;;  %vm88_vm7 = vcmask 965632   ;;  %vm58_vm8 = vcmask 1039360   ;;  %vm240_vm9 = vcmask 588800  }
   0x5   :  { %362 = vset.pattern.permute.xlu1 %v373_v58  ;;  %363 = vset.pattern.permute.xlu2 %v373_v58 }
   0x6   :  { %364 = vset.pattern.permute.xlu0 %v373_v58 }
   0x9   :  { %v153_v2 = vld [vmem:[#allocation2 + $0x8] sm:$0xf] }
   0xa   :  { %v123_v3 = vld [vmem:[#allocation2 + $0x8] sm:$0xf]  ;;  %158 = vrot.lane.b32.xlu0 %v153_v2, %s365_s19 }
   0xb   :  { %128 = vrot.lane.b32.xlu1 %v123_v3, %s366_s20  ;;  %v138_v4 = vld [vmem:[#allocation2 + $0x8] sm:$0xf] }
   0xc   :  { %143 = vrot.lane.b32.xlu2 %v138_v4, %s367_s21  ;;  %v93_v5 = vld [vmem:[#allocation2 + $0x8] sm:$0xf] }
   0xd   :  { %v108_v6 = vld [vmem:[#allocation2 + $0x8] sm:$0xf] }
   0xe   :  { %v63_v7 = vld [vmem:[#allocation2 + $0x8] sm:$0xf] }
   0xf   :  { %v78_v8 = vld [vmem:[#allocation2 + $0x8] sm:$0xf] }
  0x10   :  { %v47_v9 = vld [vmem:[#allocation2 + $0x8] sm:$0xf] }
  0x12   :  { %96 = vrot.lane.b32.xlu0 %v40_v0, %s368_s0 }
  0x13   :  { %98 = vrot.lane.b32.xlu1 %v93_v5, %s368_s0 }
  0x14   :  { %111 = vrot.lane.b32.xlu2 %v40_v0, %s369_s22 }
  0x1a   :  { %113 = vrot.lane.b32.xlu0 %v108_v6, %s369_s22 }
  0x1b   :  { %66 = vrot.lane.b32.xlu1 %v40_v0, %s370_s1 }
  0x1c   :  { %68 = vrot.lane.b32.xlu2 %v63_v7, %s370_s1 }
  0x22   :  { %81 = vrot.lane.b32.xlu0 %v40_v0, %s371_s23 }
  0x23   :  { %83 = vrot.lane.b32.xlu1 %v78_v8, %s371_s23 }
  0x24   :  { %50 = vrot.lane.b32.xlu2 %v40_v0, %s372_s24 }
  0x2a   :  { %52 = vrot.lane.b32.xlu0 %v47_v9, %s372_s24 }
  0x2b   :  { %182 = vperm.xlu1 %362, %v178_v54  }
  0x2c   :  { %187 = vperm.xlu2 %363, %v179_v55  }
  0x5d   :  { %v142_v10 = vpop.permute.xlu2 %141 }
  0x5e   :  { %v145_v11 = vrot.slane %v142_v10, 4 }
  0x66   :  { %v144_v12 = vpop.permute.xlu2 %143 }
  0x67   :  { %v146_v13 = vrot.slane %v144_v12, 4 }
  0x69   :  { %v147_v14 = vsel %vm56_vm0, %v145_v11, %v146_v13 }
  0x6a   :  { %v149_v15 = vsel %vm148_vm1, %v142_v10, %v147_v14 }
  0x6b   :  { %151 = vst [vmem:[#allocation3 + $0x38] sm:$0xff] %v149_v15 }
  0x6e   :  { %v112_v24 = vpop.permute.xlu2 %111 }
  0x6f   :  { %v115_v48 = vrot.slane %v112_v24, 4 }
  0x72   :  { %v351_v42 = vld [vmem:[#allocation3 + $0x34] sm:$0xf0]  ;;  %v338_v43 = vld [vmem:[#allocation3 + $0x38] sm:$0xf0] }
  0x74   :  { %v157_v16 = vpop.permute.xlu0 %156  ;;  %v127_v17 = vpop.permute.xlu1 %126 }
  0x75   :  { %v160_v20 = vrot.slane %v157_v16, 4  ;;  %v130_v21 = vrot.slane %v127_v17, 4 }
  0x76   :  { %v69_v41 = vpop.permute.xlu2 %68 }
  0x77   :  { %v71_v49 = vrot.slane %v69_v41, 4 }
  0x7c   :  { %v159_v18 = vpop.permute.xlu0 %158 }
  0x7d   :  { %v129_v19 = vpop.permute.xlu1 %128  ;;  %v161_v22 = vrot.slane %v159_v18, 4 }
  0x7e   :  { %v131_v23 = vrot.slane %v129_v19, 4  ;;  %v51_v7 = vpop.permute.xlu2 %50 }
  0x7f   :  { %v162_v25 = vsel %vm56_vm0, %v160_v20, %v161_v22  ;;  %v54_v10 = vrot.slane %v51_v7, 4  ;;  %v344_v22 = vld [vmem:[#allocation3 + $0x4] sm:$0xf] }
  0x80   :  { %v132_v26 = vsel %vm56_vm0, %v130_v21, %v131_v23  ;;  %v164_v27 = vsel %vm163_vm2, %v157_v16, %v162_v25  ;;  %v312_v21 = vld [vmem:[#allocation3] sm:$0xf]  ;;  %v308_v23 = vld [vmem:[%s436_s2] sm:$0xf] }
  0x81   :  { %v134_v28 = vsel %vm133_vm3, %v127_v17, %v132_v26  ;;  %v220_v29 = vunpack.c.l.b16 %v164_v27  ;;  %v221_v30 = vunpack.c.h.b16 %v164_v27 }
  0x82   :  { %136 = vst [vmem:[#allocation3 + $0x30] sm:$0xff] %v134_v28 }
  0x83   :  { %v230_v31 = vpack.c.b16 %v220_v29, %v220_v29  ;;  %v231_v32 = vpack.c.b16 %v221_v30, %v221_v30 }
  0x84   :  { %v97_v34 = vpop.permute.xlu0 %96 }
  0x85   :  { %v99_v33 = vpop.permute.xlu1 %98  ;;  %v100_v36 = vrot.slane %v97_v34, 4  ;;  %v246_v37 = vsel %vm56_vm0, %v230_v31, 0  ;;  %v249_v38 = vsel %vm56_vm0, %v231_v32, 0 }
  0x86   :  { %v101_v35 = vrot.slane %v99_v33, 4  ;;  %254 = vmatpush.bf16.msra.mxu0 %v246_v37  ;;  %268 = vmatpush.bf16.msra.mxu1 %v249_v38 }
  0x88   :  { %v102_v39 = vsel %vm56_vm0, %v100_v36, %v101_v35 }
  0x89   :  { %v104_v40 = vsel %vm103_vm4, %v97_v34, %v102_v39  ;;  %v336_v44 = vld [vmem:[#allocation3 + $0x30] sm:$0xf]  ;;  %v350_v45 = vld [vmem:[#allocation3 + $0x34] sm:$0xf] }
  0x8a   :  { %106 = vst [vmem:[#allocation3 + $0x20] sm:$0xff] %v104_v40  ;;  %v337_v46 = vor.u32 %v351_v42, %v336_v44  ;;  %v341_v47 = vor.u32 %v350_v45, %v338_v43  ;;  %v188_v40 = vpop.permute.xlu2 %187 }
  0x8c   :  { %v114_v50 = vpop.permute.xlu0 %113  ;;  %255 = vmatpush.bf16.msra.mxu0 %v337_v46  ;;  %269 = vmatpush.bf16.msra.mxu1 %v341_v47 }
  0x8d   :  { %v67_v51 = vpop.permute.xlu1 %66  ;;  %v116_v52 = vrot.slane %v114_v50, 4 }
  0x8e   :  { %v70_v53 = vrot.slane %v67_v51, 4 }
  0x8f   :  { %v117_v56 = vsel %vm56_vm0, %v115_v48, %v116_v52 }
  0x90   :  { %v72_v57 = vsel %vm56_vm0, %v70_v53, %v71_v49  ;;  %v119_v59 = vsel %vm118_vm5, %v112_v24, %v117_v56  ;;  %v352_v24 = vld [vmem:[%s436_s2] sm:$0x30] }
  0x91   :  { %v74_v60 = vsel %vm73_vm6, %v67_v51, %v72_v57  ;;  %121 = vst [vmem:[#allocation3 + $0x28] sm:$0xff] %v119_v59  ;;  %v328_v2 = vld [vmem:[#allocation3 + $0x20] sm:$0xf]  ;;  %v348_v5 = vld [vmem:[#allocation3 + $0x24] sm:$0xf]  ;;  %v309_v29 = vor.u32 %v352_v24, %v308_v23 }
  0x92   :  { %76 = vst [vmem:[#allocation3 + $0x10] sm:$0xff] %v74_v60 }
  0x94   :  { %v82_v61 = vpop.permute.xlu0 %81 }
  0x95   :  { %v84_v62 = vpop.permute.xlu1 %83  ;;  %v85_v63 = vrot.slane %v82_v61, 4 }
  0x96   :  { %v86_v0 = vrot.slane %v84_v62, 4 }
  0x98   :  { %v87_v1 = vsel %vm56_vm0, %v85_v63, %v86_v0  ;;  %v349_v4 = vld [vmem:[#allocation3 + $0x24] sm:$0xf0]  ;;  %v330_v6 = vld [vmem:[#allocation3 + $0x28] sm:$0xf0] }
  0x99   :  { %v89_v3 = vsel %vm88_vm7, %v82_v61, %v87_v1  ;;  %v329_v8 = vor.u32 %v349_v4, %v328_v2  ;;  %v333_v9 = vor.u32 %v348_v5, %v330_v6  ;;  %v320_v14 = vld [vmem:[#allocation3 + $0x10] sm:$0xf]  ;;  %v346_v17 = vld [vmem:[#allocation3 + $0x14] sm:$0xf] }
  0x9a   :  { %91 = vst [vmem:[#allocation3 + $0x18] sm:$0xff] %v89_v3 }
  0x9b   :  { %256 = vmatpush.bf16.msra.mxu0 %v329_v8  ;;  %270 = vmatpush.bf16.msra.mxu1 %v333_v9 }
  0x9c   :  { %v53_v11 = vpop.permute.xlu0 %52 }
  0x9d   :  { %v55_v12 = vrot.slane %v53_v11, 4  ;;  %v183_v30 = vpop.permute.xlu1 %182 }
  0x9f   :  { %v57_v13 = vsel %vm56_vm0, %v54_v10, %v55_v12 }
  0xa0   :  { %v59_v15 = vsel %vm58_vm8, %v51_v7, %v57_v13 }
  0xa1   :  { %v347_v16 = vld [vmem:[#allocation3 + $0x14] sm:$0xf0]  ;;  %v322_v18 = vld [vmem:[#allocation3 + $0x18] sm:$0xf0]  ;;  %61 = vst [vmem:[#allocation3 + $0x8] sm:$0xff] %v59_v15 }
  0xa2   :  { %v321_v19 = vor.u32 %v347_v16, %v320_v14  ;;  %v325_v20 = vor.u32 %v346_v17, %v322_v18 }
  0xa4   :  { %257 = vmatpush.bf16.msra.mxu0 %v321_v19  ;;  %271 = vmatpush.bf16.msra.mxu1 %v325_v20 }
  0xa8   :  { %v345_v25 = vld [vmem:[#allocation3 + $0x4] sm:$0xf0]  ;;  %v314_v26 = vld [vmem:[#allocation3 + $0x8] sm:$0xf0] }
  0xa9   :  { %v313_v27 = vor.u32 %v345_v25, %v312_v21  ;;  %v317_v28 = vor.u32 %v344_v22, %v314_v26 }
  0xab   :  { %258 = vmatpush.bf16.msra.mxu0 %v313_v27  ;;  %272 = vmatpush.bf16.msra.mxu1 %v317_v28 }
  0xae   :  { %342 = vmatmul.msk.bf16.vlgmr.msra.gmra.mxu0 %vm240_vm9, %v309_v29  ;;  %343 = vmatmul.msk.bf16.vlgmr.msra.gmra.mxu1 %vm240_vm9, %v309_v29 }
 0x12b   :  { %v260_v31 = vpop.f32.mrf.mxu0  ;;  %v274_v32 = vpop.f32.mrf.mxu1 }
 0x12c   :  { %v261_v33 = vadd.f32 %v260_v31, %v183_v30  ;;  %v275_v34 = vadd.f32 %v274_v32, %v183_v30 }
 0x12e   :  { %vm279_vm10 = vcmp.ge.f32.partialorder %v261_v33, 0.0  ;;  %v283_v35 = vmul.f32 0.01, %v261_v33  ;;  %vm280_vm11 = vcmp.ge.f32.partialorder %v275_v34, 0.0  ;;  %v284_v36 = vmul.f32 0.01, %v275_v34 }
 0x130   :  { %v287_v37 = vsel %vm279_vm10, %v261_v33, %v283_v35  ;;  %v288_v38 = vsel %vm280_vm11, %v275_v34, %v284_v36 }
 0x131   :  { %v291_v39 = vpack.c.bf16 %v288_v38, %v287_v37 }
 0x133   :  { %293 = vst [vmem:[%s437_s4] sm:$0xff] %v291_v39  ;;  %v262_v41 = vpop.f32.mrf.mxu0  ;;  %v276_v42 = vpop.f32.mrf.mxu1 }
 0x134   :  { %v263_v43 = vadd.f32 %v262_v41, %v188_v40  ;;  %v277_v44 = vadd.f32 %v276_v42, %v188_v40 }
 0x136   :  { %vm281_vm12 = vcmp.ge.f32.partialorder %v263_v43, 0.0  ;;  %v285_v45 = vmul.f32 0.01, %v263_v43  ;;  %vm282_vm13 = vcmp.ge.f32.partialorder %v277_v44, 0.0  ;;  %v286_v46 = vmul.f32 0.01, %v277_v44 }
 0x138   :  { %v289_v47 = vsel %vm281_vm12, %v263_v43, %v285_v45  ;;  %v290_v48 = vsel %vm282_vm13, %v277_v44, %v286_v46 }
 0x139   :  { %v292_v49 = vpack.c.bf16 %v290_v48, %v289_v47 }
 0x13b   :  { %294 = vst [vmem:[%s437_s4 + $0x8] sm:$0x33] %v292_v49 }

// kernel: e2e_varnet_forward.36
= control target key start
LH: loop header
LB: loop body
LE: loop exit
PB: predicated region body
PF: predicated region fallthrough
CT: control target
= control target key end

     0   :  { %s317_s23 = smov 64   ;;  %vm130_vm0 = vcmask 1041408   ;;  %vm131_vm1 = vcmask 1045508   ;;  %v318_v31 = vmov 0   ;;  %vm153_vm3 = vcmask 1043456   ;;  %s377_s0 = inlined_call_operand.vmem [shape: bf16[1,12,384], index: 0, kind: input, shape index: {}, may-alias: {0,1}]   ;;  %s378_s1 = inlined_call_operand.vmem [shape: bf16[1,12,384], index: 1, kind: input, shape index: {}, may-alias: {0,1}]   ;;  %s379_s2 = inlined_call_operand.vmem [shape: bf16[12,36], index: 2, kind: input, shape index: {}]   ;;  %s380_s3 = inlined_call_operand.vmem [shape: f32[12,1], index: 3, kind: input, shape index: {}]   ;;  %s381_s4 = inlined_call_operand.vmem [shape: bf16[1,12,256], index: 4, kind: output, shape index: {}]  }
   0x1   :  { %v41_v0 = vld [vmem:[%s377_s0] sm:$0xff]  ;;  %v43_v1 = vld [vmem:[%s377_s0 + $0xc] sm:$0xff]  ;;  %v284_v3 = vld [vmem:[%s378_s1 + $0x8] sm:$0xf]  ;;  %315 = vset.pattern.permute.xlu2 %v318_v31  ;;  %316 = vset.pattern.permute.xlu0 %v318_v31  ;;  %vm155_vm4 = vcmask 523264   ;;  %vm216_vm5 = vcmask 293888  }
   0x2   :  { %v133_v2 = vrot.slane %v41_v0, 6  ;;  %112 = vst [vmem:[#allocation2] sm:$0xff] %v41_v0  ;;  %v285_v4 = vld [vmem:[%s378_s1 + $0x14] sm:$0xf]  ;;  %vm132_vm2 = vmor %vm130_vm0, %vm131_vm1  ;;  %v174_v29 = vld [vmem:[%s380_s3] sm:$0xff] }
   0x3   :  { %44 = vst [vmem:[#allocation4 + $0x8] sm:$0xff] %v43_v1  ;;  %178 = vperm.xlu2 %315, %v174_v29   ;;  %v175_v37 = vld [vmem:[%s380_s3 + $0x8] sm:$0xf]  ;;  %v288_v53 = vld [vmem:[%s379_s2] sm:$0xf] }
   0x4   :  { %141 = vrot.lane.b32.xlu1 %v133_v2, %s317_s23  ;;  %71 = vst [vmem:[#allocation5] sm:$0xf] %v284_v3  ;;  %v135_v8 = vrot.slane %v133_v2, 4  ;;  %v312_v54 = vld [vmem:[%s379_s2] sm:$0x30] }
   0x5   :  { %73 = vst [vmem:[#allocation5 + $0x4] sm:$0xf] %v285_v4  ;;  %v289_v57 = vor.u32 %v312_v54, %v288_v53 }
   0x6   :  { %120 = vst [vmem:[#allocation3] sm:$0xff] %v41_v0 }
   0xa   :  { %v111_v5 = vld [vmem:[#allocation4 + $0x8] sm:$0x33] }
   0xb   :  { %113 = vst [vmem:[#allocation2 + $0xc] sm:$0x33] %v111_v5  ;;  %v114_v6 = vld [vmem:[#allocation5] sm:$0xf]  ;;  %183 = vperm.xlu2 %315, %v175_v37  }
   0xc   :  { %116 = vst [vmem:[#allocation2 + $0x8] sm:$0xf] %v114_v6  ;;  %v115_v7 = vld [vmem:[#allocation5 + $0x4] sm:$0x3] }
   0xd   :  { %117 = vst [vmem:[#allocation2 + $0x14] sm:$0x3] %v115_v7  ;;  %v292_v49 = vld [vmem:[#allocation3] sm:$0xf]  ;;  %v308_v51 = vld [vmem:[#allocation3 + $0x4] sm:$0xf] }
  0x12   :  { %v124_v9 = vld [vmem:[#allocation2 + $0xc] sm:$0x33] }
  0x13   :  { %v136_v10 = vrot.slane %v124_v9, 6  ;;  %v123_v11 = vld [vmem:[#allocation2 + $0x8] sm:$0xf]  ;;  %v119_v19 = vld [vmem:[#allocation2 + $0xc] sm:$0x33] }
  0x14   :  { %v134_v12 = vrot.slane %v123_v11, 6  ;;  %v125_v13 = vld [vmem:[#allocation2 + $0x14] sm:$0x3]  ;;  %121 = vst [vmem:[#allocation3 + $0x8] sm:$0x33] %v119_v19  ;;  %v163_v20 = vld [vmem:[#allocation2 + $0x4] sm:$0xff] }
  0x15   :  { %v137_v14 = vsel %vm132_vm2, %v135_v8, %v136_v10  ;;  %v139_v16 = vrot.slane %v125_v13, 6  ;;  %v164_v18 = vld [vmem:[#allocation2 + $0x10] sm:$0x33]  ;;  %165 = vst [vmem:[#allocation3 + $0x18] sm:$0xff] %v163_v20 }
  0x16   :  { %145 = vrot.lane.b32.xlu0 %v137_v14, %s317_s23  ;;  %143 = vrot.lane.b32.xlu1 %v134_v12, %s317_s23  ;;  %v138_v15 = vrot.slane %v134_v12, 4  ;;  %166 = vst [vmem:[#allocation3 + $0x20] sm:$0x33] %v164_v18 }
  0x18   :  { %v140_v17 = vsel %vm132_vm2, %v138_v15, %v139_v16 }
  0x1c   :  { %v311_v43 = vld [vmem:[#allocation3 + $0x14] sm:$0xf0]  ;;  %v302_v44 = vld [vmem:[#allocation3 + $0x18] sm:$0xf0] }
  0x1d   :  { %v171_v21 = vld [vmem:[#allocation3 + $0x20] sm:$0x33] }
  0x1e   :  { %147 = vrot.lane.b32.xlu0 %v140_v17, %s317_s23  ;;  %v204_v22 = vunpack.c.l.b16 %v171_v21  ;;  %v205_v23 = vunpack.c.h.b16 %v171_v21 }
  0x20   :  { %v210_v24 = vpack.c.b16 %v204_v22, %v204_v22  ;;  %v211_v25 = vpack.c.b16 %v205_v23, %v205_v23 }
  0x22   :  { %v222_v26 = vsel %vm130_vm0, %v210_v24, 0  ;;  %v225_v27 = vsel %vm130_vm0, %v211_v25, 0 }
  0x23   :  { %232 = vmatpush.bf16.msra.mxu0 %v222_v26  ;;  %246 = vmatpush.bf16.msra.mxu1 %v225_v27 }
  0x5d   :  { %v179_v58 = vpop.permute.xlu2 %178 }
  0x65   :  { %v184_v4 = vpop.permute.xlu2 %183 }
  0x76   :  { %v142_v28 = vpop.permute.xlu1 %141 }
  0x77   :  { %v149_v30 = vrot.slane %v142_v28, 4 }
  0x88   :  { %v146_v32 = vpop.permute.xlu0 %145  ;;  %v144_v33 = vpop.permute.xlu1 %143 }
  0x89   :  { %v150_v34 = vrot.slane %v144_v33, 4  ;;  %v151_v39 = vrot.slane %v146_v32, 4 }
  0x8b   :  { %v154_v35 = vsel %vm153_vm3, %v149_v30, %v150_v34 }
  0x8c   :  { %v156_v36 = vsel %vm155_vm4, %v142_v28, %v154_v35 }
  0x8d   :  { %161 = vst [vmem:[#allocation3 + $0x8] sm:$0xcc] %v156_v36 }
  0x90   :  { %v148_v38 = vpop.permute.xlu0 %147 }
  0x91   :  { %v152_v40 = vrot.slane %v148_v38, 4 }
  0x93   :  { %v157_v41 = vsel %vm153_vm3, %v151_v39, %v152_v40 }
  0x94   :  { %v158_v42 = vsel %vm155_vm4, %v146_v32, %v157_v41  ;;  %v309_v50 = vld [vmem:[#allocation3 + $0x4] sm:$0xf0]  ;;  %v294_v52 = vld [vmem:[#allocation3 + $0x8] sm:$0xf0] }
  0x95   :  { %162 = vst [vmem:[#allocation3 + $0x10] sm:$0xff] %v158_v42  ;;  %v293_v55 = vor.u32 %v309_v50, %v292_v49  ;;  %v297_v56 = vor.u32 %v308_v51, %v294_v52 }
  0x9c   :  { %v300_v45 = vld [vmem:[#allocation3 + $0x10] sm:$0xf]  ;;  %v310_v46 = vld [vmem:[#allocation3 + $0x14] sm:$0xf] }
  0x9d   :  { %v301_v47 = vor.u32 %v311_v43, %v300_v45  ;;  %v305_v48 = vor.u32 %v310_v46, %v302_v44 }
  0x9f   :  { %233 = vmatpush.bf16.msra.mxu0 %v301_v47  ;;  %247 = vmatpush.bf16.msra.mxu1 %v305_v48 }
  0xa3   :  { %234 = vmatpush.bf16.msra.mxu0 %v293_v55  ;;  %248 = vmatpush.bf16.msra.mxu1 %v297_v56 }
  0xa6   :  { %306 = vmatmul.msk.bf16.vlgmr.msra.gmra.mxu0 %vm216_vm5, %v289_v57  ;;  %307 = vmatmul.msk.bf16.vlgmr.msra.gmra.mxu1 %vm216_vm5, %v289_v57 }
 0x123   :  { %v236_v59 = vpop.f32.mrf.mxu0  ;;  %v250_v60 = vpop.f32.mrf.mxu1 }
 0x124   :  { %v237_v61 = vadd.f32 %v236_v59, %v179_v58  ;;  %v251_v62 = vadd.f32 %v250_v60, %v179_v58 }
 0x126   :  { %vm255_vm6 = vcmp.ge.f32.partialorder %v237_v61, 0.0  ;;  %v259_v63 = vmul.f32 0.01, %v237_v61  ;;  %vm256_vm7 = vcmp.ge.f32.partialorder %v251_v62, 0.0  ;;  %v260_v0 = vmul.f32 0.01, %v251_v62 }
 0x128   :  { %v263_v1 = vsel %vm255_vm6, %v237_v61, %v259_v63  ;;  %v264_v2 = vsel %vm256_vm7, %v251_v62, %v260_v0 }
 0x129   :  { %v267_v3 = vpack.c.bf16 %v264_v2, %v263_v1 }
 0x12b   :  { %269 = vst [vmem:[%s381_s4] sm:$0xff] %v267_v3  ;;  %v238_v5 = vpop.f32.mrf.mxu0  ;;  %v252_v6 = vpop.f32.mrf.mxu1 }
 0x12c   :  { %v239_v7 = vadd.f32 %v238_v5, %v184_v4  ;;  %v253_v8 = vadd.f32 %v252_v6, %v184_v4 }
 0x12e   :  { %vm257_vm8 = vcmp.ge.f32.partialorder %v239_v7, 0.0  ;;  %v261_v9 = vmul.f32 0.01, %v239_v7  ;;  %vm258_vm9 = vcmp.ge.f32.partialorder %v253_v8, 0.0  ;;  %v262_v10 = vmul.f32 0.01, %v253_v8 }
 0x130   :  { %v265_v11 = vsel %vm257_vm8, %v239_v7, %v261_v9  ;;  %v266_v12 = vsel %vm258_vm9, %v253_v8, %v262_v10 }
 0x131   :  { %v268_v13 = vpack.c.bf16 %v266_v12, %v265_v11 }
 0x133   :  { %270 = vst [vmem:[%s381_s4 + $0x8] sm:$0x33] %v268_v13 }

// kernel: squeeze.11
= control target key start
LH: loop header
LB: loop body
LE: loop exit
PB: predicated region body
PF: predicated region fallthrough
CT: control target
= control target key end

     0   :  { %s8_s6 = smov 3  ;;  %s11_s7 = smov 12  ;;  %vm13_vm0 = vcmask 1043458   ;;  %vm3_vm1 = vcmask 130048   ;;  %vm17_vm2 = vcmask 1048448   ;;  %vm31_vm3 = vcmask 917248   ;;  %s214_s0 = inlined_call_operand.vmem [shape: f32[1,1,1,2,16,16], index: 0, kind: input, shape index: {}]   ;;  %s215_s1 = inlined_call_operand.vmem [shape: f32[1,1,2,256], index: 1, kind: output, shape index: {}]  }
   0x1   :  { %v117_v0 = vld [vmem:[%s214_s0 + $0x7] ss:$16 sm:%s8_s6]   ;;  %v118_v1 = vld [vmem:[%s214_s0 - $0x11] ss:$16 sm:%s11_s7]   ;;  %s36_s12 = smov 3  ;;  %s39_s15 = smov 12 }
   0x2   :  { %v14_v2 = vsel %vm13_vm0, %v118_v1, %v117_v0  ;;  %v121_v3 = vld [vmem:[%s214_s0 + $0x5] ss:$16 sm:%s36_s12]   ;;  %s139_s16 = smov 112   ;;  %v122_v4 = vld [vmem:[%s214_s0 - $0x13] ss:$16 sm:%s39_s15]   ;;  %s22_s19 = smov 3 }
   0x3   :  { %15 = vrot.lane.b32.xlu0 %v14_v2, %s139_s16  ;;  %s25_s20 = smov 12  ;;  %v42_v5 = vsel %vm13_vm0, %v122_v4, %v121_v3  ;;  %v119_v6 = vld [vmem:[%s214_s0 + $0x6] ss:$16 sm:%s22_s19]   ;;  %s50_s23 = smov 3  ;;  %vm45_vm4 = vcmask 786048   ;;  %vm59_vm5 = vcmask 654848  }
   0x4   :  { %s140_s24 = smov 80   ;;  %v120_v7 = vld [vmem:[%s214_s0 - $0x12] ss:$16 sm:%s25_s20]   ;;  %s53_s27 = smov 12  ;;  %v123_v8 = vld [vmem:[%s214_s0 + $0x4] ss:$16 sm:%s50_s23]  }
   0x5   :  { %43 = vrot.lane.b32.xlu1 %v42_v5, %s140_s24  ;;  %v124_v9 = vld [vmem:[%s214_s0 - $0x14] ss:$16 sm:%s53_s27]   ;;  %s92_s3 = smov 3  ;;  %s64_s4 = smov 3  ;;  %v28_v10 = vsel %vm13_vm0, %v120_v7, %v119_v6  ;;  %vm73_vm6 = vcmask 523648   ;;  %vm87_vm7 = vcmask 392448  }
   0x6   :  { %v125_v11 = vld [vmem:[%s214_s0 + $0x3] ss:$16 sm:%s64_s4]   ;;  %s67_s7 = smov 12  ;;  %s95_s8 = smov 12  ;;  %v56_v13 = vsel %vm13_vm0, %v124_v9, %v123_v8  ;;  %v129_v15 = vld [vmem:[%s214_s0 + $0x1] ss:$16 sm:%s92_s3]  }
   0x7   :  { %v126_v12 = vld [vmem:[%s214_s0 - $0x15] ss:$16 sm:%s67_s7]   ;;  %s78_s11 = smov 3  ;;  %s81_s12 = smov 12  ;;  %v130_v16 = vld [vmem:[%s214_s0 - $0x17] ss:$16 sm:%s95_s8]  }
   0x8   :  { %v70_v14 = vsel %vm13_vm0, %v126_v12, %v125_v11  ;;  %s141_s13 = smov 96   ;;  %s142_s16 = smov 48   ;;  %v127_v17 = vld [vmem:[%s214_s0 + $0x2] ss:$16 sm:%s78_s11]   ;;  %v128_v18 = vld [vmem:[%s214_s0 - $0x16] ss:$16 sm:%s81_s12]   ;;  %v98_v19 = vsel %vm13_vm0, %v130_v16, %v129_v15 }
   0x9   :  { %71 = vrot.lane.b32.xlu2 %v70_v14, %s142_s16  ;;  %s143_s21 = smov 64   ;;  %v84_v20 = vsel %vm13_vm0, %v128_v18, %v127_v17  ;;  %s144_s24 = smov 16   ;;  %v2_v21 = vld [vmem:[%s214_s0] ss:$8 sm:$0xf]   ;;  %vm101_vm8 = vcmask 261248  }
   0xa   :  { %s145_s25 = smov 32   ;;  %4 = vst.msk [vmem:[#allocation0] ss:$8 sm:$0x3] %vm3_vm1, %v2_v21  }
   0xb   :  { %29 = vrot.lane.b32.xlu0 %v28_v10, %s141_s13  ;;  %6 = vst.msk [vmem:[#allocation0 - $0xf] ss:$8 sm:$0xc] %vm3_vm1, %v2_v21  }
   0xd   :  { %57 = vrot.lane.b32.xlu1 %v56_v13, %s143_s21 }
  0x11   :  { %85 = vrot.lane.b32.xlu2 %v84_v20, %s145_s25 }
  0x13   :  { %99 = vrot.lane.b32.xlu0 %v98_v19, %s144_s24 }
  0x63   :  { %v72_v22 = vpop.permute.xlu2 %71  }
  0x6b   :  { %v86_v23 = vpop.permute.xlu2 %85  }
  0x75   :  { %v16_v24 = vpop.permute.xlu0 %15  }
  0x76   :  { %18 = vst.msk [vmem:[#allocation0] sm:$0x3] %vm17_vm2, %v16_v24  }
  0x77   :  { %20 = vst.msk [vmem:[#allocation0 + $0x6] sm:$0xc] %vm17_vm2, %v16_v24   ;;  %v44_v25 = vpop.permute.xlu1 %43  }
  0x7d   :  { %v30_v26 = vpop.permute.xlu0 %29  }
  0x7e   :  { %32 = vst.msk [vmem:[#allocation0] sm:$0x3] %vm31_vm3, %v30_v26  }
  0x7f   :  { %34 = vst.msk [vmem:[#allocation0 + $0x6] sm:$0xc] %vm31_vm3, %v30_v26   ;;  %v58_v27 = vpop.permute.xlu1 %57  }
  0x80   :  { %46 = vst.msk [vmem:[#allocation0] sm:$0x3] %vm45_vm4, %v44_v25  }
  0x81   :  { %48 = vst.msk [vmem:[#allocation0 + $0x6] sm:$0xc] %vm45_vm4, %v44_v25  }
  0x82   :  { %60 = vst.msk [vmem:[#allocation0] sm:$0x3] %vm59_vm5, %v58_v27  }
  0x83   :  { %62 = vst.msk [vmem:[#allocation0 + $0x6] sm:$0xc] %vm59_vm5, %v58_v27  }
  0x84   :  { %74 = vst.msk [vmem:[#allocation0] sm:$0x3] %vm73_vm6, %v72_v22  }
  0x85   :  { %76 = vst.msk [vmem:[#allocation0 + $0x6] sm:$0xc] %vm73_vm6, %v72_v22   ;;  %v100_v28 = vpop.permute.xlu0 %99  }
  0x86   :  { %88 = vst.msk [vmem:[#allocation0] sm:$0x3] %vm87_vm7, %v86_v23  }
  0x87   :  { %90 = vst.msk [vmem:[#allocation0 + $0x6] sm:$0xc] %vm87_vm7, %v86_v23  }
  0x88   :  { %102 = vst.msk [vmem:[#allocation0] sm:$0x3] %vm101_vm8, %v100_v28  }
  0x89   :  { %104 = vst.msk [vmem:[#allocation0 + $0x6] sm:$0xc] %vm101_vm8, %v100_v28  }
  0x8f   :  { %v107_v29 = vld [vmem:[#allocation0] sm:$0x3] }
  0x90   :  { %110 = vst [vmem:[%s215_s1] sm:$0x3] %v107_v29  ;;  %v112_v30 = vld [vmem:[#allocation0 + $0x8] sm:$0x3] }
  0x91   :  { %131 = vst [vmem:[%s215_s1 + $0x2] sm:$0x3] %v112_v30 }

// kernel: e2e_varnet_forward.39
= control target key start
LH: loop header
LB: loop body
LE: loop exit
PB: predicated region body
PF: predicated region fallthrough
CT: control target
= control target key end

     0   :  { %v158_v2 = vmov 0   ;;  %vm63_vm0 = vcmask 1043456   ;;  %vm59_vm1 = vcmask 64512   ;;  %vm135_vm2 = vcmask 1041408   ;;  %s204_s0 = inlined_call_operand.vmem [shape: bf16[1,8,640], index: 0, kind: input, shape index: {}, may-alias: {0,1}]   ;;  %s205_s1 = inlined_call_operand.vmem [shape: bf16[1,8,640], index: 1, kind: input, shape index: {}, may-alias: {0,1}]   ;;  %s206_s3 = inlined_call_operand.vmem [shape: f32[2,1], index: 3, kind: input, shape index: {}]   ;;  %s207_s2 = inlined_call_operand.vmem [shape: bf16[2,8], index: 2, kind: input, shape index: {}]   ;;  %s208_s4 = inlined_call_operand.vmem [shape: f32[1,2,512], index: 4, kind: output, shape index: {}]  }
   0x1   :  { %v40_v0 = vld [vmem:[%s204_s0] sm:$0xff]  ;;  %v41_v1 = vld [vmem:[%s204_s0 + $0x8] sm:$0xff]  ;;  %157 = vset.pattern.permute.xlu0 %v158_v2  ;;  %vm137_vm3 = vcmask 1045508  }
   0x2   :  { %v51_v3 = vunpack.c.l.b16 %v40_v0  ;;  %v52_v4 = vunpack.c.h.b16 %v40_v0  ;;  %v53_v5 = vunpack.c.l.b16 %v41_v1  ;;  %v54_v6 = vunpack.c.h.b16 %v41_v1  ;;  %v43_v7 = vld [vmem:[%s206_s3] sm:$0x3] }
   0x3   :  { %46 = vperm.xlu0 %157, %v43_v7   ;;  %v42_v16 = vld [vmem:[%s207_s2] sm:$0x1] }
   0x4   :  { %v55_v8 = vpack.c.b16 %v51_v3, %v51_v3  ;;  %v56_v9 = vpack.c.b16 %v52_v4, %v52_v4  ;;  %v57_v10 = vpack.c.b16 %v53_v5, %v53_v5  ;;  %v58_v11 = vpack.c.b16 %v54_v6, %v54_v6 }
   0x6   :  { %v65_v12 = vsel %vm63_vm0, %v55_v8, 0  ;;  %v68_v13 = vsel %vm63_vm0, %v56_v9, 0  ;;  %v71_v14 = vsel %vm63_vm0, %v57_v10, 0  ;;  %v74_v15 = vsel %vm63_vm0, %v58_v11, 0 }
   0x7   :  { %83 = vmatpush.bf16.msra.mxu0 %v65_v12  ;;  %96 = vmatpush.bf16.msra.mxu1 %v68_v13 }
   0x8   :  { %109 = vmatpush.bf16.msra.mxu2 %v71_v14  ;;  %122 = vmatpush.bf16.msra.mxu3 %v74_v15 }
   0xa   :  { %152 = vmatmul.msk.bf16.vlgmr.msra.gmra.mxu0 %vm59_vm1, %v42_v16  ;;  %153 = vmatmul.msk.bf16.vlgmr.msra.gmra.mxu1 %vm59_vm1, %v42_v16 }
   0xb   :  { %154 = vmatmul.msk.bf16.vlgmr.msra.gmra.mxu2 %vm59_vm1, %v42_v16  ;;  %155 = vmatmul.msk.bf16.vlgmr.msra.gmra.mxu3 %vm59_vm1, %v42_v16 }
  0x75   :  { %v47_v19 = vpop.permute.xlu0 %46 }
  0x87   :  { %v85_v17 = vpop.f32.mrf.mxu0  ;;  %v98_v18 = vpop.f32.mrf.mxu1 }
  0x88   :  { %v99_v20 = vadd.f32 %v98_v18, %v47_v19  ;;  %v86_v23 = vadd.f32 %v85_v17, %v47_v19 }
  0x8a   :  { %v132_v24 = vrot.slane %v99_v20, 6 }
  0x8c   :  { %v136_v31 = vsel %vm135_vm2, %v86_v23, %v132_v24 }
  0x8e   :  { %v111_v21 = vpop.f32.mrf.mxu2  ;;  %v124_v22 = vpop.f32.mrf.mxu3 }
  0x8f   :  { %v112_v25 = vadd.f32 %v111_v21, %v47_v19  ;;  %v125_v26 = vadd.f32 %v124_v22, %v47_v19  ;;  %v87_v27 = vpop.f32.mrf.mxu0  ;;  %v100_v28 = vpop.f32.mrf.mxu1 }
  0x91   :  { %v133_v29 = vrot.slane %v112_v25, 4  ;;  %v134_v30 = vrot.slane %v125_v26, 2 }
  0x93   :  { %v138_v32 = vsel %vm137_vm3, %v133_v29, %v134_v30 }
  0x94   :  { %v139_v33 = vsel %vm63_vm0, %v136_v31, %v138_v32 }
  0x95   :  { %141 = vst [vmem:[%s208_s4] sm:$0xff] %v139_v33 }
  0x96   :  { %v113_v34 = vpop.f32.mrf.mxu2  ;;  %v126_v35 = vpop.f32.mrf.mxu3 }

// kernel: e2e_varnet_forward.40
= control target key start
LH: loop header
LB: loop body
LE: loop exit
PB: predicated region body
PF: predicated region fallthrough
CT: control target
= control target key end

     0   :  { %s981_s18 = smov 0   ;;  %s983_s19 = smov 0   ;;  %s1032_s0 = inlined_call_operand.vmem [shape: f32[1,10,1,256], index: 0, kind: input, shape index: {}]   ;;  %s1033_s1 = inlined_call_operand.vmem [shape: f32[1,10,1,256], index: 1, kind: input, shape index: {}]   ;;  %s1034_s2 = inlined_call_operand.vmem [shape: f32[1,1,2,256], index: 2, kind: input, shape index: {}]   ;;  %s1035_s3 = inlined_call_operand.vmem [shape: f32[1,1,2,256], index: 3, kind: input, shape index: {}]   ;;  %s1036_s4 = inlined_call_operand.vmem [shape: f32[1,10,1,2,256], index: 4, kind: output, shape index: {0}]   ;;  %s1037_s5 = inlined_call_operand.vmem [shape: f32[1,10,1,2,256], index: 5, kind: output, shape index: {1}]  }
   0x1   :  { %s985_s20 = smov 0  }
   0x2 LB: > { %s31_s21 = sadd.s32 1, %s945_s19  ;;  %p892_p0 = scmp.ge.s32.totalorder %s949_s20, 1  ;;  %s949_s20 = sphi %s985_s20, %s16_s20   ;;  %s945_s19 = sphi %s983_s19, %s1039_s19   ;;  %s941_s18 = sphi %s981_s18, %s1038_s18  }
   0x3   : > { %p32_p1 = scmp.ge.s32.totalorder %s31_s21, 10  ;;  %p320_p2 = scmp.lt.s32.totalorder %s949_s20, 11 }
   0x5   : > { %s1041_s21 = smov (%p32_p1, %s31_s21), 0  ;;  %p321_p3 = pnand %p892_p0, %p320_p2 }
   0x6   : > { %p433_p4 = scmp.lt.s32.totalorder (!%p321_p3), %s941_s18, 9 }
   0x7   : > { %324 = sbr.rel (%p321_p3) target bundleno = 54 (0x36), region = 36 }
   0xc   : > { %v530_v0 = vld [vmem:[%s1034_s2] sm:$0xf]  ;;  %s1043_s18 = smov (!%p433_p4, %s941_s18), 9  ;;  %vm563_vm0 = vcmask 1041408  }
   0xd   : > { %538 = vst [vmem:[#allocation1] ss:$4 sm:$0xff] %v530_v0  ;;  %s893_s24 = sshll.u32 %s1043_s18, 1  ;;  %v531_v1 = vld [vmem:[%s1035_s3] sm:$0xf]  ;;  %s901_s8 = sshll.u32 %s1043_s18, 2 }
   0xe   : > { %s445_s29 = scalar_lea.vmem %s1032_s0, %s893_s24  ;;  %s462_s7 = scalar_lea.vmem %s1033_s1, %s893_s24 }
   0xf   : > { %v528_v4 = vld [vmem:[%s445_s29] sm:$0x3]  ;;  %s508_s11 = scalar_lea.vmem %s1036_s4, %s901_s8  ;;  %s526_s14 = scalar_lea.vmem %s1037_s5, %s901_s8 }
  0x10   : > { %v529_v5 = vld [vmem:[%s462_s7] sm:$0x3]  ;;  %v534_v6 = vperm.slane %v528_v4, 1  ;;  %v533_v9 = vperm.slane %v528_v4, 0 }
  0x11   : > { %v546_v7 = vperm.slane %v529_v5, 0  ;;  %v547_v8 = vperm.slane %v529_v5, 1 }
  0x14   : > { %v539_v2 = vld.sshfl [vmem:[#allocation1] sm:$0xff pattern:$0x73625140]  ;;  %v540_v3 = vld.sshfl [vmem:[#allocation1 + $0x8] sm:$0xff pattern:$0x73625140] }
  0x15   : > { %551 = vst [vmem:[#allocation1] ss:$4 sm:$0xff] %v531_v1  ;;  %v544_v12 = vmul.f32 %v540_v3, %v534_v6  ;;  %v543_v15 = vmul.f32 %v539_v2, %v533_v9 }
  0x1c   : > { %v552_v10 = vld.sshfl [vmem:[#allocation1] sm:$0xff pattern:$0x73625140]  ;;  %v553_v11 = vld.sshfl [vmem:[#allocation1 + $0x8] sm:$0xff pattern:$0x73625140] }
  0x1d   : > { %567 = vst [vmem:[#allocation1] ss:$4 sm:$0xff] %v531_v1  ;;  %v556_v13 = vmul.f32 %v552_v10, %v546_v7  ;;  %v557_v14 = vmul.f32 %v553_v11, %v547_v8 }
  0x1f   : > { %v559_v16 = vsub.f32 %v544_v12, %v557_v14  ;;  %v558_v17 = vsub.f32 %v543_v15, %v556_v13 }
  0x21   : > { %v562_v18 = vrot.slane %v559_v16, 6 }
  0x23   : > { %v564_v19 = vsel %vm563_vm0, %v558_v17, %v562_v18 }
  0x24   : > { %566 = vst [vmem:[%s508_s11] sm:$0xf] %v564_v19  ;;  %v568_v20 = vld.sshfl [vmem:[#allocation1] sm:$0xff pattern:$0x73625140] }
  0x25   : > { %v569_v21 = vld.sshfl [vmem:[#allocation1 + $0x8] sm:$0xff pattern:$0x73625140]  ;;  %v572_v27 = vmul.f32 %v568_v20, %v533_v9 }
  0x26   : > { %574 = vst [vmem:[#allocation1] ss:$4 sm:$0xff] %v530_v0  ;;  %v573_v24 = vmul.f32 %v569_v21, %v534_v6 }
  0x2d   : > { %v575_v22 = vld.sshfl [vmem:[#allocation1] sm:$0xff pattern:$0x73625140]  ;;  %v576_v23 = vld.sshfl [vmem:[#allocation1 + $0x8] sm:$0xff pattern:$0x73625140] }
  0x2e   : > { %v579_v25 = vmul.f32 %v575_v22, %v546_v7  ;;  %v580_v26 = vmul.f32 %v576_v23, %v547_v8 }
  0x30   : > { %v582_v28 = vadd.f32 %v580_v26, %v573_v24  ;;  %v581_v29 = vadd.f32 %v579_v25, %v572_v27 }
  0x32   : > { %v585_v30 = vrot.slane %v582_v28, 6 }
  0x34   : > { %v586_v31 = vsel %vm563_vm0, %v581_v29, %v585_v30 }
  0x35   : > { %588 = vst [vmem:[%s526_s14] sm:$0xf] %v586_v31 }
  0x36 PF: > { %s16_s20 = sadd.s32 1, %s949_s20   ;;  %s1038_s18 = smov %s945_s19 }
  0x37   : > { %p13_p5 = scmp.ge.s32.totalorder %s16_s20, 12   ;;  %s1039_s19 = smov %s1041_s21 }
  0x39   :  { %15 = sbr.rel (!%p13_p5) target bundleno = 2 (0x2), region = 87 }

// kernel: e2e_varnet_forward.37
= control target key start
LH: loop header
LB: loop body
LE: loop exit
PB: predicated region body
PF: predicated region fallthrough
CT: control target
= control target key end

     0   :  { %vm176_vm0 = vcmask 1041408   ;;  %vm177_vm1 = vcmask 1045508   ;;  %s2036_s23 = smov 127   ;;  %s2039_s14 = smov 92   ;;  %vm243_vm3 = vcmask 1043456   ;;  %vm245_vm4 = vcmask 1039360   ;;  %s2902_s0 = inlined_call_operand.vmem [shape: bf16[1,20,896], index: 0, kind: input, shape index: {}, may-alias: {0,1}]   ;;  %s2903_s1 = inlined_call_operand.vmem [shape: bf16[1,20,896], index: 1, kind: input, shape index: {}, may-alias: {0,1}]   ;;  %s2904_s2 = inlined_call_operand.vmem [shape: bf16[8,180], index: 2, kind: input, shape index: {}]   ;;  %s2905_s3 = inlined_call_operand.vmem [shape: f32[8,1], index: 3, kind: input, shape index: {}]   ;;  %s2906_s4 = inlined_call_operand.vmem [shape: bf16[1,8,768], index: 4, kind: output, shape index: {}]  }
   0x1   :  { %v2073_v0 = vld [vmem:[%s2902_s0 + $0x10] sm:$0xff]  ;;  %v2078_v1 = vld [vmem:[%s2902_s0] sm:$0xff]  ;;  %vm2094_vm2 = vmor %vm176_vm0, %vm177_vm1  ;;  %s2040_s15 = smov 109   ;;  %s2041_s16 = smov 110   ;;  %vm689_vm5 = vcmask 883712   ;;  %vm786_vm6 = vcmask 752640  }
   0x2   :  { %v2083_v2 = vld [vmem:[%s2902_s0 + $0x1c] sm:$0xff]  ;;  %v2086_v3 = vrot.slane %v2073_v0, 6  ;;  %v2089_v4 = vrot.slane %v2078_v1, 6  ;;  %121 = vst [vmem:[#allocation2 + $0x10] sm:$0xff] %v2073_v0  ;;  %v2101_v7 = vld [vmem:[%s2902_s0 + $0x8] sm:$0xff]  ;;  %s2042_s17 = smov 90  }
   0x3   :  { %v184_v5 = vrot.slane %v2083_v2, 6  ;;  %v2109_v9 = vrot.slane %v2101_v7, 6  ;;  %119 = vst [vmem:[#allocation2] sm:$0xff] %v2078_v1  ;;  %v1687_v10 = vld [vmem:[%s2903_s1 + $0x18] sm:$0xf]  ;;  %v2118_v11 = vld [vmem:[%s2902_s0 + $0x24] sm:$0xff] }
   0x4   :  { %211 = vrot.lane.b32.xlu1 %v2086_v3, %s2036_s23  ;;  %207 = vrot.lane.b32.xlu0 %v2089_v4, %s2036_s23  ;;  %v183_v8 = vrot.slane %v2089_v4, 4  ;;  %122 = vst [vmem:[#allocation2 + $0x1c] sm:$0xff] %v2083_v2  ;;  %v187_v14 = vrot.slane %v2118_v11, 6  ;;  %v1688_v15 = vld [vmem:[%s2903_s1 + $0x34] sm:$0xf]  ;;  %v2136_v16 = vld [vmem:[%s2902_s0 + $0x2c] sm:$0xff] }
   0x5   :  { %67 = vst [vmem:[#allocation5] sm:$0xf] %v1687_v10  ;;  %v186_v13 = vrot.slane %v2109_v9, 4  ;;  %v189_v18 = vrot.slane %v2086_v3, 4  ;;  %v190_v19 = vrot.slane %v2136_v16, 6  ;;  %v35_v20 = vld [vmem:[%s2902_s0 + $0x38] sm:$0xff] }
   0x6   :  { %v2122_v12 = vsel %vm2094_vm2, %v183_v8, %v184_v5  ;;  %120 = vst [vmem:[#allocation2 + $0x8] sm:$0xff] %v2101_v7  ;;  %v39_v22 = vld [vmem:[%s2902_s0 + $0x48] sm:$0xff]  ;;  %v37_v23 = vld [vmem:[%s2902_s0 + $0x40] sm:$0xff]  ;;  %v1689_v25 = vld [vmem:[%s2903_s1 + $0x50] sm:$0xf]  ;;  %v2171_v37 = vrot.slane %v184_v5, 4 }
   0x7   :  { %215 = vrot.lane.b32.xlu2 %v2122_v12, %s2036_s23  ;;  %123 = vst [vmem:[#allocation2 + $0x24] sm:$0xff] %v2118_v11  ;;  %v2143_v17 = vsel %vm2094_vm2, %v186_v13, %v187_v14  ;;  %v2161_v24 = vsel %vm2094_vm2, %v189_v18, %v190_v19  ;;  %v2173_v41 = vrot.slane %v187_v14, 4  ;;  %v2179_v44 = vrot.slane %v190_v19, 4  ;;  %s2037_s0 = smov 126   ;;  %s2038_s1 = smov 108  }
   0x8   :  { %69 = vst [vmem:[#allocation5 + $0x4] sm:$0xf] %v1688_v15  ;;  %s2043_s18 = smov 91   ;;  %vm564_vm7 = vcmask 891904   ;;  %vm467_vm8 = vcmask 900096   ;;  %vm1008_vm9 = vcmask 736256  }
   0x9   :  { %124 = vst [vmem:[#allocation2 + $0x2c] sm:$0xff] %v2136_v16  ;;  %vm342_vm10 = vcmask 1031168   ;;  %vm911_vm11 = vcmask 744448   ;;  %vm1471_vm12 = vcmask 424960  }
   0xa   :  { %36 = vst [vmem:[#allocation4 + $0x40] sm:$0xff] %v35_v20 }
   0xb   :  { %40 = vst [vmem:[#allocation4 + $0x8] sm:$0xff] %v39_v22 }
   0xc   :  { %209 = vrot.lane.b32.xlu0 %v2109_v9, %s2036_s23  ;;  %v128_v21 = vld [vmem:[#allocation5] sm:$0xf]  ;;  %38 = vst [vmem:[#allocation4 + $0x38] sm:$0xff] %v37_v23 }
   0xd   :  { %131 = vst [vmem:[#allocation2 + $0x18] sm:$0xf] %v128_v21 }
   0xe   :  { %71 = vst [vmem:[#allocation5 + $0x8] sm:$0xf] %v1689_v25 }
   0xf   :  { %217 = vrot.lane.b32.xlu2 %v2143_v17, %s2036_s23  ;;  %v129_v26 = vld [vmem:[#allocation5 + $0x4] sm:$0xf] }
  0x10   :  { %132 = vst [vmem:[#allocation2 + $0x34] sm:$0xf] %v129_v26 }
  0x11   :  { %v116_v29 = vld [vmem:[#allocation4 + $0x40] sm:$0x33] }
  0x12   :  { %125 = vst [vmem:[#allocation2 + $0x38] sm:$0x33] %v116_v29  ;;  %v118_v30 = vld [vmem:[#allocation4 + $0x8] sm:$0x33] }
  0x13   :  { %127 = vst [vmem:[#allocation2 + $0x48] sm:$0x33] %v118_v30  ;;  %v117_v31 = vld [vmem:[#allocation4 + $0x38] sm:$0x33] }
  0x14   :  { %219 = vrot.lane.b32.xlu0 %v2161_v24, %s2036_s23  ;;  %v155_v27 = vld [vmem:[#allocation2 + $0x18] sm:$0xf]  ;;  %126 = vst [vmem:[#allocation2 + $0x40] sm:$0x33] %v117_v31 }
  0x15   :  { %v182_v28 = vrot.slane %v155_v27, 6  ;;  %v130_v33 = vld [vmem:[#allocation5 + $0x8] sm:$0x3] }
  0x16   :  { %133 = vst [vmem:[#allocation2 + $0x50] sm:$0x3] %v130_v33 }
  0x17   :  { %213 = vrot.lane.b32.xlu1 %v182_v28, %s2036_s23  ;;  %v192_v32 = vrot.slane %v182_v28, 4  ;;  %v159_v34 = vld [vmem:[#allocation2 + $0x34] sm:$0xf] }
  0x18   :  { %v193_v35 = vrot.slane %v159_v34, 6 }
  0x19   :  { %v160_v38 = vld [vmem:[#allocation2 + $0x38] sm:$0x33] }
  0x1a   :  { %v194_v36 = vsel %vm2094_vm2, %v192_v32, %v193_v35  ;;  %v196_v39 = vrot.slane %v160_v38, 6  ;;  %v162_v40 = vld [vmem:[#allocation2 + $0x48] sm:$0x33]  ;;  %v204_v49 = vrot.slane %v193_v35, 4  ;;  %v608_v52 = vld [vmem:[#allocation2 + $0x38] sm:$0x33] }
  0x1b   :  { %v161_v42 = vld [vmem:[#allocation2 + $0x40] sm:$0x33]  ;;  %v202_v45 = vrot.slane %v162_v40, 6  ;;  %v641_v55 = vrot.slane %v608_v52, 6  ;;  %v511_v59 = vld [vmem:[#allocation2 + $0x38] sm:$0x33] }
  0x1c   :  { %v197_v43 = vsel %vm2094_vm2, %v2171_v37, %v196_v39  ;;  %v199_v46 = vrot.slane %v161_v42, 6  ;;  %v609_v54 = vld [vmem:[#allocation2 + $0x40] sm:$0x33]  ;;  %v386_v61 = vld [vmem:[#allocation2 + $0x38] sm:$0x33] }
  0x1d   :  { %v163_v47 = vld [vmem:[#allocation2 + $0x50] sm:$0x3]  ;;  %223 = vrot.lane.b32.xlu2 %v197_v43, %s2036_s23  ;;  %v203_v51 = vsel %vm2094_vm2, %v2179_v44, %v202_v45  ;;  %v644_v56 = vrot.slane %v609_v54, 6  ;;  %v642_v57 = vsel %vm2094_vm2, %v2171_v37, %v641_v55  ;;  %v512_v60 = vld [vmem:[#allocation2 + $0x40] sm:$0x33]  ;;  %v419_v63 = vrot.slane %v386_v61, 6 }
  0x1e   :  { %v200_v48 = vsel %vm2094_vm2, %v2173_v41, %v199_v46  ;;  %v205_v50 = vrot.slane %v163_v47, 6  ;;  %v387_v62 = vld [vmem:[#allocation2 + $0x40] sm:$0x33]  ;;  %v955_v13 = vld [vmem:[#allocation2 + $0x38] sm:$0x33] }
  0x1f   :  { %221 = vrot.lane.b32.xlu1 %v194_v36, %s2036_s23  ;;  %225 = vrot.lane.b32.xlu0 %v200_v48, %s2036_s23  ;;  %v645_v58 = vsel %vm2094_vm2, %v2173_v41, %v644_v56  ;;  %v422_v5 = vrot.slane %v387_v62, 6  ;;  %v420_v8 = vsel %vm2094_vm2, %v2171_v37, %v419_v63  ;;  %v956_v14 = vld [vmem:[#allocation2 + $0x40] sm:$0x33]  ;;  %v289_v19 = vld [vmem:[#allocation2 + $0x38] sm:$0x33] }
  0x20   :  { %v206_v53 = vsel %vm2094_vm2, %v204_v49, %v205_v50  ;;  %v290_v22 = vld [vmem:[#allocation2 + $0x40] sm:$0x33]  ;;  %v140_v26 = vld [vmem:[#allocation2 + $0x38] sm:$0x33]  ;;  %v142_v29 = vld [vmem:[#allocation2 + $0x48] sm:$0x33] }
  0x21   :  { %v423_v10 = vsel %vm2094_vm2, %v2173_v41, %v422_v5  ;;  %v141_v27 = vld [vmem:[#allocation2 + $0x40] sm:$0x33]  ;;  %149 = vst [vmem:[#allocation3 + $0x30] sm:$0x33] %v140_v26  ;;  %v610_v31 = vld [vmem:[#allocation2 + $0x48] sm:$0x33] }
  0x22   :  { %150 = vst [vmem:[#allocation3 + $0x38] sm:$0x33] %v141_v27  ;;  %v647_v34 = vrot.slane %v610_v31, 6  ;;  %v830_v43 = vld [vmem:[#allocation2 + $0x38] sm:$0x33] }
  0x23   :  { %151 = vst [vmem:[#allocation3 + $0x40] sm:$0x33] %v142_v29  ;;  %v863_v47 = vrot.slane %v830_v43, 6  ;;  %v831_v49 = vld [vmem:[#allocation2 + $0x40] sm:$0x33] }
  0x24   :  { %v648_v39 = vsel %vm2094_vm2, %v2179_v44, %v647_v34  ;;  %v866_v52 = vrot.slane %v831_v49, 6  ;;  %v2319_v29 = vld [vmem:[#allocation2 + $0x34] sm:$0xf] }
  0x25   :  { %229 = vrot.lane.b32.xlu2 %v206_v53, %s2036_s23  ;;  %v864_v53 = vsel %vm2094_vm2, %v2171_v37, %v863_v47  ;;  %v513_v37 = vld [vmem:[#allocation2 + $0x48] sm:$0x33]  ;;  %v638_v34 = vrot.slane %v2319_v29, 6 }
  0x26   :  { %v388_v47 = vld [vmem:[#allocation2 + $0x48] sm:$0x33] }
  0x27   :  { %227 = vrot.lane.b32.xlu1 %v203_v51, %s2036_s23  ;;  %305 = vrot.lane.b32.xlu0 %v2078_v1, %s2037_s0 }
  0x2d   :  { %670 = vrot.lane.b32.xlu2 %v645_v58, %s2038_s1 }
  0x2f   :  { %668 = vrot.lane.b32.xlu1 %v642_v57, %s2038_s1  ;;  %749 = vrot.lane.b32.xlu0 %v2078_v1, %s2039_s14 }
  0x35   :  { %543 = vrot.lane.b32.xlu2 %v511_v59, %s2040_s15 }
  0x37   :  { %751 = vrot.lane.b32.xlu1 %v2101_v7, %s2039_s14  ;;  %545 = vrot.lane.b32.xlu0 %v512_v60, %s2040_s15 }
  0x3d   :  { %654 = vrot.lane.b32.xlu2 %v2109_v9, %s2038_s1 }
  0x3f   :  { %652 = vrot.lane.b32.xlu1 %v2089_v4, %s2038_s1  ;;  %660 = vrot.lane.b32.xlu0 %v2122_v12, %s2038_s1 }
  0x45   :  { %527 = vrot.lane.b32.xlu2 %v2078_v1, %s2040_s15 }
  0x47   :  { %662 = vrot.lane.b32.xlu1 %v2143_v17, %s2038_s1  ;;  %529 = vrot.lane.b32.xlu0 %v2101_v7, %s2040_s15 }
  0x4d   :  { %537 = vrot.lane.b32.xlu2 %v2118_v11, %s2040_s15 }
  0x4f   :  { %535 = vrot.lane.b32.xlu1 %v2083_v2, %s2040_s15  ;;  %438 = vrot.lane.b32.xlu0 %v2122_v12, %s2041_s16 }
  0x55   :  { %446 = vrot.lane.b32.xlu2 %v420_v8, %s2041_s16 }
  0x57   :  { %440 = vrot.lane.b32.xlu1 %v2143_v17, %s2041_s16  ;;  %448 = vrot.lane.b32.xlu0 %v423_v10, %s2041_s16 }
  0x5d   :  { %989 = vrot.lane.b32.xlu2 %v956_v14, %s2042_s17 }
  0x5f   :  { %987 = vrot.lane.b32.xlu1 %v955_v13, %s2042_s17  ;;  %313 = vrot.lane.b32.xlu0 %v2083_v2, %s2037_s0 }
  0x61   :  { %v216_v15 = vpop.permute.xlu2 %215 }
  0x62   :  { %v235_v18 = vrot.slane %v216_v15, 4 }
  0x65   :  { %321 = vrot.lane.b32.xlu2 %v289_v19, %s2037_s0 }
  0x67   :  { %315 = vrot.lane.b32.xlu1 %v2118_v11, %s2037_s0  ;;  %323 = vrot.lane.b32.xlu0 %v290_v22, %s2037_s0 }
  0x69   :  { %v218_v20 = vpop.permute.xlu2 %217 }
  0x6a   :  { %v236_v21 = vrot.slane %v218_v20, 4 }
  0x6c   :  { %v251_v23 = vsel %vm243_vm3, %v235_v18, %v236_v21 }
  0x6d   :  { %v252_v25 = vsel %vm245_vm4, %v216_v15, %v251_v23  ;;  %432 = vrot.lane.b32.xlu2 %v2109_v9, %s2041_s16 }
  0x6e   :  { %275 = vst [vmem:[#allocation3 + $0x48] sm:$0xff] %v252_v25 }
  0x6f   :  { %430 = vrot.lane.b32.xlu1 %v2089_v4, %s2041_s16  ;;  %307 = vrot.lane.b32.xlu0 %v2101_v7, %s2037_s0 }
  0x75   :  { %973 = vrot.lane.b32.xlu2 %v2101_v7, %s2042_s17 }
  0x76   :  { %v208_v28 = vpop.permute.xlu0 %207  ;;  %v212_v30 = vpop.permute.xlu1 %211 }
  0x77   :  { %971 = vrot.lane.b32.xlu1 %v2078_v1, %s2042_s17  ;;  %v233_v32 = vrot.slane %v212_v30, 4  ;;  %v231_v33 = vrot.slane %v208_v28, 4  ;;  %v224_v35 = vpop.permute.xlu2 %223  ;;  %979 = vrot.lane.b32.xlu0 %v2083_v2, %s2042_s17 }
  0x78   :  { %v239_v61 = vrot.slane %v224_v35, 4 }
  0x7d   :  { %672 = vrot.lane.b32.xlu2 %v648_v39, %s2038_s1  ;;  %v649_v39 = vrot.slane %v638_v34, 4 }
  0x7e   :  { %v210_v36 = vpop.permute.xlu0 %209 }
  0x7f   :  { %v232_v38 = vrot.slane %v210_v36, 4  ;;  %981 = vrot.lane.b32.xlu1 %v2118_v11, %s2042_s17  ;;  %v230_v45 = vpop.permute.xlu2 %229  ;;  %753 = vrot.lane.b32.xlu0 %v2073_v0, %s2039_s14 }
  0x80   :  { %v242_v8 = vrot.slane %v230_v45, 4 }
  0x81   :  { %v244_v1 = vsel %vm243_vm3, %v231_v33, %v232_v38  ;;  %v247_v40 = vsel %vm243_vm3, %v232_v38, %v233_v32  ;;  %v957_v33 = vld [vmem:[#allocation2 + $0x48] sm:$0x33] }
  0x82   :  { %v246_v7 = vsel %vm245_vm4, %v208_v28, %v244_v1  ;;  %v248_v42 = vsel %vm245_vm4, %v210_v36, %v247_v40 }
  0x83   :  { %272 = vst [vmem:[#allocation3 + $0x30] sm:$0xcc] %v246_v7 }
  0x84   :  { %273 = vst [vmem:[#allocation3 + $0x38] sm:$0xcc] %v248_v42 }
  0x85   :  { %884 = vrot.lane.b32.xlu2 %v2143_v17, %s2043_s18 }
  0x86   :  { %v220_v46 = vpop.permute.xlu0 %219 }
  0x87   :  { %v237_v48 = vrot.slane %v220_v46, 4  ;;  %882 = vrot.lane.b32.xlu1 %v2122_v12, %s2043_s18  ;;  %v2280_v56 = vpop.permute.xlu2 %670  ;;  %890 = vrot.lane.b32.xlu0 %v864_v53, %s2043_s18  ;;  %v867_v12 = vsel %vm2094_vm2, %v2173_v41, %v866_v52 }
  0x88   :  { %v685_v26 = vrot.slane %v2280_v56, 4 }
  0x89   :  { %v253_v50 = vsel %vm243_vm3, %v236_v21, %v237_v48  ;;  %v214_v54 = vpop.permute.xlu1 %213  ;;  %v733_v21 = vld [vmem:[#allocation2 + $0x38] sm:$0x33] }
  0x8a   :  { %v254_v51 = vsel %vm245_vm4, %v218_v20, %v253_v50  ;;  %v234_v55 = vrot.slane %v214_v54, 4  ;;  %v728_v50 = vld [vmem:[#allocation2 + $0x18] sm:$0xf]  ;;  %v425_v54 = vrot.slane %v388_v47, 6  ;;  %v291_v47 = vld [vmem:[#allocation2 + $0x48] sm:$0x33] }
  0x8b   :  { %276 = vst [vmem:[#allocation3 + $0x50] sm:$0xff] %v254_v51 }
  0x8c   :  { %v249_v57 = vsel %vm243_vm3, %v233_v32, %v234_v55 }
  0x8d   :  { %v250_v58 = vsel %vm245_vm4, %v212_v30, %v249_v57  ;;  %547 = vrot.lane.b32.xlu2 %v513_v37, %s2040_s15  ;;  %v603_v57 = vld [vmem:[#allocation2 + $0x18] sm:$0xf] }
  0x8e   :  { %274 = vst [vmem:[#allocation3 + $0x40] sm:$0xcc] %v250_v58 }
  0x8f   :  { %892 = vrot.lane.b32.xlu1 %v867_v12, %s2043_s18  ;;  %v2290_v60 = vpop.permute.xlu2 %543  ;;  %656 = vrot.lane.b32.xlu0 %v2086_v3, %s2038_s1 }
  0x91   :  { %v222_v59 = vpop.permute.xlu1 %221  ;;  %v226_v63 = vpop.permute.xlu0 %225 }
  0x92   :  { %v238_v17 = vrot.slane %v222_v59, 4  ;;  %v240_v5 = vrot.slane %v226_v63, 4 }
  0x94   :  { %v255_v62 = vsel %vm243_vm3, %v237_v48, %v238_v17  ;;  %v257_v10 = vsel %vm243_vm3, %v239_v61, %v240_v5 }
  0x95   :  { %v256_v41 = vsel %vm245_vm4, %v220_v46, %v255_v62  ;;  %v258_v14 = vsel %vm245_vm4, %v224_v35, %v257_v10  ;;  %757 = vrot.lane.b32.xlu2 %v2083_v2, %s2039_s14  ;;  %v734_v2 = vld [vmem:[#allocation2 + $0x40] sm:$0x33]  ;;  %v611_v35 = vld [vmem:[#allocation2 + $0x50] sm:$0x3] }
  0x96   :  { %277 = vst [vmem:[#allocation3 + $0x58] sm:$0xff] %v256_v41  ;;  %v650_v1 = vrot.slane %v611_v35, 6  ;;  %v514_v10 = vld [vmem:[#allocation2 + $0x50] sm:$0x3] }
  0x97   :  { %664 = vrot.lane.b32.xlu1 %v2161_v24, %s2038_s1  ;;  %278 = vst [vmem:[#allocation3 + $0x60] sm:$0xff] %v258_v14  ;;  %v2302_v18 = vpop.permute.xlu2 %654  ;;  %759 = vrot.lane.b32.xlu0 %v2118_v11, %s2039_s14 }
  0x98   :  { %v651_v46 = vsel %vm2094_vm2, %v649_v39, %v650_v1  ;;  %v677_v48 = vrot.slane %v2302_v18, 4 }
  0x99   :  { %v228_v13 = vpop.permute.xlu1 %227  ;;  %v2310_v25 = vpop.permute.xlu0 %305 }
  0x9a   :  { %v241_v15 = vrot.slane %v228_v13, 4 }
  0x9c   :  { %v261_v19 = vsel %vm243_vm3, %v241_v15, %v242_v8  ;;  %v259_v20 = vsel %vm243_vm3, %v240_v5, %v241_v15  ;;  %v627_v5 = vrot.slane %v603_v57, 6 }
  0x9d   :  { %v262_v22 = vsel %vm245_vm4, %v228_v13, %v261_v19  ;;  %v260_v23 = vsel %vm245_vm4, %v226_v63, %v259_v20  ;;  %767 = vrot.lane.b32.xlu2 %v734_v2, %s2039_s14  ;;  %v426_v63 = vsel %vm2094_vm2, %v2179_v44, %v425_v54 }
  0x9e   :  { %280 = vst [vmem:[#allocation3 + $0x70] sm:$0xff] %v262_v22  ;;  %v637_v15 = vrot.slane %v627_v5, 4 }
  0x9f   :  { %279 = vst [vmem:[#allocation3 + $0x68] sm:$0xff] %v260_v23  ;;  %765 = vrot.lane.b32.xlu1 %v733_v21, %s2039_s14  ;;  %v2315_v28 = vpop.permute.xlu2 %527  ;;  %874 = vrot.lane.b32.xlu0 %v2089_v4, %s2043_s18 }
  0xa0   :  { %v551_v20 = vrot.slane %v2315_v28, 4 }
  0xa1   :  { %v669_v27 = vpop.permute.xlu1 %668  ;;  %v750_v32 = vpop.permute.xlu0 %749 }
  0xa2   :  { %v684_v11 = vrot.slane %v669_v27, 4  ;;  %v773_v36 = vrot.slane %v750_v32, 4 }
  0xa4   :  { %v701_v30 = vsel %vm243_vm3, %v684_v11, %v685_v26 }
  0xa5   :  { %v702_v31 = vsel %vm689_vm5, %v669_v27, %v701_v30  ;;  %991 = vrot.lane.b32.xlu2 %v957_v33, %s2042_s17  ;;  %v639_v27 = vsel %vm2094_vm2, %v637_v15, %v638_v34 }
  0xa6   :  { %722 = vst [vmem:[#allocation3 + $0x150] sm:$0xff] %v702_v31 }
  0xa7   :  { %876 = vrot.lane.b32.xlu1 %v2109_v9, %s2043_s18  ;;  %v2334_v40 = vpop.permute.xlu2 %537  ;;  %531 = vrot.lane.b32.xlu0 %v2073_v0, %s2040_s15  ;;  %v559_v9 = vrot.slane %v2290_v60, 4 }
  0xa8   :  { %v556_v11 = vrot.slane %v2334_v40, 4 }
  0xa9   :  { %v2328_v38 = vpop.permute.xlu1 %751  ;;  %v2343_v43 = vpop.permute.xlu0 %545 }
  0xaa   :  { %v774_v4 = vrot.slane %v2328_v38, 4  ;;  %v560_v45 = vrot.slane %v2343_v43, 4 }
  0xac   :  { %v785_v7 = vsel %vm243_vm3, %v773_v36, %v774_v4  ;;  %v576_v49 = vsel %vm243_vm3, %v559_v9, %v560_v45 }
  0xad   :  { %v787_v42 = vsel %vm786_vm6, %v750_v32, %v785_v7  ;;  %v577_v52 = vsel %vm564_vm7, %v2290_v60, %v576_v49  ;;  %674 = vrot.lane.b32.xlu2 %v651_v46, %s2038_s1  ;;  %v1860_v58 = vld [vmem:[#allocation3 + $0x150] sm:$0xf]  ;;  %v2002_v17 = vld [vmem:[#allocation3 + $0x154] sm:$0xf] }
  0xae   :  { %813 = vst [vmem:[#allocation3 + $0x168] sm:$0xff] %v787_v42 }
  0xaf   :  { %539 = vrot.lane.b32.xlu1 %v2136_v16, %s2040_s15  ;;  %597 = vst [vmem:[#allocation3 + $0x120] sm:$0x33] %v577_v52  ;;  %v2357_v55 = vpop.permute.xlu2 %446  ;;  %755 = vrot.lane.b32.xlu0 %v728_v50, %s2039_s14 }
  0xb0   :  { %v462_v52 = vrot.slane %v2357_v55, 4 }
  0xb1   :  { %v653_v51 = vpop.permute.xlu1 %652  ;;  %v661_v61 = vpop.permute.xlu0 %660 }
  0xb2   :  { %v676_v53 = vrot.slane %v653_v51, 4  ;;  %v680_v8 = vrot.slane %v661_v61, 4 }
  0xb4   :  { %v688_v12 = vsel %vm243_vm3, %v676_v53, %v677_v48 }
  0xb5   :  { %v690_v37 = vsel %vm689_vm5, %v653_v51, %v688_v12  ;;  %v2005_v59 = vld [vmem:[#allocation3 + $0x164] sm:$0xf0]  ;;  %v1862_v60 = vld [vmem:[#allocation3 + $0x168] sm:$0xf0]  ;;  %450 = vrot.lane.b32.xlu2 %v426_v63, %s2041_s16 }
  0xb6   :  { %716 = vst [vmem:[#allocation3 + $0x120] sm:$0xcc] %v690_v37  ;;  %v1861_v62 = vor.u32 %v2005_v59, %v1860_v58  ;;  %v1865_v41 = vor.u32 %v2002_v17, %v1862_v60 }
  0xb7   :  { %442 = vrot.lane.b32.xlu1 %v2161_v24, %s2041_s16  ;;  %v2373_v19 = vpop.permute.xlu2 %989  ;;  %549 = vrot.lane.b32.xlu0 %v514_v10, %s2040_s15 }
  0xb8   :  { %1494 = vmatpush.bf16.msra.mxu0 %v1861_v62  ;;  %1520 = vmatpush.bf16.msra.mxu2 %v1865_v41  ;;  %v506_v62 = vld [vmem:[#allocation2 + $0x18] sm:$0xf]  ;;  %v832_v41 = vld [vmem:[#allocation2 + $0x48] sm:$0x33]  ;;  %v1004_v63 = vrot.slane %v2373_v19, 4 }
  0xb9   :  { %v2369_v13 = vpop.permute.xlu1 %662  ;;  %v2381_v23 = vpop.permute.xlu0 %529 }
  0xba   :  { %v681_v14 = vrot.slane %v2369_v13, 4  ;;  %v552_v2 = vrot.slane %v2381_v23, 4 }
  0xbc   :  { %v695_v21 = vsel %vm243_vm3, %v680_v8, %v681_v14  ;;  %v563_v30 = vsel %vm243_vm3, %v551_v20, %v552_v2  ;;  %v510_v8 = vld [vmem:[#allocation2 + $0x34] sm:$0xf]  ;;  %v2431_v20 = vld [vmem:[#allocation2 + $0x18] sm:$0xf] }
  0xbd   :  { %v696_v22 = vsel %vm689_vm5, %v661_v61, %v695_v21  ;;  %v565_v32 = vsel %vm564_vm7, %v2315_v28, %v563_v30  ;;  %666 = vrot.lane.b32.xlu2 %v639_v27, %s2038_s1  ;;  %v1836_v35 = vld [vmem:[#allocation3 + $0x120] sm:$0xf]  ;;  %v1996_v1 = vld [vmem:[#allocation3 + $0x124] sm:$0xf] }
  0xbe   :  { %719 = vst [vmem:[#allocation3 + $0x138] sm:$0xff] %v696_v22  ;;  %v869_v22 = vrot.slane %v832_v41, 6  ;;  %v385_v27 = vld [vmem:[#allocation2 + $0x34] sm:$0xf] }
  0xbf   :  { %658 = vrot.lane.b32.xlu1 %v627_v5, %s2038_s1  ;;  %591 = vst [vmem:[#allocation3 + $0xf0] sm:$0xff] %v565_v32  ;;  %v2396_v29 = vpop.permute.xlu2 %321  ;;  %975 = vrot.lane.b32.xlu0 %v2073_v0, %s2042_s17  ;;  %v405_v32 = vrot.slane %v2431_v20, 6 }
  0xc1   :  { %v536_v31 = vpop.permute.xlu1 %535  ;;  %v439_v28 = vpop.permute.xlu0 %438 }
  0xc2   :  { %v555_v33 = vrot.slane %v536_v31, 4  ;;  %v458_v46 = vrot.slane %v439_v28, 4 }
  0xc4   :  { %v570_v34 = vsel %vm243_vm3, %v555_v33, %v556_v11 }
  0xc5   :  { %v571_v36 = vsel %vm564_vm7, %v536_v31, %v570_v34  ;;  %v1999_v39 = vld [vmem:[#allocation3 + $0x134] sm:$0xf0]  ;;  %v1838_v9 = vld [vmem:[#allocation3 + $0x138] sm:$0xf0]  ;;  %317 = vrot.lane.b32.xlu2 %v2136_v16, %s2037_s0  ;;  %v416_v34 = vrot.slane %v385_v27, 6 }
  0xc6   :  { %594 = vst [vmem:[#allocation3 + $0x108] sm:$0xff] %v571_v36  ;;  %v1837_v7 = vor.u32 %v1999_v39, %v1836_v35  ;;  %v1841_v42 = vor.u32 %v1996_v1, %v1838_v9  ;;  %v1812_v54 = vld [vmem:[#allocation3 + $0xf0] sm:$0xf]  ;;  %v1990_v58 = vld [vmem:[#allocation3 + $0xf4] sm:$0xf]  ;;  %v870_v35 = vsel %vm2094_vm2, %v2179_v44, %v869_v22 }
  0xc7   :  { %983 = vrot.lane.b32.xlu1 %v2136_v16, %s2042_s17  ;;  %v2411_v51 = vpop.permute.xlu2 %432  ;;  %325 = vrot.lane.b32.xlu0 %v291_v47, %s2037_s0  ;;  %v389_v36 = vld [vmem:[#allocation2 + $0x50] sm:$0x3]  ;;  %v427_v47 = vrot.slane %v416_v34, 4 }
  0xc8   :  { %1495 = vmatpush.bf16.msra.mxu0 %v1837_v7  ;;  %1521 = vmatpush.bf16.msra.mxu2 %v1841_v42  ;;  %v455_v27 = vrot.slane %v2411_v51, 4 }
  0xc9   :  { %v2406_v49 = vpop.permute.xlu1 %440  ;;  %v2419_v59 = vpop.permute.xlu0 %448 }
  0xca   :  { %v459_v50 = vrot.slane %v2406_v49, 4  ;;  %v463_v61 = vrot.slane %v2419_v59, 4 }
  0xcc   :  { %v473_v53 = vsel %vm243_vm3, %v458_v46, %v459_v50  ;;  %v479_v5 = vsel %vm243_vm3, %v462_v52, %v463_v61  ;;  %v428_v52 = vrot.slane %v389_v36, 6 }
  0xcd   :  { %v474_v57 = vsel %vm467_vm8, %v439_v28, %v473_v53  ;;  %v1993_v12 = vld [vmem:[#allocation3 + $0x104] sm:$0xf0]  ;;  %v1814_v37 = vld [vmem:[#allocation3 + $0x108] sm:$0xf0]  ;;  %v480_v15 = vsel %vm467_vm8, %v2357_v55, %v479_v5  ;;  %533 = vrot.lane.b32.xlu2 %v506_v62, %s2040_s15  ;;  %v415_v28 = vrot.slane %v405_v32, 4 }
  0xce   :  { %497 = vst [vmem:[#allocation3 + $0xc0] sm:$0xff] %v474_v57  ;;  %v1813_v17 = vor.u32 %v1993_v12, %v1812_v54  ;;  %v1817_v60 = vor.u32 %v1990_v58, %v1814_v37  ;;  %v134_v57 = vld [vmem:[#allocation2] sm:$0xff]  ;;  %v337_v12 = vrot.slane %v2396_v29, 4 }
  0xcf   :  { %434 = vrot.lane.b32.xlu1 %v2086_v3, %s2041_s16  ;;  %500 = vst [vmem:[#allocation3 + $0xd8] sm:$0xff] %v480_v15  ;;  %v2433_v30 = vpop.permute.xlu2 %973  ;;  %541 = vrot.lane.b32.xlu0 %v510_v8, %s2040_s15 }
  0xd0   :  { %1496 = vmatpush.bf16.msra.mxu0 %v1813_v17  ;;  %1522 = vmatpush.bf16.msra.mxu2 %v1817_v60  ;;  %v417_v17 = vsel %vm2094_vm2, %v415_v28, %v416_v34  ;;  %v137_v60 = vld [vmem:[#allocation2 + $0x1c] sm:$0xff]  ;;  %143 = vst [vmem:[#allocation3] sm:$0xff] %v134_v57 }
  0xd1   :  { %v988_v10 = vpop.permute.xlu1 %987  ;;  %v314_v33 = vpop.permute.xlu0 %313  ;;  %146 = vst [vmem:[#allocation3 + $0x18] sm:$0xff] %v137_v60  ;;  %v292_v60 = vld [vmem:[#allocation2 + $0x50] sm:$0x3] }
  0xd2   :  { %v1003_v21 = vrot.slane %v988_v10, 4  ;;  %v333_v9 = vrot.slane %v314_v33, 4 }
  0xd4   :  { %v1020_v31 = vsel %vm243_vm3, %v1003_v21, %v1004_v63 }
  0xd5   :  { %v1021_v55 = vsel %vm1008_vm9, %v988_v10, %v1020_v31  ;;  %v1788_v39 = vld [vmem:[#allocation3 + $0xc0] sm:$0xf]  ;;  %v1984_v1 = vld [vmem:[#allocation3 + $0xc4] sm:$0xf]  ;;  %894 = vrot.lane.b32.xlu2 %v870_v35, %s2043_s18 }
  0xd6   :  { %1041 = vst [vmem:[#allocation3 + $0x210] sm:$0x33] %v1021_v55  ;;  %v1987_v42 = vld [vmem:[#allocation3 + $0xd4] sm:$0xf0]  ;;  %v1790_v46 = vld [vmem:[#allocation3 + $0xd8] sm:$0xf0] }
  0xd7   :  { %886 = vrot.lane.b32.xlu1 %v2161_v24, %s2043_s18  ;;  %v1789_v53 = vor.u32 %v1987_v42, %v1788_v39  ;;  %v1793_v54 = vor.u32 %v1984_v1, %v1790_v46  ;;  %v2452_v24 = vpop.permute.xlu2 %672  ;;  %309 = vrot.lane.b32.xlu0 %v2073_v0, %s2037_s0  ;;  %v429_v0 = vsel %vm2094_vm2, %v427_v47, %v428_v52  ;;  %v329_v42 = vrot.slane %v2310_v25, 4 }
  0xd8   :  { %v686_v37 = vrot.slane %v2452_v24, 4  ;;  %v996_v47 = vrot.slane %v2433_v30, 4 }
  0xd9   :  { %v2448_v7 = vpop.permute.xlu1 %315  ;;  %1497 = vmatpush.bf16.msra.mxu0 %v1789_v53  ;;  %1523 = vmatpush.bf16.msra.mxu2 %v1793_v54  ;;  %v2464_v41 = vpop.permute.xlu0 %323  ;;  %v288_v54 = vld [vmem:[#allocation2 + $0x34] sm:$0xf] }
  0xda   :  { %v334_v44 = vrot.slane %v2448_v7, 4  ;;  %v703_v8 = vsel %vm243_vm3, %v685_v26, %v686_v37  ;;  %v338_v10 = vrot.slane %v2464_v41, 4 }
  0xdb   :  { %v704_v22 = vsel %vm689_vm5, %v2280_v56, %v703_v8 }
  0xdc   :  { %v348_v58 = vsel %vm243_vm3, %v333_v9, %v334_v44  ;;  %723 = vst [vmem:[#allocation3 + $0x158] sm:$0xff] %v704_v22  ;;  %v354_v31 = vsel %vm243_vm3, %v337_v12, %v338_v10  ;;  %v735_v9 = vld [vmem:[#allocation2 + $0x48] sm:$0x33] }
  0xdd   :  { %v349_v62 = vsel %vm342_vm10, %v314_v33, %v348_v58  ;;  %v1110_v5 = vld [vmem:[#allocation3 + $0x210] sm:$0x33]  ;;  %v355_v34 = vsel %vm342_vm10, %v2396_v29, %v354_v31  ;;  %452 = vrot.lane.b32.xlu2 %v429_v0, %s2041_s16 }
  0xde   :  { %372 = vst [vmem:[#allocation3 + $0x90] sm:$0xff] %v349_v62  ;;  %v1327_v15 = vunpack.c.l.b16 %v1110_v5  ;;  %v1328_v21 = vunpack.c.h.b16 %v1110_v5 }
  0xdf   :  { %444 = vrot.lane.b32.xlu1 %v417_v17, %s2041_s16  ;;  %375 = vst [vmem:[#allocation3 + $0xa8] sm:$0x33] %v355_v34  ;;  %v2486_v39 = vpop.permute.xlu2 %884  ;;  %761 = vrot.lane.b32.xlu0 %v2136_v16, %s2039_s14 }
  0xe0   :  { %v1399_v55 = vpack.c.b16 %v1327_v15, %v1327_v15  ;;  %v1400_v33 = vpack.c.b16 %v1328_v21, %v1328_v21 }
  0xe1   :  { %v431_v26 = vpop.permute.xlu1 %430  ;;  %v2494_v28 = vpop.permute.xlu0 %307 }
  0xe2   :  { %v454_v35 = vrot.slane %v431_v26, 4  ;;  %v1477_v56 = vsel %vm176_vm0, %v1399_v55, 0  ;;  %v1480_v36 = vsel %vm176_vm0, %v1400_v33, 0  ;;  %v330_v46 = vrot.slane %v2494_v28, 4  ;;  %v1740_v55 = vld [vmem:[#allocation3 + $0x60] sm:$0xf] }
  0xe3   :  { %1511 = vmatpush.bf16.msra.mxu1 %v1477_v56  ;;  %1537 = vmatpush.bf16.msra.mxu3 %v1480_v36  ;;  %v2528_v56 = vld [vmem:[#allocation2 + $0x18] sm:$0xf] }
  0xe4   :  { %v466_v1 = vsel %vm243_vm3, %v454_v35, %v455_v27  ;;  %v341_v52 = vsel %vm243_vm3, %v329_v42, %v330_v46 }
  0xe5   :  { %v468_v29 = vsel %vm467_vm8, %v431_v26, %v466_v1  ;;  %v343_v16 = vsel %vm342_vm10, %v2310_v25, %v341_v52  ;;  %878 = vrot.lane.b32.xlu2 %v2086_v3, %s2043_s18  ;;  %v1764_v62 = vld [vmem:[#allocation3 + $0x90] sm:$0xf]  ;;  %v1978_v5 = vld [vmem:[#allocation3 + $0x94] sm:$0xf]  ;;  %v284_v26 = vld [vmem:[#allocation2 + $0x18] sm:$0xf] }
  0xe6   :  { %494 = vst [vmem:[#allocation3 + $0xa8] sm:$0xcc] %v468_v29  ;;  %v1972_v1 = vld [vmem:[#allocation3 + $0x64] sm:$0xf]  ;;  %v1716_v52 = vld [vmem:[#allocation3 + $0x30] sm:$0xf] }
  0xe7   :  { %769 = vrot.lane.b32.xlu1 %v735_v9, %s2039_s14  ;;  %369 = vst [vmem:[#allocation3 + $0x78] sm:$0xff] %v343_v16  ;;  %v2507_v12 = vpop.permute.xlu2 %547  ;;  %319 = vrot.lane.b32.xlu0 %v288_v54, %s2037_s0  ;;  %v829_v9 = vld [vmem:[#allocation2 + $0x34] sm:$0xf]  ;;  %v1966_v16 = vld [vmem:[#allocation3 + $0x34] sm:$0xf] }
  0xe8   :  { %v561_v17 = vrot.slane %v2507_v12, 4  ;;  %v950_v54 = vld [vmem:[#allocation2 + $0x18] sm:$0xf] }
  0xe9   :  { %v972_v53 = vpop.permute.xlu1 %971  ;;  %v980_v8 = vpop.permute.xlu0 %979 }
  0xea   :  { %v995_v57 = vrot.slane %v972_v53, 4  ;;  %v578_v15 = vsel %vm243_vm3, %v560_v45, %v561_v17  ;;  %v999_v33 = vrot.slane %v980_v8, 4 }
  0xeb   :  { %v579_v31 = vsel %vm564_vm7, %v2343_v43, %v578_v15 }
  0xec   :  { %v1007_v58 = vsel %vm243_vm3, %v995_v57, %v996_v47  ;;  %598 = vst [vmem:[#allocation3 + $0x128] sm:$0x33] %v579_v31  ;;  %v1718_v57 = vld [vmem:[#allocation3 + $0x48] sm:$0xf0] }
  0xed   :  { %v1009_v25 = vsel %vm1008_vm9, %v972_v53, %v1007_v58  ;;  %v1981_v0 = vld [vmem:[#allocation3 + $0xa4] sm:$0xf0]  ;;  %v1766_v3 = vld [vmem:[#allocation3 + $0xa8] sm:$0xf0]  ;;  %436 = vrot.lane.b32.xlu2 %v405_v32, %s2041_s16  ;;  %v958_v32 = vld [vmem:[#allocation2 + $0x50] sm:$0x3]  ;;  %v1721_v31 = vor.u32 %v1966_v16, %v1718_v57 }
  0xee   :  { %1035 = vst [vmem:[#allocation3 + $0x1e0] sm:$0xff] %v1009_v25  ;;  %v1765_v21 = vor.u32 %v1981_v0, %v1764_v62  ;;  %v1769_v22 = vor.u32 %v1978_v5, %v1766_v3  ;;  %v1975_v45 = vld [vmem:[#allocation3 + $0x74] sm:$0xf0]  ;;  %v1742_v35 = vld [vmem:[#allocation3 + $0x78] sm:$0xf0]  ;;  %v849_v58 = vrot.slane %v2528_v56, 6 }
  0xef   :  { %327 = vrot.lane.b32.xlu1 %v292_v60, %s2037_s0  ;;  %v1741_v36 = vor.u32 %v1975_v45, %v1740_v55  ;;  %v2531_v29 = vpop.permute.xlu2 %757  ;;  %v1745_v42 = vor.u32 %v1972_v1, %v1742_v35  ;;  %v1969_v53 = vld [vmem:[#allocation3 + $0x44] sm:$0xf0]  ;;  %311 = vrot.lane.b32.xlu0 %v284_v26, %s2037_s0  ;;  %v860_v25 = vrot.slane %v829_v9, 6  ;;  %v1692_v0 = vld [vmem:[#allocation3] sm:$0xf] }
  0xf0   :  { %1498 = vmatpush.bf16.msra.mxu0 %v1765_v21  ;;  %1524 = vmatpush.bf16.msra.mxu2 %v1769_v22  ;;  %v1963_v5 = vld [vmem:[#allocation3 + $0x14] sm:$0xf0]  ;;  %v1717_v15 = vor.u32 %v1969_v53, %v1716_v52  ;;  %v1960_v21 = vld [vmem:[#allocation3 + $0x4] sm:$0xf]  ;;  %v1694_v22 = vld [vmem:[#allocation3 + $0x18] sm:$0xf0] }
  0xf1   :  { %v2523_v34 = vpop.permute.xlu1 %981  ;;  %v2539_v62 = vpop.permute.xlu0 %753  ;;  %v833_v55 = vld [vmem:[#allocation2 + $0x50] sm:$0x3]  ;;  %v859_v26 = vrot.slane %v849_v58, 4  ;;  %v1693_v45 = vor.u32 %v1963_v5, %v1692_v0  ;;  %v954_v1 = vld [vmem:[#allocation2 + $0x34] sm:$0xf]  ;;  %v1697_v9 = vor.u32 %v1960_v21, %v1694_v22  ;;  %v871_v52 = vrot.slane %v860_v25, 4 }
  0xf2   :  { %v1000_v43 = vrot.slane %v2523_v34, 4  ;;  %v775_v3 = vrot.slane %v2539_v62, 4  ;;  %v872_v53 = vrot.slane %v833_v55, 6  ;;  %v2003_v55 = vld [vmem:[#allocation3 + $0x15c] sm:$0xf] }
  0xf4   :  { %v1014_v20 = vsel %vm243_vm3, %v999_v33, %v1000_v43  ;;  %1499 = vmatpush.bf16.msra.mxu0 %v1741_v36  ;;  %1525 = vmatpush.bf16.msra.mxu2 %v1745_v42  ;;  %v903_v33 = vrot.slane %v2486_v39, 4  ;;  %v873_v21 = vsel %vm2094_vm2, %v871_v52, %v872_v53 }
  0xf5   :  { %v1015_v60 = vsel %vm1008_vm9, %v980_v8, %v1014_v20  ;;  %v788_v8 = vsel %vm243_vm3, %v774_v4, %v775_v3  ;;  %977 = vrot.lane.b32.xlu2 %v950_v54, %s2042_s17  ;;  %v861_v20 = vsel %vm2094_vm2, %v859_v26, %v860_v25  ;;  %v2020_v57 = vld [vmem:[#allocation3 + $0x1e4] sm:$0xf] }
  0xf6   :  { %1038 = vst [vmem:[#allocation3 + $0x1f8] sm:$0xff] %v1015_v60  ;;  %v789_v36 = vsel %vm786_vm6, %v2328_v38, %v788_v8  ;;  %v1932_v38 = vld [vmem:[#allocation3 + $0x1e0] sm:$0xf] }
  0xf7   :  { %993 = vrot.lane.b32.xlu1 %v958_v32, %s2042_s17  ;;  %814 = vst [vmem:[#allocation3 + $0x170] sm:$0xff] %v789_v36  ;;  %v2554_v4 = vpop.permute.xlu2 %767  ;;  %985 = vrot.lane.b32.xlu0 %v954_v1, %s2042_s17  ;;  %v736_v1 = vld [vmem:[#allocation2 + $0x50] sm:$0x3] }
  0xf8   :  { %1500 = vmatpush.bf16.msra.mxu0 %v1717_v15  ;;  %1526 = vmatpush.bf16.msra.mxu2 %v1721_v31  ;;  %v732_v31 = vld [vmem:[#allocation2 + $0x34] sm:$0xf] }
  0xf9   :  { %v883_v35 = vpop.permute.xlu1 %882  ;;  %v891_v0 = vpop.permute.xlu0 %890 }
  0xfa   :  { %v902_v42 = vrot.slane %v883_v35, 4  ;;  %v906_v25 = vrot.slane %v891_v0, 4 }
  0xfc   :  { %v917_v16 = vsel %vm243_vm3, %v902_v42, %v903_v33  ;;  %1501 = vmatpush.bf16.msra.mxu0 %v1693_v45  ;;  %1527 = vmatpush.bf16.msra.mxu2 %v1697_v9 }
  0xfd   :  { %v918_v32 = vsel %vm911_vm11, %v883_v35, %v917_v16  ;;  %v2023_v54 = vld [vmem:[#allocation3 + $0x1f4] sm:$0xf0]  ;;  %v1934_v60 = vld [vmem:[#allocation3 + $0x1f8] sm:$0xf0]  ;;  %896 = vrot.lane.b32.xlu2 %v873_v21, %s2043_s18 }
  0xfe   :  { %941 = vst [vmem:[#allocation3 + $0x1b0] sm:$0xff] %v918_v32  ;;  %v1933_v5 = vor.u32 %v2023_v54, %v1932_v38  ;;  %v1937_v15 = vor.u32 %v2020_v57, %v1934_v60  ;;  %v1870_v8 = vld [vmem:[#allocation3 + $0x170] sm:$0xf0]  ;;  %v777_v54 = vrot.slane %v2531_v29, 4 }
  0xff   :  { %888 = vrot.lane.b32.xlu1 %v861_v20, %s2043_s18  ;;  %v1873_v45 = vor.u32 %v2003_v55, %v1870_v8  ;;  %v2570_v35 = vpop.permute.xlu2 %991  ;;  %763 = vrot.lane.b32.xlu0 %v732_v31, %s2039_s14 }
 0x100   :  { %1512 = vmatpush.bf16.msra.mxu1 %v1933_v5  ;;  %1538 = vmatpush.bf16.msra.mxu3 %v1937_v15  ;;  %v1005_v36 = vrot.slane %v2570_v35, 4 }
 0x101   :  { %v2566_v22 = vpop.permute.xlu1 %892  ;;  %1572 = vmatpush.bf16.msrb.mxu0 %v1873_v45  ;;  %v2578_v42 = vpop.permute.xlu0 %656 }
 0x102   :  { %v907_v26 = vrot.slane %v2566_v22, 4  ;;  %v1022_v52 = vsel %vm243_vm3, %v1004_v63, %v1005_v36  ;;  %v678_v53 = vrot.slane %v2578_v42, 4 }
 0x103   :  { %v1023_v16 = vsel %vm1008_vm9, %v2373_v19, %v1022_v52 }
 0x104   :  { %v923_v6 = vsel %vm243_vm3, %v906_v25, %v907_v26  ;;  %1042 = vst [vmem:[#allocation3 + $0x218] sm:$0x33] %v1023_v16  ;;  %v691_v20 = vsel %vm243_vm3, %v677_v48, %v678_v53 }
 0x105   :  { %v924_v9 = vsel %vm911_vm11, %v891_v0, %v923_v6  ;;  %v692_v32 = vsel %vm689_vm5, %v2302_v18, %v691_v20  ;;  %880 = vrot.lane.b32.xlu2 %v849_v58, %s2043_s18  ;;  %v1908_v0 = vld [vmem:[#allocation3 + $0x1b0] sm:$0xf]  ;;  %v2014_v18 = vld [vmem:[#allocation3 + $0x1b4] sm:$0xf] }
 0x106   :  { %944 = vst [vmem:[#allocation3 + $0x1c8] sm:$0xff] %v924_v9 }
 0x107   :  { %771 = vrot.lane.b32.xlu1 %v736_v1, %s2039_s14  ;;  %717 = vst [vmem:[#allocation3 + $0x128] sm:$0xcc] %v692_v32  ;;  %v675_v19 = vpop.permute.xlu2 %674 }
 0x108   :  { %v687_v60 = vrot.slane %v675_v19, 4 }
 0x109   :  { %v665_v38 = vpop.permute.xlu1 %664  ;;  %v2605_v21 = vpop.permute.xlu0 %759 }
 0x10a   :  { %v682_v63 = vrot.slane %v665_v38, 4  ;;  %v705_v56 = vsel %vm243_vm3, %v686_v37, %v687_v60  ;;  %v778_v31 = vrot.slane %v2605_v21, 4 }
 0x10b   :  { %v1111_v55 = vld [vmem:[#allocation3 + $0x218] sm:$0x33] }
 0x10c   :  { %v697_v57 = vsel %vm243_vm3, %v681_v14, %v682_v63  ;;  %v706_v14 = vsel %vm689_vm5, %v2452_v24, %v705_v56  ;;  %v792_v8 = vsel %vm243_vm3, %v777_v54, %v778_v31  ;;  %v1330_v45 = vunpack.c.h.b16 %v1111_v55 }
 0x10d   :  { %v698_v48 = vsel %vm689_vm5, %v2369_v13, %v697_v57  ;;  %v2017_v5 = vld [vmem:[#allocation3 + $0x1c4] sm:$0xf0]  ;;  %v1910_v15 = vld [vmem:[#allocation3 + $0x1c8] sm:$0xf0]  ;;  %v782_v13 = vrot.slane %v2554_v4, 4  ;;  %724 = vst [vmem:[#allocation3 + $0x160] sm:$0xff] %v706_v14  ;;  %v793_v37 = vsel %vm786_vm6, %v2531_v29, %v792_v8 }
 0x10e   :  { %720 = vst [vmem:[#allocation3 + $0x140] sm:$0xff] %v698_v48  ;;  %v1909_v58 = vor.u32 %v2017_v5, %v1908_v0  ;;  %v1913_v25 = vor.u32 %v2014_v18, %v1910_v15  ;;  %v1402_v9 = vpack.c.b16 %v1330_v45, %v1330_v45  ;;  %v1997_v19 = vld [vmem:[#allocation3 + $0x12c] sm:$0xf] }
 0x10f   :  { %816 = vst [vmem:[#allocation3 + $0x180] sm:$0xff] %v793_v37  ;;  %v2619_v52 = vpop.permute.xlu2 %450 }
 0x110   :  { %1513 = vmatpush.bf16.msra.mxu1 %v1909_v58  ;;  %1539 = vmatpush.bf16.msra.mxu3 %v1913_v25  ;;  %v464_v16 = vrot.slane %v2619_v52, 4  ;;  %v1486_v20 = vsel %vm176_vm0, %v1402_v9, 0 }
 0x111   :  { %v766_v6 = vpop.permute.xlu1 %765  ;;  %1589 = vmatpush.bf16.msrb.mxu2 %v1486_v20  ;;  %v875_v57 = vpop.permute.xlu0 %874 }
 0x112   :  { %v781_v1 = vrot.slane %v766_v6, 4  ;;  %v481_v29 = vsel %vm243_vm3, %v463_v61, %v464_v16  ;;  %v898_v48 = vrot.slane %v875_v57, 4 }
 0x113   :  { %v482_v0 = vsel %vm467_vm8, %v2419_v59, %v481_v29 }
 0x114   :  { %v798_v24 = vsel %vm243_vm3, %v781_v1, %v782_v13  ;;  %501 = vst [vmem:[#allocation3 + $0xe0] sm:$0xff] %v482_v0 }
 0x115   :  { %v799_v32 = vsel %vm786_vm6, %v766_v6, %v798_v24  ;;  %v1846_v54 = vld [vmem:[#allocation3 + $0x140] sm:$0xf0]  ;;  %v1329_v6 = vunpack.c.l.b16 %v1111_v55  ;;  %v2006_v55 = vld [vmem:[#allocation3 + $0x16c] sm:$0xf0] }
 0x116   :  { %819 = vst [vmem:[#allocation3 + $0x198] sm:$0x33] %v799_v32  ;;  %v1849_v60 = vor.u32 %v1997_v19, %v1846_v54  ;;  %v2008_v19 = vld [vmem:[#allocation3 + $0x184] sm:$0xf] }
 0x117   :  { %v667_v15 = vpop.permute.xlu2 %666  ;;  %v1401_v20 = vpack.c.b16 %v1329_v6, %v1329_v6 }
 0x118   :  { %1573 = vmatpush.bf16.msrb.mxu0 %v1849_v60  ;;  %v683_v58 = vrot.slane %v667_v15, 4 }
 0x119   :  { %v2634_v5 = vpop.permute.xlu1 %876  ;;  %v532_v61 = vpop.permute.xlu0 %531 }
 0x11a   :  { %v899_v18 = vrot.slane %v2634_v5, 4  ;;  %v699_v14 = vsel %vm243_vm3, %v682_v63, %v683_v58  ;;  %v553_v59 = vrot.slane %v532_v61, 4  ;;  %v1483_v58 = vsel %vm176_vm0, %v1401_v20, 0 }
 0x11b   :  { %v700_v8 = vsel %vm689_vm5, %v665_v38, %v699_v14 }
 0x11c   :  { %v910_v56 = vsel %vm243_vm3, %v898_v48, %v899_v18  ;;  %721 = vst [vmem:[#allocation3 + $0x148] sm:$0xff] %v700_v8  ;;  %v566_v45 = vsel %vm243_vm3, %v552_v2, %v553_v59  ;;  %v1884_v2 = vld [vmem:[#allocation3 + $0x180] sm:$0xf]  ;;  %v1868_v48 = vld [vmem:[#allocation3 + $0x158] sm:$0xf] }
 0x11d   :  { %v912_v25 = vsel %vm911_vm11, %v875_v57, %v910_v56  ;;  %v567_v1 = vsel %vm564_vm7, %v2381_v23, %v566_v45  ;;  %v1869_v56 = vor.u32 %v2006_v55, %v1868_v48  ;;  %v1844_v8 = vld [vmem:[#allocation3 + $0x128] sm:$0xf]  ;;  %v1988_v48 = vld [vmem:[#allocation3 + $0xdc] sm:$0xf0] }
 0x11e   :  { %938 = vst [vmem:[#allocation3 + $0x198] sm:$0xcc] %v912_v25  ;;  %v2000_v25 = vld [vmem:[#allocation3 + $0x13c] sm:$0xf0] }
 0x11f   :  { %592 = vst [vmem:[#allocation3 + $0xf8] sm:$0xff] %v567_v1  ;;  %v2651_v24 = vpop.permute.xlu2 %317  ;;  %v1845_v6 = vor.u32 %v2000_v25, %v1844_v8 }
 0x120   :  { %v335_v63 = vrot.slane %v2651_v24, 4 }
 0x121   :  { %v2646_v37 = vpop.permute.xlu1 %539  ;;  %v756_v57 = vpop.permute.xlu0 %755 }
 0x122   :  { %v557_v9 = vrot.slane %v2646_v37, 4  ;;  %v350_v29 = vsel %vm243_vm3, %v334_v44, %v335_v63  ;;  %v776_v0 = vrot.slane %v756_v57, 4 }
 0x123   :  { %v351_v15 = vsel %vm342_vm10, %v2448_v7, %v350_v29 }
 0x124   :  { %v572_v38 = vsel %vm243_vm3, %v556_v11, %v557_v9  ;;  %373 = vst [vmem:[#allocation3 + $0x98] sm:$0xff] %v351_v15 }
 0x125   :  { %v573_v32 = vsel %vm564_vm7, %v2334_v40, %v572_v38  ;;  %v2011_v23 = vld [vmem:[#allocation3 + $0x194] sm:$0xf0]  ;;  %v1886_v54 = vld [vmem:[#allocation3 + $0x198] sm:$0xf0]  ;;  %v790_v40 = vsel %vm243_vm3, %v775_v3, %v776_v0 }
 0x126   :  { %595 = vst [vmem:[#allocation3 + $0x110] sm:$0xff] %v573_v32  ;;  %v1885_v11 = vor.u32 %v2011_v23, %v1884_v2  ;;  %v1889_v60 = vor.u32 %v2008_v19, %v1886_v54  ;;  %v791_v44 = vsel %vm786_vm6, %v2539_v62, %v790_v40  ;;  %v1991_v38 = vld [vmem:[#allocation3 + $0xfc] sm:$0xf]  ;;  %v1820_v20 = vld [vmem:[#allocation3 + $0xf8] sm:$0xf] }
 0x127   :  { %815 = vst [vmem:[#allocation3 + $0x178] sm:$0xff] %v791_v44  ;;  %v534_v45 = vpop.permute.xlu2 %533  ;;  %v1798_v40 = vld [vmem:[#allocation3 + $0xe0] sm:$0xf0] }
 0x128   :  { %1514 = vmatpush.bf16.msra.mxu1 %v1885_v11  ;;  %1540 = vmatpush.bf16.msra.mxu3 %v1889_v60  ;;  %v554_v1 = vrot.slane %v534_v45, 4 }
 0x129   :  { %v2672_v14 = vpop.permute.xlu1 %442  ;;  %v550_v55 = vpop.permute.xlu0 %549 }
 0x12a   :  { %v460_v7 = vrot.slane %v2672_v14, 4  ;;  %v568_v23 = vsel %vm243_vm3, %v553_v59, %v554_v1  ;;  %v562_v54 = vrot.slane %v550_v55, 4 }
 0x12b   :  { %v569_v29 = vsel %vm564_vm7, %v532_v61, %v568_v23 }
 0x12c   :  { %1546 = vmatpush.bf16.msrb.mxu1 %v1869_v56  ;;  %1563 = vmatpush.bf16.msrb.mxu3 %v1483_v58  ;;  %v475_v3 = vsel %vm243_vm3, %v459_v50, %v460_v7  ;;  %593 = vst [vmem:[#allocation3 + $0x100] sm:$0xff] %v569_v29  ;;  %v580_v50 = vsel %vm243_vm3, %v561_v17, %v562_v54 }
 0x12d   :  { %v476_v2 = vsel %vm467_vm8, %v2406_v49, %v475_v3  ;;  %v1822_v62 = vld [vmem:[#allocation3 + $0x110] sm:$0xf0]  ;;  %v1994_v32 = vld [vmem:[#allocation3 + $0x10c] sm:$0xf0]  ;;  %v581_v11 = vsel %vm564_vm7, %v2507_v12, %v580_v50 }
 0x12e   :  { %498 = vst [vmem:[#allocation3 + $0xc8] sm:$0xff] %v476_v2  ;;  %v1825_v19 = vor.u32 %v1991_v38, %v1822_v62  ;;  %v1821_v57 = vor.u32 %v1994_v32, %v1820_v20 }
 0x12f   :  { %599 = vst [vmem:[#allocation3 + $0x130] sm:$0x33] %v581_v11  ;;  %v2691_v0 = vpop.permute.xlu2 %894 }
 0x130   :  { %1547 = vmatpush.bf16.msrb.mxu1 %v1845_v6  ;;  %1574 = vmatpush.bf16.msrb.mxu0 %v1825_v19  ;;  %v908_v61 = vrot.slane %v2691_v0, 4 }
 0x131   :  { %v659_v49 = vpop.permute.xlu1 %658  ;;  %v2699_v58 = vpop.permute.xlu0 %975 }
 0x132   :  { %v679_v60 = vrot.slane %v659_v49, 4  ;;  %v925_v12 = vsel %vm243_vm3, %v907_v26, %v908_v61  ;;  %v997_v44 = vrot.slane %v2699_v58, 4 }
 0x133   :  { %v926_v8 = vsel %vm911_vm11, %v2566_v22, %v925_v12 }
 0x134   :  { %1548 = vmatpush.bf16.msrb.mxu1 %v1821_v57  ;;  %v693_v59 = vsel %vm243_vm3, %v678_v53, %v679_v60  ;;  %945 = vst [vmem:[#allocation3 + $0x1d0] sm:$0xff] %v926_v8 }
 0x135   :  { %v694_v15 = vsel %vm689_vm5, %v2578_v42, %v693_v59  ;;  %v1796_v17 = vld [vmem:[#allocation3 + $0xc8] sm:$0xf]  ;;  %v1985_v56 = vld [vmem:[#allocation3 + $0xcc] sm:$0xf]  ;;  %v1010_v42 = vsel %vm243_vm3, %v996_v47, %v997_v44 }
 0x136   :  { %718 = vst [vmem:[#allocation3 + $0x130] sm:$0xcc] %v694_v15  ;;  %v1797_v25 = vor.u32 %v1988_v48, %v1796_v17  ;;  %v1801_v53 = vor.u32 %v1985_v56, %v1798_v40  ;;  %v1011_v26 = vsel %vm1008_vm9, %v2433_v30, %v1010_v42  ;;  %v1979_v42 = vld [vmem:[#allocation3 + $0x9c] sm:$0xf] }
 0x137   :  { %1036 = vst [vmem:[#allocation3 + $0x1e8] sm:$0xff] %v1011_v26  ;;  %v453_v3 = vpop.permute.xlu2 %452 }
 0x138   :  { %1549 = vmatpush.bf16.msrb.mxu1 %v1797_v25  ;;  %1575 = vmatpush.bf16.msrb.mxu0 %v1801_v53  ;;  %v465_v1 = vrot.slane %v453_v3, 4  ;;  %v1772_v53 = vld [vmem:[#allocation3 + $0x98] sm:$0xf] }
 0x139   :  { %v2714_v45 = vpop.permute.xlu1 %983  ;;  %v2726_v47 = vpop.permute.xlu0 %325 }
 0x13a   :  { %v1001_v6 = vrot.slane %v2714_v45, 4  ;;  %v483_v30 = vsel %vm243_vm3, %v464_v16, %v465_v1  ;;  %v339_v2 = vrot.slane %v2726_v47, 4 }
 0x13b   :  { %v484_v62 = vsel %vm467_vm8, %v2619_v52, %v483_v30 }
 0x13c   :  { %v1016_v22 = vsel %vm243_vm3, %v1000_v43, %v1001_v6  ;;  %502 = vst [vmem:[#allocation3 + $0xe8] sm:$0xff] %v484_v62  ;;  %v356_v43 = vsel %vm243_vm3, %v338_v10, %v339_v2 }
 0x13d   :  { %v1017_v38 = vsel %vm1008_vm9, %v2523_v34, %v1016_v22  ;;  %v1113_v34 = vld [vmem:[%s2904_s2] sm:$0xff]  ;;  %v357_v16 = vsel %vm342_vm10, %v2464_v41, %v356_v43  ;;  %v135_v43 = vld [vmem:[#allocation2 + $0x8] sm:$0xff] }
 0x13e   :  { %1039 = vst [vmem:[#allocation3 + $0x200] sm:$0xff] %v1017_v38  ;;  %v1121_v20 = vunpack.c.l.b16 %v1113_v34  ;;  %v1122_v32 = vunpack.c.h.b16 %v1113_v34  ;;  %v1940_v29 = vld [vmem:[#allocation3 + $0x1e8] sm:$0xf]  ;;  %v2021_v49 = vld [vmem:[#allocation3 + $0x1ec] sm:$0xf] }
 0x13f   :  { %376 = vst [vmem:[#allocation3 + $0xb0] sm:$0x33] %v357_v16  ;;  %v2744_v52 = vpop.permute.xlu2 %878  ;;  %v138_v16 = vld [vmem:[#allocation2 + $0x24] sm:$0xff] }
 0x140   :  { %v2746_v19 = vpack.c.b16 %v1121_v20, %v1121_v20  ;;  %v2748_v54 = vpack.c.b16 %v1122_v32, %v1122_v32  ;;  %v900_v57 = vrot.slane %v2744_v52, 4  ;;  %144 = vst [vmem:[#allocation3 + $0x8] sm:$0xff] %v135_v43 }
 0x141   :  { %v435_v55 = vpop.permute.xlu1 %434  ;;  %v542_v60 = vpop.permute.xlu0 %541  ;;  %147 = vst [vmem:[#allocation3 + $0x20] sm:$0xff] %v138_v16 }
 0x142   :  { %v456_v23 = vrot.slane %v435_v55, 4  ;;  %1528 = vmatmul.bf16.vlgmr.msra.gmra.mxu2 %v2746_v19  ;;  %1955 = vmatmul.msk.bf16.vlgmr.msra.gmra.mxu3 %vm1471_vm12, %v2748_v54  ;;  %v558_v15 = vrot.slane %v542_v60, 4 }
 0x143   :  { %1502 = vmatmul.bf16.vlgmr.msra.gmra.mxu0 %v2746_v19  ;;  %1954 = vmatmul.msk.bf16.vlgmr.msra.gmra.mxu1 %vm1471_vm12, %v2748_v54 }
 0x144   :  { %v469_v10 = vsel %vm243_vm3, %v455_v27, %v456_v23  ;;  %v913_v27 = vsel %vm243_vm3, %v899_v18, %v900_v57  ;;  %v574_v17 = vsel %vm243_vm3, %v557_v9, %v558_v15 }
 0x145   :  { %v470_v41 = vsel %vm467_vm8, %v2411_v51, %v469_v10  ;;  %v2024_v50 = vld [vmem:[#allocation3 + $0x1fc] sm:$0xf0]  ;;  %v1942_v11 = vld [vmem:[#allocation3 + $0x200] sm:$0xf0]  ;;  %v914_v51 = vsel %vm911_vm11, %v2634_v5, %v913_v27  ;;  %v575_v18 = vsel %vm564_vm7, %v2646_v37, %v574_v17  ;;  %v2044_v27 = vmov 0  }
 0x146   :  { %495 = vst [vmem:[#allocation3 + $0xb0] sm:$0xcc] %v470_v41  ;;  %v1941_v59 = vor.u32 %v2024_v50, %v1940_v29  ;;  %v1945_v48 = vor.u32 %v2021_v49, %v1942_v11  ;;  %v1918_v41 = vld [vmem:[#allocation3 + $0x1d0] sm:$0xf0]  ;;  %2035 = vset.pattern.permute.xlu0 %v2044_v27 }
 0x147   :  { %939 = vst [vmem:[#allocation3 + $0x1a0] sm:$0xcc] %v914_v51  ;;  %v437_v12 = vpop.permute.xlu2 %436  ;;  %v1973_v51 = vld [vmem:[#allocation3 + $0x6c] sm:$0xf] }
 0x148   :  { %1564 = vmatpush.bf16.msrb.mxu3 %v1941_v59  ;;  %1590 = vmatpush.bf16.msrb.mxu2 %v1945_v48  ;;  %596 = vst [vmem:[#allocation3 + $0x118] sm:$0xff] %v575_v18  ;;  %v457_v25 = vrot.slane %v437_v12, 4  ;;  %v1748_v59 = vld [vmem:[#allocation3 + $0x68] sm:$0xf] }
 0x149   :  { %v2772_v56 = vpop.permute.xlu1 %886  ;;  %v2784_v3 = vpop.permute.xlu0 %309 }
 0x14a   :  { %v904_v40 = vrot.slane %v2772_v56, 4  ;;  %v471_v37 = vsel %vm243_vm3, %v456_v23, %v457_v25  ;;  %v331_v38 = vrot.slane %v2784_v3, 4  ;;  %v2018_v23 = vld [vmem:[#allocation3 + $0x1cc] sm:$0xf0] }
 0x14b   :  { %v472_v30 = vsel %vm467_vm8, %v435_v55, %v471_v37  ;;  %v1700_v37 = vld [vmem:[#allocation3 + $0x8] sm:$0xf] }
 0x14c   :  { %v919_v5 = vsel %vm243_vm3, %v903_v33, %v904_v40  ;;  %496 = vst [vmem:[#allocation3 + $0xb8] sm:$0xcc] %v472_v30  ;;  %v1702_v30 = vld [vmem:[#allocation3 + $0x20] sm:$0xf0] }
 0x14d   :  { %v920_v9 = vsel %vm911_vm11, %v2486_v39, %v919_v5  ;;  %v1982_v8 = vld [vmem:[#allocation3 + $0xac] sm:$0xf0]  ;;  %v1774_v26 = vld [vmem:[#allocation3 + $0xb0] sm:$0xf0]  ;;  %v344_v39 = vsel %vm243_vm3, %v330_v46, %v331_v38 }
 0x14e   :  { %942 = vst [vmem:[#allocation3 + $0x1b8] sm:$0xff] %v920_v9  ;;  %v1773_v22 = vor.u32 %v1982_v8, %v1772_v53  ;;  %v1777_v1 = vor.u32 %v1979_v42, %v1774_v26  ;;  %v345_v62 = vsel %vm342_vm10, %v2494_v28, %v344_v39  ;;  %v1724_v53 = vld [vmem:[#allocation3 + $0x38] sm:$0xf]  ;;  %v1970_v9 = vld [vmem:[#allocation3 + $0x4c] sm:$0xf0] }
 0x14f   :  { %370 = vst [vmem:[#allocation3 + $0x80] sm:$0xff] %v345_v62  ;;  %v978_v20 = vpop.permute.xlu2 %977  ;;  %v1726_v8 = vld [vmem:[#allocation3 + $0x50] sm:$0xf0]  ;;  %v1967_v26 = vld [vmem:[#allocation3 + $0x3c] sm:$0xf]  ;;  %v1725_v62 = vor.u32 %v1970_v9, %v1724_v53 }
 0x150   :  { %1550 = vmatpush.bf16.msrb.mxu1 %v1773_v22  ;;  %1576 = vmatpush.bf16.msrb.mxu0 %v1777_v1  ;;  %v998_v32 = vrot.slane %v978_v20, 4  ;;  %v1964_v22 = vld [vmem:[#allocation3 + $0x1c] sm:$0xf0]  ;;  %v1961_v1 = vld [vmem:[#allocation3 + $0xc] sm:$0xf]  ;;  %v1729_v43 = vor.u32 %v1967_v26, %v1726_v8 }
 0x151   :  { %v445_v33 = vpop.permute.xlu1 %444  ;;  %v2804_v11 = vpop.permute.xlu0 %761  ;;  %v1701_v16 = vor.u32 %v1964_v22, %v1700_v37  ;;  %v2001_v9 = vld [vmem:[#allocation3 + $0x144] sm:$0xf0]  ;;  %v1854_v8 = vld [vmem:[#allocation3 + $0x148] sm:$0xf0]  ;;  %v1995_v26 = vld [vmem:[#allocation3 + $0x114] sm:$0xf0] }
 0x152   :  { %v461_v34 = vrot.slane %v445_v33, 4  ;;  %v1012_v28 = vsel %vm243_vm3, %v997_v44, %v998_v32  ;;  %v136_v32 = vld [vmem:[#allocation2 + $0x10] sm:$0xff] }
 0x153   :  { %v1013_v60 = vsel %vm1008_vm9, %v2699_v58, %v1012_v28  ;;  %145 = vst [vmem:[#allocation3 + $0x10] sm:$0xff] %v136_v32  ;;  %v1830_v37 = vld [vmem:[#allocation3 + $0x118] sm:$0xf0]  ;;  %v1828_v22 = vld [vmem:[#allocation3 + $0x100] sm:$0xf] }
 0x154   :  { %v477_v55 = vsel %vm243_vm3, %v460_v7, %v461_v34  ;;  %v1114_v7 = vld [vmem:[%s2905_s3] sm:$0xff]  ;;  %1037 = vst [vmem:[#allocation3 + $0x1f0] sm:$0xff] %v1013_v60 }
 0x155   :  { %v478_v46 = vsel %vm467_vm8, %v2672_v14, %v477_v55  ;;  %v1916_v10 = vld [vmem:[#allocation3 + $0x1b8] sm:$0xf]  ;;  %v2015_v29 = vld [vmem:[#allocation3 + $0x1bc] sm:$0xf]  ;;  %v779_v14 = vrot.slane %v2804_v11, 4  ;;  %1117 = vperm.xlu0 %2035, %v1114_v7  }
 0x156   :  { %499 = vst [vmem:[#allocation3 + $0xd0] sm:$0xff] %v478_v46  ;;  %v1917_v50 = vor.u32 %v2018_v23, %v1916_v10  ;;  %v1921_v49 = vor.u32 %v2015_v29, %v1918_v41  ;;  %v1976_v15 = vld [vmem:[#allocation3 + $0x7c] sm:$0xf0]  ;;  %v1750_v17 = vld [vmem:[#allocation3 + $0x80] sm:$0xf0]  ;;  %v139_v23 = vld [vmem:[#allocation2 + $0x2c] sm:$0xff] }
 0x157   :  { %v794_v48 = vsel %vm243_vm3, %v778_v31, %v779_v14  ;;  %v1749_v12 = vor.u32 %v1976_v15, %v1748_v59  ;;  %v1753_v5 = vor.u32 %v1973_v51, %v1750_v17  ;;  %v897_v25 = vpop.permute.xlu2 %896  ;;  %v2007_v10 = vld [vmem:[#allocation3 + $0x174] sm:$0xf0]  ;;  %148 = vst [vmem:[#allocation3 + $0x28] sm:$0xff] %v139_v23  ;;  %v2004_v15 = vld [vmem:[#allocation3 + $0x164] sm:$0xf] }
 0x158   :  { %1565 = vmatpush.bf16.msrb.mxu3 %v1917_v50  ;;  %1591 = vmatpush.bf16.msrb.mxu2 %v1921_v49  ;;  %v795_v18 = vsel %vm786_vm6, %v2605_v21, %v794_v48  ;;  %v909_v42 = vrot.slane %v897_v25, 4  ;;  %v1878_v50 = vld [vmem:[#allocation3 + $0x178] sm:$0xf0]  ;;  %v1876_v48 = vld [vmem:[#allocation3 + $0x160] sm:$0xf] }
 0x159   :  { %v2812_v44 = vpop.permute.xlu1 %769  ;;  %817 = vst [vmem:[#allocation3 + $0x188] sm:$0xff] %v795_v18  ;;  %1551 = vmatpush.bf16.msrb.mxu1 %v1749_v12  ;;  %1577 = vmatpush.bf16.msrb.mxu0 %v1753_v5  ;;  %v320_v33 = vpop.permute.xlu0 %319  ;;  %v1877_v18 = vor.u32 %v2007_v10, %v1876_v48  ;;  %v1881_v12 = vor.u32 %v2004_v15, %v1878_v50 }
 0x15a   :  { %v783_v58 = vrot.slane %v2812_v44, 4  ;;  %v927_v39 = vsel %vm243_vm3, %v908_v61, %v909_v42  ;;  %v336_v34 = vrot.slane %v320_v33, 4 }
 0x15c   :  { %v800_v31 = vsel %vm243_vm3, %v782_v13, %v783_v58  ;;  %v928_v13 = vsel %vm911_vm11, %v2691_v0, %v927_v39  ;;  %v352_v55 = vsel %vm243_vm3, %v335_v63, %v336_v34  ;;  %v1829_v39 = vor.u32 %v1995_v26, %v1828_v22  ;;  %v1962_v26 = vld [vmem:[#allocation3 + $0x14] sm:$0xf] }
 0x15d   :  { %v801_v21 = vsel %vm786_vm6, %v2554_v4, %v800_v31  ;;  %946 = vst [vmem:[#allocation3 + $0x1d8] sm:$0xff] %v928_v13  ;;  %1552 = vmatpush.bf16.msrb.mxu1 %v1725_v62  ;;  %1578 = vmatpush.bf16.msrb.mxu0 %v1729_v43  ;;  %v1705_v4 = vor.u32 %v1961_v1, %v1702_v30  ;;  %v1992_v1 = vld [vmem:[#allocation3 + $0x104] sm:$0xf]  ;;  %v1804_v62 = vld [vmem:[#allocation3 + $0xd0] sm:$0xf] }
 0x15e   :  { %820 = vst [vmem:[#allocation3 + $0x1a0] sm:$0x33] %v801_v21  ;;  %v353_v46 = vsel %vm342_vm10, %v2651_v24, %v352_v55  ;;  %v1833_v33 = vor.u32 %v1992_v1, %v1830_v37  ;;  %v1986_v43 = vld [vmem:[#allocation3 + $0xd4] sm:$0xf]  ;;  %v1710_v37 = vld [vmem:[#allocation3 + $0x28] sm:$0xf0] }
 0x15f   :  { %374 = vst [vmem:[#allocation3 + $0xa0] sm:$0xff] %v353_v46  ;;  %v881_v0 = vpop.permute.xlu2 %880 }
 0x160   :  { %v901_v41 = vrot.slane %v881_v0, 4  ;;  %v1892_v28 = vld [vmem:[#allocation3 + $0x188] sm:$0xf]  ;;  %v2009_v7 = vld [vmem:[#allocation3 + $0x18c] sm:$0xf] }
 0x161   :  { %v328_v20 = vpop.permute.xlu1 %327  ;;  %1553 = vmatpush.bf16.msrb.mxu1 %v1701_v16  ;;  %1579 = vmatpush.bf16.msrb.mxu0 %v1705_v4  ;;  %v1989_v16 = vld [vmem:[#allocation3 + $0xe4] sm:$0xf0]  ;;  %v1806_v4 = vld [vmem:[#allocation3 + $0xe8] sm:$0xf0] }
 0x162   :  { %v340_v61 = vrot.slane %v328_v20, 4  ;;  %v915_v60 = vsel %vm243_vm3, %v900_v57, %v901_v41  ;;  %v1998_v57 = vld [vmem:[#allocation3 + $0x134] sm:$0xf]  ;;  %v1805_v20 = vor.u32 %v1989_v16, %v1804_v62  ;;  %v1809_v55 = vor.u32 %v1986_v43, %v1806_v4 }
 0x163   :  { %v916_v51 = vsel %vm911_vm11, %v2744_v52, %v915_v60  ;;  %v1857_v42 = vor.u32 %v1998_v57, %v1854_v8  ;;  %v1734_v57 = vld [vmem:[#allocation3 + $0x58] sm:$0xf0]  ;;  %v1713_v62 = vor.u32 %v1962_v26, %v1710_v37 }
 0x164   :  { %v358_v29 = vsel %vm243_vm3, %v339_v2, %v340_v61  ;;  %v312_v2 = vpop.permute.xlu0 %311  ;;  %1554 = vmatmul.bf16.vlgmr.msrb.gmra.mxu1 %v2746_v19  ;;  %1580 = vmatmul.bf16.vlgmr.msrb.gmra.mxu0 %v2746_v19  ;;  %940 = vst [vmem:[#allocation3 + $0x1a8] sm:$0xcc] %v916_v51  ;;  %v2019_v1 = vld [vmem:[#allocation3 + $0x1d4] sm:$0xf0] }
 0x165   :  { %v359_v63 = vsel %vm342_vm10, %v2726_v47, %v358_v29  ;;  %v2012_v49 = vld [vmem:[#allocation3 + $0x19c] sm:$0xf0]  ;;  %v1894_v24 = vld [vmem:[#allocation3 + $0x1a0] sm:$0xf0]  ;;  %v332_v17 = vrot.slane %v312_v2, 4 }
 0x166   :  { %377 = vst [vmem:[#allocation3 + $0xb8] sm:$0x33] %v359_v63  ;;  %v1893_v27 = vor.u32 %v2012_v49, %v1892_v28  ;;  %v1897_v59 = vor.u32 %v2009_v7, %v1894_v24  ;;  %v1852_v47 = vld [vmem:[#allocation3 + $0x130] sm:$0xf]  ;;  %v1980_v10 = vld [vmem:[#allocation3 + $0xa4] sm:$0xf] }
 0x167   :  { %v346_v25 = vsel %vm243_vm3, %v331_v38, %v332_v17  ;;  %v1853_v31 = vor.u32 %v2001_v9, %v1852_v47  ;;  %v1708_v9 = vld [vmem:[#allocation3 + $0x10] sm:$0xf] }
 0x168   :  { %1566 = vmatpush.bf16.msrb.mxu3 %v1893_v27  ;;  %1592 = vmatpush.bf16.msrb.mxu2 %v1897_v59  ;;  %v347_v53 = vsel %vm342_vm10, %v2784_v3, %v346_v25  ;;  %v1756_v27 = vld [vmem:[#allocation3 + $0x70] sm:$0xf]  ;;  %v1974_v59 = vld [vmem:[#allocation3 + $0x74] sm:$0xf] }
 0x169   :  { %v994_v5 = vpop.permute.xlu1 %993  ;;  %371 = vst [vmem:[#allocation3 + $0x88] sm:$0xff] %v347_v53  ;;  %v1948_v25 = vld [vmem:[#allocation3 + $0x1f0] sm:$0xf]  ;;  %v1968_v53 = vld [vmem:[#allocation3 + $0x44] sm:$0xf] }
 0x16a   :  { %v1006_v52 = vrot.slane %v994_v5, 4  ;;  %v1737_v22 = vor.u32 %v1968_v53, %v1734_v57 }
 0x16b   :  { %1956 = vmatmul.msk.bf16.vlgmr.msrb.gmra.mxu3 %vm1471_vm12, %v2748_v54  ;;  %1957 = vmatmul.msk.bf16.vlgmr.msrb.gmra.mxu2 %vm1471_vm12, %v2748_v54 }
 0x16c   :  { %1598 = vmatpush.bf16.msra.mxu3 %v1877_v18  ;;  %1624 = vmatpush.bf16.msra.mxu2 %v1881_v12  ;;  %v1024_v38 = vsel %vm243_vm3, %v1005_v36, %v1006_v52  ;;  %v986_v21 = vpop.permute.xlu0 %985  ;;  %v1971_v18 = vld [vmem:[#allocation3 + $0x54] sm:$0xf0]  ;;  %v2022_v52 = vld [vmem:[#allocation3 + $0x1f4] sm:$0xf] }
 0x16d   :  { %v1025_v3 = vsel %vm1008_vm9, %v2570_v35, %v1024_v38  ;;  %v1002_v30 = vrot.slane %v986_v21, 4  ;;  %v1983_v23 = vld [vmem:[#allocation3 + $0xb4] sm:$0xf0]  ;;  %v1782_v61 = vld [vmem:[#allocation3 + $0xb8] sm:$0xf0] }
 0x16e   :  { %1043 = vst [vmem:[#allocation3 + $0x220] sm:$0x33] %v1025_v3  ;;  %v1785_v63 = vor.u32 %v1980_v10, %v1782_v61  ;;  %v1965_v38 = vld [vmem:[#allocation3 + $0x24] sm:$0xf0] }
 0x16f   :  { %v1018_v36 = vsel %vm243_vm3, %v1001_v6, %v1002_v30  ;;  %v1926_v30 = vld [vmem:[#allocation3 + $0x1d8] sm:$0xf0] }
 0x170   :  { %1599 = vmatpush.bf16.msra.mxu3 %v1853_v31  ;;  %1625 = vmatpush.bf16.msra.mxu2 %v1857_v42  ;;  %v1019_v35 = vsel %vm1008_vm9, %v2714_v45, %v1018_v36  ;;  %v1780_v45 = vld [vmem:[#allocation3 + $0xa0] sm:$0xf]  ;;  %v1758_v24 = vld [vmem:[#allocation3 + $0x88] sm:$0xf0] }
 0x171   :  { %v889_v13 = vpop.permute.xlu1 %888  ;;  %1040 = vst [vmem:[#allocation3 + $0x208] sm:$0xff] %v1019_v35  ;;  %v1781_v50 = vor.u32 %v1983_v23, %v1780_v45  ;;  %v1761_v47 = vor.u32 %v1974_v59, %v1758_v24 }
 0x172   :  { %v905_v34 = vrot.slane %v889_v13, 4 }
 0x174   :  { %1600 = vmatpush.bf16.msra.mxu3 %v1829_v39  ;;  %1626 = vmatpush.bf16.msra.mxu2 %v1833_v33  ;;  %v921_v32 = vsel %vm243_vm3, %v904_v40, %v905_v34  ;;  %v764_v0 = vpop.permute.xlu0 %763  ;;  %v1977_v40 = vld [vmem:[#allocation3 + $0x84] sm:$0xf0]  ;;  %v1709_v39 = vor.u32 %v1965_v38, %v1708_v9 }
 0x175   :  { %v922_v6 = vsel %vm911_vm11, %v2772_v56, %v921_v32  ;;  %v1112_v46 = vld [vmem:[#allocation3 + $0x220] sm:$0x33]  ;;  %v780_v28 = vrot.slane %v764_v0, 4  ;;  %v1757_v12 = vor.u32 %v1977_v40, %v1756_v27 }
 0x176   :  { %943 = vst [vmem:[#allocation3 + $0x1c0] sm:$0xff] %v922_v6  ;;  %v1331_v29 = vunpack.c.l.b16 %v1112_v46  ;;  %v1332_v41 = vunpack.c.h.b16 %v1112_v46 }
 0x177   :  { %v796_v56 = vsel %vm243_vm3, %v779_v14, %v780_v28 }
 0x178   :  { %1601 = vmatpush.bf16.msra.mxu3 %v1805_v20  ;;  %1627 = vmatpush.bf16.msra.mxu2 %v1809_v55  ;;  %v1403_v49 = vpack.c.b16 %v1331_v29, %v1331_v29  ;;  %v1404_v7 = vpack.c.b16 %v1332_v41, %v1332_v41  ;;  %v797_v48 = vsel %vm786_vm6, %v2804_v11, %v796_v56  ;;  %v2025_v17 = vld [vmem:[#allocation3 + $0x204] sm:$0xf0]  ;;  %v1950_v14 = vld [vmem:[#allocation3 + $0x208] sm:$0xf0]  ;;  %v1732_v11 = vld [vmem:[#allocation3 + $0x40] sm:$0xf] }
 0x179   :  { %v772_v60 = vpop.permute.xlu1 %771  ;;  %818 = vst [vmem:[#allocation3 + $0x190] sm:$0xff] %v797_v48  ;;  %v1949_v31 = vor.u32 %v2025_v17, %v1948_v25  ;;  %v1953_v42 = vor.u32 %v2022_v52, %v1950_v14 }
 0x17a   :  { %v784_v2 = vrot.slane %v772_v60, 4  ;;  %v1489_v15 = vsel %vm176_vm0, %v1403_v49, 0  ;;  %v1492_v51 = vsel %vm176_vm0, %v1404_v7, 0 }
 0x17b   :  { %1615 = vmatpush.bf16.msra.mxu1 %v1489_v15  ;;  %1641 = vmatpush.bf16.msra.mxu0 %v1492_v51 }
 0x17c   :  { %1602 = vmatpush.bf16.msra.mxu3 %v1781_v50  ;;  %1628 = vmatpush.bf16.msra.mxu2 %v1785_v63  ;;  %v802_v5 = vsel %vm243_vm3, %v783_v58, %v784_v2  ;;  %v1733_v58 = vor.u32 %v1971_v18, %v1732_v11 }
 0x17d   :  { %v803_v8 = vsel %vm786_vm6, %v2812_v44, %v802_v5  ;;  %v1924_v3 = vld [vmem:[#allocation3 + $0x1c0] sm:$0xf]  ;;  %v2016_v21 = vld [vmem:[#allocation3 + $0x1c4] sm:$0xf] }
 0x17e   :  { %821 = vst [vmem:[#allocation3 + $0x1a8] sm:$0x33] %v803_v8  ;;  %v1925_v44 = vor.u32 %v2019_v1, %v1924_v3  ;;  %v1929_v33 = vor.u32 %v2016_v21, %v1926_v30 }
 0x17f   :  { %1616 = vmatpush.bf16.msra.mxu1 %v1949_v31  ;;  %1642 = vmatpush.bf16.msra.mxu0 %v1953_v42 }
 0x180   :  { %1603 = vmatpush.bf16.msra.mxu3 %v1757_v12  ;;  %1629 = vmatpush.bf16.msra.mxu2 %v1761_v47  ;;  %v1900_v43 = vld [vmem:[#allocation3 + $0x190] sm:$0xf]  ;;  %v2010_v36 = vld [vmem:[#allocation3 + $0x194] sm:$0xf] }
 0x183   :  { %1617 = vmatpush.bf16.msra.mxu1 %v1925_v44  ;;  %1643 = vmatpush.bf16.msra.mxu0 %v1929_v33 }
 0x184   :  { %1604 = vmatpush.bf16.msra.mxu3 %v1733_v58  ;;  %1630 = vmatpush.bf16.msra.mxu2 %v1737_v22 }
 0x185   :  { %v2013_v13 = vld [vmem:[#allocation3 + $0x1a4] sm:$0xf0]  ;;  %v1902_v34 = vld [vmem:[#allocation3 + $0x1a8] sm:$0xf0] }
 0x186   :  { %v1901_v35 = vor.u32 %v2013_v13, %v1900_v43  ;;  %v1905_v16 = vor.u32 %v2010_v36, %v1902_v34 }
 0x188   :  { %1605 = vmatpush.bf16.msra.mxu3 %v1709_v39  ;;  %1631 = vmatpush.bf16.msra.mxu2 %v1713_v62 }
 0x189   :  { %1618 = vmatpush.bf16.msra.mxu1 %v1901_v35  ;;  %1644 = vmatpush.bf16.msra.mxu0 %v1905_v16 }
 0x18b   :  { %1606 = vmatmul.bf16.vlgmr.msra.gmra.mxu3 %v2746_v19  ;;  %1632 = vmatmul.bf16.vlgmr.msra.gmra.mxu2 %v2746_v19 }
 0x18c   :  { %1958 = vmatmul.msk.bf16.vlgmr.msra.gmra.mxu1 %vm1471_vm12, %v2748_v54  ;;  %1959 = vmatmul.msk.bf16.vlgmr.msra.gmra.mxu0 %vm1471_vm12, %v2748_v54 }
 0x1c0   :  { %v1503_v4 = vpop.f32.mrf.mxu0  ;;  %v1516_v20 = vpop.f32.mrf.mxu1 }
 0x1c5   :  { %v1529_v55 = vpop.f32.mrf.mxu2  ;;  %v1542_v32 = vpop.f32.mrf.mxu3 }
 0x1c7   :  { %v1118_v23 = vpop.permute.xlu0 %1117 }
 0x1c8   :  { %v1505_v61 = vpop.f32.mrf.mxu0  ;;  %v1504_v6 = vadd.f32 %v1503_v4, %v1118_v23  ;;  %v1530_v46 = vadd.f32 %v1529_v55, %v1118_v23  ;;  %v1518_v0 = vpop.f32.mrf.mxu1 }
 0x1ca   :  { %v1517_v45 = vadd.f32 %v1516_v20, %v1504_v6  ;;  %v1543_v10 = vadd.f32 %v1542_v32, %v1530_v46 }
 0x1cc   :  { %vm1650_vm13 = vcmp.ge.f32.partialorder %v1517_v45, 0.0  ;;  %vm1651_vm14 = vcmp.ge.f32.partialorder %v1543_v10, 0.0  ;;  %v1656_v19 = vmul.f32 0.01, %v1517_v45  ;;  %v1657_v29 = vmul.f32 0.01, %v1543_v10 }
 0x1cd   :  { %v1531_v41 = vpop.f32.mrf.mxu2  ;;  %v1544_v28 = vpop.f32.mrf.mxu3 }
 0x1ce   :  { %v1662_v50 = vsel %vm1650_vm13, %v1517_v45, %v1656_v19  ;;  %v1663_v63 = vsel %vm1651_vm14, %v1543_v10, %v1657_v29 }
 0x1cf   :  { %v1668_v54 = vpack.c.bf16 %v1663_v63, %v1662_v50 }
 0x1d1   :  { %1671 = vst [vmem:[%s2906_s4] sm:$0xff] %v1668_v54 }
 0x1e1   :  { %v1555_v49 = vpop.f32.mrf.mxu1  ;;  %v1581_v7 = vpop.f32.mrf.mxu0 }
 0x1e2   :  { %v1556_v40 = vadd.f32 %v1555_v49, %v1118_v23  ;;  %v1582_v24 = vadd.f32 %v1581_v7, %v1118_v23 }
 0x1e9   :  { %v1557_v60 = vpop.f32.mrf.mxu1  ;;  %v1583_v56 = vpop.f32.mrf.mxu0 }
 0x1ee   :  { %v1568_v27 = vpop.f32.mrf.mxu3  ;;  %v1594_v59 = vpop.f32.mrf.mxu2 }
 0x1ef   :  { %v1569_v2 = vadd.f32 %v1568_v27, %v1556_v40  ;;  %v1595_v48 = vadd.f32 %v1594_v59, %v1582_v24 }
 0x1f1   :  { %vm1652_vm15 = vcmp.ge.f32.partialorder %v1569_v2, 0.0  ;;  %v1658_v15 = vmul.f32 0.01, %v1569_v2  ;;  %vm1653_vm0 = vcmp.ge.f32.partialorder %v1595_v48, 0.0  ;;  %v1659_v51 = vmul.f32 0.01, %v1595_v48 }
 0x1f3   :  { %v1664_v17 = vsel %vm1652_vm15, %v1569_v2, %v1658_v15  ;;  %v1665_v18 = vsel %vm1653_vm0, %v1595_v48, %v1659_v51 }
 0x1f4   :  { %v1669_v12 = vpack.c.bf16 %v1665_v18, %v1664_v17 }
 0x1f6   :  { %1672 = vst [vmem:[%s2906_s4 + $0x8] sm:$0xff] %v1669_v12  ;;  %v1570_v47 = vpop.f32.mrf.mxu3  ;;  %v1596_v14 = vpop.f32.mrf.mxu2 }
 0x209   :  { %v1620_v57 = vpop.f32.mrf.mxu1  ;;  %v1646_v5 = vpop.f32.mrf.mxu0 }
 0x20e   :  { %v1607_v25 = vpop.f32.mrf.mxu3  ;;  %v1633_v11 = vpop.f32.mrf.mxu2 }
 0x20f   :  { %v1608_v52 = vadd.f32 %v1607_v25, %v1118_v23  ;;  %v1634_v53 = vadd.f32 %v1633_v11, %v1118_v23 }
 0x211   :  { %v1621_v9 = vadd.f32 %v1620_v57, %v1608_v52  ;;  %v1647_v8 = vadd.f32 %v1646_v5, %v1634_v53  ;;  %v1622_v42 = vpop.f32.mrf.mxu1  ;;  %v1648_v26 = vpop.f32.mrf.mxu0 }
 0x213   :  { %vm1654_vm1 = vcmp.ge.f32.partialorder %v1621_v9, 0.0  ;;  %v1660_v31 = vmul.f32 0.01, %v1621_v9  ;;  %vm1655_vm2 = vcmp.ge.f32.partialorder %v1647_v8, 0.0  ;;  %v1661_v38 = vmul.f32 0.01, %v1647_v8 }
 0x215   :  { %v1666_v37 = vsel %vm1654_vm1, %v1621_v9, %v1660_v31  ;;  %v1667_v3 = vsel %vm1655_vm2, %v1647_v8, %v1661_v38 }
 0x216   :  { %v1609_v21 = vpop.f32.mrf.mxu3  ;;  %v1670_v58 = vpack.c.bf16 %v1667_v3, %v1666_v37  ;;  %v1635_v22 = vpop.f32.mrf.mxu2 }
 0x218   :  { %1673 = vst [vmem:[%s2906_s4 + $0x10] sm:$0xff] %v1670_v58 }

// kernel: e2e_varnet_forward.41
= control target key start
LH: loop header
LB: loop body
LE: loop exit
PB: predicated region body
PF: predicated region fallthrough
CT: control target
= control target key end

     0   :  { %s1398_s11 = smov 0   ;;  %s1400_s12 = smov 0   ;;  %s1452_s0 = inlined_call_operand.<no memory space> [shape: f32[1], index: 0, kind: input, shape index: {}]   ;;  %s1453_s1 = inlined_call_operand.vmem [shape: f32[1,10,1,2,256], index: 1, kind: input, shape index: {}, may-alias: {1,3}]   ;;  %s1454_s2 = inlined_call_operand.vmem [shape: f32[1,10,1,2,256], index: 2, kind: input, shape index: {}, may-alias: {2,4}]   ;;  %s1455_s3 = inlined_call_operand.vmem [shape: f32[1,10,1,2,256], index: 3, kind: input, shape index: {}, may-alias: {1,3}]   ;;  %s1456_s4 = inlined_call_operand.vmem [shape: f32[1,10,1,2,256], index: 4, kind: input, shape index: {}, may-alias: {2,4}]   ;;  %s1457_s5 = inlined_call_operand.vmem [shape: f32[1,1,2,256], index: 5, kind: input, shape index: {}]   ;;  %s1458_s6 = inlined_call_operand.vmem [shape: f32[1,10,1,2,256], index: 6, kind: input, shape index: {}]   ;;  %s1459_s7 = inlined_call_operand.vmem [shape: f32[1,10,1,2,256], index: 7, kind: input, shape index: {}]   ;;  %s1460_s8 = inlined_call_operand.vmem [shape: f32[1,10,1,2,256], index: 8, kind: output, shape index: {0}]   ;;  %s1461_s9 = inlined_call_operand.vmem [shape: f32[1,10,1,2,256], index: 9, kind: output, shape index: {1}]  }
   0x1   :  { %15 = sst [smem:[#allocation2]] %s1452_s0  ;;  %s1402_s13 = smov 0  }
   0x2 LB: > { %s36_s0 = sadd.s32 1, %s1339_s12  ;;  %p1270_p0 = scmp.ge.s32.totalorder %s1343_s13, 1  ;;  %s1343_s13 = sphi %s1402_s13, %s21_s13   ;;  %s1339_s12 = sphi %s1400_s12, %s1463_s12   ;;  %s1335_s11 = sphi %s1398_s11, %s1462_s11  }
   0x3   : > { %p37_p1 = scmp.ge.s32.totalorder %s36_s0, 10  ;;  %p516_p2 = scmp.lt.s32.totalorder %s1343_s13, 11 }
   0x5   : > { %s1465_s0 = smov (%p37_p1, %s36_s0), 0  ;;  %p517_p3 = pnand %p1270_p0, %p516_p2 }
   0x6   : > { %p694_p4 = scmp.lt.s32.totalorder (!%p517_p3), %s1335_s11, 9  ;;  %s849_s14 = sld [smem:[#allocation2]] (!%p517_p3) }
   0x7   : > { %520 = sbr.rel (%p517_p3) target bundleno = 28 (0x1c), region = 52 }
   0xc   : > { %s1467_s11 = smov (!%p694_p4, %s1335_s11), 9  ;;  %v850_v0 = vld [vmem:[%s1457_s5] sm:$0xf]  ;;  %v851_v1 = vstv %s849_s14 }
   0xd   : > { %s1289_s15 = sshll.u32 %s1467_s11, 2  ;;  %v852_v4 = vmul.f32 %v851_v1, %v850_v0 }
   0xe   : > { %s707_s20 = scalar_lea.vmem %s1453_s1, %s1289_s15  ;;  %s743_s23 = scalar_lea.vmem %s1455_s3, %s1289_s15 }
   0xf   : > { %s793_s26 = scalar_lea.vmem %s1458_s6, %s1289_s15  ;;  %v853_v2 = vld [vmem:[%s707_s20] sm:$0xf]  ;;  %s725_s29 = scalar_lea.vmem %s1454_s2, %s1289_s15 }
  0x10   : > { %v855_v3 = vld [vmem:[%s743_s23] sm:$0xf]  ;;  %s761_s11 = scalar_lea.vmem %s1456_s4, %s1289_s15  ;;  %s811_s18 = scalar_lea.vmem %s1459_s7, %s1289_s15 }
  0x11   : > { %v856_v5 = vsub.f32 %v853_v2, %v855_v3  ;;  %v854_v6 = vld [vmem:[%s725_s29] sm:$0xf]  ;;  %s829_s20 = scalar_lea.vmem %s1460_s8, %s1289_s15  ;;  %s847_s23 = scalar_lea.vmem %s1461_s9, %s1289_s15 }
  0x12   : > { %v862_v7 = vld [vmem:[%s761_s11] sm:$0xf] }
  0x13   : > { %v857_v8 = vmul.f32 %v856_v5, %v852_v4  ;;  %v863_v9 = vsub.f32 %v854_v6, %v862_v7  ;;  %v859_v10 = vld [vmem:[%s793_s26] sm:$0xf] }
  0x14   : > { %v866_v13 = vld [vmem:[%s811_s18] sm:$0xf] }
  0x15   : > { %v858_v11 = vsub.f32 %v853_v2, %v857_v8  ;;  %v864_v12 = vmul.f32 %v863_v9, %v852_v4 }
  0x17   : > { %v860_v14 = vadd.f32 %v859_v10, %v858_v11  ;;  %v865_v15 = vsub.f32 %v854_v6, %v864_v12 }
  0x19   : > { %861 = vst [vmem:[%s829_s20] sm:$0xf] %v860_v14  ;;  %v867_v16 = vadd.f32 %v866_v13, %v865_v15 }
  0x1b   : > { %868 = vst [vmem:[%s847_s23] sm:$0xf] %v867_v16 }
  0x1c PF: > { %s21_s13 = sadd.s32 1, %s1343_s13   ;;  %s1462_s11 = smov %s1339_s12 }
  0x1d   : > { %p18_p5 = scmp.ge.s32.totalorder %s21_s13, 12   ;;  %s1463_s12 = smov %s1465_s0 }
  0x1f   :  { %20 = sbr.rel (!%p18_p5) target bundleno = 2 (0x2), region = 112 }

// kernel: custom-call.2
= control target key start
LH: loop header
LB: loop body
LE: loop exit
PB: predicated region body
PF: predicated region fallthrough
CT: control target
= control target key end

     0   :  { %s105_s0 = inlined_call_operand.vmem [shape: f32[1,10,1,2,16,16], index: 0, kind: input, shape index: {}]   ;;  %s106_s1 = inlined_call_operand.vmem [shape: f32[1,10,1,2,16,16], index: 1, kind: input, shape index: {}]   ;;  %s107_s2 = inlined_call_operand.hbm [shape: c64[1,10,1,2,16,16], index: 2, kind: output, shape index: {}]  }
   0x1   :  { %s3_s11 = scalar_lea.hbm %s107_s2, 320 }
   0x2   :  { %4 = vsyncpa [#allocation0], 0  ;;  %s6_s14 = sshll.u32 %s105_s0, 4  ;;  %s8_s17 = sshll.u32 %s107_s2, 4  ;;  %s7_s14 = int_to_ptr.vmem [resolvable:$true] %s6_s14  ;;  %s9_s17 = int_to_ptr.hbm [resolvable:$true] %s8_s17 }
   0x3   :  { %11 = dma.vmem_to_hbm [thread:$0]  %s7_s14, 5120, %s9_s17, [#allocation0] }
   0x4   :  { %74 = dma.done.wait [#allocation0], 5120  }
   0x5   :  { %75 = vsyncadd [#allocation0], 4294962176 }
   0x6   :  { %14 = vsyncpa [#allocation0], 1 }
   0x7   :  { %15 = vsyncpa [#allocation1], 0  ;;  %s17_s20 = sshll.u32 %s106_s1, 4  ;;  %s19_s21 = sshll.u32 %s3_s11, 4  ;;  %s18_s20 = int_to_ptr.vmem [resolvable:$true] %s17_s20  ;;  %s20_s21 = int_to_ptr.hbm [resolvable:$true] %s19_s21 }
   0x8   :  { %22 = dma.vmem_to_hbm [thread:$0]  %s18_s20, 5120, %s20_s21, [#allocation1] }
   0x9   :  { %76 = dma.done.wait [#allocation1], 5120  }
   0xa   :  { %77 = vsyncadd [#allocation1], 4294962176 }
   0xb   :  { %25 = vsyncpa [#allocation1], 1 }

// kernel: e2e_varnet_forward.52
= control target key start
LH: loop header
LB: loop body
LE: loop exit
PB: predicated region body
PF: predicated region fallthrough
CT: control target
= control target key end

     0   :  { %s561_s9 = smov 0   ;;  %s563_s10 = smov 0   ;;  %s609_s0 = inlined_call_operand.vmem [shape: f32[1,10,1,2,256], index: 0, kind: input, shape index: {}]   ;;  %s610_s1 = inlined_call_operand.vmem [shape: f32[1,10,1,2,256], index: 1, kind: input, shape index: {}]   ;;  %s611_s2 = inlined_call_operand.vmem [shape: f32[1,1,2,256], index: 2, kind: output, shape index: {}]  }
   0x1   :  { %s565_s11 = smov 0  }
   0x2 LB: > { %s27_s12 = sadd.s32 1, %s539_s10  ;;  %p481_p0 = scmp.ge.s32.totalorder %s543_s11, 1  ;;  %s543_s11 = sphi %s565_s11, %s12_s11   ;;  %s539_s10 = sphi %s563_s10, %s613_s10   ;;  %s535_s9 = sphi %s561_s9, %s612_s9  }
   0x3   : > { %p28_p1 = scmp.ge.s32.totalorder %s27_s12, 10  ;;  %p190_p2 = scmp.lt.s32.totalorder %s543_s11, 11 }
   0x5   : > { %s615_s12 = smov (%p28_p1, %s27_s12), 0  ;;  %p191_p3 = pnand %p481_p0, %p190_p2 }
   0x6   : > { %p252_p4 = scmp.lt.s32.totalorder (!%p191_p3), %s535_s9, 9  ;;  %p486_p5 = scmp.ne.s32.totalorder (!%p191_p3), %s535_s9, 0 }
   0x7   : > { %194 = sbr.rel (%p191_p3) target bundleno = 59 (0x3b), region = 28 }
   0xc   : > { %s253_s13 = scalar_select %p252_p4, %s535_s9, 9 }
   0xd   : > { %302 = sbr.rel (%p486_p5) target bundleno = 20 (0x14), region = 32 }
   0xe   : > { %s492_s14 = sshll.u32 %s253_s13, 2 }
   0xf   : > { %s265_s17 = scalar_lea.vmem %s609_s0, %s492_s14  ;;  %s283_s20 = scalar_lea.vmem %s610_s1, %s492_s14 }
  0x12   : > { %v545_v0 = vmov 0.0  }
  0x13   : > { %303 = vst [vmem:[%s611_s2] sm:$0xf] %v545_v0 }
  0x14 PF: > { %v304_v1 = vld [vmem:[%s265_s17] sm:$0xf]  ;;  %p487_p6 = scmp.ne.s32.totalorder %s535_s9, 9 }
  0x15   : > { %v305_v2 = vld [vmem:[%s283_s20] sm:$0xf]  ;;  %v307_v3 = vmul.f32 %v304_v1, %v304_v1 }
  0x16   : > { %v308_v4 = vmul.f32 %v305_v2, %v305_v2 }
  0x18   : > { %v309_v6 = vadd.f32 %v308_v4, %v307_v3 }
  0x19   : > { %315 = sbr.rel (%p487_p6) target bundleno = 59 (0x3b), region = 36 }
  0x1a   : > { %v306_v5 = vld [vmem:[%s611_s2] sm:$0xf] }
  0x1b   : > { %v310_v7 = vadd.f32 %v309_v6, %v306_v5 }
  0x1d   : > { %311 = vst [vmem:[%s611_s2] sm:$0xf] %v310_v7 }
  0x24   : > { %v316_v8 = vld [vmem:[%s611_s2] sm:$0xf] }
  0x25   : > { %519 = vrsqrt.f32 %v316_v8  ;;  %vm324_vm0 = vcmp.eq.f32.partialorder %v316_v8, inf  ;;  %v327_v15 = vand.u32 2147483648, %v316_v8  ;;  %vm326_vm1 = vcmp.eq.f32.partialorder %v316_v8, 0.0 }
  0x2b   : > { %v520_v9 = vpop.eup %519 }
  0x2c   : > { %v318_v10 = vmul.f32 %v520_v9, %v316_v8 }
  0x2e   : > { %v319_v11 = vmul.f32 %v520_v9, %v318_v10 }
  0x30   : > { %v320_v12 = vmul.f32 0.5, %v319_v11 }
  0x32   : > { %v321_v13 = vsub.f32 1.5, %v320_v12 }
  0x34   : > { %v322_v14 = vmul.f32 %v520_v9, %v321_v13 }
  0x36   : > { %v323_v16 = vmul.f32 %v322_v14, %v316_v8 }
  0x38   : > { %v325_v17 = vsel %vm324_vm0, %v316_v8, %v323_v16 }
  0x39   : > { %v328_v18 = vsel %vm326_vm1, %v327_v15, %v325_v17 }
  0x3a   : > { %329 = vst [vmem:[%s611_s2] sm:$0xf] %v328_v18 }
  0x3b PF: > { %s12_s11 = sadd.s32 1, %s543_s11   ;;  %s612_s9 = smov %s539_s10 }
  0x3c   : > { %p9_p7 = scmp.ge.s32.totalorder %s12_s11, 12   ;;  %s613_s10 = smov %s615_s12 }
  0x3e   :  { %11 = sbr.rel (!%p9_p7) target bundleno = 2 (0x2), region = 69 }

// kernel: custom-call.3
= control target key start
LH: loop header
LB: loop body
LE: loop exit
PB: predicated region body
PF: predicated region fallthrough
CT: control target
= control target key end

     0   :  { %s105_s0 = inlined_call_operand.vmem [shape: f32[1,10,1,16,16], index: 0, kind: input, shape index: {}]   ;;  %s106_s1 = inlined_call_operand.vmem [shape: f32[1,10,1,16,16], index: 1, kind: input, shape index: {}]   ;;  %s107_s2 = inlined_call_operand.hbm [shape: c64[1,10,1,16,16], index: 2, kind: output, shape index: {}]  }
   0x1   :  { %s3_s11 = scalar_lea.hbm %s107_s2, 160 }
   0x2   :  { %4 = vsyncpa [#allocation0], 0  ;;  %s6_s14 = sshll.u32 %s105_s0, 4  ;;  %s8_s17 = sshll.u32 %s107_s2, 4  ;;  %s7_s14 = int_to_ptr.vmem [resolvable:$true] %s6_s14  ;;  %s9_s17 = int_to_ptr.hbm [resolvable:$true] %s8_s17 }
   0x3   :  { %11 = dma.vmem_to_hbm [thread:$0]  %s7_s14, 2560, %s9_s17, [#allocation0] }
   0x4   :  { %74 = dma.done.wait [#allocation0], 2560  }
   0x5   :  { %75 = vsyncadd [#allocation0], 4294964736 }
   0x6   :  { %14 = vsyncpa [#allocation0], 1 }
   0x7   :  { %15 = vsyncpa [#allocation1], 0  ;;  %s17_s20 = sshll.u32 %s106_s1, 4  ;;  %s19_s21 = sshll.u32 %s3_s11, 4  ;;  %s18_s20 = int_to_ptr.vmem [resolvable:$true] %s17_s20  ;;  %s20_s21 = int_to_ptr.hbm [resolvable:$true] %s19_s21 }
   0x8   :  { %22 = dma.vmem_to_hbm [thread:$0]  %s18_s20, 2560, %s20_s21, [#allocation1] }
   0x9   :  { %76 = dma.done.wait [#allocation1], 2560  }
   0xa   :  { %77 = vsyncadd [#allocation1], 4294964736 }
   0xb   :  { %25 = vsyncpa [#allocation1], 1 }

</bundles_post_ra>
